<compile_context>
chip_gen: v7x
topology: tpu7x:2x2x1
jax: 0.10.0
libtpu: 0.0.40
codegen_flags: <defaults>
</compile_context>

<pallas_src>
import jax
import jax.numpy as jnp
from jax.experimental import pallas as pl
from jax.experimental.pallas import tpu as pltpu

NUM_CLASSES = 10
IMG_FEATURES = 28 * 28                      # 784
IN_FEATURES = IMG_FEATURES + NUM_CLASSES    # 794
EMB_PAD = 16                                # label-feature dim padded 10 -> 16
H1, H2, H3, OUT = 1024, 512, 256, 1


def _round_up(a, m):
    return (a + m - 1) // m * m


def _disc_kernel(x_ref, e_ref, w1x_ref, w1l_ref, b1_ref, w2_ref, b2_ref,
                 w3_ref, b3_ref, w4_ref, b4_ref, o_ref):
    """One TB-row tile of the discriminator MLP; weights are VMEM-resident."""

    def leaky_relu(h):
        return jnp.where(h > 0, h, 0.2 * h)

    # Layer 1 (794 -> 1024), split as image path (K=784, bf16 MXU) plus
    # label-embedding path (K=16, f32) against the resident W1 slices.
    h = jnp.dot(x_ref[...], w1x_ref[...], preferred_element_type=jnp.float32)
    h = h + jnp.dot(e_ref[...], w1l_ref[...], preferred_element_type=jnp.float32)
    h = leaky_relu(h + b1_ref[...])
    # Dropout(p=0.3) -> identity in eval mode.

    # Layer 2 (1024 -> 512)
    h = jnp.dot(h.astype(jnp.bfloat16), w2_ref[...],
                preferred_element_type=jnp.float32)
    h = leaky_relu(h + b2_ref[...])

    # Layer 3 (512 -> 256)
    h = jnp.dot(h.astype(jnp.bfloat16), w3_ref[...],
                preferred_element_type=jnp.float32)
    h = leaky_relu(h + b3_ref[...])

    # Layer 4 (256 -> 1): VPU multiply + lane reduction; b4 scalar from SMEM.
    logit = jnp.sum(h * w4_ref[...], axis=-1, keepdims=True) + b4_ref[0, 0]
    o_ref[...] = jax.nn.sigmoid(logit)


def prepare_params(params):
    """Convert (in,out)-layout f32 params into the kernel layout:
    bf16 image matmul weights, f32 label slice of W1 (padded 10->16 rows),
    padded embedding table, w4 as a row vector, b4 as an SMEM scalar."""
    w1 = params["w1"]                                        # (794, 1024) f32
    w1_label = w1[IMG_FEATURES:]                             # (10, 1024)
    w1_label = jnp.pad(w1_label, ((0, EMB_PAD - NUM_CLASSES), (0, 0)))
    emb_pad = jnp.pad(params["emb"], ((0, 0), (0, EMB_PAD - NUM_CLASSES)))
    return dict(
        emb_pad=emb_pad.astype(jnp.float32),                 # (10, 16)
        w1x=w1[:IMG_FEATURES].astype(jnp.bfloat16),          # (784, 1024)
        w1l=w1_label.astype(jnp.float32),                    # (16, 1024)
        b1=params["b1"].astype(jnp.float32),                 # (1, 1024)
        w2=params["w2"].astype(jnp.bfloat16),                # (1024, 512)
        b2=params["b2"].astype(jnp.float32),
        w3=params["w3"].astype(jnp.bfloat16),                # (512, 256)
        b3=params["b3"].astype(jnp.float32),
        w4=params["w4"].reshape(1, H3).astype(jnp.float32),  # (1, 256) row
        b4=params["b4"].reshape(1, 1).astype(jnp.float32),   # SMEM scalar
    )


def discriminator_forward(x, labels, kparams, *, max_tile=512):
    """x: (B, 1, 28, 28) float, labels: (B,) int32, kparams from prepare_params."""
    B = x.shape[0]
    x_flat = x.reshape(B, -1).astype(jnp.bfloat16)                 # (B, 784)
    emb_rows = jnp.take(kparams["emb_pad"], labels, axis=0)        # (B, 16) f32

    # Batch tile: multiple of 128 so stores are unmasked sublane-wise, capped
    # so double-buffered activations + resident weights fit VMEM everywhere.
    tb = min(max_tile, _round_up(max(B, 8), 128))
    n_tiles = pl.cdiv(B, tb)
    b_pad = n_tiles * tb
    if b_pad != B:
        pad = b_pad - B
        x_flat = jnp.pad(x_flat, ((0, pad), (0, 0)))
        emb_rows = jnp.pad(emb_rows, ((0, pad), (0, 0)))

    row = lambda i: (i, 0)        # activation stream: new block per grid step
    resident = lambda i: (0, 0)   # weights/biases: same block every step (no re-DMA)

    weight_bytes = sum(
        kparams[k].size * kparams[k].dtype.itemsize
        for k in ("w1x", "w1l", "b1", "w2", "b2", "w3", "b3", "w4", "b4"))
    cost = pl.CostEstimate(
        flops=2 * b_pad * (IMG_FEATURES * H1 + EMB_PAD * H1
                           + H1 * H2 + H2 * H3 + H3 * OUT),
        transcendentals=b_pad,                                     # sigmoid
        bytes_accessed=(weight_bytes + x_flat.size * 2 + emb_rows.size * 4
                        + b_pad * OUT * 4))

    out = pl.pallas_call(
        _disc_kernel,
        out_shape=jax.ShapeDtypeStruct((b_pad, OUT), jnp.float32),
        grid=(n_tiles,),
        in_specs=[
            pl.BlockSpec((tb, IMG_FEATURES), row),                 # x tile (bf16)
            pl.BlockSpec((tb, EMB_PAD), row),                      # label emb tile (f32)
            pl.BlockSpec((IMG_FEATURES, H1), resident),            # w1 image slice (bf16)
            pl.BlockSpec((EMB_PAD, H1), resident),                 # w1 label slice (f32)
            pl.BlockSpec((1, H1), resident),                       # b1
            pl.BlockSpec((H1, H2), resident),                      # w2 (bf16)
            pl.BlockSpec((1, H2), resident),                       # b2
            pl.BlockSpec((H2, H3), resident),                      # w3 (bf16)
            pl.BlockSpec((1, H3), resident),                       # b3
            pl.BlockSpec((1, H3), resident),                       # w4 row (f32)
            pl.BlockSpec(memory_space=pltpu.MemorySpace.SMEM),     # b4 scalar
        ],
        out_specs=pl.BlockSpec((tb, OUT), row),
        compiler_params=pltpu.CompilerParams(
            dimension_semantics=("parallel",),                     # 2 TCs on v7x
            vmem_limit_bytes=40 * 1024 * 1024),
        cost_estimate=cost,
    )(
        x_flat, emb_rows,
        kparams["w1x"], kparams["w1l"], kparams["b1"],
        kparams["w2"], kparams["b2"],
        kparams["w3"], kparams["b3"],
        kparams["w4"], kparams["b4"],
    )
    return out[:B]


def discriminator_reference(x, labels, params):
    """Pure-JAX f32 reference mirroring the PyTorch module (eval mode)."""
    B = x.shape[0]
    x_flat = x.reshape(B, -1)
    emb = jnp.take(params["emb"], labels, axis=0)
    h = jnp.concatenate([x_flat, emb], axis=1)
    h = jnp.dot(h, params["w1"]) + params["b1"]
    h = jnp.where(h > 0, h, 0.2 * h)
    h = jnp.dot(h, params["w2"]) + params["b2"]
    h = jnp.where(h > 0, h, 0.2 * h)
    h = jnp.dot(h, params["w3"]) + params["b3"]
    h = jnp.where(h > 0, h, 0.2 * h)
    h = jnp.dot(h, params["w4"]) + params["b4"]
    return jax.nn.sigmoid(h)


def init_params(key, num_classes=NUM_CLASSES):
    """Deterministic init mirroring PyTorch shapes (weights stored as (in, out))."""
    ks = jax.random.split(key, 9)

    def linear(kw, kb, fan_in, fan_out):
        bound = 1.0 / jnp.sqrt(fan_in)
        w = jax.random.uniform(kw, (fan_in, fan_out), jnp.float32, -bound, bound)
        b = jax.random.uniform(kb, (1, fan_out), jnp.float32, -bound, bound)
        return w, b

    emb = jax.random.normal(ks[0], (num_classes, num_classes), jnp.float32)
    w1, b1 = linear(ks[1], ks[2], IN_FEATURES, H1)
    w2, b2 = linear(ks[3], ks[4], H1, H2)
    w3, b3 = linear(ks[5], ks[6], H2, H3)
    w4, b4 = linear(ks[7], ks[8], H3, OUT)
    return dict(emb=emb, w1=w1, b1=b1, w2=w2, b2=b2, w3=w3, b3=b3, w4=w4, b4=b4)


if __name__ == "__main__":
    key = jax.random.PRNGKey(0)
    k_param, k_x, k_lbl = jax.random.split(key, 3)

    params = init_params(k_param)
    kparams = prepare_params(params)

    B = 4
    x = jax.random.normal(k_x, (B, 1, 28, 28), jnp.float32)        # NCHW MNIST-like
    labels = jax.random.randint(k_lbl, (B,), 0, NUM_CLASSES, jnp.int32)

    out = discriminator_forward(x, labels, kparams)
    out = jax.block_until_ready(out)

    ref = discriminator_reference(x, labels, params)

    assert out.shape == (B, OUT)
    assert bool(jnp.all((out >= 0.0) & (out <= 1.0)))
    assert bool(jnp.all(jnp.abs(out - ref) < 5e-2)), "mismatch vs f32 reference"
    print("KERNEL_OK")
</pallas_src>

<mosaic_0001>
module attributes {stable_mosaic.version = 11 : i64} {
  func.func @_disc_kernel(%arg0: i32, %arg1: memref<128x784xbf16, #tpu.memory_space<vmem>>, %arg2: memref<128x16xf32, #tpu.memory_space<vmem>>, %arg3: memref<784x1024xbf16, #tpu.memory_space<vmem>>, %arg4: memref<16x1024xf32, #tpu.memory_space<vmem>>, %arg5: memref<1x1024xf32, #tpu.memory_space<vmem>>, %arg6: memref<1024x512xbf16, #tpu.memory_space<vmem>>, %arg7: memref<1x512xf32, #tpu.memory_space<vmem>>, %arg8: memref<512x256xbf16, #tpu.memory_space<vmem>>, %arg9: memref<1x256xf32, #tpu.memory_space<vmem>>, %arg10: memref<1x256xf32, #tpu.memory_space<vmem>>, %arg11: memref<1x1xf32, #tpu.memory_space<smem>>, %arg12: memref<128x1xf32, #tpu.memory_space<vmem>>) attributes {dimension_semantics = [#tpu.dimension_semantics<parallel>], iteration_bounds = array<i64: 1>, scalar_prefetch = 0 : i64, scratch_operands = 0 : i64, tpu.core_type = #tpu.core_type<tc>, window_params = [{transform_indices = @transform_0, window_bounds = array<i64: 128, 784>}, {transform_indices = @transform_1, window_bounds = array<i64: 128, 16>}, {pipeline_mode = #tpu.pipeline_mode<synchronous>, transform_indices = @transform_2, window_bounds = array<i64: 784, 1024>}, {pipeline_mode = #tpu.pipeline_mode<synchronous>, transform_indices = @transform_3, window_bounds = array<i64: 16, 1024>}, {pipeline_mode = #tpu.pipeline_mode<synchronous>, transform_indices = @transform_4, window_bounds = array<i64: 1, 1024>}, {pipeline_mode = #tpu.pipeline_mode<synchronous>, transform_indices = @transform_5, window_bounds = array<i64: 1024, 512>}, {pipeline_mode = #tpu.pipeline_mode<synchronous>, transform_indices = @transform_6, window_bounds = array<i64: 1, 512>}, {pipeline_mode = #tpu.pipeline_mode<synchronous>, transform_indices = @transform_7, window_bounds = array<i64: 512, 256>}, {pipeline_mode = #tpu.pipeline_mode<synchronous>, transform_indices = @transform_8, window_bounds = array<i64: 1, 256>}, {pipeline_mode = #tpu.pipeline_mode<synchronous>, transform_indices = @transform_9, window_bounds = array<i64: 1, 256>}, {transform_indices = @transform_10, window_bounds = array<i64: 1, 1>}, {transform_indices = @transform_11, window_bounds = array<i64: 128, 1>}]} {
    %c0 = arith.constant 0 : index
    %c0_0 = arith.constant 0 : index
    %0 = vector.load %arg1[%c0, %c0_0] : memref<128x784xbf16, #tpu.memory_space<vmem>>, vector<128x784xbf16>
    %c0_1 = arith.constant 0 : index
    %c0_2 = arith.constant 0 : index
    %1 = vector.load %arg3[%c0_1, %c0_2] : memref<784x1024xbf16, #tpu.memory_space<vmem>>, vector<784x1024xbf16>
    %cst = arith.constant dense<0.000000e+00> : vector<128x1024xf32>
    %2 = tpu.matmul %0, %1, %cst {dimension_numbers = #tpu.dot_dimension_numbers<[1], [0], [0], [1], [0, 0, 1, 1], [], []>} : vector<128x784xbf16>, vector<784x1024xbf16>, vector<128x1024xf32> -> vector<128x1024xf32>
    %c0_3 = arith.constant 0 : index
    %c0_4 = arith.constant 0 : index
    %3 = vector.load %arg2[%c0_3, %c0_4] : memref<128x16xf32, #tpu.memory_space<vmem>>, vector<128x16xf32>
    %c0_5 = arith.constant 0 : index
    %c0_6 = arith.constant 0 : index
    %4 = vector.load %arg4[%c0_5, %c0_6] : memref<16x1024xf32, #tpu.memory_space<vmem>>, vector<16x1024xf32>
    %cst_7 = arith.constant dense<0.000000e+00> : vector<128x1024xf32>
    %5 = tpu.matmul %3, %4, %cst_7 {dimension_numbers = #tpu.dot_dimension_numbers<[1], [0], [0], [1], [0, 0, 1, 1], [], []>} : vector<128x16xf32>, vector<16x1024xf32>, vector<128x1024xf32> -> vector<128x1024xf32>
    %6 = arith.addf %2, %5 : vector<128x1024xf32>
    %c0_8 = arith.constant 0 : index
    %c0_9 = arith.constant 0 : index
    %7 = vector.load %arg5[%c0_8, %c0_9] : memref<1x1024xf32, #tpu.memory_space<vmem>>, vector<1x1024xf32>
    %8 = vector.broadcast %7 : vector<1x1024xf32> to vector<128x1024xf32>
    %9 = arith.addf %6, %8 : vector<128x1024xf32>
    %cst_10 = arith.constant 0.000000e+00 : f32
    %10 = vector.broadcast %cst_10 : f32 to vector<128x1024xf32>
    %11 = arith.cmpf ogt, %9, %10 : vector<128x1024xf32>
    %cst_11 = arith.constant 2.000000e-01 : f32
    %12 = vector.broadcast %cst_11 : f32 to vector<128x1024xf32>
    %13 = arith.mulf %12, %9 : vector<128x1024xf32>
    %14 = arith.select %11, %9, %13 : vector<128x1024xi1>, vector<128x1024xf32>
    %15 = arith.truncf %14 : vector<128x1024xf32> to vector<128x1024xbf16>
    %c0_12 = arith.constant 0 : index
    %c0_13 = arith.constant 0 : index
    %16 = vector.load %arg6[%c0_12, %c0_13] : memref<1024x512xbf16, #tpu.memory_space<vmem>>, vector<1024x512xbf16>
    %cst_14 = arith.constant dense<0.000000e+00> : vector<128x512xf32>
    %17 = tpu.matmul %15, %16, %cst_14 {dimension_numbers = #tpu.dot_dimension_numbers<[1], [0], [0], [1], [0, 0, 1, 1], [], []>} : vector<128x1024xbf16>, vector<1024x512xbf16>, vector<128x512xf32> -> vector<128x512xf32>
    %c0_15 = arith.constant 0 : index
    %c0_16 = arith.constant 0 : index
    %18 = vector.load %arg7[%c0_15, %c0_16] : memref<1x512xf32, #tpu.memory_space<vmem>>, vector<1x512xf32>
    %19 = vector.broadcast %18 : vector<1x512xf32> to vector<128x512xf32>
    %20 = arith.addf %17, %19 : vector<128x512xf32>
    %cst_17 = arith.constant 0.000000e+00 : f32
    %21 = vector.broadcast %cst_17 : f32 to vector<128x512xf32>
    %22 = arith.cmpf ogt, %20, %21 : vector<128x512xf32>
    %cst_18 = arith.constant 2.000000e-01 : f32
    %23 = vector.broadcast %cst_18 : f32 to vector<128x512xf32>
    %24 = arith.mulf %23, %20 : vector<128x512xf32>
    %25 = arith.select %22, %20, %24 : vector<128x512xi1>, vector<128x512xf32>
    %26 = arith.truncf %25 : vector<128x512xf32> to vector<128x512xbf16>
    %c0_19 = arith.constant 0 : index
    %c0_20 = arith.constant 0 : index
    %27 = vector.load %arg8[%c0_19, %c0_20] : memref<512x256xbf16, #tpu.memory_space<vmem>>, vector<512x256xbf16>
    %cst_21 = arith.constant dense<0.000000e+00> : vector<128x256xf32>
    %28 = tpu.matmul %26, %27, %cst_21 {dimension_numbers = #tpu.dot_dimension_numbers<[1], [0], [0], [1], [0, 0, 1, 1], [], []>} : vector<128x512xbf16>, vector<512x256xbf16>, vector<128x256xf32> -> vector<128x256xf32>
    %c0_22 = arith.constant 0 : index
    %c0_23 = arith.constant 0 : index
    %29 = vector.load %arg9[%c0_22, %c0_23] : memref<1x256xf32, #tpu.memory_space<vmem>>, vector<1x256xf32>
    %30 = vector.broadcast %29 : vector<1x256xf32> to vector<128x256xf32>
    %31 = arith.addf %28, %30 : vector<128x256xf32>
    %cst_24 = arith.constant 0.000000e+00 : f32
    %32 = vector.broadcast %cst_24 : f32 to vector<128x256xf32>
    %33 = arith.cmpf ogt, %31, %32 : vector<128x256xf32>
    %cst_25 = arith.constant 2.000000e-01 : f32
    %34 = vector.broadcast %cst_25 : f32 to vector<128x256xf32>
    %35 = arith.mulf %34, %31 : vector<128x256xf32>
    %36 = arith.select %33, %31, %35 : vector<128x256xi1>, vector<128x256xf32>
    %c0_26 = arith.constant 0 : index
    %c0_27 = arith.constant 0 : index
    %37 = vector.load %arg10[%c0_26, %c0_27] : memref<1x256xf32, #tpu.memory_space<vmem>>, vector<1x256xf32>
    %38 = vector.broadcast %37 : vector<1x256xf32> to vector<128x256xf32>
    %39 = arith.mulf %36, %38 : vector<128x256xf32>
    %cst_28 = arith.constant dense<0.000000e+00> : vector<128xf32>
    %40 = vector.multi_reduction <add>, %39, %cst_28 [1] : vector<128x256xf32> to vector<128xf32>
    %41 = vector.shape_cast %40 : vector<128xf32> to vector<128x1xf32>
    %c0_29 = arith.constant 0 : index
    %c0_30 = arith.constant 0 : index
    %42 = memref.load %arg11[%c0_29, %c0_30] : memref<1x1xf32, #tpu.memory_space<smem>>
    %43 = vector.broadcast %42 : f32 to vector<128x1xf32>
    %44 = arith.addf %41, %43 : vector<128x1xf32>
    %45 = arith.negf %44 : vector<128x1xf32>
    %46 = math.exp %45 : vector<128x1xf32>
    %cst_31 = arith.constant 1.000000e+00 : f32
    %47 = vector.broadcast %cst_31 : f32 to vector<128x1xf32>
    %48 = arith.addf %47, %46 : vector<128x1xf32>
    %49 = arith.divf %47, %48 : vector<128x1xf32>
    %c0_32 = arith.constant 0 : index
    %c0_33 = arith.constant 0 : index
    %50 = vector.load %arg12[%c0_32, %c0_33] : memref<128x1xf32, #tpu.memory_space<vmem>>, vector<128x1xf32>
    tpu.vector_store %arg12[%c0_32, %c0_33], %49 {strides = array<i32>} : memref<128x1xf32, #tpu.memory_space<vmem>>, vector<128x1xf32>,
    return
  }
  func.func @transform_0(%arg0: i32) -> (i32, i32) {
    %c0_i32 = arith.constant 0 : i32
    %c0_i32_0 = arith.constant 0 : i32
    return %arg0, %c0_i32 : i32, i32
  }
  func.func @transform_1(%arg0: i32) -> (i32, i32) {
    %c0_i32 = arith.constant 0 : i32
    %c0_i32_0 = arith.constant 0 : i32
    return %arg0, %c0_i32 : i32, i32
  }
  func.func @transform_2(%arg0: i32) -> (i32, i32) {
    %c0_i32 = arith.constant 0 : i32
    %c0_i32_0 = arith.constant 0 : i32
    %c0_i32_1 = arith.constant 0 : i32
    return %c0_i32, %c0_i32_0 : i32, i32
  }
  func.func @transform_3(%arg0: i32) -> (i32, i32) {
    %c0_i32 = arith.constant 0 : i32
    %c0_i32_0 = arith.constant 0 : i32
    %c0_i32_1 = arith.constant 0 : i32
    return %c0_i32, %c0_i32_0 : i32, i32
  }
  func.func @transform_4(%arg0: i32) -> (i32, i32) {
    %c0_i32 = arith.constant 0 : i32
    %c0_i32_0 = arith.constant 0 : i32
    %c0_i32_1 = arith.constant 0 : i32
    return %c0_i32, %c0_i32_0 : i32, i32
  }
  func.func @transform_5(%arg0: i32) -> (i32, i32) {
    %c0_i32 = arith.constant 0 : i32
    %c0_i32_0 = arith.constant 0 : i32
    %c0_i32_1 = arith.constant 0 : i32
    return %c0_i32, %c0_i32_0 : i32, i32
  }
  func.func @transform_6(%arg0: i32) -> (i32, i32) {
    %c0_i32 = arith.constant 0 : i32
    %c0_i32_0 = arith.constant 0 : i32
    %c0_i32_1 = arith.constant 0 : i32
    return %c0_i32, %c0_i32_0 : i32, i32
  }
  func.func @transform_7(%arg0: i32) -> (i32, i32) {
    %c0_i32 = arith.constant 0 : i32
    %c0_i32_0 = arith.constant 0 : i32
    %c0_i32_1 = arith.constant 0 : i32
    return %c0_i32, %c0_i32_0 : i32, i32
  }
  func.func @transform_8(%arg0: i32) -> (i32, i32) {
    %c0_i32 = arith.constant 0 : i32
    %c0_i32_0 = arith.constant 0 : i32
    %c0_i32_1 = arith.constant 0 : i32
    return %c0_i32, %c0_i32_0 : i32, i32
  }
  func.func @transform_9(%arg0: i32) -> (i32, i32) {
    %c0_i32 = arith.constant 0 : i32
    %c0_i32_0 = arith.constant 0 : i32
    %c0_i32_1 = arith.constant 0 : i32
    return %c0_i32, %c0_i32_0 : i32, i32
  }
  func.func @transform_10(%arg0: i32) -> (i32, i32) {
    %c0_i32 = arith.constant 0 : i32
    %c0_i32_0 = arith.constant 0 : i32
    %c0_i32_1 = arith.constant 0 : i32
    return %c0_i32, %c0_i32_0 : i32, i32
  }
  func.func @transform_11(%arg0: i32) -> (i32, i32) {
    %c0_i32 = arith.constant 0 : i32
    %c0_i32_0 = arith.constant 0 : i32
    return %arg0, %c0_i32 : i32, i32
  }
}

</mosaic_0001>

<bundles_post_ra>
// kernel: tpu_custom_call.1
= control target key start
LH: loop header
LB: loop body
LE: loop exit
PB: predicated region body
PF: predicated region fallthrough
CT: control target
= control target key end

     0   :  { %17 = vsyncpa [#allocation4], 0  ;;  %s15176_s0 = inlined_call_operand.vmem [shape: bf16[128,784], index: 0, kind: input, shape index: {}]   ;;  %s15177_s1 = inlined_call_operand.vmem [shape: f32[128,16], index: 1, kind: input, shape index: {}]   ;;  %s15178_s2 = inlined_call_operand.hbm [shape: bf16[784,1024], index: 2, kind: input, shape index: {}]   ;;  %s15179_s3 = inlined_call_operand.hbm [shape: f32[16,1024], index: 3, kind: input, shape index: {}]   ;;  %s15180_s4 = inlined_call_operand.hbm [shape: f32[1,1024], index: 4, kind: input, shape index: {}]   ;;  %s15181_s5 = inlined_call_operand.hbm [shape: bf16[1024,512], index: 5, kind: input, shape index: {}]   ;;  %s15182_s6 = inlined_call_operand.hbm [shape: f32[1,512], index: 6, kind: input, shape index: {}]   ;;  %s15183_s7 = inlined_call_operand.hbm [shape: bf16[512,256], index: 7, kind: input, shape index: {}]   ;;  %s15184_s8 = inlined_call_operand.hbm [shape: f32[1,256], index: 8, kind: input, shape index: {}]   ;;  %s15185_s9 = inlined_call_operand.hbm [shape: f32[1,256], index: 9, kind: input, shape index: {}]   ;;  %s15186_s10 = inlined_call_operand.<no memory space> [shape: f32[1,1], index: 10, kind: input, shape index: {}]   ;;  %s15187_s11 = inlined_call_operand.vmem [shape: f32[128,1], index: 11, kind: output, shape index: {}]  }
   0x1   :  { %18 = vsyncpa [#allocation6], 0 }
   0x2   :  { %19 = vsyncpa [#allocation9], 0 }
   0x3   :  { %20 = vsyncpa [#allocation12], 0 }
   0x4   :  { %21 = vsyncpa [#allocation15], 0  ;;  %s12184_s17 = smov [#allocation5]   ;;  %s11998_s21 = scalar_lea.hbm %s15179_s3, 2048 }
   0x5   :  { %s43_s18 = sshll.u32 %s12184_s17, 4  ;;  %p11999_p0 = scmp.ne.s32.totalorder %s15179_s3, %s11998_s21  ;;  %s44_s18 = int_to_ptr.vmem [resolvable:$true] %s43_s18 }
   0x6   :  { %p12002_p1 = scmp.lt.u32.totalorder %s11998_s21, %s15179_s3 }
   0x8   :  { %p12004_p2 = pnand %p12002_p1, %p11999_p0 }
   0xa   :  { %12007 = shalt.err (!%p12004_p2)
}
   0xb   :  { %s12008_s26 = scalar_lea.vmem %s44_s18, 2048  ;;  %p12013_p4 = scmp.lt.s32.totalorder %s44_s18, %s44_s18 }
   0xc   :  { %p12009_p3 = scmp.ne.s32.totalorder %s44_s18, %s12008_s26  ;;  %p12014_p5 = scmp.lt.s32.totalorder %s12008_s26, %s12008_s26 }
   0xe   :  { %p12015_p6 = por %p12014_p5, %p12013_p4 }
  0x10   :  { %p12016_p7 = pnand %p12015_p6, %p12009_p3 }
  0x12   :  { %12019 = shalt.err (!%p12016_p7)
}
  0x13   :  { %s12185_s27 = smov 1024   ;;  %s12186_s28 = smov 64  }
  0x14   :  { %49 = dma.hbm_to_vmem [thread:$0]  %s15179_s3, 2048, %s44_s18, [#allocation6], %s12185_s27, %s12185_s27, %s12186_s28  }
  0x15   :  { %s12187_s12 = smov [#allocation8]   ;;  %s12020_s16 = scalar_lea.hbm %s15181_s5, 32768 }
  0x16   :  { %s65_s13 = sshll.u32 %s12187_s12, 4  ;;  %p12021_p8 = scmp.ne.s32.totalorder %s15181_s5, %s12020_s16  ;;  %s66_s13 = int_to_ptr.vmem [resolvable:$true] %s65_s13 }
  0x17   :  { %p12024_p9 = scmp.lt.u32.totalorder %s12020_s16, %s15181_s5 }
  0x19   :  { %p12026_p10 = pnand %p12024_p9, %p12021_p8 }
  0x1b   :  { %12029 = shalt.err (!%p12026_p10)
}
  0x1c   :  { %s12030_s22 = scalar_lea.vmem %s66_s13, 32768  ;;  %p12035_p12 = scmp.lt.s32.totalorder %s66_s13, %s66_s13 }
  0x1d   :  { %p12031_p11 = scmp.ne.s32.totalorder %s66_s13, %s12030_s22  ;;  %p12036_p13 = scmp.lt.s32.totalorder %s12030_s22, %s12030_s22 }
  0x1f   :  { %p12037_p0 = por %p12036_p13, %p12035_p12 }
  0x21   :  { %p12038_p1 = pnand %p12037_p0, %p12031_p11 }
  0x23   :  { %12041 = shalt.err (!%p12038_p1)
}
  0x24   :  { %s12188_s3 = smov 256   ;;  %s12189_s18 = smov 16  }
  0x25   :  { %71 = dma.hbm_to_vmem [thread:$0]  %s15181_s5, 32768, %s66_s13, [#allocation9], %s12188_s3, %s12188_s3, %s12189_s18  }
  0x26   :  { %s12190_s25 = smov [#allocation11]   ;;  %s12042_s29 = scalar_lea.hbm %s15183_s7, 8192 }
  0x27   :  { %s87_s26 = sshll.u32 %s12190_s25, 4  ;;  %p12043_p2 = scmp.ne.s32.totalorder %s15183_s7, %s12042_s29  ;;  %s88_s26 = int_to_ptr.vmem [resolvable:$true] %s87_s26 }
  0x28   :  { %p12046_p3 = scmp.lt.u32.totalorder %s12042_s29, %s15183_s7 }
  0x2a   :  { %p12048_p4 = pnand %p12046_p3, %p12043_p2 }
  0x2c   :  { %12051 = shalt.err (!%p12048_p4)
}
  0x2d   :  { %s12052_s16 = scalar_lea.vmem %s88_s26, 8192  ;;  %p12057_p6 = scmp.lt.s32.totalorder %s88_s26, %s88_s26 }
  0x2e   :  { %p12053_p5 = scmp.ne.s32.totalorder %s88_s26, %s12052_s16  ;;  %p12058_p7 = scmp.lt.s32.totalorder %s12052_s16, %s12052_s16 }
  0x30   :  { %p12059_p8 = por %p12058_p7, %p12057_p6 }
  0x32   :  { %p12060_p9 = pnand %p12059_p8, %p12053_p5 }
  0x34   :  { %12063 = shalt.err (!%p12060_p9)
}
  0x35   :  { %s12191_s5 = smov 128   ;;  %s12192_s13 = smov 8  }
  0x36   :  { %93 = dma.hbm_to_vmem [thread:$0]  %s15183_s7, 8192, %s88_s26, [#allocation12], %s12191_s5, %s12191_s5, %s12192_s13  }
  0x37   :  { %s12193_s20 = smov [#allocation3]   ;;  %s12064_s18 = scalar_lea.hbm %s15178_s2, 50176 }
  0x38   :  { %s31_s21 = sshll.u32 %s12193_s20, 4  ;;  %p12065_p10 = scmp.ne.s32.totalorder %s15178_s2, %s12064_s18  ;;  %s32_s21 = int_to_ptr.vmem [resolvable:$true] %s31_s21 }
  0x39   :  { %p12068_p11 = scmp.lt.u32.totalorder %s12064_s18, %s15178_s2 }
  0x3b   :  { %p12070_p12 = pnand %p12068_p11, %p12065_p10 }
  0x3d   :  { %12073 = shalt.err (!%p12070_p12)
}
  0x3e   :  { %s12074_s28 = scalar_lea.vmem %s32_s21, 50176  ;;  %p12079_p0 = scmp.lt.s32.totalorder %s32_s21, %s32_s21 }
  0x3f   :  { %p12075_p13 = scmp.ne.s32.totalorder %s32_s21, %s12074_s28  ;;  %p12080_p1 = scmp.lt.s32.totalorder %s12074_s28, %s12074_s28 }
  0x41   :  { %p12081_p2 = por %p12080_p1, %p12079_p0 }
  0x43   :  { %p12082_p3 = pnand %p12081_p2, %p12075_p13 }
  0x45   :  { %12085 = shalt.err (!%p12082_p3)
}
  0x46   :  { %s12194_s7 = smov 512   ;;  %s12195_s26 = smov 32  }
  0x47   :  { %37 = dma.hbm_to_vmem [thread:$0]  %s15178_s2, 50176, %s32_s21, [#allocation4], %s12194_s7, %s12194_s7, %s12195_s26  }
  0x48   :  { %s12196_s12 = smov [#allocation7]   ;;  %s12197_s15 = smov [#allocation10]  }
  0x49   :  { %s56_s14 = sshll.u32 %s12196_s12, 4  ;;  %s78_s16 = sshll.u32 %s12197_s15, 4  ;;  %s57_s14 = int_to_ptr.vmem [resolvable:$true] %s56_s14  ;;  %s79_s16 = int_to_ptr.vmem [resolvable:$true] %s78_s16 }
  0x4a   :  { %s12086_s17 = scalar_lea.hbm %s15180_s4, 128 }
  0x4b   :  { %p12087_p4 = scmp.ne.s32.totalorder %s15180_s4, %s12086_s17  ;;  %p12090_p5 = scmp.lt.u32.totalorder %s12086_s17, %s15180_s4 }
  0x4d   :  { %p12092_p6 = pnand %p12090_p5, %p12087_p4 }
  0x4f   :  { %12095 = shalt.err (!%p12092_p6)
}
  0x50   :  { %s12096_s2 = scalar_lea.vmem %s57_s14, 128  ;;  %p12101_p8 = scmp.lt.s32.totalorder %s57_s14, %s57_s14 }
  0x51   :  { %p12097_p7 = scmp.ne.s32.totalorder %s57_s14, %s12096_s2  ;;  %p12102_p9 = scmp.lt.s32.totalorder %s12096_s2, %s12096_s2 }
  0x53   :  { %p12103_p10 = por %p12102_p9, %p12101_p8 }
  0x55   :  { %p12104_p11 = pnand %p12103_p10, %p12097_p7 }
  0x57   :  { %12107 = shalt.err (!%p12104_p11)
}
  0x58   :  { %59 = dma.hbm_to_vmem [thread:$0]  %s15180_s4, 128, %s57_s14, [#allocation6]  }
  0x59   :  { %s12108_s25 = scalar_lea.hbm %s15182_s6, 64 }
  0x5a   :  { %p12109_p12 = scmp.ne.s32.totalorder %s15182_s6, %s12108_s25  ;;  %p12112_p13 = scmp.lt.u32.totalorder %s12108_s25, %s15182_s6 }
  0x5c   :  { %p12114_p0 = pnand %p12112_p13, %p12109_p12 }
  0x5e   :  { %12117 = shalt.err (!%p12114_p0)
}
  0x5f   :  { %s12118_s29 = scalar_lea.vmem %s79_s16, 64  ;;  %p12123_p2 = scmp.lt.s32.totalorder %s79_s16, %s79_s16 }
  0x60   :  { %p12119_p1 = scmp.ne.s32.totalorder %s79_s16, %s12118_s29  ;;  %p12124_p3 = scmp.lt.s32.totalorder %s12118_s29, %s12118_s29 }
  0x62   :  { %p12125_p4 = por %p12124_p3, %p12123_p2 }
  0x64   :  { %p12126_p5 = pnand %p12125_p4, %p12119_p1 }
  0x66   :  { %12129 = shalt.err (!%p12126_p5)
}
  0x67   :  { %81 = dma.hbm_to_vmem [thread:$0]  %s15182_s6, 64, %s79_s16, [#allocation9]  }
  0x68   :  { %s12198_s12 = smov [#allocation13]   ;;  %s12199_s15 = smov [#allocation14]  }
  0x69   :  { %s100_s14 = sshll.u32 %s12198_s12, 4  ;;  %s110_s5 = sshll.u32 %s12199_s15, 4  ;;  %s101_s14 = int_to_ptr.vmem [resolvable:$true] %s100_s14  ;;  %s111_s5 = int_to_ptr.vmem [resolvable:$true] %s110_s5 }
  0x6a   :  { %s12130_s19 = scalar_lea.hbm %s15184_s8, 32 }
  0x6b   :  { %p12131_p6 = scmp.ne.s32.totalorder %s15184_s8, %s12130_s19  ;;  %p12134_p7 = scmp.lt.u32.totalorder %s12130_s19, %s15184_s8 }
  0x6d   :  { %p12136_p8 = pnand %p12134_p7, %p12131_p6 }
  0x6f   :  { %12139 = shalt.err (!%p12136_p8)
}
  0x70   :  { %s12140_s6 = scalar_lea.vmem %s101_s14, 32  ;;  %p12145_p10 = scmp.lt.s32.totalorder %s101_s14, %s101_s14 }
  0x71   :  { %p12141_p9 = scmp.ne.s32.totalorder %s101_s14, %s12140_s6  ;;  %p12146_p11 = scmp.lt.s32.totalorder %s12140_s6, %s12140_s6 }
  0x73   :  { %p12147_p12 = por %p12146_p11, %p12145_p10 }
  0x75   :  { %p12148_p13 = pnand %p12147_p12, %p12141_p9 }
  0x77   :  { %12151 = shalt.err (!%p12148_p13)
}
  0x78   :  { %103 = dma.hbm_to_vmem [thread:$0]  %s15184_s8, 32, %s101_s14, [#allocation12]  }
  0x79   :  { %s12152_s24 = scalar_lea.hbm %s15185_s9, 32 }
  0x7a   :  { %p12153_p0 = scmp.ne.s32.totalorder %s15185_s9, %s12152_s24  ;;  %p12156_p1 = scmp.lt.u32.totalorder %s12152_s24, %s15185_s9 }
  0x7c   :  { %p12158_p2 = pnand %p12156_p1, %p12153_p0 }
  0x7e   :  { %12161 = shalt.err (!%p12158_p2)
}
  0x7f   :  { %s12162_s26 = scalar_lea.vmem %s111_s5, 32  ;;  %p12167_p4 = scmp.lt.s32.totalorder %s111_s5, %s111_s5 }
  0x80   :  { %p12163_p3 = scmp.ne.s32.totalorder %s111_s5, %s12162_s26  ;;  %p12168_p5 = scmp.lt.s32.totalorder %s12162_s26, %s12162_s26 }
  0x82   :  { %p12169_p6 = por %p12168_p5, %p12167_p4 }
  0x84   :  { %p12170_p7 = pnand %p12169_p6, %p12163_p3 }
  0x86   :  { %12173 = shalt.err (!%p12170_p7)
}
  0x87   :  { %113 = dma.hbm_to_vmem [thread:$0]  %s15185_s9, 32, %s111_s5, [#allocation15]  }
  0x88   :  { %12174 = dma.done.wait [#allocation4], 50176  }
  0x89   :  { %12175 = vsyncadd [#allocation4], 4294917120 }
  0x8a   :  { %12176 = dma.done.wait [#allocation6], 2176  }
  0x8b   :  { %12177 = vsyncadd [#allocation6], 4294965120 }
  0x8c   :  { %12178 = dma.done.wait [#allocation9], 32832  }
  0x8d   :  { %12179 = vsyncadd [#allocation9], 4294934464 }
  0x8e   :  { %12180 = dma.done.wait [#allocation12], 8224  }
  0x8f   :  { %12181 = vsyncadd [#allocation12], 4294959072 }
  0x90   :  { %12182 = dma.done.wait [#allocation15], 32  }
  0x91   :  { %12183 = vsyncadd [#allocation15], 4294967264  ;;  %v12200_v0 = vmov 0.0   ;;  %v614_v1 = vld [vmem:[#allocation5 + $0x8] sm:$0xff]  ;;  %v616_v3 = vld [vmem:[#allocation5 + $0x18] sm:$0xff]  ;;  %vm629_vm0 = vcmask 130048  }
  0x92   :  { %742 = vmatprep.mubr.f32.mxu0 %v12200_v0  ;;  %903 = vmatprep.mubr.f32.mxu1 %v12200_v0  ;;  %v622_v2 = vld [vmem:[#allocation5 + $0x48] sm:$0xff]  ;;  %v624_v5 = vld [vmem:[#allocation5 + $0x58] sm:$0xff]  ;;  %v613_v6 = vld [vmem:[#allocation5] sm:$0xff] }
  0x93   :  { %v10528_v4 = vpack.c.bf16 %v622_v2, %v614_v1  ;;  %v621_v7 = vld [vmem:[#allocation5 + $0x40] sm:$0xff]  ;;  %v10532_v8 = vpack.c.bf16 %v624_v5, %v616_v3  ;;  %v615_v10 = vld [vmem:[#allocation5 + $0x10] sm:$0xff]  ;;  %v618_v13 = vld [vmem:[#allocation5 + $0x28] sm:$0xff] }
  0x94   :  { %v10530_v9 = vpack.c.bf16 %v621_v7, %v613_v6  ;;  %v623_v11 = vld [vmem:[#allocation5 + $0x50] sm:$0xff]  ;;  %v626_v14 = vld [vmem:[#allocation5 + $0x68] sm:$0xff]  ;;  %v617_v15 = vld [vmem:[#allocation5 + $0x20] sm:$0xff] }
  0x95   :  { %10529 = vmatprep.subr.bf16.mxu0 %v10528_v4  ;;  %v10534_v12 = vpack.c.bf16 %v623_v11, %v615_v10  ;;  %10533 = vmatprep.subr.bf16.mxu1 %v10532_v8  ;;  %v12363_v16 = vld [vmem:[%s15177_s1] sm:$0xff]  ;;  %v10536_v17 = vpack.c.bf16 %v626_v14, %v618_v13  ;;  %v12372_v20 = vld [vmem:[%s15177_s1 + $0x8] sm:$0xff]  ;;  %v620_v21 = vld [vmem:[#allocation5 + $0x38] sm:$0xff] }
  0x96   :  { %10531 = vmatpush1.bf16.msra.mxu0 %v10530_v9  ;;  %v625_v18 = vld [vmem:[#allocation5 + $0x60] sm:$0xff]  ;;  %v628_v22 = vld [vmem:[#allocation5 + $0x78] sm:$0xff]  ;;  %v619_v24 = vld [vmem:[#allocation5 + $0x30] sm:$0xff] }
  0x97   :  { %10535 = vmatpush1.bf16.msra.mxu1 %v10534_v12  ;;  %v10538_v19 = vpack.c.bf16 %v625_v18, %v617_v15  ;;  %10537 = vmatprep.subr.bf16.mxu0 %v10536_v17  ;;  %v10540_v23 = vpack.c.bf16 %v628_v22, %v620_v21  ;;  %v627_v25 = vld [vmem:[#allocation5 + $0x70] sm:$0xff]  ;;  %v12376_v26 = vld [vmem:[#allocation3] sm:$0xff]  ;;  %v12407_v34 = vld [vmem:[%s15177_s1 + $0x18] sm:$0xff] }
  0x98   :  { %v10542_v27 = vpack.c.bf16 %v627_v25, %v619_v24  ;;  %v12380_v28 = vld [vmem:[#allocation3 + $0x20] sm:$0xff]  ;;  %v12392_v31 = vld [vmem:[%s15177_s1 + $0x10] sm:$0xff]  ;;  %v12429_v36 = vld [vmem:[%s15177_s1 + $0x28] sm:$0xff] }
  0x99   :  { %9648 = vmatmul.mubr.msk.f32.vlgmr.msra.gmra.mrb[0].mxu0 %vm629_vm0, %v12363_v16  ;;  %v12382_v29 = vld [vmem:[#allocation3 + $0x400] sm:$0xff]  ;;  %v9769_v32 = vcombine.high %v12376_v26, %v12380_v28  ;;  %10541 = vmatprep.subr.bf16.mxu1 %v10540_v23  ;;  %v12440_v37 = vld [vmem:[%s15177_s1 + $0x30] sm:$0xff]  ;;  %v12451_v38 = vld [vmem:[%s15177_s1 + $0x38] sm:$0xff]  ;;  %v9768_v49 = vcombine.low %v12376_v26, %v12380_v28 }
  0x9a   :  { %9664 = vmatmul.mubr.msk.f32.vlgmr.msra.gmra.mrb[0].mxu1 %vm629_vm0, %v12363_v16  ;;  %10539 = vmatpush1.bf16.msra.mxu0 %v10538_v19  ;;  %v12384_v30 = vld [vmem:[#allocation3 + $0x420] sm:$0xff]  ;;  %v12473_v40 = vld [vmem:[%s15177_s1 + $0x48] sm:$0xff]  ;;  %v12484_v41 = vld [vmem:[%s15177_s1 + $0x50] sm:$0xff] }
  0x9b   :  { %748 = vmatprep.mubr.f32.mxu0 %v12200_v0  ;;  %909 = vmatprep.mubr.f32.mxu1 %v12200_v0  ;;  %v9897_v33 = vcombine.high %v12382_v29, %v12384_v30  ;;  %v12418_v35 = vld [vmem:[%s15177_s1 + $0x20] sm:$0xff]  ;;  %v12495_v42 = vld [vmem:[%s15177_s1 + $0x58] sm:$0xff]  ;;  %v12517_v44 = vld [vmem:[%s15177_s1 + $0x68] sm:$0xff]  ;;  %v9896_v52 = vcombine.low %v12382_v29, %v12384_v30 }
  0x9c   :  { %10543 = vmatpush1.bf16.msra.mxu1 %v10542_v27  ;;  %3586 = vmatprep.subr.bf16.mxu0 %v9769_v32  ;;  %v12462_v39 = vld [vmem:[%s15177_s1 + $0x40] sm:$0xff]  ;;  %v12528_v45 = vld [vmem:[%s15177_s1 + $0x70] sm:$0xff]  ;;  %v12539_v46 = vld [vmem:[%s15177_s1 + $0x78] sm:$0xff] }
  0x9d   :  { %9649 = vmatmul.mubr.msk.f32.gmra.mrb[2].mxu0 %vm629_vm0, %v12372_v20  ;;  %3699 = vmatprep.subr.bf16.mxu1 %v9897_v33  ;;  %v12506_v43 = vld [vmem:[%s15177_s1 + $0x60] sm:$0xff] }
  0x9e   :  { %9665 = vmatmul.mubr.msk.f32.gmra.mrb[2].mxu1 %vm629_vm0, %v12372_v20  ;;  %754 = vmatprep.mubr.f32.mxu0 %v12200_v0  ;;  %v213_v47 = vld [vmem:[#allocation3 + $0x40] sm:$0xff] }
  0x9f   :  { %915 = vmatprep.mubr.f32.mxu1 %v12200_v0  ;;  %v217_v48 = vld [vmem:[#allocation3 + $0x60] sm:$0xff] }
  0xa0   :  { %v341_v50 = vld [vmem:[#allocation3 + $0x440] sm:$0xff]  ;;  %v9777_v53 = vcombine.high %v213_v47, %v217_v48  ;;  %v9776_v57 = vcombine.low %v213_v47, %v217_v48 }
  0xa1   :  { %9650 = vmatmul.mubr.msk.f32.gmra.mrb[4].mxu0 %vm629_vm0, %v12392_v31  ;;  %v345_v51 = vld [vmem:[#allocation3 + $0x460] sm:$0xff] }
  0xa2   :  { %9666 = vmatmul.mubr.msk.f32.gmra.mrb[4].mxu1 %vm629_vm0, %v12392_v31  ;;  %760 = vmatprep.mubr.f32.mxu0 %v12200_v0  ;;  %v9905_v54 = vcombine.high %v341_v50, %v345_v51  ;;  %v221_v55 = vld [vmem:[#allocation3 + $0x80] sm:$0xff]  ;;  %v9904_v60 = vcombine.low %v341_v50, %v345_v51 }
  0xa3   :  { %921 = vmatprep.mubr.f32.mxu1 %v12200_v0  ;;  %v225_v56 = vld [vmem:[#allocation3 + $0xa0] sm:$0xff] }
  0xa4   :  { %v349_v58 = vld [vmem:[#allocation3 + $0x480] sm:$0xff]  ;;  %v9785_v61 = vcombine.high %v221_v55, %v225_v56  ;;  %v9784_v2 = vcombine.low %v221_v55, %v225_v56 }
  0xa5   :  { %9651 = vmatmul.mubr.msk.f32.gmra.mrb[6].mxu0 %vm629_vm0, %v12407_v34  ;;  %v353_v59 = vld [vmem:[#allocation3 + $0x4a0] sm:$0xff] }
  0xa6   :  { %9667 = vmatmul.mubr.msk.f32.gmra.mrb[6].mxu1 %vm629_vm0, %v12407_v34  ;;  %766 = vmatprep.mubr.f32.mxu0 %v12200_v0  ;;  %v9913_v62 = vcombine.high %v349_v58, %v353_v59  ;;  %v229_v63 = vld [vmem:[#allocation3 + $0xc0] sm:$0xff]  ;;  %v9912_v5 = vcombine.low %v349_v58, %v353_v59 }
  0xa7   :  { %927 = vmatprep.mubr.f32.mxu1 %v12200_v0  ;;  %v233_v1 = vld [vmem:[#allocation3 + $0xe0] sm:$0xff] }
  0xa8   :  { %v357_v3 = vld [vmem:[#allocation3 + $0x4c0] sm:$0xff]  ;;  %v9793_v6 = vcombine.high %v229_v63, %v233_v1  ;;  %v9792_v10 = vcombine.low %v229_v63, %v233_v1 }
  0xa9   :  { %9652 = vmatmul.mubr.msk.f32.gmra.mrb[8].mxu0 %vm629_vm0, %v12418_v35  ;;  %v361_v4 = vld [vmem:[#allocation3 + $0x4e0] sm:$0xff] }
  0xaa   :  { %9668 = vmatmul.mubr.msk.f32.gmra.mrb[8].mxu1 %vm629_vm0, %v12418_v35  ;;  %772 = vmatprep.mubr.f32.mxu0 %v12200_v0  ;;  %v237_v7 = vld [vmem:[#allocation3 + $0x100] sm:$0xff]  ;;  %v9921_v8 = vcombine.high %v357_v3, %v361_v4  ;;  %v9920_v13 = vcombine.low %v357_v3, %v361_v4 }
  0xab   :  { %933 = vmatprep.mubr.f32.mxu1 %v12200_v0  ;;  %v241_v9 = vld [vmem:[#allocation3 + $0x120] sm:$0xff] }
  0xac   :  { %v365_v11 = vld [vmem:[#allocation3 + $0x500] sm:$0xff]  ;;  %v9800_v18 = vcombine.low %v237_v7, %v241_v9 }
  0xad   :  { %9653 = vmatmul.mubr.msk.f32.gmra.mrb[10].mxu0 %vm629_vm0, %v12429_v36  ;;  %v369_v12 = vld [vmem:[#allocation3 + $0x520] sm:$0xff] }
  0xae   :  { %9669 = vmatmul.mubr.msk.f32.gmra.mrb[10].mxu1 %vm629_vm0, %v12429_v36  ;;  %778 = vmatprep.mubr.f32.mxu0 %v12200_v0  ;;  %v245_v14 = vld [vmem:[#allocation3 + $0x140] sm:$0xff]  ;;  %v9929_v17 = vcombine.high %v365_v11, %v369_v12  ;;  %v9928_v21 = vcombine.low %v365_v11, %v369_v12 }
  0xaf   :  { %939 = vmatprep.mubr.f32.mxu1 %v12200_v0  ;;  %v249_v15 = vld [vmem:[#allocation3 + $0x160] sm:$0xff] }
  0xb0   :  { %v373_v19 = vld [vmem:[#allocation3 + $0x540] sm:$0xff]  ;;  %v9809_v24 = vcombine.high %v245_v14, %v249_v15  ;;  %v9808_v28 = vcombine.low %v245_v14, %v249_v15 }
  0xb1   :  { %9654 = vmatmul.mubr.msk.f32.gmra.mrb[12].mxu0 %vm629_vm0, %v12440_v37  ;;  %v253_v22 = vld [vmem:[#allocation3 + $0x180] sm:$0xff] }
  0xb2   :  { %9670 = vmatmul.mubr.msk.f32.gmra.mrb[12].mxu1 %vm629_vm0, %v12440_v37  ;;  %784 = vmatprep.mubr.f32.mxu0 %v12200_v0  ;;  %v257_v23 = vld [vmem:[#allocation3 + $0x1a0] sm:$0xff] }
  0xb3   :  { %945 = vmatprep.mubr.f32.mxu1 %v12200_v0  ;;  %v381_v25 = vld [vmem:[#allocation3 + $0x580] sm:$0xff]  ;;  %v9817_v32 = vcombine.high %v253_v22, %v257_v23 }
  0xb4   :  { %v385_v26 = vld [vmem:[#allocation3 + $0x5a0] sm:$0xff] }
  0xb5   :  { %9655 = vmatmul.mubr.msk.f32.gmra.mrb[14].mxu0 %vm629_vm0, %v12451_v38  ;;  %v261_v30 = vld [vmem:[#allocation3 + $0x1c0] sm:$0xff]  ;;  %v9945_v47 = vcombine.high %v381_v25, %v385_v26  ;;  %v9944_v48 = vcombine.low %v381_v25, %v385_v26 }
  0xb6   :  { %9671 = vmatmul.mubr.msk.f32.gmra.mrb[14].mxu1 %vm629_vm0, %v12451_v38  ;;  %790 = vmatprep.mubr.f32.mxu0 %v12200_v0  ;;  %v389_v33 = vld [vmem:[#allocation3 + $0x5c0] sm:$0xff] }
  0xb7   :  { %951 = vmatprep.mubr.f32.mxu1 %v12200_v0  ;;  %v273_v50 = vld [vmem:[#allocation3 + $0x220] sm:$0xff] }
  0xb8   :  { %v277_v56 = vld [vmem:[#allocation3 + $0x240] sm:$0xff] }
  0xb9   :  { %9656 = vmatmul.mubr.msk.f32.gmra.mrb[16].mxu0 %vm629_vm0, %v12462_v39  ;;  %v405_v59 = vld [vmem:[#allocation3 + $0x640] sm:$0xff] }
  0xba   :  { %9672 = vmatmul.mubr.msk.f32.gmra.mrb[16].mxu1 %vm629_vm0, %v12462_v39  ;;  %796 = vmatprep.mubr.f32.mxu0 %v12200_v0  ;;  %v285_v63 = vld [vmem:[#allocation3 + $0x280] sm:$0xff] }
  0xbb   :  { %957 = vmatprep.mubr.f32.mxu1 %v12200_v0  ;;  %v289_v1 = vld [vmem:[#allocation3 + $0x2a0] sm:$0xff] }
  0xbc   :  { %v413_v3 = vld [vmem:[#allocation3 + $0x680] sm:$0xff] }
  0xbd   :  { %9657 = vmatmul.mubr.msk.f32.gmra.mrb[18].mxu0 %vm629_vm0, %v12473_v40  ;;  %v417_v4 = vld [vmem:[#allocation3 + $0x6a0] sm:$0xff] }
  0xbe   :  { %9673 = vmatmul.mubr.msk.f32.gmra.mrb[18].mxu1 %vm629_vm0, %v12473_v40  ;;  %802 = vmatprep.mubr.f32.mxu0 %v12200_v0  ;;  %v425_v11 = vld [vmem:[#allocation3 + $0x6e0] sm:$0xff]  ;;  %v9977_v12 = vcombine.high %v413_v3, %v417_v4 }
  0xbf   :  { %963 = vmatprep.mubr.f32.mxu1 %v12200_v0  ;;  %v301_v14 = vld [vmem:[#allocation3 + $0x300] sm:$0xff] }
  0xc0   :  { %v305_v15 = vld [vmem:[#allocation3 + $0x320] sm:$0xff] }
  0xc1   :  { %9658 = vmatmul.mubr.msk.f32.gmra.mrb[20].mxu0 %vm629_vm0, %v12484_v41  ;;  %v441_v25 = vld [vmem:[#allocation3 + $0x760] sm:$0xff] }
  0xc2   :  { %9674 = vmatmul.mubr.msk.f32.gmra.mrb[20].mxu1 %vm629_vm0, %v12484_v41  ;;  %808 = vmatprep.mubr.f32.mxu0 %v12200_v0 }
  0xc3   :  { %969 = vmatprep.mubr.f32.mxu1 %v12200_v0 }
  0xc5   :  { %9659 = vmatmul.mubr.msk.f32.gmra.mrb[22].mxu0 %vm629_vm0, %v12495_v42 }
  0xc6   :  { %9675 = vmatmul.mubr.msk.f32.gmra.mrb[22].mxu1 %vm629_vm0, %v12495_v42  ;;  %814 = vmatprep.mubr.f32.mxu0 %v12200_v0 }
  0xc7   :  { %975 = vmatprep.mubr.f32.mxu1 %v12200_v0 }
  0xc9   :  { %9660 = vmatmul.mubr.msk.f32.gmra.mrb[24].mxu0 %vm629_vm0, %v12506_v43 }
  0xca   :  { %9676 = vmatmul.mubr.msk.f32.gmra.mrb[24].mxu1 %vm629_vm0, %v12506_v43  ;;  %820 = vmatprep.mubr.f32.mxu0 %v12200_v0 }
  0xcb   :  { %981 = vmatprep.mubr.f32.mxu1 %v12200_v0 }
  0xcd   :  { %9661 = vmatmul.mubr.msk.f32.gmra.mrb[26].mxu0 %vm629_vm0, %v12517_v44 }
  0xce   :  { %9677 = vmatmul.mubr.msk.f32.gmra.mrb[26].mxu1 %vm629_vm0, %v12517_v44  ;;  %826 = vmatprep.mubr.f32.mxu0 %v12200_v0 }
  0xcf   :  { %987 = vmatprep.mubr.f32.mxu1 %v12200_v0 }
  0xd1   :  { %9662 = vmatmul.mubr.msk.f32.gmra.mrb[28].mxu0 %vm629_vm0, %v12528_v45 }
  0xd2   :  { %9678 = vmatmul.mubr.msk.f32.gmra.mrb[28].mxu1 %vm629_vm0, %v12528_v45  ;;  %832 = vmatprep.mubr.f32.mxu0 %v12200_v0 }
  0xd3   :  { %993 = vmatprep.mubr.f32.mxu1 %v12200_v0 }
  0xd5   :  { %9663 = vmatmul.mubr.msk.f32.gmra.mrb[30].mxu0 %vm629_vm0, %v12539_v46 }
  0xd6   :  { %9679 = vmatmul.mubr.msk.f32.gmra.mrb[30].mxu1 %vm629_vm0, %v12539_v46  ;;  %1064 = vmatprep.mubr.f32.mxu0 %v12200_v0 }
  0xd7   :  { %1225 = vmatprep.mubr.f32.mxu1 %v12200_v0 }
  0xd9   :  { %9680 = vmatmul.mubr.msk.f32.vlgmr.msra.gmra.mrb[32].mxu0 %vm629_vm0, %v12363_v16 }
  0xda   :  { %9696 = vmatmul.mubr.msk.f32.vlgmr.msra.gmra.mrb[32].mxu1 %vm629_vm0, %v12363_v16  ;;  %3587 = vmatpush1.bf16.msra.mxu0 %v9768_v49  ;;  %v9801_v16 = vcombine.high %v237_v7, %v241_v9  ;;  %v269_v49 = vld [vmem:[#allocation3 + $0x200] sm:$0xff]  ;;  %v9849_v9 = vcombine.high %v285_v63, %v289_v1 }
  0xdb   :  { %3700 = vmatpush1.bf16.msra.mxu1 %v9896_v52  ;;  %1070 = vmatprep.mubr.f32.mxu0 %v12200_v0  ;;  %v397_v52 = vld [vmem:[#allocation3 + $0x600] sm:$0xff]  ;;  %v9833_v58 = vcombine.high %v269_v49, %v273_v50 }
  0xdc   :  { %1231 = vmatprep.mubr.f32.mxu1 %v12200_v0  ;;  %3588 = vmatprep.subr.bf16.mxu0 %v9777_v53  ;;  %v401_v53 = vld [vmem:[#allocation3 + $0x620] sm:$0xff] }
  0xdd   :  { %9681 = vmatmul.mubr.msk.f32.gmra.mrb[34].mxu0 %vm629_vm0, %v12372_v20  ;;  %3701 = vmatprep.subr.bf16.mxu1 %v9905_v54  ;;  %v293_v7 = vld [vmem:[#allocation3 + $0x2c0] sm:$0xff] }
  0xde   :  { %9697 = vmatmul.mubr.msk.f32.gmra.mrb[34].mxu1 %vm629_vm0, %v12372_v20  ;;  %3589 = vmatpush1.bf16.msra.mxu0 %v9776_v57  ;;  %v377_v20 = vld [vmem:[#allocation3 + $0x560] sm:$0xff] }
  0xdf   :  { %3702 = vmatpush1.bf16.msra.mxu1 %v9904_v60  ;;  %1076 = vmatprep.mubr.f32.mxu0 %v12200_v0  ;;  %v9937_v27 = vcombine.high %v373_v19, %v377_v20  ;;  %v9936_v29 = vcombine.low %v373_v19, %v377_v20  ;;  %v281_v57 = vld [vmem:[#allocation3 + $0x260] sm:$0xff] }
  0xe0   :  { %1237 = vmatprep.mubr.f32.mxu1 %v12200_v0  ;;  %3590 = vmatprep.subr.bf16.mxu0 %v9785_v61  ;;  %v409_v60 = vld [vmem:[#allocation3 + $0x660] sm:$0xff]  ;;  %v9961_v61 = vcombine.high %v397_v52, %v401_v53 }
  0xe1   :  { %9682 = vmatmul.mubr.msk.f32.gmra.mrb[36].mxu0 %vm629_vm0, %v12392_v31  ;;  %3703 = vmatprep.subr.bf16.mxu1 %v9913_v62  ;;  %v9960_v62 = vcombine.low %v397_v52, %v401_v53  ;;  %v461_v53 = vld [vmem:[#allocation3 + $0x800] sm:$0xff] }
  0xe2   :  { %9698 = vmatmul.mubr.msk.f32.gmra.mrb[36].mxu1 %vm629_vm0, %v12392_v31  ;;  %3591 = vmatpush1.bf16.msra.mxu0 %v9784_v2  ;;  %v265_v31 = vld [vmem:[#allocation3 + $0x1e0] sm:$0xff]  ;;  %v9841_v2 = vcombine.high %v277_v56, %v281_v57 }
  0xe3   :  { %3704 = vmatpush1.bf16.msra.mxu1 %v9912_v5  ;;  %1082 = vmatprep.mubr.f32.mxu0 %v12200_v0  ;;  %v9825_v51 = vcombine.high %v261_v30, %v265_v31  ;;  %v9969_v5 = vcombine.high %v405_v59, %v409_v60 }
  0xe4   :  { %1243 = vmatprep.mubr.f32.mxu1 %v12200_v0  ;;  %3592 = vmatprep.subr.bf16.mxu0 %v9793_v6  ;;  %v9968_v6 = vcombine.low %v405_v59, %v409_v60  ;;  %v11271_v59 = vld [vmem:[%s15176_s0 + $0xc] ss:$28 sps:$4 sm:$0xff]  }
  0xe5   :  { %9683 = vmatmul.mubr.msk.f32.gmra.mrb[38].mxu0 %vm629_vm0, %v12407_v34  ;;  %3705 = vmatprep.subr.bf16.mxu1 %v9921_v8  ;;  %v297_v8 = vld [vmem:[#allocation3 + $0x2e0] sm:$0xff] }
  0xe6   :  { %9699 = vmatmul.mubr.msk.f32.gmra.mrb[38].mxu1 %vm629_vm0, %v12407_v34  ;;  %3593 = vmatpush1.bf16.msra.mxu0 %v9792_v10  ;;  %v393_v34 = vld [vmem:[#allocation3 + $0x5e0] sm:$0xff] }
  0xe7   :  { %3706 = vmatpush1.bf16.msra.mxu1 %v9920_v13  ;;  %1088 = vmatprep.mubr.f32.mxu0 %v12200_v0  ;;  %v9953_v54 = vcombine.high %v389_v33, %v393_v34  ;;  %v9952_v55 = vcombine.low %v389_v33, %v393_v34  ;;  %v421_v10 = vld [vmem:[#allocation3 + $0x6c0] sm:$0xff]  ;;  %v9976_v13 = vcombine.low %v413_v3, %v417_v4 }
  0xe8   :  { %1249 = vmatprep.mubr.f32.mxu1 %v12200_v0  ;;  %3594 = vmatprep.subr.bf16.mxu0 %v9801_v16  ;;  %v9857_v16 = vcombine.high %v293_v7, %v297_v8  ;;  %v9985_v19 = vcombine.high %v421_v10, %v425_v11  ;;  %v9984_v20 = vcombine.low %v421_v10, %v425_v11  ;;  %v226_v10 = vld [vmem:[#allocation3 + $0xa8] sm:$0xff] }
  0xe9   :  { %9684 = vmatmul.mubr.msk.f32.gmra.mrb[40].mxu0 %vm629_vm0, %v12418_v35  ;;  %3707 = vmatprep.subr.bf16.mxu1 %v9929_v17  ;;  %v429_v17 = vld [vmem:[#allocation3 + $0x700] sm:$0xff] }
  0xea   :  { %9700 = vmatmul.mubr.msk.f32.gmra.mrb[40].mxu1 %vm629_vm0, %v12418_v35  ;;  %3595 = vmatpush1.bf16.msra.mxu0 %v9800_v18  ;;  %v9816_v35 = vcombine.low %v253_v22, %v257_v23  ;;  %v433_v18 = vld [vmem:[#allocation3 + $0x720] sm:$0xff]  ;;  %v9865_v23 = vcombine.high %v301_v14, %v305_v15 }
  0xeb   :  { %3708 = vmatpush1.bf16.msra.mxu1 %v9928_v21  ;;  %1094 = vmatprep.mubr.f32.mxu0 %v12200_v0  ;;  %v309_v21 = vld [vmem:[#allocation3 + $0x340] sm:$0xff]  ;;  %v9993_v26 = vcombine.high %v429_v17, %v433_v18 }
  0xec   :  { %1255 = vmatprep.mubr.f32.mxu1 %v12200_v0  ;;  %3596 = vmatprep.subr.bf16.mxu0 %v9809_v24  ;;  %v313_v22 = vld [vmem:[#allocation3 + $0x360] sm:$0xff] }
  0xed   :  { %9685 = vmatmul.mubr.msk.f32.gmra.mrb[42].mxu0 %vm629_vm0, %v12429_v36  ;;  %3709 = vmatprep.subr.bf16.mxu1 %v9937_v27  ;;  %v437_v24 = vld [vmem:[#allocation3 + $0x740] sm:$0xff]  ;;  %v9992_v27 = vcombine.low %v429_v17, %v433_v18 }
  0xee   :  { %9701 = vmatmul.mubr.msk.f32.gmra.mrb[42].mxu1 %vm629_vm0, %v12429_v36  ;;  %3597 = vmatpush1.bf16.msra.mxu0 %v9808_v28  ;;  %v9824_v36 = vcombine.low %v261_v30, %v265_v31  ;;  %v317_v28 = vld [vmem:[#allocation3 + $0x380] sm:$0xff]  ;;  %v9873_v30 = vcombine.high %v309_v21, %v313_v22  ;;  %v10001_v33 = vcombine.high %v437_v24, %v441_v25 }
  0xef   :  { %3710 = vmatpush1.bf16.msra.mxu1 %v9936_v29  ;;  %1100 = vmatprep.mubr.f32.mxu0 %v12200_v0  ;;  %v321_v29 = vld [vmem:[#allocation3 + $0x3a0] sm:$0xff]  ;;  %v10000_v34 = vcombine.low %v437_v24, %v441_v25 }
  0xf0   :  { %1261 = vmatprep.mubr.f32.mxu1 %v12200_v0  ;;  %3598 = vmatprep.subr.bf16.mxu0 %v9817_v32  ;;  %v445_v31 = vld [vmem:[#allocation3 + $0x780] sm:$0xff] }
  0xf1   :  { %9686 = vmatmul.mubr.msk.f32.gmra.mrb[44].mxu0 %vm629_vm0, %v12440_v37  ;;  %3711 = vmatprep.subr.bf16.mxu1 %v9945_v47  ;;  %v449_v32 = vld [vmem:[#allocation3 + $0x7a0] sm:$0xff] }
  0xf2   :  { %9702 = vmatmul.mubr.msk.f32.gmra.mrb[44].mxu1 %vm629_vm0, %v12440_v37  ;;  %3599 = vmatpush1.bf16.msra.mxu0 %v9816_v35  ;;  %v9832_v37 = vcombine.low %v269_v49, %v273_v50  ;;  %v325_v47 = vld [vmem:[#allocation3 + $0x3c0] sm:$0xff]  ;;  %v10008_v52 = vcombine.low %v445_v31, %v449_v32 }
  0xf3   :  { %3712 = vmatpush1.bf16.msra.mxu1 %v9944_v48  ;;  %1106 = vmatprep.mubr.f32.mxu0 %v12200_v0  ;;  %v329_v35 = vld [vmem:[#allocation3 + $0x3e0] sm:$0xff]  ;;  %v9881_v48 = vcombine.high %v317_v28, %v321_v29 }
  0xf4   :  { %1267 = vmatprep.mubr.f32.mxu1 %v12200_v0  ;;  %3600 = vmatprep.subr.bf16.mxu0 %v9825_v51  ;;  %v453_v49 = vld [vmem:[#allocation3 + $0x7c0] sm:$0xff]  ;;  %v10009_v51 = vcombine.high %v445_v31, %v449_v32 }
  0xf5   :  { %9687 = vmatmul.mubr.msk.f32.gmra.mrb[46].mxu0 %vm629_vm0, %v12451_v38  ;;  %3713 = vmatprep.subr.bf16.mxu1 %v9953_v54  ;;  %v457_v50 = vld [vmem:[#allocation3 + $0x7e0] sm:$0xff] }
  0xf6   :  { %9703 = vmatmul.mubr.msk.f32.gmra.mrb[46].mxu1 %vm629_vm0, %v12451_v38  ;;  %3601 = vmatpush1.bf16.msra.mxu0 %v9824_v36  ;;  %v9840_v38 = vcombine.low %v277_v56, %v281_v57  ;;  %v465_v54 = vld [vmem:[#allocation3 + $0x820] sm:$0xff]  ;;  %v9889_v36 = vcombine.high %v325_v47, %v329_v35  ;;  %v210_v56 = vld [vmem:[#allocation3 + $0x28] sm:$0xff]  ;;  %v10017_v57 = vcombine.high %v453_v49, %v457_v50 }
  0xf7   :  { %3714 = vmatpush1.bf16.msra.mxu1 %v9952_v55  ;;  %1112 = vmatprep.mubr.f32.mxu0 %v12200_v0  ;;  %v206_v55 = vld [vmem:[#allocation3 + $0x8] sm:$0xff]  ;;  %v10016_v60 = vcombine.low %v453_v49, %v457_v50  ;;  %v11277_v17 = vld [vmem:[%s15176_s0 + $0x40] ss:$28 sps:$4 sm:$0xff]  }
  0xf8   :  { %1273 = vmatprep.mubr.f32.mxu1 %v12200_v0  ;;  %3602 = vmatprep.subr.bf16.mxu0 %v9833_v58  ;;  %v9888_v58 = vcombine.low %v325_v47, %v329_v35  ;;  %v9771_v3 = vcombine.high %v206_v55, %v210_v56  ;;  %v9770_v4 = vcombine.low %v206_v55, %v210_v56  ;;  %v493_v24 = vld [vmem:[#allocation3 + $0x900] sm:$0xff]  ;;  %v250_v35 = vld [vmem:[#allocation3 + $0x168] sm:$0xff] }
  0xf9   :  { %9688 = vmatmul.mubr.msk.f32.gmra.mrb[48].mxu0 %vm629_vm0, %v12462_v39  ;;  %3715 = vmatprep.subr.bf16.mxu1 %v9961_v61  ;;  %v12652_v61 = vld [vmem:[%s15176_s0] ss:$28 sps:$4 sm:$0xff]   ;;  %v12702_v49 = vld [vmem:[%s15176_s0 + $0xac] ss:$28 sps:$4 sm:$0xff]  }
  0xfa   :  { %9704 = vmatmul.mubr.msk.f32.gmra.mrb[48].mxu1 %vm629_vm0, %v12462_v39  ;;  %3603 = vmatpush1.bf16.msra.mxu0 %v9832_v37  ;;  %v9848_v39 = vcombine.low %v285_v63, %v289_v1  ;;  %v469_v37 = vld [vmem:[#allocation3 + $0x840] sm:$0xff]  ;;  %v214_v63 = vld [vmem:[#allocation3 + $0x48] sm:$0xff]  ;;  %v10025_v1 = vcombine.high %v461_v53, %v465_v54 }
  0xfb   :  { %3716 = vmatpush1.bf16.msra.mxu1 %v9960_v62  ;;  %1118 = vmatprep.mubr.f32.mxu0 %v12200_v0  ;;  %v473_v62 = vld [vmem:[#allocation3 + $0x860] sm:$0xff]  ;;  %v258_v55 = vld [vmem:[#allocation3 + $0x1a8] sm:$0xff] }
  0xfc   :  { %1279 = vmatprep.mubr.f32.mxu1 %v12200_v0  ;;  %3604 = vmatprep.subr.bf16.mxu0 %v9841_v2  ;;  %v218_v2 = vld [vmem:[#allocation3 + $0x68] sm:$0xff]  ;;  %v497_v25 = vld [vmem:[#allocation3 + $0x920] sm:$0xff] }
  0xfd   :  { %9689 = vmatmul.mubr.msk.f32.gmra.mrb[50].mxu0 %vm629_vm0, %v12473_v40  ;;  %3717 = vmatprep.subr.bf16.mxu1 %v9969_v5  ;;  %v10024_v5 = vcombine.low %v461_v53, %v465_v54  ;;  %v9778_v11 = vcombine.low %v214_v63, %v218_v2  ;;  %v501_v32 = vld [vmem:[#allocation3 + $0x940] sm:$0xff]  ;;  %v10057_v47 = vcombine.high %v493_v24, %v497_v25 }
  0xfe   :  { %9705 = vmatmul.mubr.msk.f32.gmra.mrb[50].mxu1 %vm629_vm0, %v12473_v40  ;;  %3605 = vmatpush1.bf16.msra.mxu0 %v9840_v38  ;;  %v9856_v40 = vcombine.low %v293_v7, %v297_v8  ;;  %v9779_v38 = vcombine.high %v214_v63, %v218_v2  ;;  %v477_v7 = vld [vmem:[#allocation3 + $0x880] sm:$0xff]  ;;  %v10056_v50 = vcombine.low %v493_v24, %v497_v25  ;;  %v11289_v63 = vld [vmem:[%s15176_s0 + $0xb0] ss:$28 sps:$4 sm:$0xff]  }
  0xff   :  { %3718 = vmatpush1.bf16.msra.mxu1 %v9968_v6  ;;  %1124 = vmatprep.mubr.f32.mxu0 %v12200_v0  ;;  %v11274_v6 = vld [vmem:[%s15176_s0 + $0x44] ss:$28 sps:$4 sm:$0xff]  }
 0x100   :  { %1285 = vmatprep.mubr.f32.mxu1 %v12200_v0  ;;  %3606 = vmatprep.subr.bf16.mxu0 %v9849_v9  ;;  %v481_v8 = vld [vmem:[#allocation3 + $0x8a0] sm:$0xff]  ;;  %v222_v9 = vld [vmem:[#allocation3 + $0x88] sm:$0xff] }
 0x101   :  { %9690 = vmatmul.mubr.msk.f32.gmra.mrb[52].mxu0 %vm629_vm0, %v12484_v41  ;;  %3719 = vmatprep.subr.bf16.mxu1 %v9977_v12  ;;  %v10032_v12 = vcombine.low %v469_v37, %v473_v62  ;;  %v10041_v18 = vcombine.high %v477_v7, %v481_v8  ;;  %v513_v53 = vld [vmem:[#allocation3 + $0x9a0] sm:$0xff] }
 0x102   :  { %9706 = vmatmul.mubr.msk.f32.gmra.mrb[52].mxu1 %vm629_vm0, %v12484_v41  ;;  %3607 = vmatpush1.bf16.msra.mxu0 %v9848_v39  ;;  %v9864_v41 = vcombine.low %v301_v14, %v305_v15  ;;  %v12675_v39 = vld [vmem:[%s15176_s0 + $0x38] ss:$28 sps:$4 sm:$0xff]   ;;  %v485_v14 = vld [vmem:[#allocation3 + $0x8c0] sm:$0xff] }
 0x103   :  { %3720 = vmatpush1.bf16.msra.mxu1 %v9976_v13  ;;  %1130 = vmatprep.mubr.f32.mxu0 %v12200_v0  ;;  %v9787_v13 = vcombine.high %v222_v9, %v226_v10  ;;  %v489_v15 = vld [vmem:[#allocation3 + $0x8e0] sm:$0xff] }
 0x104   :  { %1291 = vmatprep.mubr.f32.mxu1 %v12200_v0  ;;  %3608 = vmatprep.subr.bf16.mxu0 %v9857_v16  ;;  %v230_v16 = vld [vmem:[#allocation3 + $0xc8] sm:$0xff]  ;;  %v11298_v24 = vld [vmem:[%s15176_s0 + $0x124] ss:$28 sps:$4 sm:$0xff]  }
 0x105   :  { %9691 = vmatmul.mubr.msk.f32.gmra.mrb[54].mxu0 %vm629_vm0, %v12495_v42  ;;  %3721 = vmatprep.subr.bf16.mxu1 %v9985_v19  ;;  %v234_v19 = vld [vmem:[#allocation3 + $0xe8] sm:$0xff]  ;;  %v541_v25 = vld [vmem:[#allocation3 + $0xa80] sm:$0xff] }
 0x106   :  { %9707 = vmatmul.mubr.msk.f32.gmra.mrb[54].mxu1 %vm629_vm0, %v12495_v42  ;;  %3609 = vmatpush1.bf16.msra.mxu0 %v9856_v40  ;;  %v9872_v42 = vcombine.low %v309_v21, %v313_v22  ;;  %v9786_v40 = vcombine.low %v222_v9, %v226_v10  ;;  %v10040_v21 = vcombine.low %v477_v7, %v481_v8  ;;  %v529_v7 = vld [vmem:[#allocation3 + $0xa20] sm:$0xff]  ;;  %v274_v9 = vld [vmem:[#allocation3 + $0x228] sm:$0xff] }
 0x107   :  { %3722 = vmatpush1.bf16.msra.mxu1 %v9984_v20  ;;  %1136 = vmatprep.mubr.f32.mxu0 %v12200_v0  ;;  %v12684_v20 = vld [vmem:[%s15176_s0 + $0x74] ss:$28 sps:$4 sm:$0xff]   ;;  %v9795_v22 = vcombine.high %v230_v16, %v234_v19 }
 0x108   :  { %1297 = vmatprep.mubr.f32.mxu1 %v12200_v0  ;;  %3610 = vmatprep.subr.bf16.mxu0 %v9865_v23  ;;  %v11280_v23 = vld [vmem:[%s15176_s0 + $0x7c] ss:$28 sps:$4 sm:$0xff]  }
 0x109   :  { %9692 = vmatmul.mubr.msk.f32.gmra.mrb[56].mxu0 %vm629_vm0, %v12506_v43  ;;  %3723 = vmatprep.subr.bf16.mxu1 %v9993_v26  ;;  %v10049_v26 = vcombine.high %v485_v14, %v489_v15 }
 0x10a   :  { %9708 = vmatmul.mubr.msk.f32.gmra.mrb[56].mxu1 %vm629_vm0, %v12506_v43  ;;  %3611 = vmatpush1.bf16.msra.mxu0 %v9864_v41  ;;  %v9880_v43 = vcombine.low %v317_v28, %v321_v29  ;;  %v238_v41 = vld [vmem:[#allocation3 + $0x108] sm:$0xff]  ;;  %v9794_v28 = vcombine.low %v230_v16, %v234_v19  ;;  %v10048_v29 = vcombine.low %v485_v14, %v489_v15  ;;  %v533_v14 = vld [vmem:[#allocation3 + $0xa40] sm:$0xff] }
 0x10b   :  { %3724 = vmatpush1.bf16.msra.mxu1 %v9992_v27  ;;  %1142 = vmatprep.mubr.f32.mxu0 %v12200_v0  ;;  %v242_v27 = vld [vmem:[#allocation3 + $0x128] sm:$0xff]  ;;  %v537_v15 = vld [vmem:[#allocation3 + $0xa60] sm:$0xff] }
 0x10c   :  { %1303 = vmatprep.mubr.f32.mxu1 %v12200_v0  ;;  %3612 = vmatprep.subr.bf16.mxu0 %v9873_v30  ;;  %v12693_v30 = vld [vmem:[%s15176_s0 + $0x70] ss:$28 sps:$4 sm:$0xff]   ;;  %v9803_v31 = vcombine.high %v238_v41, %v242_v27 }
 0x10d   :  { %9693 = vmatmul.mubr.msk.f32.gmra.mrb[58].mxu0 %vm629_vm0, %v12517_v44  ;;  %3725 = vmatprep.subr.bf16.mxu1 %v10001_v33  ;;  %v505_v33 = vld [vmem:[#allocation3 + $0x960] sm:$0xff]  ;;  %v278_v16 = vld [vmem:[#allocation3 + $0x248] sm:$0xff] }
 0x10e   :  { %9709 = vmatmul.mubr.msk.f32.gmra.mrb[58].mxu1 %vm629_vm0, %v12517_v44  ;;  %3613 = vmatpush1.bf16.msra.mxu0 %v9872_v42  ;;  %v12641_v44 = vld [vmem:[%s15176_s0 + $0x4] ss:$28 sps:$4 sm:$0xff]   ;;  %v246_v42 = vld [vmem:[#allocation3 + $0x148] sm:$0xff]  ;;  %v10065_v54 = vcombine.high %v501_v32, %v505_v33 }
 0x10f   :  { %3726 = vmatpush1.bf16.msra.mxu1 %v10000_v34  ;;  %1148 = vmatprep.mubr.f32.mxu0 %v12200_v0  ;;  %v11283_v34 = vld [vmem:[%s15176_s0 + $0x78] ss:$28 sps:$4 sm:$0xff]   ;;  %v9810_v56 = vcombine.low %v246_v42, %v250_v35  ;;  %v282_v19 = vld [vmem:[#allocation3 + $0x268] sm:$0xff] }
 0x110   :  { %1309 = vmatprep.mubr.f32.mxu1 %v12200_v0  ;;  %3614 = vmatprep.subr.bf16.mxu0 %v9881_v48  ;;  %v9802_v48 = vcombine.low %v238_v41, %v242_v27  ;;  %v10097_v41 = vcombine.high %v533_v14, %v537_v15  ;;  %v286_v27 = vld [vmem:[#allocation3 + $0x288] sm:$0xff] }
 0x111   :  { %9694 = vmatmul.mubr.msk.f32.gmra.mrb[60].mxu0 %vm629_vm0, %v12528_v45  ;;  %3727 = vmatprep.subr.bf16.mxu1 %v10009_v51  ;;  %v9811_v51 = vcombine.high %v246_v42, %v250_v35  ;;  %v549_v42 = vld [vmem:[#allocation3 + $0xac0] sm:$0xff] }
 0x112   :  { %9710 = vmatmul.mubr.msk.f32.gmra.mrb[60].mxu1 %vm629_vm0, %v12528_v45  ;;  %3615 = vmatpush1.bf16.msra.mxu0 %v9880_v43  ;;  %v11269_v45 = vld [vmem:[%s15176_s0 + $0x8] ss:$28 sps:$4 sm:$0xff]   ;;  %v11286_v43 = vld [vmem:[%s15176_s0 + $0xb4] ss:$28 sps:$4 sm:$0xff]   ;;  %v11301_v35 = vld [vmem:[%s15176_s0 + $0x120] ss:$28 sps:$4 sm:$0xff]  }
 0x113   :  { %3728 = vmatpush1.bf16.msra.mxu1 %v10008_v52  ;;  %1154 = vmatprep.mubr.f32.mxu0 %v12200_v0  ;;  %v509_v52 = vld [vmem:[#allocation3 + $0x980] sm:$0xff] }
 0x114   :  { %1315 = vmatprep.mubr.f32.mxu1 %v12200_v0  ;;  %3616 = vmatprep.subr.bf16.mxu0 %v9889_v36  ;;  %v12665_v0 = vld [vmem:[%s15176_s0 + $0x3c] ss:$28 sps:$4 sm:$0xff]   ;;  %v254_v36 = vld [vmem:[#allocation3 + $0x188] sm:$0xff] }
 0x115   :  { %9695 = vmatmul.mubr.msk.f32.gmra.mrb[62].mxu0 %vm629_vm0, %v12539_v46  ;;  %3729 = vmatprep.subr.bf16.mxu1 %v10017_v57  ;;  %v10064_v57 = vcombine.low %v501_v32, %v505_v33  ;;  %v9818_v2 = vcombine.low %v254_v36, %v258_v55  ;;  %v12747_v32 = vld [vmem:[%s15176_s0 + $0x118] ss:$28 sps:$4 sm:$0xff]  }
 0x116   :  { %9711 = vmatmul.mubr.msk.f32.gmra.mrb[62].mxu1 %vm629_vm0, %v12539_v46  ;;  %3617 = vmatpush1.bf16.msra.mxu0 %v9888_v58  ;;  %v10033_v46 = vcombine.high %v469_v37, %v473_v62  ;;  %v12711_v58 = vld [vmem:[%s15176_s0 + $0xa8] ss:$28 sps:$4 sm:$0xff]  }
 0x117   :  { %3730 = vmatpush1.bf16.msra.mxu1 %v10016_v60  ;;  %3618 = vmatprep.mubr.bf16.mxu0 %v12641_v44  ;;  %v517_v60 = vld [vmem:[#allocation3 + $0x9c0] sm:$0xff]  ;;  %v262_v62 = vld [vmem:[#allocation3 + $0x1c8] sm:$0xff] }
 0x118   :  { %3731 = vmatprep.mubr.bf16.mxu1 %v11271_v59  ;;  %3812 = vmatprep.subr.bf16.mxu1 %v10025_v1  ;;  %v9819_v59 = vcombine.high %v254_v36, %v258_v55  ;;  %v521_v37 = vld [vmem:[#allocation3 + $0x9e0] sm:$0xff]  ;;  %v266_v1 = vld [vmem:[#allocation3 + $0x1e8] sm:$0xff] }
 0x119   :  { %3619 = vmatmul.mubr.bf16.vlgmr.msra.gmra.mrb[64].mxu0 %v12652_v61  ;;  %4038 = vmatprep.subr.bf16.mxu0 %v9771_v3  ;;  %v12720_v3 = vld [vmem:[%s15176_s0 + $0xe4] ss:$28 sps:$4 sm:$0xff]   ;;  %v10081_v8 = vcombine.high %v517_v60, %v521_v37  ;;  %v9826_v10 = vcombine.low %v262_v62, %v266_v1 }
 0x11a   :  { %3732 = vmatmul.mubr.bf16.vlgmr.msra.gmra.mrb[64].mxu1 %v11269_v45  ;;  %4039 = vmatpush1.bf16.msra.mxu0 %v9770_v4  ;;  %v10073_v45 = vcombine.high %v509_v52, %v513_v53  ;;  %v10072_v4 = vcombine.low %v509_v52, %v513_v53  ;;  %v557_v36 = vld [vmem:[#allocation3 + $0xb00] sm:$0xff] }
 0x11b   :  { %3813 = vmatpush1.bf16.msra.mxu1 %v10024_v5  ;;  %4040 = vmatprep.subr.bf16.mxu0 %v9779_v38  ;;  %v9827_v5 = vcombine.high %v262_v62, %v266_v1  ;;  %v11292_v38 = vld [vmem:[%s15176_s0 + $0xec] ss:$28 sps:$4 sm:$0xff]   ;;  %v561_v55 = vld [vmem:[#allocation3 + $0xb20] sm:$0xff] }
 0x11c   :  { %3814 = vmatprep.subr.bf16.mxu1 %v10033_v46  ;;  %3628 = vmatprep.mubr.bf16.mxu0 %v12665_v0  ;;  %v270_v46 = vld [vmem:[#allocation3 + $0x208] sm:$0xff]  ;;  %v569_v1 = vld [vmem:[#allocation3 + $0xb60] sm:$0xff] }
 0x11d   :  { %3741 = vmatprep.mubr.bf16.mxu1 %v11274_v6  ;;  %v525_v6 = vld [vmem:[#allocation3 + $0xa00] sm:$0xff]  ;;  %v12765_v62 = vld [vmem:[%s15176_s0 + $0x150] ss:$28 sps:$4 sm:$0xff]  }
 0x11e   :  { %4041 = vmatpush1.bf16.msra.mxu0 %v9778_v11  ;;  %v10080_v11 = vcombine.low %v517_v60, %v521_v37 }
 0x11f   :  { %3815 = vmatpush1.bf16.msra.mxu1 %v10032_v12  ;;  %4042 = vmatprep.subr.bf16.mxu0 %v9787_v13  ;;  %v12729_v12 = vld [vmem:[%s15176_s0 + $0xe0] ss:$28 sps:$4 sm:$0xff]   ;;  %v9835_v13 = vcombine.high %v270_v46, %v274_v9 }
 0x120   :  { %3816 = vmatprep.subr.bf16.mxu1 %v10041_v18  ;;  %v10089_v18 = vcombine.high %v525_v6, %v529_v7 }
 0x121   :  { %3629 = vmatmul.mubr.bf16.gmra.mrb[68].mxu0 %v12675_v39 }
 0x122   :  { %3742 = vmatmul.mubr.bf16.gmra.mrb[68].mxu1 %v11277_v17  ;;  %4043 = vmatpush1.bf16.msra.mxu0 %v9786_v40  ;;  %v11295_v17 = vld [vmem:[%s15176_s0 + $0xe8] ss:$28 sps:$4 sm:$0xff]   ;;  %v9834_v40 = vcombine.low %v270_v46, %v274_v9  ;;  %v11310_v9 = vld [vmem:[%s15176_s0 + $0x194] ss:$28 sps:$4 sm:$0xff]  }
 0x123   :  { %3817 = vmatpush1.bf16.msra.mxu1 %v10040_v21  ;;  %4044 = vmatprep.subr.bf16.mxu0 %v9795_v22  ;;  %v12738_v21 = vld [vmem:[%s15176_s0 + $0x11c] ss:$28 sps:$4 sm:$0xff]   ;;  %v10088_v22 = vcombine.low %v525_v6, %v529_v7  ;;  %v12774_v7 = vld [vmem:[%s15176_s0 + $0x18c] ss:$28 sps:$4 sm:$0xff]  }
 0x124   :  { %3818 = vmatprep.subr.bf16.mxu1 %v10049_v26  ;;  %3638 = vmatprep.mubr.bf16.mxu0 %v12684_v20  ;;  %v545_v26 = vld [vmem:[#allocation3 + $0xaa0] sm:$0xff] }
 0x125   :  { %3751 = vmatprep.mubr.bf16.mxu1 %v11280_v23  ;;  %v9843_v23 = vcombine.high %v278_v16, %v282_v19  ;;  %v10104_v52 = vcombine.low %v541_v25, %v545_v26 }
 0x126   :  { %4045 = vmatpush1.bf16.msra.mxu0 %v9794_v28  ;;  %v290_v28 = vld [vmem:[#allocation3 + $0x2a8] sm:$0xff] }
 0x127   :  { %3819 = vmatpush1.bf16.msra.mxu1 %v10048_v29  ;;  %4046 = vmatprep.subr.bf16.mxu0 %v9803_v31  ;;  %v9842_v29 = vcombine.low %v278_v16, %v282_v19  ;;  %v10096_v31 = vcombine.low %v533_v14, %v537_v15  ;;  %v9851_v33 = vcombine.high %v286_v27, %v290_v28  ;;  %v318_v14 = vld [vmem:[#allocation3 + $0x388] sm:$0xff] }
 0x128   :  { %3820 = vmatprep.subr.bf16.mxu1 %v10057_v47  ;;  %v294_v47 = vld [vmem:[#allocation3 + $0x2c8] sm:$0xff] }
 0x129   :  { %3639 = vmatmul.mubr.bf16.gmra.mrb[72].mxu0 %v12693_v30  ;;  %v322_v15 = vld [vmem:[#allocation3 + $0x3a8] sm:$0xff] }
 0x12a   :  { %3752 = vmatmul.mubr.bf16.gmra.mrb[72].mxu1 %v11283_v34  ;;  %4047 = vmatpush1.bf16.msra.mxu0 %v9802_v48  ;;  %v553_v34 = vld [vmem:[#allocation3 + $0xae0] sm:$0xff]  ;;  %v10105_v48 = vcombine.high %v541_v25, %v545_v26  ;;  %v9883_v19 = vcombine.high %v318_v14, %v322_v15  ;;  %v330_v26 = vld [vmem:[#allocation3 + $0x3e8] sm:$0xff] }
 0x12b   :  { %3821 = vmatpush1.bf16.msra.mxu1 %v10056_v50  ;;  %4048 = vmatprep.subr.bf16.mxu0 %v9811_v51  ;;  %v298_v50 = vld [vmem:[#allocation3 + $0x2e8] sm:$0xff]  ;;  %v9850_v51 = vcombine.low %v286_v27, %v290_v28  ;;  %v10112_v37 = vcombine.low %v549_v42, %v553_v34 }
 0x12c   :  { %3822 = vmatprep.subr.bf16.mxu1 %v10065_v54  ;;  %3648 = vmatprep.mubr.bf16.mxu0 %v12702_v49  ;;  %v9859_v53 = vcombine.high %v294_v47, %v298_v50  ;;  %v11304_v54 = vld [vmem:[%s15176_s0 + $0x15c] ss:$28 sps:$4 sm:$0xff]   ;;  %v9858_v60 = vcombine.low %v294_v47, %v298_v50  ;;  %v593_v47 = vld [vmem:[#allocation3 + $0xc20] sm:$0xff] }
 0x12d   :  { %3761 = vmatprep.mubr.bf16.mxu1 %v11286_v43  ;;  %v12756_v43 = vld [vmem:[%s15176_s0 + $0x154] ss:$28 sps:$4 sm:$0xff]  }
 0x12e   :  { %4049 = vmatpush1.bf16.msra.mxu0 %v9810_v56  ;;  %v10113_v56 = vcombine.high %v549_v42, %v553_v34  ;;  %v589_v34 = vld [vmem:[#allocation3 + $0xc00] sm:$0xff] }
 0x12f   :  { %3823 = vmatpush1.bf16.msra.mxu1 %v10064_v57  ;;  %4050 = vmatprep.subr.bf16.mxu0 %v9819_v59  ;;  %v302_v57 = vld [vmem:[#allocation3 + $0x308] sm:$0xff] }
 0x130   :  { %3824 = vmatprep.subr.bf16.mxu1 %v10073_v45  ;;  %v306_v59 = vld [vmem:[#allocation3 + $0x328] sm:$0xff]  ;;  %v565_v45 = vld [vmem:[#allocation3 + $0xb40] sm:$0xff] }
 0x131   :  { %3649 = vmatmul.mubr.bf16.gmra.mrb[76].mxu0 %v12711_v58  ;;  %v9866_v6 = vcombine.low %v302_v57, %v306_v59 }
 0x132   :  { %3762 = vmatmul.mubr.bf16.gmra.mrb[76].mxu1 %v11289_v63  ;;  %4051 = vmatpush1.bf16.msra.mxu0 %v9818_v2  ;;  %v9867_v63 = vcombine.high %v302_v57, %v306_v59  ;;  %v310_v2 = vld [vmem:[#allocation3 + $0x348] sm:$0xff] }
 0x133   :  { %3825 = vmatpush1.bf16.msra.mxu1 %v10072_v4  ;;  %4052 = vmatprep.subr.bf16.mxu0 %v9827_v5  ;;  %v11307_v4 = vld [vmem:[%s15176_s0 + $0x158] ss:$28 sps:$4 sm:$0xff]   ;;  %v10121_v5 = vcombine.high %v557_v36, %v561_v55 }
 0x134   :  { %3826 = vmatprep.subr.bf16.mxu1 %v10081_v8  ;;  %3658 = vmatprep.mubr.bf16.mxu0 %v12720_v3  ;;  %v10120_v8 = vcombine.low %v557_v36, %v561_v55  ;;  %v12796_v36 = vld [vmem:[#allocation3 + $0x10] sm:$0xff] }
 0x135   :  { %3771 = vmatprep.mubr.bf16.mxu1 %v11292_v38  ;;  %v314_v38 = vld [vmem:[#allocation3 + $0x368] sm:$0xff]  ;;  %v12798_v55 = vld [vmem:[#allocation3 + $0x30] sm:$0xff] }
 0x136   :  { %4053 = vmatpush1.bf16.msra.mxu0 %v9826_v10  ;;  %v9875_v46 = vcombine.high %v310_v2, %v314_v38  ;;  %v573_v10 = vld [vmem:[#allocation3 + $0xb80] sm:$0xff]  ;;  %v9874_v16 = vcombine.low %v310_v2, %v314_v38  ;;  %v358_v2 = vld [vmem:[#allocation3 + $0x4c8] sm:$0xff] }
 0x137   :  { %3827 = vmatpush1.bf16.msra.mxu1 %v10080_v11  ;;  %4054 = vmatprep.subr.bf16.mxu0 %v9835_v13  ;;  %v577_v11 = vld [vmem:[#allocation3 + $0xba0] sm:$0xff]  ;;  %v10129_v13 = vcombine.high %v565_v45, %v569_v1 }
 0x138   :  { %3828 = vmatprep.subr.bf16.mxu1 %v10089_v18  ;;  %v12783_v18 = vld [vmem:[%s15176_s0 + $0x188] ss:$28 sps:$4 sm:$0xff]   ;;  %v10137_v25 = vcombine.high %v573_v10, %v577_v11  ;;  %v10136_v27 = vcombine.low %v573_v10, %v577_v11 }
 0x139   :  { %3659 = vmatmul.mubr.bf16.gmra.mrb[80].mxu0 %v12729_v12  ;;  %v374_v10 = vld [vmem:[#allocation3 + $0x548] sm:$0xff] }
 0x13a   :  { %3772 = vmatmul.mubr.bf16.gmra.mrb[80].mxu1 %v11295_v17  ;;  %4055 = vmatpush1.bf16.msra.mxu0 %v9834_v40  ;;  %v10128_v17 = vcombine.low %v565_v45, %v569_v1  ;;  %v581_v40 = vld [vmem:[#allocation3 + $0xbc0] sm:$0xff]  ;;  %v9773_v45 = vcombine.high %v12796_v36, %v12798_v55  ;;  %v378_v11 = vld [vmem:[#allocation3 + $0x568] sm:$0xff] }
 0x13b   :  { %3829 = vmatpush1.bf16.msra.mxu1 %v10088_v22  ;;  %4056 = vmatprep.subr.bf16.mxu0 %v9843_v23  ;;  %v585_v22 = vld [vmem:[#allocation3 + $0xbe0] sm:$0xff]  ;;  %v326_v23 = vld [vmem:[#allocation3 + $0x3c8] sm:$0xff] }
 0x13c   :  { %3830 = vmatprep.subr.bf16.mxu1 %v10097_v41  ;;  %3668 = vmatprep.mubr.bf16.mxu0 %v12738_v21  ;;  %v9882_v41 = vcombine.low %v318_v14, %v322_v15  ;;  %v9891_v28 = vcombine.high %v326_v23, %v330_v26  ;;  %v10145_v42 = vcombine.high %v581_v40, %v585_v22  ;;  %v11323_v14 = vld [vmem:[%s15176_s0 + $0xbc] ss:$28 sps:$4 sm:$0xff]  }
 0x13d   :  { %3781 = vmatprep.mubr.bf16.mxu1 %v11298_v24  ;;  %v11313_v24 = vld [vmem:[%s15176_s0 + $0x190] ss:$28 sps:$4 sm:$0xff]   ;;  %v9939_v15 = vcombine.high %v374_v10, %v378_v11 }
 0x13e   :  { %4057 = vmatpush1.bf16.msra.mxu0 %v9842_v29  ;;  %v11316_v29 = vld [vmem:[%s15176_s0 + $0x14] ss:$28 sps:$4 sm:$0xff]  }
 0x13f   :  { %3831 = vmatpush1.bf16.msra.mxu1 %v10096_v31  ;;  %4058 = vmatprep.subr.bf16.mxu0 %v9851_v33  ;;  %v334_v31 = vld [vmem:[#allocation3 + $0x408] sm:$0xff] }
 0x140   :  { %3832 = vmatprep.subr.bf16.mxu1 %v10105_v48  ;;  %v338_v33 = vld [vmem:[#allocation3 + $0x428] sm:$0xff]  ;;  %v10144_v48 = vcombine.low %v581_v40, %v585_v22 }
 0x141   :  { %3669 = vmatmul.mubr.bf16.gmra.mrb[84].mxu0 %v12747_v32  ;;  %v9899_v50 = vcombine.high %v334_v31, %v338_v33  ;;  %v9898_v57 = vcombine.low %v334_v31, %v338_v33  ;;  %v390_v40 = vld [vmem:[#allocation3 + $0x5c8] sm:$0xff] }
 0x142   :  { %3782 = vmatmul.mubr.bf16.gmra.mrb[84].mxu1 %v11301_v35  ;;  %4059 = vmatpush1.bf16.msra.mxu0 %v9850_v51  ;;  %v9890_v35 = vcombine.low %v326_v23, %v330_v26  ;;  %v342_v51 = vld [vmem:[#allocation3 + $0x448] sm:$0xff] }
 0x143   :  { %3833 = vmatpush1.bf16.msra.mxu1 %v10104_v52  ;;  %4060 = vmatprep.subr.bf16.mxu0 %v9859_v53  ;;  %v346_v52 = vld [vmem:[#allocation3 + $0x468] sm:$0xff] }
 0x144   :  { %3834 = vmatprep.subr.bf16.mxu1 %v10113_v56  ;;  %3678 = vmatprep.mubr.bf16.mxu0 %v12756_v43  ;;  %v11314_v53 = vld [vmem:[%s15176_s0 + $0x10] ss:$28 sps:$4 sm:$0xff]   ;;  %v9907_v59 = vcombine.high %v342_v51, %v346_v52 }
 0x145   :  { %3791 = vmatprep.mubr.bf16.mxu1 %v11304_v54  ;;  %v10153_v54 = vcombine.high %v589_v34, %v593_v47  ;;  %v11317_v56 = vld [vmem:[%s15176_s0 + $0x4c] ss:$28 sps:$4 sm:$0xff]  }
 0x146   :  { %4061 = vmatpush1.bf16.msra.mxu0 %v9858_v60  ;;  %v350_v60 = vld [vmem:[#allocation3 + $0x488] sm:$0xff] }
 0x147   :  { %3835 = vmatpush1.bf16.msra.mxu1 %v10112_v37  ;;  %4062 = vmatprep.subr.bf16.mxu0 %v9867_v63  ;;  %v354_v37 = vld [vmem:[#allocation3 + $0x4a8] sm:$0xff]  ;;  %v10152_v63 = vcombine.low %v589_v34, %v593_v47 }
 0x148   :  { %3836 = vmatprep.subr.bf16.mxu1 %v10121_v5  ;;  %v9915_v1 = vcombine.high %v350_v60, %v354_v37  ;;  %v11319_v5 = vld [vmem:[%s15176_s0 + $0x48] ss:$28 sps:$4 sm:$0xff]   ;;  %v9914_v38 = vcombine.low %v350_v60, %v354_v37 }
 0x149   :  { %3679 = vmatmul.mubr.bf16.gmra.mrb[88].mxu0 %v12765_v62  ;;  %v394_v22 = vld [vmem:[#allocation3 + $0x5e8] sm:$0xff] }
 0x14a   :  { %3792 = vmatmul.mubr.bf16.gmra.mrb[88].mxu1 %v11307_v4  ;;  %4063 = vmatpush1.bf16.msra.mxu0 %v9866_v6  ;;  %v362_v4 = vld [vmem:[#allocation3 + $0x4e8] sm:$0xff]  ;;  %v9954_v34 = vcombine.low %v390_v40, %v394_v22 }
 0x14b   :  { %3837 = vmatpush1.bf16.msra.mxu1 %v10120_v8  ;;  %4064 = vmatprep.subr.bf16.mxu0 %v9875_v46  ;;  %v9923_v6 = vcombine.high %v358_v2, %v362_v4  ;;  %v366_v8 = vld [vmem:[#allocation3 + $0x508] sm:$0xff] }
 0x14c   :  { %3838 = vmatprep.subr.bf16.mxu1 %v10129_v13  ;;  %3688 = vmatprep.mubr.bf16.mxu0 %v12774_v7  ;;  %v370_v46 = vld [vmem:[#allocation3 + $0x528] sm:$0xff]  ;;  %v11322_v13 = vld [vmem:[%s15176_s0 + $0x80] ss:$28 sps:$4 sm:$0xff]  }
 0x14d   :  { %3801 = vmatprep.mubr.bf16.mxu1 %v11310_v9  ;;  %v9931_v9 = vcombine.high %v366_v8, %v370_v46  ;;  %v414_v60 = vld [vmem:[#allocation3 + $0x688] sm:$0xff] }
 0x14e   :  { %4065 = vmatpush1.bf16.msra.mxu0 %v9874_v16  ;;  %v382_v16 = vld [vmem:[#allocation3 + $0x588] sm:$0xff] }
 0x14f   :  { %3839 = vmatpush1.bf16.msra.mxu1 %v10128_v17  ;;  %4066 = vmatprep.subr.bf16.mxu0 %v9883_v19  ;;  %v386_v17 = vld [vmem:[#allocation3 + $0x5a8] sm:$0xff]  ;;  %v9938_v19 = vcombine.low %v374_v10, %v378_v11 }
 0x150   :  { %3840 = vmatprep.subr.bf16.mxu1 %v10137_v25  ;;  %v430_v10 = vld [vmem:[#allocation3 + $0x708] sm:$0xff] }
 0x151   :  { %3689 = vmatmul.mubr.bf16.gmra.mrb[92].mxu0 %v12783_v18 }
 0x152   :  { %3802 = vmatmul.mubr.bf16.gmra.mrb[92].mxu1 %v11313_v24  ;;  %4067 = vmatpush1.bf16.msra.mxu0 %v9882_v41  ;;  %v11325_v24 = vld [vmem:[%s15176_s0 + $0xb8] ss:$28 sps:$4 sm:$0xff]   ;;  %v9946_v41 = vcombine.low %v382_v16, %v386_v17 }
 0x153   :  { %3841 = vmatpush1.bf16.msra.mxu1 %v10136_v27  ;;  %4068 = vmatprep.subr.bf16.mxu0 %v9891_v28  ;;  %v9955_v28 = vcombine.high %v390_v40, %v394_v22 }
 0x154   :  { %3842 = vmatprep.subr.bf16.mxu1 %v10145_v42  ;;  %3844 = vmatprep.mubr.bf16.mxu1 %v11316_v29  ;;  %v398_v29 = vld [vmem:[#allocation3 + $0x608] sm:$0xff] }
 0x155   :  { %4070 = vmatprep.mubr.bf16.mxu0 %v12641_v44  ;;  %v9906_v44 = vcombine.low %v342_v51, %v346_v52 }
 0x156   :  { %4069 = vmatpush1.bf16.msra.mxu0 %v9890_v35 }
 0x157   :  { %3843 = vmatpush1.bf16.msra.mxu1 %v10144_v48  ;;  %4151 = vmatprep.subr.bf16.mxu0 %v9899_v50  ;;  %v406_v48 = vld [vmem:[#allocation3 + $0x648] sm:$0xff] }
 0x158   :  { %3925 = vmatprep.subr.bf16.mxu1 %v10153_v54  ;;  %v410_v50 = vld [vmem:[#allocation3 + $0x668] sm:$0xff] }
 0x159   :  { %4071 = vmatmul.mubr.bf16.vlgmr.msra.gmra.mrb[96].mxu0 %v12652_v61  ;;  %v11320_v61 = vld [vmem:[%s15176_s0 + $0x84] ss:$28 sps:$4 sm:$0xff]  }
 0x15a   :  { %3845 = vmatmul.mubr.bf16.vlgmr.msra.gmra.mrb[64].mxu1 %v11314_v53  ;;  %4152 = vmatpush1.bf16.msra.mxu0 %v9898_v57  ;;  %v11329_v53 = vld [vmem:[%s15176_s0 + $0x12c] ss:$28 sps:$4 sm:$0xff]  }
 0x15b   :  { %4153 = vmatprep.subr.bf16.mxu0 %v9907_v59  ;;  %3854 = vmatprep.mubr.bf16.mxu1 %v11317_v56  ;;  %v9971_v59 = vcombine.high %v406_v48, %v410_v50 }
 0x15c   :  { %4080 = vmatprep.mubr.bf16.mxu0 %v12665_v0  ;;  %3926 = vmatpush1.bf16.msra.mxu1 %v10152_v63  ;;  %v9922_v0 = vcombine.low %v358_v2, %v362_v4  ;;  %v422_v4 = vld [vmem:[#allocation3 + $0x6c8] sm:$0xff] }
 0x15d   :  { %4490 = vmatprep.subr.bf16.mxu1 %v9773_v45 }
 0x15e   :  { %4154 = vmatpush1.bf16.msra.mxu0 %v9906_v44  ;;  %v9970_v44 = vcombine.low %v406_v48, %v410_v50 }
 0x15f   :  { %4155 = vmatprep.subr.bf16.mxu0 %v9915_v1 }
 0x161   :  { %4081 = vmatmul.mubr.bf16.gmra.mrb[100].mxu0 %v12675_v39  ;;  %v9930_v39 = vcombine.low %v366_v8, %v370_v46 }
 0x162   :  { %3855 = vmatmul.mubr.bf16.gmra.mrb[68].mxu1 %v11319_v5  ;;  %4156 = vmatpush1.bf16.msra.mxu0 %v9914_v38  ;;  %v426_v5 = vld [vmem:[#allocation3 + $0x6e8] sm:$0xff] }
 0x163   :  { %4157 = vmatprep.subr.bf16.mxu0 %v9923_v6  ;;  %3864 = vmatprep.mubr.bf16.mxu1 %v11320_v61  ;;  %v11332_v6 = vld [vmem:[%s15176_s0 + $0x164] ss:$28 sps:$4 sm:$0xff]  }
 0x164   :  { %4090 = vmatprep.mubr.bf16.mxu0 %v12684_v20  ;;  %v9947_v20 = vcombine.high %v382_v16, %v386_v17 }
 0x166   :  { %4158 = vmatpush1.bf16.msra.mxu0 %v9922_v0 }
 0x167   :  { %4159 = vmatprep.subr.bf16.mxu0 %v9931_v9  ;;  %v9987_v9 = vcombine.high %v422_v4, %v426_v5 }
 0x169   :  { %4091 = vmatmul.mubr.bf16.gmra.mrb[104].mxu0 %v12693_v30  ;;  %v11326_v30 = vld [vmem:[%s15176_s0 + $0xf4] ss:$28 sps:$4 sm:$0xff]  }
 0x16a   :  { %3865 = vmatmul.mubr.bf16.gmra.mrb[72].mxu1 %v11322_v13  ;;  %4160 = vmatpush1.bf16.msra.mxu0 %v9930_v39  ;;  %v9986_v39 = vcombine.low %v422_v4, %v426_v5 }
 0x16b   :  { %4161 = vmatprep.subr.bf16.mxu0 %v9939_v15  ;;  %3874 = vmatprep.mubr.bf16.mxu1 %v11323_v14 }
 0x16c   :  { %v12823_v23 = vpop.f32.mrb[0].mxu0  ;;  %4100 = vmatprep.mubr.bf16.mxu0 %v12702_v49  ;;  %v402_v49 = vld [vmem:[#allocation3 + $0x628] sm:$0xff] }
 0x16d   :  { %v12829_v25 = vpop.f32.mrb[1].mxu0  ;;  %v12834_v26 = vpop.f32.mrb[0].mxu1  ;;  %v9963_v35 = vcombine.high %v398_v29, %v402_v49  ;;  %v9962_v56 = vcombine.low %v398_v29, %v402_v49  ;;  %v446_v29 = vld [vmem:[#allocation3 + $0x788] sm:$0xff] }
 0x16e   :  { %15233 = vst [vmem:[#allocation21_spill] sm:$0xff] %v12834_v26  ;;  %4162 = vmatpush1.bf16.msra.mxu0 %v9938_v19  ;;  %v12836_v27 = vpop.f32.mrb[1].mxu1  ;;  %v438_v19 = vld [vmem:[#allocation3 + $0x748] sm:$0xff] }
 0x16f   :  { %15234 = vst [vmem:[#allocation22_spill] sm:$0xff] %v12836_v27  ;;  %4163 = vmatprep.subr.bf16.mxu0 %v9947_v20  ;;  %v442_v20 = vld [vmem:[#allocation3 + $0x768] sm:$0xff] }
 0x170   :  { %v12838_v31 = vpop.f32.mrb[2].mxu0  ;;  %v450_v49 = vld [vmem:[#allocation3 + $0x7a8] sm:$0xff]  ;;  %v10002_v48 = vcombine.low %v438_v19, %v442_v20 }
 0x171   :  { %v12840_v33 = vpop.f32.mrb[3].mxu0  ;;  %4101 = vmatmul.mubr.bf16.gmra.mrb[108].mxu0 %v12711_v58  ;;  %v12843_v42 = vpop.f32.mrb[2].mxu1  ;;  %v11328_v58 = vld [vmem:[%s15176_s0 + $0xf0] ss:$28 sps:$4 sm:$0xff]  }
 0x172   :  { %15235 = vst [vmem:[#allocation23_spill] sm:$0xff] %v12843_v42  ;;  %3875 = vmatmul.mubr.bf16.gmra.mrb[76].mxu1 %v11325_v24  ;;  %4164 = vmatpush1.bf16.msra.mxu0 %v9946_v41  ;;  %v12845_v47 = vpop.f32.mrb[3].mxu1  ;;  %v10003_v41 = vcombine.high %v438_v19, %v442_v20  ;;  %v12955_v19 = vld [vmem:[%s15176_s0 + $0xc] ss:$28 sps:$4 sm:$0xff]  }
 0x173   :  { %15236 = vst [vmem:[#allocation24_spill] sm:$0xff] %v12845_v47  ;;  %4165 = vmatprep.subr.bf16.mxu0 %v9955_v28  ;;  %3884 = vmatprep.mubr.bf16.mxu1 %v11326_v30  ;;  %v474_v20 = vld [vmem:[#allocation3 + $0x868] sm:$0xff] }
 0x174   :  { %v12847_v51 = vpop.f32.mrb[4].mxu0  ;;  %4110 = vmatprep.mubr.bf16.mxu0 %v12720_v3  ;;  %v418_v3 = vld [vmem:[#allocation3 + $0x6a8] sm:$0xff] }
 0x175   :  { %v12853_v52 = vpop.f32.mrb[5].mxu0  ;;  %v12858_v54 = vpop.f32.mrb[4].mxu1  ;;  %v9979_v2 = vcombine.high %v414_v60, %v418_v3  ;;  %v9978_v46 = vcombine.low %v414_v60, %v418_v3  ;;  %v12935_v3 = vld [vmem:[%s15176_s0 + $0x198] ss:$28 sps:$4 sm:$0xff]   ;;  %v510_v42 = vld [vmem:[#allocation3 + $0x988] sm:$0xff] }
 0x176   :  { %15237 = vst [vmem:[#allocation25_spill] sm:$0xff] %v12858_v54  ;;  %4166 = vmatpush1.bf16.msra.mxu0 %v9954_v34  ;;  %v12860_v57 = vpop.f32.mrb[5].mxu1  ;;  %v514_v27 = vld [vmem:[#allocation3 + $0x9a8] sm:$0xff] }
 0x177   :  { %15238 = vst [vmem:[#allocation26_spill] sm:$0xff] %v12860_v57  ;;  %4167 = vmatprep.subr.bf16.mxu0 %v9963_v35  ;;  %v506_v57 = vld [vmem:[#allocation3 + $0x968] sm:$0xff] }
 0x178   :  { %v12862_v37 = vpop.f32.mrb[6].mxu0 }
 0x179   :  { %v12864_v63 = vpop.f32.mrb[7].mxu0  ;;  %4111 = vmatmul.mubr.bf16.gmra.mrb[112].mxu0 %v12729_v12  ;;  %v12867_v45 = vpop.f32.mrb[6].mxu1  ;;  %v11331_v12 = vld [vmem:[%s15176_s0 + $0x128] ss:$28 sps:$4 sm:$0xff]  }
 0x17a   :  { %15239 = vst [vmem:[#allocation27_spill] sm:$0xff] %v12867_v45  ;;  %3885 = vmatmul.mubr.bf16.gmra.mrb[80].mxu1 %v11328_v58  ;;  %4168 = vmatpush1.bf16.msra.mxu0 %v9962_v56  ;;  %v12869_v1 = vpop.f32.mrb[7].mxu1  ;;  %v10011_v58 = vcombine.high %v446_v29, %v450_v49  ;;  %v454_v56 = vld [vmem:[#allocation3 + $0x7c8] sm:$0xff] }
 0x17b   :  { %15240 = vst [vmem:[#allocation28_spill] sm:$0xff] %v12869_v1  ;;  %4169 = vmatprep.subr.bf16.mxu0 %v9971_v59  ;;  %3894 = vmatprep.mubr.bf16.mxu1 %v11329_v53  ;;  %v458_v59 = vld [vmem:[#allocation3 + $0x7e8] sm:$0xff] }
 0x17c   :  { %v12871_v61 = vpop.f32.mrb[8].mxu0  ;;  %4120 = vmatprep.mubr.bf16.mxu0 %v12738_v21  ;;  %v434_v21 = vld [vmem:[#allocation3 + $0x728] sm:$0xff]  ;;  %v10019_v4 = vcombine.high %v454_v56, %v458_v59 }
 0x17d   :  { %v12877_v38 = vpop.f32.mrb[9].mxu0  ;;  %v12882_v8 = vpop.f32.mrb[8].mxu1  ;;  %v9995_v16 = vcombine.high %v430_v10, %v434_v21  ;;  %v9994_v24 = vcombine.low %v430_v10, %v434_v21  ;;  %v15188_v21 = vmov 0   ;;  %v502_v45 = vld [vmem:[#allocation3 + $0x948] sm:$0xff] }
 0x17e   :  { %15241 = vst [vmem:[#allocation29_spill] sm:$0xff] %v12882_v8  ;;  %4170 = vmatpush1.bf16.msra.mxu0 %v9970_v44  ;;  %v12884_v0 = vpop.f32.mrb[9].mxu1  ;;  %v10010_v44 = vcombine.low %v446_v29, %v450_v49  ;;  %v219_v29 = vld [vmem:[#allocation3 + $0x70] sm:$0xff]  ;;  %v498_v8 = vld [vmem:[#allocation3 + $0x928] sm:$0xff] }
 0x17f   :  { %15242 = vst [vmem:[#allocation30_spill] sm:$0xff] %v12884_v0  ;;  %4171 = vmatprep.subr.bf16.mxu0 %v9979_v2  ;;  %v494_v0 = vld [vmem:[#allocation3 + $0x908] sm:$0xff] }
 0x180   :  { %v12886_v11 = vpop.f32.mrb[10].mxu0 }
 0x181   :  { %v12888_v13 = vpop.f32.mrb[11].mxu0  ;;  %4121 = vmatmul.mubr.bf16.gmra.mrb[116].mxu0 %v12747_v32  ;;  %v12891_v14 = vpop.f32.mrb[10].mxu1  ;;  %v12905_v32 = vld [vmem:[%s15176_s0 + $0x160] ss:$28 sps:$4 sm:$0xff]  }
 0x182   :  { %15243 = vst [vmem:[#allocation31_spill] sm:$0xff] %v12891_v14  ;;  %3895 = vmatmul.mubr.bf16.gmra.mrb[84].mxu1 %v11331_v12  ;;  %4172 = vmatpush1.bf16.msra.mxu0 %v9978_v46  ;;  %v12893_v15 = vpop.f32.mrb[11].mxu1  ;;  %v466_v12 = vld [vmem:[#allocation3 + $0x828] sm:$0xff] }
 0x183   :  { %15244 = vst [vmem:[#allocation32_spill] sm:$0xff] %v12893_v15  ;;  %4173 = vmatprep.subr.bf16.mxu0 %v9987_v9  ;;  %3904 = vmatprep.mubr.bf16.mxu1 %v11332_v6  ;;  %v10018_v9 = vcombine.low %v454_v56, %v458_v59  ;;  %v9772_v59 = vcombine.low %v12796_v36, %v12798_v55 }
 0x184   :  { %v12895_v17 = vpop.f32.mrb[12].mxu0  ;;  %4130 = vmatprep.mubr.bf16.mxu0 %v12756_v43  ;;  %v12912_v43 = vld [vmem:[%s15176_s0 + $0x19c] ss:$28 sps:$4 sm:$0xff]  }
 0x185   :  { %v12898_v40 = vpop.f32.mrb[13].mxu0  ;;  %v12900_v22 = vpop.f32.mrb[12].mxu1 }
 0x186   :  { %15245 = vst [vmem:[#allocation33_spill] sm:$0xff] %v12900_v22  ;;  %4174 = vmatpush1.bf16.msra.mxu0 %v9986_v39  ;;  %v12907_v30 = vpop.f32.mrb[13].mxu1  ;;  %v490_v22 = vld [vmem:[#allocation3 + $0x8e8] sm:$0xff] }
 0x187   :  { %15246 = vst [vmem:[#allocation34_spill] sm:$0xff] %v12907_v30  ;;  %4175 = vmatprep.subr.bf16.mxu0 %v9995_v16  ;;  %v486_v30 = vld [vmem:[#allocation3 + $0x8c8] sm:$0xff] }
 0x188   :  { %v12914_v28 = vpop.f32.mrb[14].mxu0 }
 0x189   :  { %v12916_v34 = vpop.f32.mrb[15].mxu0  ;;  %4131 = vmatmul.mubr.bf16.gmra.mrb[120].mxu0 %v12765_v62  ;;  %v12919_v35 = vpop.f32.mrb[14].mxu1 }
 0x18a   :  { %15247 = vst [vmem:[#allocation35_spill] sm:$0xff] %v12919_v35  ;;  %3905 = vmatmul.mubr.bf16.gmra.mrb[88].mxu1 %v12905_v32  ;;  %4176 = vmatpush1.bf16.msra.mxu0 %v9994_v24  ;;  %v12922_v50 = vpop.f32.mrb[15].mxu1 }
 0x18b   :  { %15248 = vst [vmem:[#allocation36_spill] sm:$0xff] %v12922_v50  ;;  %4177 = vmatprep.subr.bf16.mxu0 %v10003_v41  ;;  %3914 = vmatprep.mubr.bf16.mxu1 %v12912_v43  ;;  %v215_v41 = vld [vmem:[#allocation3 + $0x50] sm:$0xff]  ;;  %v15257_v50 = vmov 0  }
 0x18c   :  { %v12925_v53 = vpop.f32.mrb[16].mxu0  ;;  %4140 = vmatprep.mubr.bf16.mxu0 %v12774_v7  ;;  %v462_v7 = vld [vmem:[#allocation3 + $0x808] sm:$0xff] }
 0x18d   :  { %v12928_v60 = vpop.f32.mrb[17].mxu0  ;;  %v12930_v62 = vpop.f32.mrb[16].mxu1  ;;  %v10027_v39 = vcombine.high %v462_v7, %v466_v12 }
 0x18e   :  { %15249 = vst [vmem:[#allocation37_spill] sm:$0xff] %v12930_v62  ;;  %4178 = vmatpush1.bf16.msra.mxu0 %v10002_v48  ;;  %v12937_v2 = vpop.f32.mrb[17].mxu1  ;;  %v12965_v48 = vld [vmem:[%s15176_s0 + $0x18] ss:$28 sps:$4 sm:$0xff]  }
 0x18f   :  { %15250 = vst [vmem:[#allocation38_spill] sm:$0xff] %v12937_v2  ;;  %4179 = vmatprep.subr.bf16.mxu0 %v10011_v58  ;;  %v10026_v58 = vcombine.low %v462_v7, %v466_v12  ;;  %v223_v7 = vld [vmem:[#allocation3 + $0x90] sm:$0xff] }
 0x190   :  { %v12939_v5 = vpop.f32.mrb[18].mxu0  ;;  %v227_v12 = vld [vmem:[#allocation3 + $0xb0] sm:$0xff] }
 0x191   :  { %v12941_v6 = vpop.f32.mrb[19].mxu0  ;;  %4141 = vmatmul.mubr.bf16.gmra.mrb[124].mxu0 %v12783_v18  ;;  %v12944_v46 = vpop.f32.mrb[18].mxu1  ;;  %v470_v18 = vld [vmem:[#allocation3 + $0x848] sm:$0xff]  ;;  %v9789_v35 = vcombine.high %v223_v7, %v227_v12 }
 0x192   :  { %15251 = vst [vmem:[#allocation39_spill] sm:$0xff] %v12944_v46  ;;  %3915 = vmatmul.mubr.bf16.gmra.mrb[92].mxu1 %v12935_v3  ;;  %4180 = vmatpush1.bf16.msra.mxu0 %v10010_v44  ;;  %v12947_v10 = vpop.f32.mrb[19].mxu1  ;;  %v10035_v44 = vcombine.high %v470_v18, %v474_v20  ;;  %v482_v46 = vld [vmem:[#allocation3 + $0x8a8] sm:$0xff]  ;;  %v10034_v36 = vcombine.low %v470_v18, %v474_v20  ;;  %v12995_v18 = vld [vmem:[%s15176_s0 + $0x44] ss:$28 sps:$4 sm:$0xff]   ;;  %v231_v20 = vld [vmem:[#allocation3 + $0xd0] sm:$0xff] }
 0x193   :  { %15252 = vst [vmem:[#allocation40_spill] sm:$0xff] %v12947_v10  ;;  %4181 = vmatprep.subr.bf16.mxu0 %v10019_v4  ;;  %3957 = vmatprep.mubr.bf16.mxu1 %v15188_v21  ;;  %v9781_v21 = vcombine.high %v215_v41, %v219_v29  ;;  %v478_v10 = vld [vmem:[#allocation3 + $0x888] sm:$0xff] }
 0x194   :  { %v12950_v16 = vpop.f32.mrb[20].mxu0  ;;  %4183 = vmatprep.mubr.bf16.mxu0 %v12955_v19  ;;  %v10043_v2 = vcombine.high %v478_v10, %v482_v46 }
 0x195   :  { %v12958_v24 = vpop.f32.mrb[21].mxu0  ;;  %v12960_v49 = vpop.f32.mrb[20].mxu1 }
 0x196   :  { %15253 = vst [vmem:[#allocation41_spill] sm:$0xff] %v12960_v49  ;;  %4182 = vmatpush1.bf16.msra.mxu0 %v10018_v9  ;;  %v12967_v56 = vpop.f32.mrb[21].mxu1  ;;  %v12978_v9 = vld [vmem:[%s15176_s0 + $0x8] ss:$28 sps:$4 sm:$0xff]  }
 0x197   :  { %15254 = vst [vmem:[#allocation42_spill] sm:$0xff] %v12967_v56  ;;  %4264 = vmatprep.subr.bf16.mxu0 %v10027_v39  ;;  %v9780_v56 = vcombine.low %v215_v41, %v219_v29  ;;  %v235_v41 = vld [vmem:[#allocation3 + $0xf0] sm:$0xff] }
 0x198   :  { %v12971_v4 = vpop.f32.mrb[22].mxu0  ;;  %v9797_v14 = vcombine.high %v231_v20, %v235_v41 }
 0x199   :  { %v12973_v49 = vpop.f32.mrb[23].mxu0  ;;  %4184 = vmatmul.mubr.bf16.vlgmr.msra.gmra.mrb[128].mxu0 %v12978_v9  ;;  %v12981_v39 = vpop.f32.mrb[22].mxu1 }
 0x19a   :  { %15255 = vst [vmem:[#allocation43_spill] sm:$0xff] %v12981_v39  ;;  %10160 = vmatmul.mubr.msk.bf16.vlgmr.msra.gmra.mrb[64].mxu1 %vm629_vm0, %v12965_v48  ;;  %4265 = vmatpush1.bf16.msra.mxu0 %v10026_v58  ;;  %v12985_v55 = vpop.f32.mrb[23].mxu1  ;;  %v10042_v58 = vcombine.low %v478_v10, %v482_v46  ;;  %v239_v46 = vld [vmem:[#allocation3 + $0x110] sm:$0xff] }
 0x19b   :  { %15256 = vst [vmem:[#allocation44_spill] sm:$0xff] %v12985_v55  ;;  %4491 = vmatpush1.bf16.msra.mxu1 %v9772_v59  ;;  %4266 = vmatprep.subr.bf16.mxu0 %v10035_v44  ;;  %v9788_v44 = vcombine.low %v223_v7, %v227_v12  ;;  %v10051_v55 = vcombine.high %v486_v30, %v490_v22  ;;  %v243_v10 = vld [vmem:[#allocation3 + $0x130] sm:$0xff] }
 0x19c   :  { %v12987_v62 = vpop.f32.mrb[24].mxu0  ;;  %4492 = vmatprep.subr.bf16.mxu1 %v9781_v21  ;;  %3967 = vmatprep.mubr.bf16.mxu1 %v15257_v50  ;;  %v13003_v21 = vld [vmem:[%s15176_s0 + $0x50] ss:$28 sps:$4 sm:$0xff]   ;;  %v9796_v7 = vcombine.low %v231_v20, %v235_v41  ;;  %v10059_v12 = vcombine.high %v494_v0, %v498_v8  ;;  %v9805_v1 = vcombine.high %v239_v46, %v243_v10 }
 0x19d   :  { %v12990_v39 = vpop.f32.mrb[25].mxu0  ;;  %4193 = vmatprep.mubr.bf16.mxu0 %v12995_v18  ;;  %v12998_v29 = vpop.f32.mrb[24].mxu1  ;;  %v10058_v41 = vcombine.low %v494_v0, %v498_v8  ;;  %v255_v8 = vld [vmem:[#allocation3 + $0x190] sm:$0xff] }
 0x19e   :  { %15258 = vst [vmem:[#allocation45_spill] sm:$0xff] %v12998_v29  ;;  %4267 = vmatpush1.bf16.msra.mxu0 %v10034_v36  ;;  %v13005_v59 = vpop.f32.mrb[25].mxu1  ;;  %v13014_v36 = vld [vmem:[%s15176_s0 + $0x40] ss:$28 sps:$4 sm:$0xff]   ;;  %v259_v0 = vld [vmem:[#allocation3 + $0x1b0] sm:$0xff] }
 0x19f   :  { %15259 = vst [vmem:[#allocation46_spill] sm:$0xff] %v13005_v59  ;;  %4493 = vmatpush1.bf16.msra.mxu1 %v9780_v56  ;;  %4268 = vmatprep.subr.bf16.mxu0 %v10043_v2  ;;  %v9821_v26 = vcombine.high %v255_v8, %v259_v0 }
 0x1a0   :  { %v13007_v15 = vpop.f32.mrb[26].mxu0  ;;  %4494 = vmatprep.subr.bf16.mxu1 %v9789_v35  ;;  %v10050_v35 = vcombine.low %v486_v30, %v490_v22  ;;  %v13031_v22 = vld [vmem:[%s15176_s0 + $0x7c] ss:$28 sps:$4 sm:$0xff]   ;;  %v247_v30 = vld [vmem:[#allocation3 + $0x150] sm:$0xff] }
 0x1a1   :  { %v13009_v29 = vpop.f32.mrb[27].mxu0  ;;  %4194 = vmatmul.mubr.bf16.gmra.mrb[132].mxu0 %v13014_v36  ;;  %v13017_v2 = vpop.f32.mrb[26].mxu1 }
 0x1a2   :  { %15260 = vst [vmem:[#allocation47_spill] sm:$0xff] %v13017_v2  ;;  %10161 = vmatmul.mubr.msk.bf16.gmra.mrb[68].mxu1 %vm629_vm0, %v13003_v21  ;;  %4269 = vmatpush1.bf16.msra.mxu0 %v10042_v58  ;;  %v13021_v56 = vpop.f32.mrb[27].mxu1 }
 0x1a3   :  { %15261 = vst [vmem:[#allocation48_spill] sm:$0xff] %v13021_v56  ;;  %4495 = vmatpush1.bf16.msra.mxu1 %v9788_v44  ;;  %4270 = vmatprep.subr.bf16.mxu0 %v10051_v55  ;;  %v251_v55 = vld [vmem:[#allocation3 + $0x170] sm:$0xff]  ;;  %v9804_v44 = vcombine.low %v239_v46, %v243_v10  ;;  %v10067_v56 = vcombine.high %v502_v45, %v506_v57 }
 0x1a4   :  { %v13023_v59 = vpop.f32.mrb[28].mxu0  ;;  %4496 = vmatprep.subr.bf16.mxu1 %v9797_v14  ;;  %3977 = vmatprep.mubr.bf16.mxu1 %v15257_v50  ;;  %v13039_v14 = vld [vmem:[%s15176_s0 + $0x88] ss:$28 sps:$4 sm:$0xff]   ;;  %v9813_v47 = vcombine.high %v247_v30, %v251_v55  ;;  %v9812_v10 = vcombine.low %v247_v30, %v251_v55  ;;  %v10074_v55 = vcombine.low %v510_v42, %v514_v27 }
 0x1a5   :  { %v13026_v2 = vpop.f32.mrb[29].mxu0  ;;  %4203 = vmatprep.mubr.bf16.mxu0 %v13031_v22  ;;  %v13034_v20 = vpop.f32.mrb[28].mxu1  ;;  %15263 = vst [vmem:[#allocation50_spill] sm:$0xff] %v13039_v14 }
 0x1a6   :  { %15262 = vst [vmem:[#allocation49_spill] sm:$0xff] %v13034_v20  ;;  %4271 = vmatpush1.bf16.msra.mxu0 %v10050_v35  ;;  %v13041_v58 = vpop.f32.mrb[29].mxu1  ;;  %v13050_v35 = vld [vmem:[%s15176_s0 + $0x78] ss:$28 sps:$4 sm:$0xff]  }
 0x1a7   :  { %15264 = vst [vmem:[#allocation51_spill] sm:$0xff] %v13041_v58  ;;  %4497 = vmatpush1.bf16.msra.mxu1 %v9796_v7  ;;  %4272 = vmatprep.subr.bf16.mxu0 %v10059_v12  ;;  %15266 = vst [vmem:[#allocation53_spill] sm:$0xff] %v13050_v35  ;;  %v10075_v12 = vcombine.high %v510_v42, %v514_v27  ;;  %v271_v27 = vld [vmem:[#allocation3 + $0x210] sm:$0xff] }
 0x1a8   :  { %v13043_v54 = vpop.f32.mrb[30].mxu0  ;;  %4498 = vmatprep.subr.bf16.mxu1 %v9805_v1  ;;  %v10066_v1 = vcombine.low %v502_v45, %v506_v57  ;;  %v13067_v57 = vld [vmem:[%s15176_s0 + $0xb4] ss:$28 sps:$4 sm:$0xff]  }
 0x1a9   :  { %v13045_v20 = vpop.f32.mrb[31].mxu0  ;;  %4204 = vmatmul.mubr.bf16.gmra.mrb[136].mxu0 %v13050_v35  ;;  %v13053_v7 = vpop.f32.mrb[30].mxu1  ;;  %v518_v35 = vld [vmem:[#allocation3 + $0x9c8] sm:$0xff]  ;;  %15271 = vst [vmem:[#allocation58_spill] sm:$0xff] %v13067_v57  ;;  %v263_v45 = vld [vmem:[#allocation3 + $0x1d0] sm:$0xff] }
 0x1aa   :  { %15265 = vst [vmem:[#allocation52_spill] sm:$0xff] %v13045_v20  ;;  %15267 = vst [vmem:[#allocation54_spill] sm:$0xff] %v13053_v7  ;;  %10162 = vmatmul.mubr.msk.bf16.gmra.mrb[72].mxu1 %vm629_vm0, %v13039_v14  ;;  %4273 = vmatpush1.bf16.msra.mxu0 %v10058_v41  ;;  %v13057_v46 = vpop.f32.mrb[31].mxu1  ;;  %v522_v20 = vld [vmem:[#allocation3 + $0x9e8] sm:$0xff]  ;;  %v275_v42 = vld [vmem:[#allocation3 + $0x230] sm:$0xff] }
 0x1ab   :  { %15268 = vst [vmem:[#allocation55_spill] sm:$0xff] %v13057_v46  ;;  %4499 = vmatpush1.bf16.msra.mxu1 %v9804_v44  ;;  %4274 = vmatprep.subr.bf16.mxu0 %v10067_v56  ;;  %v267_v56 = vld [vmem:[#allocation3 + $0x1f0] sm:$0xff]  ;;  %v9820_v44 = vcombine.low %v255_v8, %v259_v0  ;;  %v530_v14 = vld [vmem:[#allocation3 + $0xa28] sm:$0xff] }
 0x1ac   :  { %v13059_v58 = vpop.f32.mrb[32].mxu0  ;;  %4500 = vmatprep.subr.bf16.mxu1 %v9813_v47  ;;  %3987 = vmatprep.mubr.bf16.mxu1 %v15257_v50  ;;  %v13075_v47 = vld [vmem:[%s15176_s0 + $0xc0] ss:$28 sps:$4 sm:$0xff]   ;;  %v9829_v46 = vcombine.high %v263_v45, %v267_v56  ;;  %v9828_v0 = vcombine.low %v263_v45, %v267_v56 }
 0x1ad   :  { %15269 = vst [vmem:[#allocation56_spill] sm:$0xff] %v13059_v58  ;;  %v13062_v7 = vpop.f32.mrb[33].mxu0  ;;  %4213 = vmatprep.mubr.bf16.mxu0 %v13067_v57  ;;  %v13070_v30 = vpop.f32.mrb[32].mxu1  ;;  %15273 = vst [vmem:[#allocation60_spill] sm:$0xff] %v13075_v47  ;;  %v526_v57 = vld [vmem:[#allocation3 + $0xa08] sm:$0xff] }
 0x1ae   :  { %15270 = vst [vmem:[#allocation57_spill] sm:$0xff] %v13062_v7  ;;  %15272 = vst [vmem:[#allocation59_spill] sm:$0xff] %v13070_v30  ;;  %4275 = vmatpush1.bf16.msra.mxu0 %v10066_v1  ;;  %v13077_v41 = vpop.f32.mrb[33].mxu1  ;;  %v10083_v7 = vcombine.high %v518_v35, %v522_v20  ;;  %v13086_v1 = vld [vmem:[%s15176_s0 + $0xb0] ss:$28 sps:$4 sm:$0xff]   ;;  %v10090_v56 = vcombine.low %v526_v57, %v530_v14 }
 0x1af   :  { %15274 = vst [vmem:[#allocation61_spill] sm:$0xff] %v13077_v41  ;;  %4501 = vmatpush1.bf16.msra.mxu1 %v9812_v10  ;;  %4276 = vmatprep.subr.bf16.mxu0 %v10075_v12  ;;  %15277 = vst [vmem:[#allocation64_spill] sm:$0xff] %v13086_v1  ;;  %v10091_v12 = vcombine.high %v526_v57, %v530_v14  ;;  %v287_v14 = vld [vmem:[#allocation3 + $0x290] sm:$0xff] }
 0x1b0   :  { %v13079_v58 = vpop.f32.mrb[34].mxu0  ;;  %4502 = vmatprep.subr.bf16.mxu1 %v9821_v26  ;;  %v10082_v26 = vcombine.low %v518_v35, %v522_v20  ;;  %v13103_v20 = vld [vmem:[%s15176_s0 + $0xec] ss:$28 sps:$4 sm:$0xff]   ;;  %v279_v35 = vld [vmem:[#allocation3 + $0x250] sm:$0xff] }
 0x1b1   :  { %15275 = vst [vmem:[#allocation62_spill] sm:$0xff] %v13079_v58  ;;  %v13081_v30 = vpop.f32.mrb[35].mxu0  ;;  %4214 = vmatmul.mubr.bf16.gmra.mrb[140].mxu0 %v13086_v1  ;;  %v13089_v10 = vpop.f32.mrb[34].mxu1  ;;  %v534_v58 = vld [vmem:[#allocation3 + $0xa48] sm:$0xff]  ;;  %15282 = vst [vmem:[#allocation69_spill] sm:$0xff] %v13103_v20  ;;  %v291_v57 = vld [vmem:[#allocation3 + $0x2b0] sm:$0xff] }
 0x1b2   :  { %15276 = vst [vmem:[#allocation63_spill] sm:$0xff] %v13081_v30  ;;  %15278 = vst [vmem:[#allocation65_spill] sm:$0xff] %v13089_v10  ;;  %10163 = vmatmul.mubr.msk.bf16.gmra.mrb[76].mxu1 %vm629_vm0, %v13075_v47  ;;  %4277 = vmatpush1.bf16.msra.mxu0 %v10074_v55  ;;  %v13093_v8 = vpop.f32.mrb[35].mxu1  ;;  %v9837_v30 = vcombine.high %v271_v27, %v275_v42  ;;  %v538_v1 = vld [vmem:[#allocation3 + $0xa68] sm:$0xff] }
 0x1b3   :  { %15279 = vst [vmem:[#allocation66_spill] sm:$0xff] %v13093_v8  ;;  %4503 = vmatpush1.bf16.msra.mxu1 %v9820_v44  ;;  %4278 = vmatprep.subr.bf16.mxu0 %v10083_v7  ;;  %v283_v7 = vld [vmem:[#allocation3 + $0x270] sm:$0xff]  ;;  %v9836_v44 = vcombine.low %v271_v27, %v275_v42  ;;  %v10099_v8 = vcombine.high %v534_v58, %v538_v1  ;;  %v546_v47 = vld [vmem:[#allocation3 + $0xaa8] sm:$0xff] }
 0x1b4   :  { %v13095_v41 = vpop.f32.mrb[36].mxu0  ;;  %4504 = vmatprep.subr.bf16.mxu1 %v9829_v46  ;;  %3997 = vmatprep.mubr.bf16.mxu1 %v15257_v50  ;;  %v13111_v46 = vld [vmem:[%s15176_s0 + $0xf8] ss:$28 sps:$4 sm:$0xff]   ;;  %v9844_v42 = vcombine.low %v279_v35, %v283_v7 }
 0x1b5   :  { %15280 = vst [vmem:[#allocation67_spill] sm:$0xff] %v13095_v41  ;;  %v13098_v10 = vpop.f32.mrb[37].mxu0  ;;  %4223 = vmatprep.mubr.bf16.mxu0 %v13103_v20  ;;  %v13106_v45 = vpop.f32.mrb[36].mxu1  ;;  %15284 = vst [vmem:[#allocation71_spill] sm:$0xff] %v13111_v46  ;;  %v9845_v41 = vcombine.high %v279_v35, %v283_v7  ;;  %v542_v20 = vld [vmem:[#allocation3 + $0xa88] sm:$0xff] }
 0x1b6   :  { %15281 = vst [vmem:[#allocation68_spill] sm:$0xff] %v13098_v10  ;;  %15283 = vst [vmem:[#allocation70_spill] sm:$0xff] %v13106_v45  ;;  %4279 = vmatpush1.bf16.msra.mxu0 %v10082_v26  ;;  %v13113_v55 = vpop.f32.mrb[37].mxu1  ;;  %v13122_v26 = vld [vmem:[%s15176_s0 + $0xe8] ss:$28 sps:$4 sm:$0xff]   ;;  %v10106_v7 = vcombine.low %v542_v20, %v546_v47 }
 0x1b7   :  { %15285 = vst [vmem:[#allocation72_spill] sm:$0xff] %v13113_v55  ;;  %4505 = vmatpush1.bf16.msra.mxu1 %v9828_v0  ;;  %4280 = vmatprep.subr.bf16.mxu0 %v10091_v12  ;;  %15288 = vst [vmem:[#allocation75_spill] sm:$0xff] %v13122_v26  ;;  %v10107_v12 = vcombine.high %v542_v20, %v546_v47  ;;  %v303_v47 = vld [vmem:[#allocation3 + $0x310] sm:$0xff] }
 0x1b8   :  { %v13115_v10 = vpop.f32.mrb[38].mxu0  ;;  %4506 = vmatprep.subr.bf16.mxu1 %v9837_v30  ;;  %v10098_v30 = vcombine.low %v534_v58, %v538_v1  ;;  %v13139_v58 = vld [vmem:[%s15176_s0 + $0x124] ss:$28 sps:$4 sm:$0xff]   ;;  %v295_v1 = vld [vmem:[#allocation3 + $0x2d0] sm:$0xff] }
 0x1b9   :  { %15286 = vst [vmem:[#allocation73_spill] sm:$0xff] %v13115_v10  ;;  %v13117_v45 = vpop.f32.mrb[39].mxu0  ;;  %4224 = vmatmul.mubr.bf16.gmra.mrb[144].mxu0 %v13122_v26  ;;  %v13125_v0 = vpop.f32.mrb[38].mxu1  ;;  %v550_v10 = vld [vmem:[#allocation3 + $0xac8] sm:$0xff]  ;;  %15293 = vst [vmem:[#allocation80_spill] sm:$0xff] %v13139_v58  ;;  %v307_v20 = vld [vmem:[#allocation3 + $0x330] sm:$0xff] }
 0x1ba   :  { %15287 = vst [vmem:[#allocation74_spill] sm:$0xff] %v13117_v45  ;;  %15289 = vst [vmem:[#allocation76_spill] sm:$0xff] %v13125_v0  ;;  %10164 = vmatmul.mubr.msk.bf16.gmra.mrb[80].mxu1 %vm629_vm0, %v13111_v46  ;;  %4281 = vmatpush1.bf16.msra.mxu0 %v10090_v56  ;;  %v13129_v27 = vpop.f32.mrb[39].mxu1  ;;  %v9853_v45 = vcombine.high %v287_v14, %v291_v57  ;;  %v554_v26 = vld [vmem:[#allocation3 + $0xae8] sm:$0xff] }
 0x1bb   :  { %15290 = vst [vmem:[#allocation77_spill] sm:$0xff] %v13129_v27  ;;  %4507 = vmatpush1.bf16.msra.mxu1 %v9836_v44  ;;  %4282 = vmatprep.subr.bf16.mxu0 %v10099_v8  ;;  %v299_v8 = vld [vmem:[#allocation3 + $0x2f0] sm:$0xff]  ;;  %v9852_v44 = vcombine.low %v287_v14, %v291_v57  ;;  %v10115_v27 = vcombine.high %v550_v10, %v554_v26  ;;  %v562_v46 = vld [vmem:[#allocation3 + $0xb28] sm:$0xff] }
 0x1bc   :  { %v13131_v55 = vpop.f32.mrb[40].mxu0  ;;  %4508 = vmatprep.subr.bf16.mxu1 %v9845_v41  ;;  %4007 = vmatprep.mubr.bf16.mxu1 %v15257_v50  ;;  %v13147_v41 = vld [vmem:[%s15176_s0 + $0x130] ss:$28 sps:$4 sm:$0xff]   ;;  %v9860_v57 = vcombine.low %v295_v1, %v299_v8 }
 0x1bd   :  { %15291 = vst [vmem:[#allocation78_spill] sm:$0xff] %v13131_v55  ;;  %v13134_v0 = vpop.f32.mrb[41].mxu0  ;;  %4233 = vmatprep.mubr.bf16.mxu0 %v13139_v58  ;;  %v13142_v35 = vpop.f32.mrb[40].mxu1  ;;  %15295 = vst [vmem:[#allocation82_spill] sm:$0xff] %v13147_v41  ;;  %v9861_v55 = vcombine.high %v295_v1, %v299_v8  ;;  %v558_v58 = vld [vmem:[#allocation3 + $0xb08] sm:$0xff] }
 0x1be   :  { %15292 = vst [vmem:[#allocation79_spill] sm:$0xff] %v13134_v0  ;;  %15294 = vst [vmem:[#allocation81_spill] sm:$0xff] %v13142_v35  ;;  %4283 = vmatpush1.bf16.msra.mxu0 %v10098_v30  ;;  %v13149_v56 = vpop.f32.mrb[41].mxu1  ;;  %v13158_v30 = vld [vmem:[%s15176_s0 + $0x120] ss:$28 sps:$4 sm:$0xff]   ;;  %v10122_v8 = vcombine.low %v558_v58, %v562_v46 }
 0x1bf   :  { %15296 = vst [vmem:[#allocation83_spill] sm:$0xff] %v13149_v56  ;;  %4509 = vmatpush1.bf16.msra.mxu1 %v9844_v42  ;;  %4284 = vmatprep.subr.bf16.mxu0 %v10107_v12  ;;  %15299 = vst [vmem:[#allocation86_spill] sm:$0xff] %v13158_v30  ;;  %v10123_v12 = vcombine.high %v558_v58, %v562_v46  ;;  %v319_v46 = vld [vmem:[#allocation3 + $0x390] sm:$0xff] }
 0x1c0   :  { %v13151_v0 = vpop.f32.mrb[42].mxu0  ;;  %4510 = vmatprep.subr.bf16.mxu1 %v9853_v45  ;;  %v10114_v45 = vcombine.low %v550_v10, %v554_v26  ;;  %v13175_v10 = vld [vmem:[%s15176_s0 + $0x15c] ss:$28 sps:$4 sm:$0xff]   ;;  %v311_v26 = vld [vmem:[#allocation3 + $0x350] sm:$0xff] }
 0x1c1   :  { %15297 = vst [vmem:[#allocation84_spill] sm:$0xff] %v13151_v0  ;;  %v13153_v35 = vpop.f32.mrb[43].mxu0  ;;  %4234 = vmatmul.mubr.bf16.gmra.mrb[148].mxu0 %v13158_v30  ;;  %v13161_v42 = vpop.f32.mrb[42].mxu1  ;;  %v566_v0 = vld [vmem:[#allocation3 + $0xb48] sm:$0xff]  ;;  %15304 = vst [vmem:[#allocation91_spill] sm:$0xff] %v13175_v10  ;;  %v323_v58 = vld [vmem:[#allocation3 + $0x3b0] sm:$0xff] }
 0x1c2   :  { %15298 = vst [vmem:[#allocation85_spill] sm:$0xff] %v13153_v35  ;;  %15300 = vst [vmem:[#allocation87_spill] sm:$0xff] %v13161_v42  ;;  %10165 = vmatmul.mubr.msk.bf16.gmra.mrb[84].mxu1 %vm629_vm0, %v13147_v41  ;;  %4285 = vmatpush1.bf16.msra.mxu0 %v10106_v7  ;;  %v13165_v14 = vpop.f32.mrb[43].mxu1  ;;  %v9869_v35 = vcombine.high %v303_v47, %v307_v20  ;;  %v570_v30 = vld [vmem:[#allocation3 + $0xb68] sm:$0xff] }
 0x1c3   :  { %15301 = vst [vmem:[#allocation88_spill] sm:$0xff] %v13165_v14  ;;  %4511 = vmatpush1.bf16.msra.mxu1 %v9852_v44  ;;  %4286 = vmatprep.subr.bf16.mxu0 %v10115_v27  ;;  %v315_v27 = vld [vmem:[#allocation3 + $0x370] sm:$0xff]  ;;  %v9868_v44 = vcombine.low %v303_v47, %v307_v20  ;;  %v10131_v14 = vcombine.high %v566_v0, %v570_v30  ;;  %v578_v41 = vld [vmem:[#allocation3 + $0xba8] sm:$0xff] }
 0x1c4   :  { %v13167_v56 = vpop.f32.mrb[44].mxu0  ;;  %4512 = vmatprep.subr.bf16.mxu1 %v9861_v55  ;;  %4017 = vmatprep.mubr.bf16.mxu1 %v15257_v50  ;;  %v13183_v55 = vld [vmem:[%s15176_s0 + $0x168] ss:$28 sps:$4 sm:$0xff]   ;;  %v9876_v20 = vcombine.low %v311_v26, %v315_v27 }
 0x1c5   :  { %15302 = vst [vmem:[#allocation89_spill] sm:$0xff] %v13167_v56  ;;  %v13170_v42 = vpop.f32.mrb[45].mxu0  ;;  %4243 = vmatprep.mubr.bf16.mxu0 %v13175_v10  ;;  %v13178_v1 = vpop.f32.mrb[44].mxu1  ;;  %15306 = vst [vmem:[#allocation93_spill] sm:$0xff] %v13183_v55  ;;  %v9877_v56 = vcombine.high %v311_v26, %v315_v27  ;;  %v574_v10 = vld [vmem:[#allocation3 + $0xb88] sm:$0xff] }
 0x1c6   :  { %15303 = vst [vmem:[#allocation90_spill] sm:$0xff] %v13170_v42  ;;  %15305 = vst [vmem:[#allocation92_spill] sm:$0xff] %v13178_v1  ;;  %4287 = vmatpush1.bf16.msra.mxu0 %v10114_v45  ;;  %v13185_v7 = vpop.f32.mrb[45].mxu1  ;;  %v13194_v45 = vld [vmem:[%s15176_s0 + $0x158] ss:$28 sps:$4 sm:$0xff]   ;;  %v10138_v27 = vcombine.low %v574_v10, %v578_v41 }
 0x1c7   :  { %15307 = vst [vmem:[#allocation94_spill] sm:$0xff] %v13185_v7  ;;  %4513 = vmatpush1.bf16.msra.mxu1 %v9860_v57  ;;  %4288 = vmatprep.subr.bf16.mxu0 %v10123_v12  ;;  %15310 = vst [vmem:[#allocation97_spill] sm:$0xff] %v13194_v45  ;;  %v10139_v12 = vcombine.high %v574_v10, %v578_v41  ;;  %v335_v41 = vld [vmem:[#allocation3 + $0x410] sm:$0xff] }
 0x1c8   :  { %v13187_v42 = vpop.f32.mrb[46].mxu0  ;;  %4514 = vmatprep.subr.bf16.mxu1 %v9869_v35  ;;  %v10130_v35 = vcombine.low %v566_v0, %v570_v30  ;;  %v13211_v0 = vld [vmem:[%s15176_s0 + $0x194] ss:$28 sps:$4 sm:$0xff]  }
 0x1c9   :  { %15308 = vst [vmem:[#allocation95_spill] sm:$0xff] %v13187_v42  ;;  %v13189_v1 = vpop.f32.mrb[47].mxu0  ;;  %4244 = vmatmul.mubr.bf16.gmra.mrb[152].mxu0 %v13194_v45  ;;  %v13197_v57 = vpop.f32.mrb[46].mxu1  ;;  %v582_v42 = vld [vmem:[#allocation3 + $0xbc8] sm:$0xff]  ;;  %15315 = vst [vmem:[#allocation102_spill] sm:$0xff] %v13211_v0  ;;  %v327_v30 = vld [vmem:[#allocation3 + $0x3d0] sm:$0xff] }
 0x1ca   :  { %15309 = vst [vmem:[#allocation96_spill] sm:$0xff] %v13189_v1  ;;  %15311 = vst [vmem:[#allocation98_spill] sm:$0xff] %v13197_v57  ;;  %10166 = vmatmul.mubr.msk.bf16.gmra.mrb[88].mxu1 %vm629_vm0, %v13183_v55  ;;  %4289 = vmatpush1.bf16.msra.mxu0 %v10122_v8  ;;  %v13201_v47 = vpop.f32.mrb[47].mxu1  ;;  %v9885_v1 = vcombine.high %v319_v46, %v323_v58  ;;  %v586_v45 = vld [vmem:[#allocation3 + $0xbe8] sm:$0xff]  ;;  %v339_v10 = vld [vmem:[#allocation3 + $0x430] sm:$0xff] }
 0x1cb   :  { %15312 = vst [vmem:[#allocation99_spill] sm:$0xff] %v13201_v47  ;;  %4515 = vmatpush1.bf16.msra.mxu1 %v9868_v44  ;;  %4290 = vmatprep.subr.bf16.mxu0 %v10131_v14  ;;  %v331_v14 = vld [vmem:[#allocation3 + $0x3f0] sm:$0xff]  ;;  %v9884_v44 = vcombine.low %v319_v46, %v323_v58  ;;  %v10147_v47 = vcombine.high %v582_v42, %v586_v45  ;;  %v594_v55 = vld [vmem:[#allocation3 + $0xc28] sm:$0xff] }
 0x1cc   :  { %v13203_v7 = vpop.f32.mrb[48].mxu0  ;;  %4516 = vmatprep.subr.bf16.mxu1 %v9877_v56  ;;  %4027 = vmatprep.mubr.bf16.mxu1 %v15257_v50  ;;  %v13219_v56 = vld [vmem:[%s15176_s0 + $0x1a0] ss:$28 sps:$4 sm:$0xff]   ;;  %v9892_v58 = vcombine.low %v327_v30, %v331_v14 }
 0x1cd   :  { %15313 = vst [vmem:[#allocation100_spill] sm:$0xff] %v13203_v7  ;;  %v13206_v57 = vpop.f32.mrb[49].mxu0  ;;  %4253 = vmatprep.mubr.bf16.mxu0 %v13211_v0  ;;  %v13214_v26 = vpop.f32.mrb[48].mxu1  ;;  %v9893_v7 = vcombine.high %v327_v30, %v331_v14  ;;  %v590_v0 = vld [vmem:[#allocation3 + $0xc08] sm:$0xff] }
 0x1ce   :  { %15314 = vst [vmem:[#allocation101_spill] sm:$0xff] %v13206_v57  ;;  %15316 = vst [vmem:[#allocation103_spill] sm:$0xff] %v13214_v26  ;;  %4291 = vmatpush1.bf16.msra.mxu0 %v10130_v35  ;;  %v13221_v8 = vpop.f32.mrb[49].mxu1  ;;  %v13230_v35 = vld [vmem:[%s15176_s0 + $0x190] ss:$28 sps:$4 sm:$0xff]   ;;  %v10154_v30 = vcombine.low %v590_v0, %v594_v55 }
 0x1cf   :  { %15317 = vst [vmem:[#allocation104_spill] sm:$0xff] %v13221_v8  ;;  %4517 = vmatpush1.bf16.msra.mxu1 %v9876_v20  ;;  %4292 = vmatprep.subr.bf16.mxu0 %v10139_v12  ;;  %v10155_v12 = vcombine.high %v590_v0, %v594_v55  ;;  %v351_v55 = vld [vmem:[#allocation3 + $0x490] sm:$0xff] }
 0x1d0   :  { %v13223_v57 = vpop.f32.mrb[50].mxu0  ;;  %4518 = vmatprep.subr.bf16.mxu1 %v9885_v1  ;;  %v10146_v1 = vcombine.low %v582_v42, %v586_v45  ;;  %v13252_v42 = vld [vmem:[%s15176_s0 + $0x4] ss:$28 sps:$4 sm:$0xff]   ;;  %v343_v45 = vld [vmem:[#allocation3 + $0x450] sm:$0xff] }
 0x1d1   :  { %15318 = vst [vmem:[#allocation105_spill] sm:$0xff] %v13223_v57  ;;  %v13225_v26 = vpop.f32.mrb[51].mxu0  ;;  %4254 = vmatmul.mubr.bf16.gmra.mrb[156].mxu0 %v13230_v35  ;;  %v13233_v20 = vpop.f32.mrb[50].mxu1  ;;  %15324 = vst [vmem:[#allocation111_spill] sm:$0xff] %v13252_v42  ;;  %v355_v0 = vld [vmem:[#allocation3 + $0x4b0] sm:$0xff] }
 0x1d2   :  { %15319 = vst [vmem:[#allocation106_spill] sm:$0xff] %v13225_v26  ;;  %15320 = vst [vmem:[#allocation107_spill] sm:$0xff] %v13233_v20  ;;  %10167 = vmatmul.mubr.msk.bf16.gmra.mrb[92].mxu1 %vm629_vm0, %v13219_v56  ;;  %4293 = vmatpush1.bf16.msra.mxu0 %v10138_v27  ;;  %v13237_v46 = vpop.f32.mrb[51].mxu1  ;;  %v13244_v26 = vld [vmem:[%s15176_s0 + $0x14] ss:$28 sps:$4 sm:$0xff]   ;;  %v9901_v20 = vcombine.high %v335_v41, %v339_v10  ;;  %v13259_v27 = vld [vmem:[#allocation3 + $0x18] sm:$0xff] }
 0x1d3   :  { %15321 = vst [vmem:[#allocation108_spill] sm:$0xff] %v13237_v46  ;;  %4519 = vmatpush1.bf16.msra.mxu1 %v9884_v44  ;;  %4294 = vmatprep.subr.bf16.mxu0 %v10147_v47  ;;  %v347_v47 = vld [vmem:[#allocation3 + $0x470] sm:$0xff]  ;;  %v13261_v44 = vld [vmem:[#allocation3 + $0x38] sm:$0xff]  ;;  %v9900_v46 = vcombine.low %v335_v41, %v339_v10 }
 0x1d4   :  { %v13239_v8 = vpop.f32.mrb[52].mxu0  ;;  %4520 = vmatprep.subr.bf16.mxu1 %v9893_v7  ;;  %4296 = vmatprep.mubr.bf16.mxu0 %v13244_v26  ;;  %v9775_v41 = vcombine.high %v13259_v27, %v13261_v44  ;;  %v13280_v10 = vld [vmem:[%s15176_s0] ss:$28 sps:$4 sm:$0xff]  }
 0x1d5   :  { %15322 = vst [vmem:[#allocation109_spill] sm:$0xff] %v13239_v8  ;;  %v13247_v57 = vpop.f32.mrb[53].mxu0  ;;  %4522 = vmatprep.mubr.bf16.mxu1 %v13252_v42  ;;  %v13255_v7 = vpop.f32.mrb[52].mxu1  ;;  %v9909_v8 = vcombine.high %v343_v45, %v347_v47 }
 0x1d6   :  { %15323 = vst [vmem:[#allocation110_spill] sm:$0xff] %v13247_v57  ;;  %15325 = vst [vmem:[#allocation112_spill] sm:$0xff] %v13255_v7  ;;  %4295 = vmatpush1.bf16.msra.mxu0 %v10146_v1  ;;  %v13257_v14 = vpop.f32.mrb[53].mxu1  ;;  %v13270_v1 = vld [vmem:[%s15176_s0 + $0x10] ss:$28 sps:$4 sm:$0xff]  }
 0x1d7   :  { %15326 = vst [vmem:[#allocation113_spill] sm:$0xff] %v13257_v14  ;;  %4521 = vmatpush1.bf16.msra.mxu1 %v9892_v58  ;;  %4377 = vmatprep.subr.bf16.mxu0 %v10155_v12  ;;  %15329 = vst [vmem:[#allocation116_spill] sm:$0xff] %v13270_v1  ;;  %v9908_v58 = vcombine.low %v343_v45, %v347_v47  ;;  %v13288_v12 = vld [vmem:[%s15176_s0 + $0x4c] ss:$28 sps:$4 sm:$0xff]   ;;  %v13296_v7 = vld [vmem:[%s15176_s0 + $0x3c] ss:$28 sps:$4 sm:$0xff]  }
 0x1d8   :  { %v13263_v57 = vpop.f32.mrb[54].mxu0  ;;  %4603 = vmatprep.subr.bf16.mxu1 %v9901_v20  ;;  %15332 = vst [vmem:[#allocation119_spill] sm:$0xff] %v13288_v12  ;;  %15334 = vst [vmem:[#allocation121_spill] sm:$0xff] %v13296_v7  ;;  %v359_v45 = vld [vmem:[#allocation3 + $0x4d0] sm:$0xff] }
 0x1d9   :  { %15327 = vst [vmem:[#allocation114_spill] sm:$0xff] %v13263_v57  ;;  %v13265_v42 = vpop.f32.mrb[55].mxu0  ;;  %4297 = vmatmul.mubr.bf16.vlgmr.msra.gmra.mrb[128].mxu0 %v13270_v1  ;;  %v13273_v14 = vpop.f32.mrb[54].mxu1  ;;  %v363_v47 = vld [vmem:[#allocation3 + $0x4f0] sm:$0xff] }
 0x1da   :  { %15328 = vst [vmem:[#allocation115_spill] sm:$0xff] %v13265_v42  ;;  %15330 = vst [vmem:[#allocation117_spill] sm:$0xff] %v13273_v14  ;;  %4523 = vmatmul.mubr.bf16.vlgmr.msra.gmra.mrb[96].mxu1 %v13280_v10  ;;  %4378 = vmatpush1.bf16.msra.mxu0 %v10154_v30  ;;  %v13283_v20 = vpop.f32.mrb[55].mxu1  ;;  %v9917_v30 = vcombine.high %v351_v55, %v355_v0  ;;  %v9925_v57 = vcombine.high %v359_v45, %v363_v47 }
 0x1db   :  { %15331 = vst [vmem:[#allocation118_spill] sm:$0xff] %v13283_v20  ;;  %4604 = vmatpush1.bf16.msra.mxu1 %v9900_v46  ;;  %4306 = vmatprep.mubr.bf16.mxu0 %v13288_v12 }
 0x1dc   :  { %v13291_v14 = vpop.f32.mrb[56].mxu0  ;;  %4605 = vmatprep.subr.bf16.mxu1 %v9909_v8  ;;  %4532 = vmatprep.mubr.bf16.mxu1 %v13296_v7  ;;  %v13312_v7 = vld [vmem:[%s15176_s0 + $0x48] ss:$28 sps:$4 sm:$0xff]  }
 0x1dd   :  { %15333 = vst [vmem:[#allocation120_spill] sm:$0xff] %v13291_v14  ;;  %v13299_v46 = vpop.f32.mrb[57].mxu0  ;;  %4942 = vmatprep.subr.bf16.mxu0 %v9775_v41  ;;  %v13301_v20 = vpop.f32.mrb[56].mxu1  ;;  %v9916_v14 = vcombine.low %v351_v55, %v355_v0  ;;  %15340 = vst [vmem:[#allocation127_spill] sm:$0xff] %v13312_v7  ;;  %v367_v41 = vld [vmem:[#allocation3 + $0x510] sm:$0xff] }
 0x1de   :  { %15335 = vst [vmem:[#allocation122_spill] sm:$0xff] %v13299_v46  ;;  %15336 = vst [vmem:[#allocation123_spill] sm:$0xff] %v13301_v20  ;;  %v13303_v42 = vpop.f32.mrb[57].mxu1  ;;  %v371_v46 = vld [vmem:[#allocation3 + $0x530] sm:$0xff]  ;;  %v13326_v0 = vld [vmem:[%s15176_s0 + $0x84] ss:$28 sps:$4 sm:$0xff]  }
 0x1df   :  { %15337 = vst [vmem:[#allocation124_spill] sm:$0xff] %v13303_v42  ;;  %4606 = vmatpush1.bf16.msra.mxu1 %v9908_v58  ;;  %v13320_v55 = vld [vmem:[%s15176_s0 + $0x38] ss:$28 sps:$4 sm:$0xff]   ;;  %15343 = vst [vmem:[#allocation130_spill] sm:$0xff] %v13326_v0 }
 0x1e0   :  { %v13305_v8 = vpop.f32.mrb[58].mxu0  ;;  %4607 = vmatprep.subr.bf16.mxu1 %v9917_v30  ;;  %15342 = vst [vmem:[#allocation129_spill] sm:$0xff] %v13320_v55  ;;  %v9924_v30 = vcombine.low %v359_v45, %v363_v47 }
 0x1e1   :  { %15338 = vst [vmem:[#allocation125_spill] sm:$0xff] %v13305_v8  ;;  %v13307_v12 = vpop.f32.mrb[59].mxu0  ;;  %4307 = vmatmul.mubr.bf16.gmra.mrb[132].mxu0 %v13312_v7  ;;  %v13315_v20 = vpop.f32.mrb[58].mxu1  ;;  %v375_v7 = vld [vmem:[#allocation3 + $0x550] sm:$0xff] }
 0x1e2   :  { %15339 = vst [vmem:[#allocation126_spill] sm:$0xff] %v13307_v12  ;;  %15341 = vst [vmem:[#allocation128_spill] sm:$0xff] %v13315_v20  ;;  %4533 = vmatmul.mubr.bf16.gmra.mrb[100].mxu1 %v13320_v55  ;;  %4316 = vmatprep.mubr.bf16.mxu0 %v13326_v0  ;;  %v13329_v58 = vpop.f32.mrb[59].mxu1  ;;  %v13334_v20 = vld [vmem:[%s15176_s0 + $0x74] ss:$28 sps:$4 sm:$0xff]   ;;  %v9933_v12 = vcombine.high %v367_v41, %v371_v46 }
 0x1e3   :  { %15344 = vst [vmem:[#allocation131_spill] sm:$0xff] %v13329_v58  ;;  %4608 = vmatpush1.bf16.msra.mxu1 %v9916_v14  ;;  %15345 = vst [vmem:[#allocation132_spill] sm:$0xff] %v13334_v20  ;;  %4542 = vmatprep.mubr.bf16.mxu1 %v13334_v20  ;;  %v379_v55 = vld [vmem:[#allocation3 + $0x570] sm:$0xff]  ;;  %v9932_v14 = vcombine.low %v367_v41, %v371_v46 }
 0x1e4   :  { %v13337_v42 = vpop.f32.mrb[60].mxu0  ;;  %4609 = vmatprep.subr.bf16.mxu1 %v9925_v57  ;;  %v9941_v47 = vcombine.high %v375_v7, %v379_v55  ;;  %v13352_v57 = vld [vmem:[%s15176_s0 + $0x80] ss:$28 sps:$4 sm:$0xff]   ;;  %v13360_v46 = vld [vmem:[%s15176_s0 + $0x70] ss:$28 sps:$4 sm:$0xff]  }
 0x1e5   :  { %15346 = vst [vmem:[#allocation133_spill] sm:$0xff] %v13337_v42  ;;  %v13339_v8 = vpop.f32.mrb[61].mxu0  ;;  %v13341_v0 = vpop.f32.mrb[60].mxu1  ;;  %15352 = vst [vmem:[#allocation139_spill] sm:$0xff] %v13352_v57  ;;  %v387_v42 = vld [vmem:[#allocation3 + $0x5b0] sm:$0xff] }
 0x1e6   :  { %15347 = vst [vmem:[#allocation134_spill] sm:$0xff] %v13339_v8  ;;  %15348 = vst [vmem:[#allocation135_spill] sm:$0xff] %v13341_v0  ;;  %v13343_v58 = vpop.f32.mrb[61].mxu1  ;;  %v383_v8 = vld [vmem:[#allocation3 + $0x590] sm:$0xff] }
 0x1e7   :  { %15349 = vst [vmem:[#allocation136_spill] sm:$0xff] %v13343_v58  ;;  %4610 = vmatpush1.bf16.msra.mxu1 %v9924_v30  ;;  %15354 = vst [vmem:[#allocation141_spill] sm:$0xff] %v13360_v46  ;;  %v9940_v30 = vcombine.low %v375_v7, %v379_v55  ;;  %v9948_v20 = vcombine.low %v383_v8, %v387_v42 }
 0x1e8   :  { %v13345_v45 = vpop.f32.mrb[62].mxu0  ;;  %4611 = vmatprep.subr.bf16.mxu1 %v9933_v12  ;;  %v13366_v12 = vld [vmem:[%s15176_s0 + $0xbc] ss:$28 sps:$4 sm:$0xff]  }
 0x1e9   :  { %15350 = vst [vmem:[#allocation137_spill] sm:$0xff] %v13345_v45  ;;  %v13347_v1 = vpop.f32.mrb[63].mxu0  ;;  %4317 = vmatmul.mubr.bf16.gmra.mrb[136].mxu0 %v13352_v57  ;;  %v13355_v0 = vpop.f32.mrb[62].mxu1  ;;  %15355 = vst [vmem:[#allocation142_spill] sm:$0xff] %v13366_v12 }
 0x1ea   :  { %15351 = vst [vmem:[#allocation138_spill] sm:$0xff] %v13347_v1  ;;  %15353 = vst [vmem:[#allocation140_spill] sm:$0xff] %v13355_v0  ;;  %4543 = vmatmul.mubr.bf16.gmra.mrb[104].mxu1 %v13360_v46  ;;  %4326 = vmatprep.mubr.bf16.mxu0 %v13366_v12  ;;  %v13369_v41 = vpop.f32.mrb[63].mxu1  ;;  %v13374_v0 = vld [vmem:[%s15176_s0 + $0xac] ss:$28 sps:$4 sm:$0xff]   ;;  %v9949_v1 = vcombine.high %v383_v8, %v387_v42  ;;  %v391_v46 = vld [vmem:[#allocation3 + $0x5d0] sm:$0xff] }
 0x1eb   :  { %15356 = vst [vmem:[#allocation143_spill] sm:$0xff] %v13369_v41  ;;  %4612 = vmatpush1.bf16.msra.mxu1 %v9932_v14  ;;  %15357 = vst [vmem:[#allocation144_spill] sm:$0xff] %v13374_v0  ;;  %4552 = vmatprep.mubr.bf16.mxu1 %v13374_v0  ;;  %v395_v12 = vld [vmem:[#allocation3 + $0x5f0] sm:$0xff] }
 0x1ec   :  { %v3620_v58 = vpop.f32.mrb[64].mxu0  ;;  %4613 = vmatprep.subr.bf16.mxu1 %v9941_v47  ;;  %v9957_v47 = vcombine.high %v391_v46, %v395_v12  ;;  %v9956_v42 = vcombine.low %v391_v46, %v395_v12 }
 0x1ed   :  { %v13378_v45 = vadd.f32 %v3620_v58, %v12823_v23  ;;  %v3622_v57 = vpop.f32.mrb[65].mxu0  ;;  %v13392_v23 = vld [vmem:[%s15176_s0 + $0xb8] ss:$28 sps:$4 sm:$0xff]  }
 0x1ee   :  { %v13381_v41 = vadd.f32 %v3622_v57, %v12829_v25  ;;  %v3624_v7 = vpop.f32.mrb[66].mxu0  ;;  %15358 = vst [vmem:[#allocation145_spill] sm:$0xff] %v13392_v23  ;;  %v399_v25 = vld [vmem:[#allocation3 + $0x610] sm:$0xff] }
 0x1ef   :  { %v13384_v55 = vadd.f32 %v3624_v7, %v12838_v31  ;;  %4614 = vmatpush1.bf16.msra.mxu1 %v9940_v30  ;;  %v3626_v14 = vpop.f32.mrb[67].mxu0  ;;  %v403_v58 = vld [vmem:[#allocation3 + $0x630] sm:$0xff]  ;;  %v13398_v31 = vld [vmem:[%s15176_s0 + $0xa8] ss:$28 sps:$4 sm:$0xff]  }
 0x1f0   :  { %v13387_v0 = vadd.f32 %v3626_v14, %v12840_v33  ;;  %4615 = vmatprep.subr.bf16.mxu1 %v9949_v1  ;;  %15359 = vst [vmem:[#allocation146_spill] sm:$0xff] %v13398_v31  ;;  %v13404_v33 = vld [vmem:[%s15176_s0 + $0xf4] ss:$28 sps:$4 sm:$0xff]   ;;  %v13410_v1 = vld [vmem:[%s15176_s0 + $0xe4] ss:$28 sps:$4 sm:$0xff]   ;;  %v9965_v57 = vcombine.high %v399_v25, %v403_v58 }
 0x1f1   :  { %4327 = vmatmul.mubr.bf16.gmra.mrb[140].mxu0 %v13392_v23  ;;  %15360 = vst [vmem:[#allocation147_spill] sm:$0xff] %v13404_v33  ;;  %15361 = vst [vmem:[#allocation148_spill] sm:$0xff] %v13410_v1  ;;  %v407_v14 = vld [vmem:[#allocation3 + $0x650] sm:$0xff] }
 0x1f2   :  { %4553 = vmatmul.mubr.bf16.gmra.mrb[108].mxu1 %v13398_v31  ;;  %4336 = vmatprep.mubr.bf16.mxu0 %v13404_v33  ;;  %v411_v23 = vld [vmem:[#allocation3 + $0x670] sm:$0xff]  ;;  %v9964_v31 = vcombine.low %v399_v25, %v403_v58  ;;  %v11927_v58 = vld [vmem:[%s15176_s0 + $0x11c] ss:$28 sps:$4 sm:$0xff]  }
 0x1f3   :  { %4616 = vmatpush1.bf16.msra.mxu1 %v9948_v20  ;;  %4562 = vmatprep.mubr.bf16.mxu1 %v13410_v1  ;;  %v9972_v25 = vcombine.low %v407_v14, %v411_v23 }
 0x1f4   :  { %v3630_v8 = vpop.f32.mrb[68].mxu0  ;;  %4617 = vmatprep.subr.bf16.mxu1 %v9957_v47  ;;  %v9973_v47 = vcombine.high %v407_v14, %v411_v23 }
 0x1f5   :  { %v13414_v30 = vadd.f32 %v3630_v8, %v12847_v51  ;;  %v3632_v7 = vpop.f32.mrb[69].mxu0  ;;  %v11924_v51 = vld [vmem:[%s15176_s0 + $0xf0] ss:$28 sps:$4 sm:$0xff]  }
 0x1f6   :  { %v13417_v33 = vadd.f32 %v3632_v7, %v12853_v52  ;;  %v3634_v20 = vpop.f32.mrb[70].mxu0  ;;  %v415_v8 = vld [vmem:[#allocation3 + $0x690] sm:$0xff] }
 0x1f7   :  { %v13420_v46 = vadd.f32 %v3634_v20, %v12862_v37  ;;  %4618 = vmatpush1.bf16.msra.mxu1 %v9956_v42  ;;  %v3636_v12 = vpop.f32.mrb[71].mxu0  ;;  %v419_v52 = vld [vmem:[#allocation3 + $0x6b0] sm:$0xff]  ;;  %v13431_v37 = vld [vmem:[%s15176_s0 + $0xe0] ss:$28 sps:$4 sm:$0xff]  }
 0x1f8   :  { %v13423_v1 = vadd.f32 %v3636_v12, %v12864_v63  ;;  %4619 = vmatprep.subr.bf16.mxu1 %v9965_v57  ;;  %15362 = vst [vmem:[#allocation149_spill] sm:$0xff] %v13431_v37  ;;  %v11926_v63 = vld [vmem:[%s15176_s0 + $0x12c] ss:$28 sps:$4 sm:$0xff]   ;;  %v9981_v57 = vcombine.high %v415_v8, %v419_v52  ;;  %v423_v12 = vld [vmem:[#allocation3 + $0x6d0] sm:$0xff]  ;;  %v9980_v14 = vcombine.low %v415_v8, %v419_v52  ;;  %v11930_v8 = vld [vmem:[%s15176_s0 + $0x164] ss:$28 sps:$4 sm:$0xff]  }
 0x1f9   :  { %4337 = vmatmul.mubr.bf16.gmra.mrb[144].mxu0 %v11924_v51  ;;  %v427_v51 = vld [vmem:[#allocation3 + $0x6f0] sm:$0xff] }
 0x1fa   :  { %4563 = vmatmul.mubr.bf16.gmra.mrb[112].mxu1 %v13431_v37  ;;  %4346 = vmatprep.mubr.bf16.mxu0 %v11926_v63  ;;  %v11931_v52 = vld [vmem:[%s15176_s0 + $0x154] ss:$28 sps:$4 sm:$0xff]  }
 0x1fb   :  { %4620 = vmatpush1.bf16.msra.mxu1 %v9964_v31  ;;  %4572 = vmatprep.mubr.bf16.mxu1 %v11927_v58 }
 0x1fc   :  { %v3640_v42 = vpop.f32.mrb[72].mxu0  ;;  %4621 = vmatprep.subr.bf16.mxu1 %v9973_v47  ;;  %v9989_v47 = vcombine.high %v423_v12, %v427_v51 }
 0x1fd   :  { %v13441_v7 = vadd.f32 %v3640_v42, %v12871_v61  ;;  %v3642_v20 = vpop.f32.mrb[73].mxu0  ;;  %v11928_v61 = vld [vmem:[%s15176_s0 + $0x128] ss:$28 sps:$4 sm:$0xff]   ;;  %v431_v42 = vld [vmem:[#allocation3 + $0x710] sm:$0xff] }
 0x1fe   :  { %v13444_v37 = vadd.f32 %v3642_v20, %v12877_v38  ;;  %v3644_v63 = vpop.f32.mrb[74].mxu0  ;;  %v435_v38 = vld [vmem:[#allocation3 + $0x730] sm:$0xff] }
 0x1ff   :  { %v13447_v23 = vadd.f32 %v3644_v63, %v12886_v11  ;;  %4622 = vmatpush1.bf16.msra.mxu1 %v9972_v25  ;;  %v3646_v31 = vpop.f32.mrb[75].mxu0  ;;  %v11929_v11 = vld [vmem:[%s15176_s0 + $0x118] ss:$28 sps:$4 sm:$0xff]  }
 0x200   :  { %v13450_v58 = vadd.f32 %v3646_v31, %v12888_v13  ;;  %4623 = vmatprep.subr.bf16.mxu1 %v9981_v57  ;;  %v9988_v13 = vcombine.low %v423_v12, %v427_v51  ;;  %v9997_v57 = vcombine.high %v431_v42, %v435_v38  ;;  %v439_v31 = vld [vmem:[#allocation3 + $0x750] sm:$0xff] }
 0x201   :  { %4347 = vmatmul.mubr.bf16.gmra.mrb[148].mxu0 %v11928_v61  ;;  %v443_v61 = vld [vmem:[#allocation3 + $0x770] sm:$0xff] }
 0x202   :  { %4573 = vmatmul.mubr.bf16.gmra.mrb[116].mxu1 %v11929_v11  ;;  %4356 = vmatprep.mubr.bf16.mxu0 %v11930_v8 }
 0x203   :  { %4624 = vmatpush1.bf16.msra.mxu1 %v9980_v14  ;;  %4582 = vmatprep.mubr.bf16.mxu1 %v11931_v52  ;;  %v9996_v14 = vcombine.low %v431_v42, %v435_v38 }
 0x204   :  { %v3650_v25 = vpop.f32.mrb[76].mxu0  ;;  %4625 = vmatprep.subr.bf16.mxu1 %v9989_v47  ;;  %v10005_v47 = vcombine.high %v439_v31, %v443_v61 }
 0x205   :  { %v13465_v20 = vadd.f32 %v3650_v25, %v12895_v17  ;;  %v3652_v63 = vpop.f32.mrb[77].mxu0  ;;  %v447_v17 = vld [vmem:[#allocation3 + $0x790] sm:$0xff] }
 0x206   :  { %v13468_v11 = vadd.f32 %v3652_v63, %v12898_v40  ;;  %v3654_v8 = vpop.f32.mrb[78].mxu0  ;;  %v451_v25 = vld [vmem:[#allocation3 + $0x7b0] sm:$0xff] }
 0x207   :  { %v13471_v12 = vadd.f32 %v3654_v8, %v12914_v28  ;;  %4626 = vmatpush1.bf16.msra.mxu1 %v9988_v13  ;;  %v3656_v51 = vpop.f32.mrb[79].mxu0  ;;  %v11932_v40 = vld [vmem:[%s15176_s0 + $0x150] ss:$28 sps:$4 sm:$0xff]   ;;  %v10004_v28 = vcombine.low %v439_v31, %v443_v61  ;;  %v10013_v38 = vcombine.high %v447_v17, %v451_v25 }
 0x208   :  { %v13474_v52 = vadd.f32 %v3656_v51, %v12916_v34  ;;  %4627 = vmatprep.subr.bf16.mxu1 %v9997_v57  ;;  %v11933_v34 = vld [vmem:[%s15176_s0 + $0x18c] ss:$28 sps:$4 sm:$0xff]   ;;  %v455_v57 = vld [vmem:[#allocation3 + $0x7d0] sm:$0xff]  ;;  %v10012_v51 = vcombine.low %v447_v17, %v451_v25  ;;  %v216_v25 = vld [vmem:[#allocation3 + $0x58] sm:$0xff] }
 0x209   :  { %4357 = vmatmul.mubr.bf16.gmra.mrb[152].mxu0 %v12905_v32  ;;  %v459_v63 = vld [vmem:[#allocation3 + $0x7f0] sm:$0xff] }
 0x20a   :  { %4583 = vmatmul.mubr.bf16.gmra.mrb[120].mxu1 %v11932_v40  ;;  %4366 = vmatprep.mubr.bf16.mxu0 %v12912_v43  ;;  %v467_v40 = vld [vmem:[#allocation3 + $0x830] sm:$0xff] }
 0x20b   :  { %4628 = vmatpush1.bf16.msra.mxu1 %v9996_v14  ;;  %4592 = vmatprep.mubr.bf16.mxu1 %v11933_v34 }
 0x20c   :  { %v3660_v42 = vpop.f32.mrb[80].mxu0  ;;  %4629 = vmatprep.subr.bf16.mxu1 %v10005_v47  ;;  %v10021_v47 = vcombine.high %v455_v57, %v459_v63 }
 0x20d   :  { %v13485_v32 = vadd.f32 %v3660_v42, %v12925_v53  ;;  %v3662_v13 = vpop.f32.mrb[81].mxu0  ;;  %v463_v53 = vld [vmem:[#allocation3 + $0x810] sm:$0xff] }
 0x20e   :  { %v13488_v8 = vadd.f32 %v3662_v13, %v12928_v60  ;;  %v3664_v43 = vpop.f32.mrb[82].mxu0  ;;  %v11934_v60 = vld [vmem:[%s15176_s0 + $0x188] ss:$28 sps:$4 sm:$0xff]   ;;  %v471_v42 = vld [vmem:[#allocation3 + $0x850] sm:$0xff] }
 0x20f   :  { %v13491_v31 = vadd.f32 %v3664_v43, %v12939_v5  ;;  %4630 = vmatpush1.bf16.msra.mxu1 %v10004_v28  ;;  %v3666_v61 = vpop.f32.mrb[83].mxu0  ;;  %v10020_v5 = vcombine.low %v455_v57, %v459_v63  ;;  %v220_v28 = vld [vmem:[#allocation3 + $0x78] sm:$0xff]  ;;  %v9774_v57 = vcombine.low %v13259_v27, %v13261_v44 }
 0x210   :  { %v13494_v14 = vadd.f32 %v3666_v61, %v12941_v6  ;;  %4631 = vmatprep.subr.bf16.mxu1 %v10013_v38  ;;  %v10029_v6 = vcombine.high %v463_v53, %v467_v40  ;;  %v475_v38 = vld [vmem:[#allocation3 + $0x870] sm:$0xff]  ;;  %v10028_v61 = vcombine.low %v463_v53, %v467_v40  ;;  %v232_v40 = vld [vmem:[#allocation3 + $0xd8] sm:$0xff] }
 0x211   :  { %4367 = vmatmul.mubr.bf16.gmra.mrb[156].mxu0 %v12935_v3  ;;  %v10036_v27 = vcombine.low %v471_v42, %v475_v38 }
 0x212   :  { %4593 = vmatmul.mubr.bf16.gmra.mrb[124].mxu1 %v11934_v60  ;;  %4409 = vmatprep.mubr.bf16.mxu0 %v15257_v50  ;;  %v224_v60 = vld [vmem:[#allocation3 + $0x98] sm:$0xff] }
 0x213   :  { %4632 = vmatpush1.bf16.msra.mxu1 %v10012_v51  ;;  %4635 = vmatprep.mubr.bf16.mxu1 %v12955_v19  ;;  %v9783_v51 = vcombine.high %v216_v25, %v220_v28 }
 0x214   :  { %v3670_v17 = vpop.f32.mrb[84].mxu0  ;;  %4633 = vmatprep.subr.bf16.mxu1 %v10021_v47  ;;  %v10037_v47 = vcombine.high %v471_v42, %v475_v38 }
 0x215   :  { %v13503_v3 = vadd.f32 %v3670_v17, %v12950_v16  ;;  %v3672_v34 = vpop.f32.mrb[85].mxu0  ;;  %v228_v17 = vld [vmem:[#allocation3 + $0xb8] sm:$0xff] }
 0x216   :  { %v13506_v13 = vadd.f32 %v3672_v34, %v12958_v24  ;;  %v3674_v43 = vpop.f32.mrb[86].mxu0  ;;  %v479_v24 = vld [vmem:[#allocation3 + $0x890] sm:$0xff]  ;;  %v9791_v44 = vcombine.high %v224_v60, %v228_v17  ;;  %v9790_v42 = vcombine.low %v224_v60, %v228_v17 }
 0x217   :  { %v13511_v19 = vadd.f32 %v3674_v43, %v12971_v4  ;;  %4634 = vmatpush1.bf16.msra.mxu1 %v10020_v5  ;;  %v3676_v63 = vpop.f32.mrb[87].mxu0  ;;  %v483_v34 = vld [vmem:[#allocation3 + $0x8b0] sm:$0xff]  ;;  %v9782_v4 = vcombine.low %v216_v25, %v220_v28  ;;  %v236_v5 = vld [vmem:[#allocation3 + $0xf8] sm:$0xff] }
 0x218   :  { %v13514_v16 = vadd.f32 %v3676_v63, %v12973_v49  ;;  %4716 = vmatprep.subr.bf16.mxu1 %v10029_v6  ;;  %v10045_v49 = vcombine.high %v479_v24, %v483_v34  ;;  %v491_v43 = vld [vmem:[#allocation3 + $0x8f0] sm:$0xff]  ;;  %v10044_v63 = vcombine.low %v479_v24, %v483_v34 }
 0x219   :  { %10168 = vmatmul.mubr.msk.bf16.vlgmr.msra.gmra.mrb[128].mxu0 %vm629_vm0, %v12965_v48  ;;  %v499_v60 = vld [vmem:[#allocation3 + $0x930] sm:$0xff] }
 0x21a   :  { %4636 = vmatmul.mubr.bf16.vlgmr.msra.gmra.mrb[128].mxu1 %v12978_v9  ;;  %4943 = vmatpush1.bf16.msra.mxu0 %v9774_v57  ;;  %v487_v9 = vld [vmem:[#allocation3 + $0x8d0] sm:$0xff] }
 0x21b   :  { %4717 = vmatpush1.bf16.msra.mxu1 %v10028_v61  ;;  %4944 = vmatprep.subr.bf16.mxu0 %v9783_v51  ;;  %v240_v51 = vld [vmem:[#allocation3 + $0x118] sm:$0xff]  ;;  %v10052_v17 = vcombine.low %v487_v9, %v491_v43 }
 0x21c   :  { %v3680_v53 = vpop.f32.mrb[88].mxu0  ;;  %4718 = vmatprep.subr.bf16.mxu1 %v10037_v47  ;;  %4419 = vmatprep.mubr.bf16.mxu0 %v15257_v50  ;;  %v244_v47 = vld [vmem:[#allocation3 + $0x138] sm:$0xff] }
 0x21d   :  { %v13521_v6 = vadd.f32 %v3680_v53, %v12987_v62  ;;  %v3682_v48 = vpop.f32.mrb[89].mxu0  ;;  %4645 = vmatprep.mubr.bf16.mxu1 %v12995_v18  ;;  %v9799_v62 = vcombine.high %v232_v40, %v236_v5  ;;  %v10053_v18 = vcombine.high %v487_v9, %v491_v43  ;;  %v9807_v24 = vcombine.high %v240_v51, %v244_v47  ;;  %v507_v53 = vld [vmem:[#allocation3 + $0x970] sm:$0xff] }
 0x21e   :  { %v13525_v25 = vadd.f32 %v3682_v48, %v12990_v39  ;;  %v3684_v28 = vpop.f32.mrb[90].mxu0  ;;  %4945 = vmatpush1.bf16.msra.mxu0 %v9782_v4  ;;  %v495_v39 = vld [vmem:[#allocation3 + $0x910] sm:$0xff]  ;;  %v248_v4 = vld [vmem:[#allocation3 + $0x158] sm:$0xff] }
 0x21f   :  { %v13528_v38 = vadd.f32 %v3684_v28, %v13007_v15  ;;  %4719 = vmatpush1.bf16.msra.mxu1 %v10036_v27  ;;  %v3686_v57 = vpop.f32.mrb[91].mxu0  ;;  %4946 = vmatprep.subr.bf16.mxu0 %v9791_v44  ;;  %v9798_v15 = vcombine.low %v232_v40, %v236_v5  ;;  %v252_v27 = vld [vmem:[#allocation3 + $0x178] sm:$0xff]  ;;  %v9806_v5 = vcombine.low %v240_v51, %v244_v47  ;;  %v15363_v28 = vld [vmem:[#allocation52_spill] sm:$0xff]  ;;  %v15365_v51 = vld [vmem:[#allocation53_spill] sm:$0xff] }
 0x220   :  { %v13531_v61 = vadd.f32 %v3686_v57, %v13009_v29  ;;  %4720 = vmatprep.subr.bf16.mxu1 %v10045_v49  ;;  %v10061_v29 = vcombine.high %v495_v39, %v499_v60  ;;  %v10060_v43 = vcombine.low %v495_v39, %v499_v60  ;;  %v256_v57 = vld [vmem:[#allocation3 + $0x198] sm:$0xff] }
 0x221   :  { %10169 = vmatmul.mubr.msk.bf16.gmra.mrb[132].mxu0 %vm629_vm0, %v13003_v21 }
 0x222   :  { %4646 = vmatmul.mubr.bf16.gmra.mrb[132].mxu1 %v13014_v36  ;;  %4947 = vmatpush1.bf16.msra.mxu0 %v9790_v42  ;;  %v503_v36 = vld [vmem:[#allocation3 + $0x950] sm:$0xff] }
 0x223   :  { %4721 = vmatpush1.bf16.msra.mxu1 %v10044_v63  ;;  %4948 = vmatprep.subr.bf16.mxu0 %v9799_v62  ;;  %v260_v63 = vld [vmem:[#allocation3 + $0x1b8] sm:$0xff]  ;;  %v511_v62 = vld [vmem:[#allocation3 + $0x990] sm:$0xff]  ;;  %v10068_v47 = vcombine.low %v503_v36, %v507_v53 }
 0x224   :  { %v3690_v34 = vpop.f32.mrb[92].mxu0  ;;  %4722 = vmatprep.subr.bf16.mxu1 %v10053_v18  ;;  %4429 = vmatprep.mubr.bf16.mxu0 %v15257_v50  ;;  %v515_v18 = vld [vmem:[#allocation3 + $0x9b0] sm:$0xff]  ;;  %v9823_v39 = vcombine.high %v256_v57, %v260_v63 }
 0x225   :  { %v13538_v44 = vadd.f32 %v3690_v34, %v13023_v59  ;;  %v3692_v21 = vpop.f32.mrb[93].mxu0  ;;  %4655 = vmatprep.mubr.bf16.mxu1 %v13031_v22  ;;  %v9815_v59 = vcombine.high %v248_v4, %v252_v27  ;;  %v10069_v22 = vcombine.high %v503_v36, %v507_v53  ;;  %v15366_v34 = vld [vmem:[#allocation21_spill] sm:$0xff]  ;;  %v9822_v53 = vcombine.low %v256_v57, %v260_v63  ;;  %v15376_v63 = vld [vmem:[#allocation64_spill] sm:$0xff] }
 0x226   :  { %v13542_v49 = vadd.f32 %v3692_v21, %v13026_v2  ;;  %v3694_v40 = vpop.f32.mrb[94].mxu0  ;;  %4949 = vmatpush1.bf16.msra.mxu0 %v9798_v15  ;;  %v15364_v2 = vld [vmem:[#allocation50_spill] sm:$0xff]  ;;  %v10077_v15 = vcombine.high %v511_v62, %v515_v18  ;;  %v531_v57 = vld [vmem:[#allocation3 + $0xa30] sm:$0xff] }
 0x227   :  { %v13545_v48 = vadd.f32 %v3694_v40, %v13043_v54  ;;  %4723 = vmatpush1.bf16.msra.mxu1 %v10052_v17  ;;  %v3696_v9 = vpop.f32.mrb[95].mxu0  ;;  %4950 = vmatprep.subr.bf16.mxu0 %v9807_v24  ;;  %v9814_v54 = vcombine.low %v248_v4, %v252_v27  ;;  %v264_v17 = vld [vmem:[#allocation3 + $0x1d8] sm:$0xff] }
 0x228   :  { %v13548_v42 = vadd.f32 %v3696_v9, %v15363_v28  ;;  %4724 = vmatprep.subr.bf16.mxu1 %v10061_v29  ;;  %v268_v24 = vld [vmem:[#allocation3 + $0x1f8] sm:$0xff]  ;;  %v519_v9 = vld [vmem:[#allocation3 + $0x9d0] sm:$0xff] }
 0x229   :  { %10170 = vmatmul.mubr.msk.bf16.gmra.mrb[136].mxu0 %vm629_vm0, %v15364_v2  ;;  %v15368_v40 = vld [vmem:[#allocation58_spill] sm:$0xff]  ;;  %v9831_v2 = vcombine.high %v264_v17, %v268_v24 }
 0x22a   :  { %4656 = vmatmul.mubr.bf16.gmra.mrb[136].mxu1 %v15365_v51  ;;  %4951 = vmatpush1.bf16.msra.mxu0 %v9806_v5  ;;  %v523_v5 = vld [vmem:[#allocation3 + $0x9f0] sm:$0xff]  ;;  %v15369_v4 = vld [vmem:[#allocation22_spill] sm:$0xff]  ;;  %v15373_v51 = vld [vmem:[#allocation24_spill] sm:$0xff] }
 0x22b   :  { %4725 = vmatpush1.bf16.msra.mxu1 %v10060_v43  ;;  %4952 = vmatprep.subr.bf16.mxu0 %v9815_v59  ;;  %v15371_v43 = vld [vmem:[#allocation23_spill] sm:$0xff] }
 0x22c   :  { %v4072_v60 = vpop.f32.mrb[96].mxu0  ;;  %4726 = vmatprep.subr.bf16.mxu1 %v10069_v22  ;;  %4439 = vmatprep.mubr.bf16.mxu0 %v15257_v50  ;;  %v10076_v22 = vcombine.low %v511_v62, %v515_v18  ;;  %v10084_v62 = vcombine.low %v519_v9, %v523_v5 }
 0x22d   :  { %v13555_v29 = vadd.f32 %v4072_v60, %v15366_v34  ;;  %v4074_v21 = vpop.f32.mrb[97].mxu0  ;;  %4665 = vmatprep.mubr.bf16.mxu1 %v15368_v40  ;;  %v10085_v34 = vcombine.high %v519_v9, %v523_v5  ;;  %v272_v40 = vld [vmem:[#allocation3 + $0x218] sm:$0xff] }
 0x22e   :  { %v13559_v27 = vadd.f32 %v4074_v21, %v15369_v4  ;;  %v4076_v36 = vpop.f32.mrb[98].mxu0  ;;  %4953 = vmatpush1.bf16.msra.mxu0 %v9814_v54  ;;  %v15375_v21 = vld [vmem:[#allocation60_spill] sm:$0xff]  ;;  %v527_v54 = vld [vmem:[#allocation3 + $0xa10] sm:$0xff]  ;;  %v280_v4 = vld [vmem:[#allocation3 + $0x258] sm:$0xff] }
 0x22f   :  { %15367 = vst [vmem:[#allocation52_spill] sm:$0xff] %v13555_v29  ;;  %v13562_v59 = vadd.f32 %v4076_v36, %v15371_v43  ;;  %4727 = vmatpush1.bf16.msra.mxu1 %v10068_v47  ;;  %v4078_v28 = vpop.f32.mrb[99].mxu0  ;;  %4954 = vmatprep.subr.bf16.mxu0 %v9823_v39  ;;  %v276_v29 = vld [vmem:[#allocation3 + $0x238] sm:$0xff]  ;;  %v9830_v47 = vcombine.low %v264_v17, %v268_v24  ;;  %v15377_v43 = vld [vmem:[#allocation25_spill] sm:$0xff] }
 0x230   :  { %15370 = vst [vmem:[#allocation50_spill] sm:$0xff] %v13559_v27  ;;  %v13565_v60 = vadd.f32 %v4078_v28, %v15373_v51  ;;  %4728 = vmatprep.subr.bf16.mxu1 %v10077_v15  ;;  %v9839_v18 = vcombine.high %v272_v40, %v276_v29  ;;  %v10093_v15 = vcombine.high %v527_v54, %v531_v57  ;;  %v284_v36 = vld [vmem:[#allocation3 + $0x278] sm:$0xff] }
 0x231   :  { %15372 = vst [vmem:[#allocation53_spill] sm:$0xff] %v13562_v59  ;;  %10171 = vmatmul.mubr.msk.bf16.gmra.mrb[140].mxu0 %vm629_vm0, %v15375_v21  ;;  %v15379_v21 = vld [vmem:[#allocation69_spill] sm:$0xff]  ;;  %v15380_v17 = vld [vmem:[#allocation26_spill] sm:$0xff]  ;;  %v9838_v5 = vcombine.low %v272_v40, %v276_v29  ;;  %v15387_v40 = vld [vmem:[#allocation75_spill] sm:$0xff] }
 0x232   :  { %15374 = vst [vmem:[#allocation21_spill] sm:$0xff] %v13565_v60  ;;  %4666 = vmatmul.mubr.bf16.gmra.mrb[140].mxu1 %v15376_v63  ;;  %4955 = vmatpush1.bf16.msra.mxu0 %v9822_v53  ;;  %v535_v63 = vld [vmem:[#allocation3 + $0xa50] sm:$0xff]  ;;  %v10092_v60 = vcombine.low %v527_v54, %v531_v57  ;;  %v288_v59 = vld [vmem:[#allocation3 + $0x298] sm:$0xff] }
 0x233   :  { %4729 = vmatpush1.bf16.msra.mxu1 %v10076_v22  ;;  %4956 = vmatprep.subr.bf16.mxu0 %v9831_v2  ;;  %v539_v53 = vld [vmem:[#allocation3 + $0xa70] sm:$0xff]  ;;  %v15382_v22 = vld [vmem:[#allocation27_spill] sm:$0xff]  ;;  %v292_v27 = vld [vmem:[#allocation3 + $0x2b8] sm:$0xff] }
 0x234   :  { %v4082_v39 = vpop.f32.mrb[100].mxu0  ;;  %4730 = vmatprep.subr.bf16.mxu1 %v10085_v34  ;;  %4449 = vmatprep.mubr.bf16.mxu0 %v15257_v50  ;;  %v547_v29 = vld [vmem:[#allocation3 + $0xab0] sm:$0xff]  ;;  %v10100_v54 = vcombine.low %v535_v63, %v539_v53  ;;  %v9855_v57 = vcombine.high %v288_v59, %v292_v27 }
 0x235   :  { %v13572_v28 = vadd.f32 %v4082_v39, %v15377_v43  ;;  %v4084_v51 = vpop.f32.mrb[101].mxu0  ;;  %4675 = vmatprep.mubr.bf16.mxu1 %v15379_v21  ;;  %v9847_v39 = vcombine.high %v280_v4, %v284_v36  ;;  %v15384_v43 = vld [vmem:[#allocation28_spill] sm:$0xff]  ;;  %v10101_v21 = vcombine.high %v535_v63, %v539_v53  ;;  %v9854_v63 = vcombine.low %v288_v59, %v292_v27  ;;  %v15393_v53 = vld [vmem:[#allocation31_spill] sm:$0xff]  ;;  %v563_v27 = vld [vmem:[#allocation3 + $0xb30] sm:$0xff] }
 0x236   :  { %v13576_v24 = vadd.f32 %v4084_v51, %v15380_v17  ;;  %v4086_v9 = vpop.f32.mrb[102].mxu0  ;;  %4957 = vmatpush1.bf16.msra.mxu0 %v9830_v47  ;;  %v15386_v51 = vld [vmem:[#allocation71_spill] sm:$0xff]  ;;  %v543_v47 = vld [vmem:[#allocation3 + $0xa90] sm:$0xff]  ;;  %v296_v17 = vld [vmem:[#allocation3 + $0x2d8] sm:$0xff] }
 0x237   :  { %15378 = vst [vmem:[#allocation58_spill] sm:$0xff] %v13572_v28  ;;  %v13579_v2 = vadd.f32 %v4086_v9, %v15382_v22  ;;  %4731 = vmatpush1.bf16.msra.mxu1 %v10084_v62  ;;  %v4088_v34 = vpop.f32.mrb[103].mxu0  ;;  %4958 = vmatprep.subr.bf16.mxu0 %v9839_v18  ;;  %v9846_v62 = vcombine.low %v280_v4, %v284_v36  ;;  %v300_v9 = vld [vmem:[#allocation3 + $0x2f8] sm:$0xff]  ;;  %v15388_v22 = vld [vmem:[#allocation29_spill] sm:$0xff] }
 0x238   :  { %15381 = vst [vmem:[#allocation22_spill] sm:$0xff] %v13576_v24  ;;  %v13582_v28 = vadd.f32 %v4088_v34, %v15384_v43  ;;  %4732 = vmatprep.subr.bf16.mxu1 %v10093_v15  ;;  %v10109_v15 = vcombine.high %v543_v47, %v547_v29  ;;  %v15391_v4 = vld [vmem:[#allocation30_spill] sm:$0xff] }
 0x239   :  { %15383 = vst [vmem:[#allocation23_spill] sm:$0xff] %v13579_v2  ;;  %10172 = vmatmul.mubr.msk.bf16.gmra.mrb[144].mxu0 %vm629_vm0, %v15386_v51  ;;  %v15390_v51 = vld [vmem:[#allocation80_spill] sm:$0xff]  ;;  %v304_v2 = vld [vmem:[#allocation3 + $0x318] sm:$0xff] }
 0x23a   :  { %15385 = vst [vmem:[#allocation24_spill] sm:$0xff] %v13582_v28  ;;  %4676 = vmatmul.mubr.bf16.gmra.mrb[144].mxu1 %v15387_v40  ;;  %4959 = vmatpush1.bf16.msra.mxu0 %v9838_v5  ;;  %v551_v40 = vld [vmem:[#allocation3 + $0xad0] sm:$0xff]  ;;  %v10108_v28 = vcombine.low %v543_v47, %v547_v29  ;;  %v308_v24 = vld [vmem:[#allocation3 + $0x338] sm:$0xff] }
 0x23b   :  { %4733 = vmatpush1.bf16.msra.mxu1 %v10092_v60  ;;  %4960 = vmatprep.subr.bf16.mxu0 %v9847_v39  ;;  %v555_v5 = vld [vmem:[#allocation3 + $0xaf0] sm:$0xff]  ;;  %v15398_v59 = vld [vmem:[#allocation86_spill] sm:$0xff]  ;;  %v9871_v29 = vcombine.high %v304_v2, %v308_v24 }
 0x23c   :  { %v4092_v18 = vpop.f32.mrb[104].mxu0  ;;  %4734 = vmatprep.subr.bf16.mxu1 %v10101_v21  ;;  %4459 = vmatprep.mubr.bf16.mxu0 %v15257_v50  ;;  %v10116_v47 = vcombine.low %v551_v40, %v555_v5 }
 0x23d   :  { %v13589_v34 = vadd.f32 %v4092_v18, %v15388_v22  ;;  %v4094_v43 = vpop.f32.mrb[105].mxu0  ;;  %4685 = vmatprep.mubr.bf16.mxu1 %v15390_v51  ;;  %v9863_v18 = vcombine.high %v296_v17, %v300_v9  ;;  %v15395_v22 = vld [vmem:[#allocation32_spill] sm:$0xff]  ;;  %v10117_v51 = vcombine.high %v551_v40, %v555_v5  ;;  %v9870_v40 = vcombine.low %v304_v2, %v308_v24  ;;  %v15404_v5 = vld [vmem:[#allocation35_spill] sm:$0xff]  ;;  %v579_v24 = vld [vmem:[#allocation3 + $0xbb0] sm:$0xff] }
 0x23e   :  { %v13593_v60 = vadd.f32 %v4094_v43, %v15391_v4  ;;  %v4096_v36 = vpop.f32.mrb[106].mxu0  ;;  %4961 = vmatpush1.bf16.msra.mxu0 %v9846_v62  ;;  %v15397_v43 = vld [vmem:[#allocation82_spill] sm:$0xff]  ;;  %v559_v62 = vld [vmem:[#allocation3 + $0xb10] sm:$0xff] }
 0x23f   :  { %15389 = vst [vmem:[#allocation60_spill] sm:$0xff] %v13589_v34  ;;  %v13596_v39 = vadd.f32 %v4096_v36, %v15393_v53  ;;  %4735 = vmatpush1.bf16.msra.mxu1 %v10100_v54  ;;  %v4098_v21 = vpop.f32.mrb[107].mxu0  ;;  %4962 = vmatprep.subr.bf16.mxu0 %v9855_v57  ;;  %v9862_v54 = vcombine.low %v296_v17, %v300_v9  ;;  %v312_v4 = vld [vmem:[#allocation3 + $0x358] sm:$0xff]  ;;  %v15399_v53 = vld [vmem:[#allocation33_spill] sm:$0xff] }
 0x240   :  { %15392 = vst [vmem:[#allocation64_spill] sm:$0xff] %v13593_v60  ;;  %v13599_v34 = vadd.f32 %v4098_v21, %v15395_v22  ;;  %4736 = vmatprep.subr.bf16.mxu1 %v10109_v15  ;;  %v10125_v15 = vcombine.high %v559_v62, %v563_v27  ;;  %v316_v36 = vld [vmem:[#allocation3 + $0x378] sm:$0xff]  ;;  %v15409_v2 = vld [vmem:[#allocation97_spill] sm:$0xff] }
 0x241   :  { %15394 = vst [vmem:[#allocation25_spill] sm:$0xff] %v13596_v39  ;;  %10173 = vmatmul.mubr.msk.bf16.gmra.mrb[148].mxu0 %vm629_vm0, %v15397_v43  ;;  %v15401_v43 = vld [vmem:[#allocation91_spill] sm:$0xff]  ;;  %v15402_v17 = vld [vmem:[#allocation34_spill] sm:$0xff] }
 0x242   :  { %15396 = vst [vmem:[#allocation69_spill] sm:$0xff] %v13599_v34  ;;  %4686 = vmatmul.mubr.bf16.gmra.mrb[148].mxu1 %v15398_v59  ;;  %4963 = vmatpush1.bf16.msra.mxu0 %v9854_v63  ;;  %v567_v59 = vld [vmem:[#allocation3 + $0xb50] sm:$0xff]  ;;  %v10124_v34 = vcombine.low %v559_v62, %v563_v27  ;;  %v320_v39 = vld [vmem:[#allocation3 + $0x398] sm:$0xff] }
 0x243   :  { %4737 = vmatpush1.bf16.msra.mxu1 %v10108_v28  ;;  %4964 = vmatprep.subr.bf16.mxu0 %v9863_v18  ;;  %v571_v63 = vld [vmem:[#allocation3 + $0xb70] sm:$0xff]  ;;  %v324_v60 = vld [vmem:[#allocation3 + $0x3b8] sm:$0xff] }
 0x244   :  { %v4102_v57 = vpop.f32.mrb[108].mxu0  ;;  %4738 = vmatprep.subr.bf16.mxu1 %v10117_v51  ;;  %4469 = vmatprep.mubr.bf16.mxu0 %v15257_v50  ;;  %v10132_v62 = vcombine.low %v567_v59, %v571_v63  ;;  %v9887_v27 = vcombine.high %v320_v39, %v324_v60 }
 0x245   :  { %v13606_v21 = vadd.f32 %v4102_v57, %v15399_v53  ;;  %v4104_v22 = vpop.f32.mrb[109].mxu0  ;;  %4695 = vmatprep.mubr.bf16.mxu1 %v15401_v43  ;;  %v9879_v57 = vcombine.high %v312_v4, %v316_v36  ;;  %v15406_v53 = vld [vmem:[#allocation36_spill] sm:$0xff]  ;;  %v10133_v43 = vcombine.high %v567_v59, %v571_v63  ;;  %v9886_v59 = vcombine.low %v320_v39, %v324_v60  ;;  %v15414_v63 = vld [vmem:[#allocation39_spill] sm:$0xff]  ;;  %v595_v60 = vld [vmem:[#allocation3 + $0xc30] sm:$0xff] }
 0x246   :  { %v13610_v28 = vadd.f32 %v4104_v22, %v15402_v17  ;;  %v4106_v9 = vpop.f32.mrb[110].mxu0  ;;  %4965 = vmatpush1.bf16.msra.mxu0 %v9862_v54  ;;  %v15408_v22 = vld [vmem:[#allocation93_spill] sm:$0xff]  ;;  %v328_v17 = vld [vmem:[#allocation3 + $0x3d8] sm:$0xff] }
 0x247   :  { %15400 = vst [vmem:[#allocation26_spill] sm:$0xff] %v13606_v21  ;;  %v13613_v18 = vadd.f32 %v4106_v9, %v15404_v5  ;;  %4739 = vmatpush1.bf16.msra.mxu1 %v10116_v47  ;;  %v4108_v51 = vpop.f32.mrb[111].mxu0  ;;  %4966 = vmatprep.subr.bf16.mxu0 %v9871_v29  ;;  %v575_v54 = vld [vmem:[#allocation3 + $0xb90] sm:$0xff]  ;;  %v9878_v47 = vcombine.low %v312_v4, %v316_v36  ;;  %v332_v9 = vld [vmem:[#allocation3 + $0x3f8] sm:$0xff] }
 0x248   :  { %15403 = vst [vmem:[#allocation27_spill] sm:$0xff] %v13610_v28  ;;  %v13616_v21 = vadd.f32 %v4108_v51, %v15406_v53  ;;  %4740 = vmatprep.subr.bf16.mxu1 %v10125_v15  ;;  %v10141_v15 = vcombine.high %v575_v54, %v579_v24  ;;  %v15410_v5 = vld [vmem:[#allocation37_spill] sm:$0xff]  ;;  %v15413_v4 = vld [vmem:[#allocation38_spill] sm:$0xff]  ;;  %v9894_v39 = vcombine.low %v328_v17, %v332_v9 }
 0x249   :  { %15405 = vst [vmem:[#allocation28_spill] sm:$0xff] %v13613_v18  ;;  %10174 = vmatmul.mubr.msk.bf16.gmra.mrb[152].mxu0 %vm629_vm0, %v15408_v22  ;;  %v15412_v22 = vld [vmem:[#allocation102_spill] sm:$0xff] }
 0x24a   :  { %15407 = vst [vmem:[#allocation71_spill] sm:$0xff] %v13616_v21  ;;  %4696 = vmatmul.mubr.bf16.gmra.mrb[152].mxu1 %v15409_v2  ;;  %4967 = vmatpush1.bf16.msra.mxu0 %v9870_v40  ;;  %v583_v2 = vld [vmem:[#allocation3 + $0xbd0] sm:$0xff]  ;;  %v10140_v21 = vcombine.low %v575_v54, %v579_v24  ;;  %v336_v18 = vld [vmem:[#allocation3 + $0x418] sm:$0xff] }
 0x24b   :  { %4741 = vmatpush1.bf16.msra.mxu1 %v10124_v34  ;;  %4968 = vmatprep.subr.bf16.mxu0 %v9879_v57  ;;  %v587_v40 = vld [vmem:[#allocation3 + $0xbf0] sm:$0xff]  ;;  %v340_v28 = vld [vmem:[#allocation3 + $0x438] sm:$0xff] }
 0x24c   :  { %v4112_v29 = vpop.f32.mrb[112].mxu0  ;;  %4742 = vmatprep.subr.bf16.mxu1 %v10133_v43  ;;  %4479 = vmatprep.mubr.bf16.mxu0 %v15257_v50  ;;  %v10148_v54 = vcombine.low %v583_v2, %v587_v40  ;;  %v9903_v24 = vcombine.high %v336_v18, %v340_v28 }
 0x24d   :  { %v13623_v51 = vadd.f32 %v4112_v29, %v15410_v5  ;;  %v4114_v53 = vpop.f32.mrb[113].mxu0  ;;  %4705 = vmatprep.mubr.bf16.mxu1 %v15412_v22  ;;  %v9895_v29 = vcombine.high %v328_v17, %v332_v9  ;;  %v15415_v5 = vld [vmem:[#allocation40_spill] sm:$0xff]  ;;  %v10149_v22 = vcombine.high %v583_v2, %v587_v40  ;;  %v9902_v17 = vcombine.low %v336_v18, %v340_v28  ;;  %v15419_v9 = vld [vmem:[#allocation43_spill] sm:$0xff] }
 0x24e   :  { %v13627_v34 = vadd.f32 %v4114_v53, %v15413_v4  ;;  %v4116_v36 = vpop.f32.mrb[114].mxu0  ;;  %4969 = vmatpush1.bf16.msra.mxu0 %v9878_v47  ;;  %v591_v47 = vld [vmem:[#allocation3 + $0xc10] sm:$0xff]  ;;  %v15424_v18 = vld [vmem:[#allocation119_spill] sm:$0xff] }
 0x24f   :  { %15411 = vst [vmem:[#allocation75_spill] sm:$0xff] %v13623_v51  ;;  %v13630_v57 = vadd.f32 %v4116_v36, %v15414_v63  ;;  %4743 = vmatpush1.bf16.msra.mxu1 %v10132_v62  ;;  %v4118_v43 = vpop.f32.mrb[115].mxu0  ;;  %4970 = vmatprep.subr.bf16.mxu0 %v9887_v27  ;;  %v344_v27 = vld [vmem:[#allocation3 + $0x458] sm:$0xff]  ;;  %v10157_v53 = vcombine.high %v591_v47, %v595_v60  ;;  %v15416_v4 = vld [vmem:[#allocation41_spill] sm:$0xff]  ;;  %v15417_v63 = vld [vmem:[#allocation111_spill] sm:$0xff] }
 0x250   :  { %v13633_v51 = vadd.f32 %v4118_v43, %v15415_v5  ;;  %4744 = vmatprep.subr.bf16.mxu1 %v10141_v15  ;;  %v348_v15 = vld [vmem:[#allocation3 + $0x478] sm:$0xff]  ;;  %v15421_v43 = vld [vmem:[#allocation44_spill] sm:$0xff] }
 0x251   :  { %10175 = vmatmul.mubr.msk.bf16.gmra.mrb[156].mxu0 %vm629_vm0, %v13219_v56  ;;  %v9911_v40 = vcombine.high %v344_v27, %v348_v15  ;;  %v352_v5 = vld [vmem:[#allocation3 + $0x498] sm:$0xff]  ;;  %v9910_v28 = vcombine.low %v344_v27, %v348_v15  ;;  %v15430_v15 = vld [vmem:[#allocation47_spill] sm:$0xff] }
 0x252   :  { %4706 = vmatmul.mubr.bf16.gmra.mrb[156].mxu1 %v13230_v35  ;;  %4971 = vmatpush1.bf16.msra.mxu0 %v9886_v59  ;;  %v15418_v35 = vld [vmem:[#allocation42_spill] sm:$0xff] }
 0x253   :  { %4745 = vmatpush1.bf16.msra.mxu1 %v10140_v21  ;;  %4972 = vmatprep.subr.bf16.mxu0 %v9895_v29 }
 0x254   :  { %v4122_v62 = vpop.f32.mrb[116].mxu0  ;;  %4746 = vmatprep.subr.bf16.mxu1 %v10149_v22  ;;  %4748 = vmatprep.mubr.bf16.mxu1 %v13244_v26  ;;  %v356_v22 = vld [vmem:[#allocation3 + $0x4b8] sm:$0xff] }
 0x255   :  { %v13640_v36 = vadd.f32 %v4122_v62, %v15416_v4  ;;  %v4124_v56 = vpop.f32.mrb[117].mxu0  ;;  %4974 = vmatprep.mubr.bf16.mxu0 %v15417_v63  ;;  %v10156_v62 = vcombine.low %v591_v47, %v595_v60  ;;  %v11348_v4 = vld [vmem:[#allocation8 + $0x4] ss:$16 sps:$4 sm:$0xff]   ;;  %v9918_v27 = vcombine.low %v352_v5, %v356_v22 }
 0x256   :  { %v13644_v59 = vadd.f32 %v4124_v56, %v15418_v35  ;;  %v4126_v21 = vpop.f32.mrb[118].mxu0  ;;  %4973 = vmatpush1.bf16.msra.mxu0 %v9894_v39  ;;  %v15423_v56 = vld [vmem:[#allocation116_spill] sm:$0xff]  ;;  %v9919_v39 = vcombine.high %v352_v5, %v356_v22  ;;  %v360_v63 = vld [vmem:[#allocation3 + $0x4d8] sm:$0xff] }
 0x257   :  { %v13647_v2 = vadd.f32 %v4126_v21, %v15419_v9  ;;  %4747 = vmatpush1.bf16.msra.mxu1 %v10148_v54  ;;  %v4128_v26 = vpop.f32.mrb[119].mxu0  ;;  %5055 = vmatprep.subr.bf16.mxu0 %v9903_v24  ;;  %v15425_v24 = vld [vmem:[#allocation121_spill] sm:$0xff]  ;;  %v364_v35 = vld [vmem:[#allocation3 + $0x4f8] sm:$0xff] }
 0x258   :  { %v13650_v29 = vadd.f32 %v4128_v26, %v15421_v43  ;;  %4829 = vmatprep.subr.bf16.mxu1 %v10157_v53  ;;  %v15426_v21 = vld [vmem:[#allocation45_spill] sm:$0xff]  ;;  %v15432_v43 = vld [vmem:[#allocation48_spill] sm:$0xff]  ;;  %v15436_v5 = vld [vmem:[#allocation130_spill] sm:$0xff] }
 0x259   :  { %15420 = vst [vmem:[#allocation29_spill] sm:$0xff] %v13647_v2  ;;  %4975 = vmatmul.mubr.bf16.vlgmr.msra.gmra.mrb[160].mxu0 %v13280_v10  ;;  %v15428_v10 = vld [vmem:[#allocation46_spill] sm:$0xff] }
 0x25a   :  { %15422 = vst [vmem:[#allocation80_spill] sm:$0xff] %v13650_v29  ;;  %4749 = vmatmul.mubr.bf16.vlgmr.msra.gmra.mrb[128].mxu1 %v15423_v56  ;;  %5056 = vmatpush1.bf16.msra.mxu0 %v9902_v17 }
 0x25b   :  { %5057 = vmatprep.subr.bf16.mxu0 %v9911_v40  ;;  %4758 = vmatprep.mubr.bf16.mxu1 %v15424_v18  ;;  %v9927_v40 = vcombine.high %v360_v63, %v364_v35  ;;  %v372_v18 = vld [vmem:[#allocation3 + $0x538] sm:$0xff] }
 0x25c   :  { %v4132_v54 = vpop.f32.mrb[120].mxu0  ;;  %4984 = vmatprep.mubr.bf16.mxu0 %v15425_v24  ;;  %4830 = vmatpush1.bf16.msra.mxu1 %v10156_v62  ;;  %v368_v62 = vld [vmem:[#allocation3 + $0x518] sm:$0xff]  ;;  %v15434_v24 = vld [vmem:[#allocation129_spill] sm:$0xff] }
 0x25d   :  { %v13657_v47 = vadd.f32 %v4132_v54, %v15426_v21  ;;  %v4134_v60 = vpop.f32.mrb[121].mxu0  ;;  %7570 = vmatprep.subr.bf16.mxu1 %v11348_v4  ;;  %v5396_v54 = vlaneseq  ;;  %v15435_v4 = vld [vmem:[#allocation127_spill] sm:$0xff]  ;;  %v9926_v21 = vcombine.low %v360_v63, %v364_v35  ;;  %v9935_v22 = vcombine.high %v368_v62, %v372_v18  ;;  %v15442_v35 = vld [vmem:[#allocation54_spill] sm:$0xff] }
 0x25e   :  { %v13660_v53 = vadd.f32 %v4134_v60, %v15428_v10  ;;  %v4136_v17 = vpop.f32.mrb[122].mxu0  ;;  %5058 = vmatpush1.bf16.msra.mxu0 %v9910_v28  ;;  %v15437_v60 = vld [vmem:[#allocation132_spill] sm:$0xff]  ;;  %v376_v10 = vld [vmem:[#allocation3 + $0x558] sm:$0xff]  ;;  %v9934_v63 = vcombine.low %v368_v62, %v372_v18  ;;  %v15449_v62 = vld [vmem:[#allocation139_spill] sm:$0xff] }
 0x25f   :  { %15427 = vst [vmem:[#allocation30_spill] sm:$0xff] %v13657_v47  ;;  %v13663_v9 = vadd.f32 %v4136_v17, %v15430_v15  ;;  %v4138_v26 = vpop.f32.mrb[123].mxu0  ;;  %5059 = vmatprep.subr.bf16.mxu0 %v9919_v39  ;;  %v13672_v39 = vshrl.u32 %v5396_v54, 7  ;;  %v380_v17 = vld [vmem:[#allocation3 + $0x578] sm:$0xff]  ;;  %v15438_v15 = vld [vmem:[#allocation49_spill] sm:$0xff]  ;;  %v15444_v54 = vld [vmem:[#allocation55_spill] sm:$0xff] }
 0x260   :  { %15429 = vst [vmem:[#allocation31_spill] sm:$0xff] %v13660_v53  ;;  %v13666_v56 = vadd.f32 %v4138_v26, %v15432_v43  ;;  %v9942_v18 = vcombine.low %v376_v10, %v380_v17  ;;  %v404_v53 = vld [vmem:[#allocation3 + $0x638] sm:$0xff] }
 0x261   :  { %15431 = vst [vmem:[#allocation32_spill] sm:$0xff] %v13663_v9  ;;  %4985 = vmatmul.mubr.bf16.gmra.mrb[164].mxu0 %v15434_v24  ;;  %v15440_v24 = vld [vmem:[#allocation51_spill] sm:$0xff]  ;;  %v13687_v9 = vsub.s32 0, %v13672_v39 }
 0x262   :  { %15433 = vst [vmem:[#allocation82_spill] sm:$0xff] %v13666_v56  ;;  %4759 = vmatmul.mubr.bf16.gmra.mrb[132].mxu1 %v15435_v4  ;;  %5060 = vmatpush1.bf16.msra.mxu0 %v9918_v27 }
 0x263   :  { %5061 = vmatprep.subr.bf16.mxu0 %v9927_v40  ;;  %4768 = vmatprep.mubr.bf16.mxu1 %v15436_v5  ;;  %v9943_v5 = vcombine.high %v376_v10, %v380_v17  ;;  %15446 = vst [vmem:[#allocation35_spill] sm:$0xff] %v13687_v9 }
 0x264   :  { %v4142_v28 = vpop.f32.mrb[124].mxu0  ;;  %4994 = vmatprep.mubr.bf16.mxu0 %v15437_v60 }
 0x265   :  { %v13675_v26 = vadd.f32 %v4142_v28, %v15438_v15  ;;  %v4144_v43 = vpop.f32.mrb[125].mxu0  ;;  %v384_v28 = vld [vmem:[#allocation3 + $0x598] sm:$0xff] }
 0x266   :  { %v13678_v56 = vadd.f32 %v4144_v43, %v15440_v24  ;;  %v4146_v27 = vpop.f32.mrb[126].mxu0  ;;  %5062 = vmatpush1.bf16.msra.mxu0 %v9926_v21  ;;  %v388_v15 = vld [vmem:[#allocation3 + $0x5b8] sm:$0xff]  ;;  %v5394_v43 = vld [vmem:[#allocation7] sm:$0xff]  ;;  %v13691_v21 = vsub.s32 1, %v13672_v39 }
 0x267   :  { %15439 = vst [vmem:[#allocation86_spill] sm:$0xff] %v13675_v26  ;;  %v13681_v40 = vadd.f32 %v4146_v27, %v15442_v35  ;;  %v4148_v4 = vpop.f32.mrb[127].mxu0  ;;  %5063 = vmatprep.subr.bf16.mxu0 %v9935_v22  ;;  %v15447_v26 = vld [vmem:[#allocation141_spill] sm:$0xff]  ;;  %v15450_v22 = vld [vmem:[#allocation142_spill] sm:$0xff]  ;;  %v9951_v24 = vcombine.high %v384_v28, %v388_v15  ;;  %v13696_v27 = vrot.slane %v5394_v43, %v13687_v9  ;;  %v15451_v35 = vld [vmem:[#allocation144_spill] sm:$0xff] }
 0x268   :  { %15441 = vst [vmem:[#allocation33_spill] sm:$0xff] %v13678_v56  ;;  %v13684_v60 = vadd.f32 %v4148_v4, %v15444_v54  ;;  %15448 = vst [vmem:[#allocation36_spill] sm:$0xff] %v13691_v21  ;;  %v392_v4 = vld [vmem:[#allocation3 + $0x5d8] sm:$0xff]  ;;  %v9950_v10 = vcombine.low %v384_v28, %v388_v15 }
 0x269   :  { %15443 = vst [vmem:[#allocation91_spill] sm:$0xff] %v13681_v40  ;;  %4995 = vmatmul.mubr.bf16.gmra.mrb[168].mxu0 %v15447_v26  ;;  %v396_v54 = vld [vmem:[#allocation3 + $0x5f8] sm:$0xff] }
 0x26a   :  { %15445 = vst [vmem:[#allocation34_spill] sm:$0xff] %v13684_v60  ;;  %4769 = vmatmul.mubr.bf16.gmra.mrb[136].mxu1 %v15449_v62  ;;  %5064 = vmatpush1.bf16.msra.mxu0 %v9934_v63  ;;  %v13700_v60 = vrot.slane %v5394_v43, %v13691_v21  ;;  %v400_v56 = vld [vmem:[#allocation3 + $0x618] sm:$0xff]  ;;  %v9958_v15 = vcombine.low %v392_v4, %v396_v54 }
 0x26b   :  { %5065 = vmatprep.subr.bf16.mxu0 %v9943_v5  ;;  %4778 = vmatprep.mubr.bf16.mxu1 %v15450_v22  ;;  %v9959_v5 = vcombine.high %v392_v4, %v396_v54 }
 0x26c   :  { %5004 = vmatprep.mubr.bf16.mxu0 %v15451_v35 }
 0x26d   :  { %v3959_v26 = vpop.f32.mrb[64].mxu1 }
 0x26e   :  { %v10544_v40 = vadd.f32 %v3959_v26, %v13378_v45  ;;  %v3961_v62 = vpop.f32.mrb[65].mxu1  ;;  %5066 = vmatpush1.bf16.msra.mxu0 %v9942_v18  ;;  %v15452_v45 = vld [vmem:[#allocation146_spill] sm:$0xff]  ;;  %v9967_v26 = vcombine.high %v400_v56, %v404_v53 }
 0x26f   :  { %v10545_v17 = vadd.f32 %v3961_v62, %v13381_v41  ;;  %v3963_v63 = vpop.f32.mrb[66].mxu1  ;;  %5067 = vmatprep.subr.bf16.mxu0 %v9951_v24  ;;  %v15453_v41 = vld [vmem:[#allocation145_spill] sm:$0xff]  ;;  %v15454_v24 = vld [vmem:[#allocation147_spill] sm:$0xff]  ;;  %v408_v62 = vld [vmem:[#allocation3 + $0x658] sm:$0xff] }
 0x270   :  { %v5436_v22 = vadd.f32 %v10544_v40, %v13696_v27  ;;  %v10546_v35 = vadd.f32 %v3963_v63, %v13384_v55  ;;  %v3965_v9 = vpop.f32.mrb[67].mxu1 }
 0x271   :  { %v5437_v43 = vadd.f32 %v10545_v17, %v13700_v60  ;;  %v10547_v21 = vadd.f32 %v3965_v9, %v13387_v0  ;;  %5005 = vmatmul.mubr.bf16.gmra.mrb[172].mxu0 %v15452_v45  ;;  %v412_v17 = vld [vmem:[#allocation3 + $0x678] sm:$0xff]  ;;  %v15455_v9 = vld [vmem:[#allocation148_spill] sm:$0xff] }
 0x272   :  { %v5692_v18 = vmul.f32 0.2, %v5436_v22  ;;  %v5444_v28 = vadd.f32 %v10546_v35, %v13696_v27  ;;  %4779 = vmatmul.mubr.bf16.gmra.mrb[140].mxu1 %v15453_v41  ;;  %5068 = vmatpush1.bf16.msra.mxu0 %v9950_v10  ;;  %vm5564_vm1 = vcmp.gt.f32.partialorder %v5436_v22, 0.0  ;;  %v9966_v10 = vcombine.low %v400_v56, %v404_v53 }
 0x273   :  { %v5693_v40 = vmul.f32 0.2, %v5437_v43  ;;  %v5445_v55 = vadd.f32 %v10547_v21, %v13700_v60  ;;  %5069 = vmatprep.subr.bf16.mxu0 %v9959_v5  ;;  %4788 = vmatprep.mubr.bf16.mxu1 %v15454_v24  ;;  %vm5565_vm2 = vcmp.gt.f32.partialorder %v5437_v43, 0.0  ;;  %v9975_v45 = vcombine.high %v408_v62, %v412_v17 }
 0x274   :  { %vm5572_vm3 = vcmp.gt.f32.partialorder %v5444_v28, 0.0  ;;  %v5700_v0 = vmul.f32 0.2, %v5444_v28  ;;  %5014 = vmatprep.mubr.bf16.mxu0 %v15455_v9  ;;  %v5820_v4 = vsel %vm5564_vm1, %v5436_v22, %v5692_v18  ;;  %v416_v22 = vld [vmem:[#allocation3 + $0x698] sm:$0xff] }
 0x275   :  { %vm5573_vm4 = vcmp.gt.f32.partialorder %v5445_v55, 0.0  ;;  %v5701_v63 = vmul.f32 0.2, %v5445_v55  ;;  %v3969_v35 = vpop.f32.mrb[68].mxu1  ;;  %v5821_v9 = vsel %vm5565_vm2, %v5437_v43, %v5693_v40  ;;  %v420_v18 = vld [vmem:[#allocation3 + $0x6b8] sm:$0xff] }
 0x276   :  { %v5828_v54 = vsel %vm5572_vm3, %v5444_v28, %v5700_v0  ;;  %v10548_v21 = vadd.f32 %v3969_v35, %v13414_v30  ;;  %v3971_v5 = vpop.f32.mrb[69].mxu1  ;;  %5070 = vmatpush1.bf16.msra.mxu0 %v9958_v15  ;;  %v15456_v0 = vld [vmem:[#allocation149_spill] sm:$0xff]  ;;  %v9983_v40 = vcombine.high %v416_v22, %v420_v18 }
 0x277   :  { %v13716_v41 = vpack.c.bf16 %v5828_v54, %v5820_v4  ;;  %v10549_v24 = vadd.f32 %v3971_v5, %v13417_v33  ;;  %v3973_v47 = vpop.f32.mrb[70].mxu1  ;;  %5071 = vmatprep.subr.bf16.mxu0 %v9967_v26  ;;  %v5829_v29 = vsel %vm5573_vm4, %v5445_v55, %v5701_v63  ;;  %v11935_v43 = vld [vmem:[%s15176_s0 + $0xf0] ss:$28 sps:$4 sm:$0xff]   ;;  %v424_v55 = vld [vmem:[#allocation3 + $0x6d8] sm:$0xff]  ;;  %v9982_v4 = vcombine.low %v416_v22, %v420_v18 }
 0x278   :  { %v5452_v2 = vadd.f32 %v10548_v21, %v13696_v27  ;;  %v10550_v53 = vadd.f32 %v3973_v47, %v13420_v46  ;;  %v3975_v56 = vpop.f32.mrb[71].mxu1  ;;  %v13722_v30 = vpack.c.bf16 %v5829_v29, %v5821_v9  ;;  %v9974_v46 = vcombine.low %v408_v62, %v412_v17  ;;  %v428_v63 = vld [vmem:[#allocation3 + $0x6f8] sm:$0xff] }
 0x279   :  { %v5453_v28 = vadd.f32 %v10549_v24, %v13700_v60  ;;  %v10551_v15 = vadd.f32 %v3975_v56, %v13423_v1  ;;  %5015 = vmatmul.mubr.bf16.gmra.mrb[176].mxu0 %v15456_v0  ;;  %v11936_v1 = vld [vmem:[%s15176_s0 + $0x12c] ss:$28 sps:$4 sm:$0xff]   ;;  %v11937_v62 = vld [vmem:[%s15176_s0 + $0x11c] ss:$28 sps:$4 sm:$0xff]   ;;  %v9991_v5 = vcombine.high %v424_v55, %v428_v63 }
 0x27a   :  { %v5708_v33 = vmul.f32 0.2, %v5452_v2  ;;  %v5460_v26 = vadd.f32 %v10550_v53, %v13696_v27  ;;  %4789 = vmatmul.mubr.bf16.gmra.mrb[144].mxu1 %v11935_v43  ;;  %5072 = vmatpush1.bf16.msra.mxu0 %v9966_v10  ;;  %vm5580_vm5 = vcmp.gt.f32.partialorder %v5452_v2, 0.0  ;;  %v432_v18 = vld [vmem:[#allocation3 + $0x718] sm:$0xff] }
 0x27b   :  { %v5709_v47 = vmul.f32 0.2, %v5453_v28  ;;  %v5461_v29 = vadd.f32 %v10551_v15, %v13700_v60  ;;  %5073 = vmatprep.subr.bf16.mxu0 %v9975_v45  ;;  %4798 = vmatprep.mubr.bf16.mxu1 %v11936_v1  ;;  %vm5581_vm6 = vcmp.gt.f32.partialorder %v5453_v28, 0.0 }
 0x27c   :  { %vm5588_vm7 = vcmp.gt.f32.partialorder %v5460_v26, 0.0  ;;  %v5716_v35 = vmul.f32 0.2, %v5460_v26  ;;  %5024 = vmatprep.mubr.bf16.mxu0 %v11937_v62  ;;  %v5836_v45 = vsel %vm5580_vm5, %v5452_v2, %v5708_v33  ;;  %v440_v62 = vld [vmem:[#allocation3 + $0x758] sm:$0xff] }
 0x27d   :  { %vm5589_vm8 = vcmp.gt.f32.partialorder %v5461_v29, 0.0  ;;  %v5717_v17 = vmul.f32 0.2, %v5461_v29  ;;  %v3979_v10 = vpop.f32.mrb[72].mxu1  ;;  %v5837_v56 = vsel %vm5581_vm6, %v5453_v28, %v5709_v47  ;;  %v11938_v28 = vld [vmem:[%s15176_s0 + $0x118] ss:$28 sps:$4 sm:$0xff]   ;;  %v9990_v47 = vcombine.low %v424_v55, %v428_v63 }
 0x27e   :  { %v10552_v54 = vadd.f32 %v3979_v10, %v13441_v7  ;;  %v3981_v21 = vpop.f32.mrb[73].mxu1  ;;  %5074 = vmatpush1.bf16.msra.mxu0 %v9974_v46  ;;  %v5844_v24 = vsel %vm5588_vm7, %v5460_v26, %v5716_v35  ;;  %v436_v46 = vld [vmem:[#allocation3 + $0x738] sm:$0xff]  ;;  %v11941_v55 = vld [vmem:[%s15176_s0 + $0x154] ss:$28 sps:$4 sm:$0xff]  }
 0x27f   :  { %v10553_v9 = vadd.f32 %v3981_v21, %v13444_v37  ;;  %v3983_v53 = vpop.f32.mrb[74].mxu1  ;;  %5075 = vmatprep.subr.bf16.mxu0 %v9983_v40  ;;  %v5845_v15 = vsel %vm5589_vm8, %v5461_v29, %v5717_v17  ;;  %v13742_v0 = vpack.c.bf16 %v5844_v24, %v5836_v45  ;;  %v9999_v35 = vcombine.high %v432_v18, %v436_v46  ;;  %v444_v17 = vld [vmem:[#allocation3 + $0x778] sm:$0xff] }
 0x280   :  { %v5468_v43 = vadd.f32 %v10552_v54, %v13696_v27  ;;  %v10554_v22 = vadd.f32 %v3983_v53, %v13447_v23  ;;  %v3985_v7 = vpop.f32.mrb[75].mxu1  ;;  %v13746_v1 = vpack.c.bf16 %v5845_v15, %v5837_v56  ;;  %v11939_v23 = vld [vmem:[%s15176_s0 + $0x128] ss:$28 sps:$4 sm:$0xff]   ;;  %v9998_v54 = vcombine.low %v432_v18, %v436_v46  ;;  %v448_v46 = vld [vmem:[#allocation3 + $0x798] sm:$0xff] }
 0x281   :  { %v5469_v2 = vadd.f32 %v10553_v9, %v13700_v60  ;;  %v10555_v37 = vadd.f32 %v3985_v7, %v13450_v58  ;;  %5025 = vmatmul.mubr.bf16.gmra.mrb[180].mxu0 %v11938_v28  ;;  %v11940_v58 = vld [vmem:[%s15176_s0 + $0x164] ss:$28 sps:$4 sm:$0xff]   ;;  %v10007_v45 = vcombine.high %v440_v62, %v444_v17  ;;  %v452_v28 = vld [vmem:[#allocation3 + $0x7b8] sm:$0xff] }
 0x282   :  { %v5724_v33 = vmul.f32 0.2, %v5468_v43  ;;  %v5476_v26 = vadd.f32 %v10554_v22, %v13696_v27  ;;  %4799 = vmatmul.mubr.bf16.gmra.mrb[148].mxu1 %v11939_v23  ;;  %5076 = vmatpush1.bf16.msra.mxu0 %v9982_v4  ;;  %vm5596_vm9 = vcmp.gt.f32.partialorder %v5468_v43, 0.0 }
 0x283   :  { %v5725_v29 = vmul.f32 0.2, %v5469_v2  ;;  %v5477_v40 = vadd.f32 %v10555_v37, %v13700_v60  ;;  %5077 = vmatprep.subr.bf16.mxu0 %v9991_v5  ;;  %4808 = vmatprep.mubr.bf16.mxu1 %v11940_v58  ;;  %vm5597_vm10 = vcmp.gt.f32.partialorder %v5469_v2, 0.0  ;;  %v10015_v58 = vcombine.high %v448_v46, %v452_v28 }
 0x284   :  { %vm5604_vm11 = vcmp.gt.f32.partialorder %v5476_v26, 0.0  ;;  %v5732_v10 = vmul.f32 0.2, %v5476_v26  ;;  %5034 = vmatprep.mubr.bf16.mxu0 %v11941_v55  ;;  %v5852_v24 = vsel %vm5596_vm9, %v5468_v43, %v5724_v33 }
 0x285   :  { %vm5605_vm12 = vcmp.gt.f32.partialorder %v5477_v40, 0.0  ;;  %v5733_v63 = vmul.f32 0.2, %v5477_v40  ;;  %v3989_v4 = vpop.f32.mrb[76].mxu1  ;;  %v5853_v15 = vsel %vm5597_vm10, %v5469_v2, %v5725_v29  ;;  %v11942_v2 = vld [vmem:[%s15176_s0 + $0x150] ss:$28 sps:$4 sm:$0xff]  }
 0x286   :  { %v10556_v21 = vadd.f32 %v3989_v4, %v13465_v20  ;;  %v3991_v5 = vpop.f32.mrb[77].mxu1  ;;  %5078 = vmatpush1.bf16.msra.mxu0 %v9990_v47  ;;  %v5860_v9 = vsel %vm5604_vm11, %v5476_v26, %v5732_v10  ;;  %v10006_v47 = vcombine.low %v440_v62, %v444_v17  ;;  %v460_v10 = vld [vmem:[#allocation3 + $0x7f8] sm:$0xff]  ;;  %v11945_v62 = vld [vmem:[%s15176_s0 + $0x18c] ss:$28 sps:$4 sm:$0xff]   ;;  %v10014_v4 = vcombine.low %v448_v46, %v452_v28 }
 0x287   :  { %v10557_v53 = vadd.f32 %v3991_v5, %v13468_v11  ;;  %v3993_v56 = vpop.f32.mrb[78].mxu1  ;;  %5079 = vmatprep.subr.bf16.mxu0 %v9999_v35  ;;  %v5861_v22 = vsel %vm5605_vm12, %v5477_v40, %v5733_v63  ;;  %v13768_v7 = vpack.c.bf16 %v5860_v9, %v5852_v24  ;;  %v456_v35 = vld [vmem:[#allocation3 + $0x7d8] sm:$0xff] }
 0x288   :  { %v5484_v37 = vadd.f32 %v10556_v21, %v13696_v27  ;;  %v10558_v18 = vadd.f32 %v3993_v56, %v13471_v12  ;;  %v3995_v20 = vpop.f32.mrb[79].mxu1  ;;  %v13772_v23 = vpack.c.bf16 %v5861_v22, %v5853_v15  ;;  %v11943_v12 = vld [vmem:[%s15176_s0 + $0x160] ss:$28 sps:$4 sm:$0xff]   ;;  %v10023_v5 = vcombine.high %v456_v35, %v460_v10 }
 0x289   :  { %v5485_v43 = vadd.f32 %v10557_v53, %v13700_v60  ;;  %v10559_v11 = vadd.f32 %v3995_v20, %v13474_v52  ;;  %5035 = vmatmul.mubr.bf16.gmra.mrb[184].mxu0 %v11942_v2  ;;  %v11944_v52 = vld [vmem:[%s15176_s0 + $0x19c] ss:$28 sps:$4 sm:$0xff]  }
 0x28a   :  { %v5740_v33 = vmul.f32 0.2, %v5484_v37  ;;  %v5492_v26 = vadd.f32 %v10558_v18, %v13696_v27  ;;  %4809 = vmatmul.mubr.bf16.gmra.mrb[152].mxu1 %v11943_v12  ;;  %5080 = vmatpush1.bf16.msra.mxu0 %v9998_v54  ;;  %vm5612_vm13 = vcmp.gt.f32.partialorder %v5484_v37, 0.0  ;;  %v464_v46 = vld [vmem:[#allocation3 + $0x818] sm:$0xff] }
 0x28b   :  { %v5741_v29 = vmul.f32 0.2, %v5485_v43  ;;  %v5493_v40 = vadd.f32 %v10559_v11, %v13700_v60  ;;  %5081 = vmatprep.subr.bf16.mxu0 %v10007_v45  ;;  %4818 = vmatprep.mubr.bf16.mxu1 %v11944_v52  ;;  %vm5613_vm14 = vcmp.gt.f32.partialorder %v5485_v43, 0.0  ;;  %v468_v28 = vld [vmem:[#allocation3 + $0x838] sm:$0xff] }
 0x28c   :  { %vm5620_vm15 = vcmp.gt.f32.partialorder %v5492_v26, 0.0  ;;  %v5748_v55 = vmul.f32 0.2, %v5492_v26  ;;  %5044 = vmatprep.mubr.bf16.mxu0 %v11945_v62  ;;  %v5868_v45 = vsel %vm5612_vm13, %v5484_v37, %v5740_v33 }
 0x28d   :  { %vm5621_vm1 = vcmp.gt.f32.partialorder %v5493_v40, 0.0  ;;  %v5749_v17 = vmul.f32 0.2, %v5493_v40  ;;  %v3999_v63 = vpop.f32.mrb[80].mxu1  ;;  %v5869_v56 = vsel %vm5613_vm14, %v5485_v43, %v5741_v29  ;;  %v11946_v43 = vld [vmem:[%s15176_s0 + $0x188] ss:$28 sps:$4 sm:$0xff]  }
 0x28e   :  { %v10560_v54 = vadd.f32 %v3999_v63, %v13485_v32  ;;  %v4001_v21 = vpop.f32.mrb[81].mxu1  ;;  %5082 = vmatpush1.bf16.msra.mxu0 %v10006_v47  ;;  %v5876_v24 = vsel %vm5620_vm15, %v5492_v26, %v5748_v55  ;;  %v10022_v26 = vcombine.low %v456_v35, %v460_v10  ;;  %v13811_v29 = vld [vmem:[#allocation3 + $0x858] sm:$0xff]  ;;  %v10030_v55 = vcombine.low %v464_v46, %v468_v28 }
 0x28f   :  { %v10561_v9 = vadd.f32 %v4001_v21, %v13488_v8  ;;  %v4003_v53 = vpop.f32.mrb[82].mxu1  ;;  %5083 = vmatprep.subr.bf16.mxu0 %v10015_v58  ;;  %v5877_v15 = vsel %vm5621_vm1, %v5493_v40, %v5749_v17  ;;  %v13794_v22 = vpack.c.bf16 %v5876_v24, %v5868_v45  ;;  %v13813_v40 = vld [vmem:[#allocation3 + $0x878] sm:$0xff]  ;;  %v11948_v58 = vld [vmem:[%s15176_s0 + $0xc] ss:$28 sps:$4 sm:$0xff]  }
 0x290   :  { %v5500_v18 = vadd.f32 %v10560_v54, %v13696_v27  ;;  %v10562_v20 = vadd.f32 %v4003_v53, %v13491_v31  ;;  %v4005_v32 = vpop.f32.mrb[83].mxu1  ;;  %v13798_v11 = vpack.c.bf16 %v5877_v15, %v5869_v56  ;;  %v11947_v31 = vld [vmem:[%s15176_s0 + $0x198] ss:$28 sps:$4 sm:$0xff]   ;;  %v10039_v63 = vcombine.high %v13811_v29, %v13813_v40 }
 0x291   :  { %v5501_v37 = vadd.f32 %v10561_v9, %v13700_v60  ;;  %v10563_v8 = vadd.f32 %v4005_v32, %v13494_v14  ;;  %5045 = vmatmul.mubr.bf16.gmra.mrb[188].mxu0 %v11946_v43  ;;  %v10031_v14 = vcombine.high %v464_v46, %v468_v28  ;;  %v11346_v45 = vld [vmem:[#allocation8] ss:$16 sps:$4 sm:$0xff]   ;;  %v11351_v32 = vld [vmem:[#allocation8 + $0x24] ss:$16 sps:$4 sm:$0xff]  }
 0x292   :  { %v5756_v2 = vmul.f32 0.2, %v5500_v18  ;;  %v5508_v33 = vadd.f32 %v10562_v20, %v13696_v27  ;;  %4819 = vmatmul.mubr.bf16.gmra.mrb[156].mxu1 %v11947_v31  ;;  %5084 = vmatpush1.bf16.msra.mxu0 %v10014_v4  ;;  %vm5628_vm2 = vcmp.gt.f32.partialorder %v5500_v18, 0.0  ;;  %v13823_v24 = vld [vmem:[#allocation3 + $0x898] sm:$0xff] }
 0x293   :  { %v5757_v12 = vmul.f32 0.2, %v5501_v37  ;;  %v5509_v47 = vadd.f32 %v10563_v8, %v13700_v60  ;;  %5085 = vmatprep.subr.bf16.mxu0 %v10023_v5  ;;  %4861 = vmatprep.mubr.bf16.mxu1 %v15257_v50  ;;  %vm5629_vm3 = vcmp.gt.f32.partialorder %v5501_v37, 0.0  ;;  %v13825_v9 = vld [vmem:[#allocation3 + $0x8b8] sm:$0xff] }
 0x294   :  { %vm5636_vm4 = vcmp.gt.f32.partialorder %v5508_v33, 0.0  ;;  %v5764_v52 = vmul.f32 0.2, %v5508_v33  ;;  %5087 = vmatprep.mubr.bf16.mxu0 %v11948_v58  ;;  %v5884_v4 = vsel %vm5628_vm2, %v5500_v18, %v5756_v2  ;;  %v10038_v2 = vcombine.low %v13811_v29, %v13813_v40  ;;  %v13851_v31 = vld [vmem:[#allocation3 + $0x8f8] sm:$0xff]  ;;  %v11951_v58 = vld [vmem:[%s15176_s0 + $0x44] ss:$28 sps:$4 sm:$0xff]  }
 0x295   :  { %vm5637_vm5 = vcmp.gt.f32.partialorder %v5509_v47, 0.0  ;;  %v5765_v35 = vmul.f32 0.2, %v5509_v47  ;;  %v4009_v10 = vpop.f32.mrb[84].mxu1  ;;  %v5885_v53 = vsel %vm5629_vm3, %v5501_v37, %v5757_v12  ;;  %v11949_v37 = vld [vmem:[%s15176_s0 + $0x8] ss:$28 sps:$4 sm:$0xff]  }
 0x296   :  { %v10564_v62 = vadd.f32 %v4009_v10, %v13503_v3  ;;  %v4011_v17 = vpop.f32.mrb[85].mxu1  ;;  %5086 = vmatpush1.bf16.msra.mxu0 %v10022_v26  ;;  %v5892_v54 = vsel %vm5636_vm4, %v5508_v33, %v5764_v52  ;;  %v13849_v33 = vld [vmem:[#allocation3 + $0x8d8] sm:$0xff] }
 0x297   :  { %v10565_v21 = vadd.f32 %v4011_v17, %v13506_v13  ;;  %v4013_v5 = vpop.f32.mrb[86].mxu1  ;;  %5168 = vmatprep.subr.bf16.mxu0 %v10031_v14  ;;  %v5893_v3 = vsel %vm5637_vm5, %v5509_v47, %v5765_v35  ;;  %v13829_v56 = vpack.c.bf16 %v5892_v54, %v5884_v4  ;;  %v11349_v47 = vld [vmem:[#allocation8 + $0x20] ss:$16 sps:$4 sm:$0xff]   ;;  %v11354_v29 = vld [vmem:[#allocation8 + $0x44] ss:$16 sps:$4 sm:$0xff]   ;;  %v10046_v35 = vcombine.low %v13823_v24, %v13825_v9 }
 0x298   :  { %v5516_v15 = vadd.f32 %v10564_v62, %v13696_v27  ;;  %v10566_v18 = vadd.f32 %v4013_v5, %v13511_v19  ;;  %v4015_v20 = vpop.f32.mrb[87].mxu1  ;;  %v13833_v13 = vpack.c.bf16 %v5893_v3, %v5885_v53  ;;  %v11950_v19 = vld [vmem:[%s15176_s0 + $0x18] ss:$28 sps:$4 sm:$0xff]   ;;  %v10055_v10 = vcombine.high %v13849_v33, %v13851_v31 }
 0x299   :  { %v5517_v46 = vadd.f32 %v10565_v21, %v13700_v60  ;;  %v10567_v28 = vadd.f32 %v4015_v20, %v13514_v16  ;;  %5088 = vmatmul.mubr.bf16.vlgmr.msra.gmra.mrb[192].mxu0 %v11949_v37  ;;  %v10047_v16 = vcombine.high %v13823_v24, %v13825_v9  ;;  %v11352_v5 = vld [vmem:[#allocation8 + $0x40] ss:$16 sps:$4 sm:$0xff]  }
 0x29a   :  { %v5772_v8 = vmul.f32 0.2, %v5516_v15  ;;  %v5524_v43 = vadd.f32 %v10566_v18, %v13696_v27  ;;  %10176 = vmatmul.mubr.msk.bf16.vlgmr.msra.gmra.mrb[128].mxu1 %vm629_vm0, %v11950_v19  ;;  %5169 = vmatpush1.bf16.msra.mxu0 %v10030_v55  ;;  %vm5644_vm6 = vcmp.gt.f32.partialorder %v5516_v15, 0.0  ;;  %v13869_v24 = vld [vmem:[#allocation3 + $0x938] sm:$0xff] }
 0x29b   :  { %vm5645_vm7 = vcmp.gt.f32.partialorder %v5517_v46, 0.0  ;;  %v5773_v26 = vmul.f32 0.2, %v5517_v46  ;;  %v5525_v12 = vadd.f32 %v10567_v28, %v13700_v60  ;;  %7571 = vmatpush1.bf16.msra.mxu1 %v11346_v45  ;;  %5170 = vmatprep.subr.bf16.mxu0 %v10039_v63  ;;  %v13867_v45 = vld [vmem:[#allocation3 + $0x918] sm:$0xff] }
 0x29c   :  { %vm5652_vm8 = vcmp.gt.f32.partialorder %v5524_v43, 0.0  ;;  %v5780_v14 = vmul.f32 0.2, %v5524_v43  ;;  %7572 = vmatprep.subr.bf16.mxu1 %v11351_v32  ;;  %4871 = vmatprep.mubr.bf16.mxu1 %v15257_v50  ;;  %v5900_v63 = vsel %vm5644_vm6, %v5516_v15, %v5772_v8  ;;  %v11357_v18 = vld [vmem:[#allocation8 + $0x64] ss:$16 sps:$4 sm:$0xff]   ;;  %v10054_v8 = vcombine.low %v13849_v33, %v13851_v31 }
 0x29d   :  { %vm5653_vm9 = vcmp.gt.f32.partialorder %v5525_v12, 0.0  ;;  %v5781_v40 = vmul.f32 0.2, %v5525_v12  ;;  %v4019_v52 = vpop.f32.mrb[88].mxu1  ;;  %5097 = vmatprep.mubr.bf16.mxu0 %v11951_v58  ;;  %v5901_v17 = vsel %vm5645_vm7, %v5517_v46, %v5773_v26  ;;  %v11952_v46 = vld [vmem:[%s15176_s0 + $0x40] ss:$28 sps:$4 sm:$0xff]  }
 0x29e   :  { %v10568_v55 = vadd.f32 %v4019_v52, %v13521_v6  ;;  %v4021_v62 = vpop.f32.mrb[89].mxu1  ;;  %5171 = vmatpush1.bf16.msra.mxu0 %v10038_v2  ;;  %v5908_v4 = vsel %vm5652_vm8, %v5524_v43, %v5780_v14  ;;  %v13892_v43 = vld [vmem:[#allocation3 + $0x958] sm:$0xff] }
 0x29f   :  { %v10569_v54 = vadd.f32 %v4021_v62, %v13525_v25  ;;  %v4023_v21 = vpop.f32.mrb[90].mxu1  ;;  %7573 = vmatpush1.bf16.msra.mxu1 %v11349_v47  ;;  %5172 = vmatprep.subr.bf16.mxu0 %v10047_v16  ;;  %v5909_v6 = vsel %vm5653_vm9, %v5525_v12, %v5781_v40  ;;  %v13872_v9 = vpack.c.bf16 %v5908_v4, %v5900_v63  ;;  %v13894_v19 = vld [vmem:[#allocation3 + $0x978] sm:$0xff] }
 0x2a0   :  { %v5532_v53 = vadd.f32 %v10568_v55, %v13696_v27  ;;  %v10570_v3 = vadd.f32 %v4023_v21, %v13528_v38  ;;  %v4025_v15 = vpop.f32.mrb[91].mxu1  ;;  %7574 = vmatprep.subr.bf16.mxu1 %v11354_v29  ;;  %v13876_v25 = vpack.c.bf16 %v5909_v6, %v5901_v17  ;;  %v11953_v38 = vld [vmem:[%s15176_s0 + $0x50] ss:$28 sps:$4 sm:$0xff]   ;;  %v11355_v26 = vld [vmem:[#allocation8 + $0x60] ss:$16 sps:$4 sm:$0xff]   ;;  %v10062_v29 = vcombine.low %v13867_v45, %v13869_v24 }
 0x2a1   :  { %15457 = vst [vmem:[#allocation93_spill] sm:$0xff] %v13872_v9  ;;  %v5533_v20 = vadd.f32 %v10569_v54, %v13700_v60  ;;  %v10571_v32 = vadd.f32 %v4025_v15, %v13531_v61  ;;  %5098 = vmatmul.mubr.bf16.gmra.mrb[196].mxu0 %v11952_v46  ;;  %v10063_v61 = vcombine.high %v13867_v45, %v13869_v24  ;;  %v11360_v33 = vld [vmem:[#allocation8 + $0x84] ss:$16 sps:$4 sm:$0xff]   ;;  %v11358_v63 = vld [vmem:[#allocation8 + $0x80] ss:$16 sps:$4 sm:$0xff]  }
 0x2a2   :  { %v5788_v28 = vmul.f32 0.2, %v5532_v53  ;;  %v5540_v37 = vadd.f32 %v10570_v3, %v13696_v27  ;;  %10177 = vmatmul.mubr.msk.bf16.gmra.mrb[132].mxu1 %vm629_vm0, %v11953_v38  ;;  %5173 = vmatpush1.bf16.msra.mxu0 %v10046_v35  ;;  %vm5660_vm10 = vcmp.gt.f32.partialorder %v5532_v53, 0.0  ;;  %v11954_v14 = vld [vmem:[%s15176_s0 + $0x7c] ss:$28 sps:$4 sm:$0xff]   ;;  %v10071_v40 = vcombine.high %v13892_v43, %v13894_v19 }
 0x2a3   :  { %vm5661_vm11 = vcmp.gt.f32.partialorder %v5533_v20, 0.0  ;;  %v5789_v2 = vmul.f32 0.2, %v5533_v20  ;;  %v5541_v16 = vadd.f32 %v10571_v32, %v13700_v60  ;;  %7575 = vmatpush1.bf16.msra.mxu1 %v11352_v5  ;;  %5174 = vmatprep.subr.bf16.mxu0 %v10055_v10  ;;  %v13910_v4 = vld [vmem:[#allocation3 + $0x998] sm:$0xff]  ;;  %v10070_v32 = vcombine.low %v13892_v43, %v13894_v19 }
 0x2a4   :  { %vm5668_vm12 = vcmp.gt.f32.partialorder %v5540_v37, 0.0  ;;  %v5796_v12 = vmul.f32 0.2, %v5540_v37  ;;  %7576 = vmatprep.subr.bf16.mxu1 %v11357_v18  ;;  %4881 = vmatprep.mubr.bf16.mxu1 %v15257_v50  ;;  %v5916_v10 = vsel %vm5660_vm10, %v5532_v53, %v5788_v28  ;;  %v13912_v54 = vld [vmem:[#allocation3 + $0x9b8] sm:$0xff] }
 0x2a5   :  { %vm5669_vm13 = vcmp.gt.f32.partialorder %v5541_v16, 0.0  ;;  %v5797_v31 = vmul.f32 0.2, %v5541_v16  ;;  %v4029_v47 = vpop.f32.mrb[92].mxu1  ;;  %5107 = vmatprep.mubr.bf16.mxu0 %v11954_v14  ;;  %v5917_v35 = vsel %vm5661_vm11, %v5533_v20, %v5789_v2  ;;  %v11363_v6 = vld [vmem:[#allocation8 + $0xa4] ss:$16 sps:$4 sm:$0xff]  }
 0x2a6   :  { %v10572_v52 = vadd.f32 %v4029_v47, %v13538_v44  ;;  %v4031_v58 = vpop.f32.mrb[93].mxu1  ;;  %5175 = vmatpush1.bf16.msra.mxu0 %v10054_v8  ;;  %v5924_v55 = vsel %vm5668_vm12, %v5540_v37, %v5796_v12  ;;  %v11955_v15 = vld [vmem:[%s15176_s0 + $0x78] ss:$28 sps:$4 sm:$0xff]  }
 0x2a7   :  { %v10573_v62 = vadd.f32 %v4031_v58, %v13542_v49  ;;  %v4033_v17 = vpop.f32.mrb[94].mxu1  ;;  %7577 = vmatpush1.bf16.msra.mxu1 %v11355_v26  ;;  %5176 = vmatprep.subr.bf16.mxu0 %v10063_v61  ;;  %v5925_v44 = vsel %vm5669_vm13, %v5541_v16, %v5797_v31  ;;  %v13915_v21 = vpack.c.bf16 %v5924_v55, %v5916_v10  ;;  %v520_v46 = vld [vmem:[#allocation3 + $0x9d8] sm:$0xff]  ;;  %v11957_v2 = vld [vmem:[%s15176_s0 + $0xb4] ss:$28 sps:$4 sm:$0xff]   ;;  %v15459_v26 = vld [vmem:[#allocation56_spill] sm:$0xff] }
 0x2a8   :  { %v5548_v5 = vadd.f32 %v10572_v52, %v13696_v27  ;;  %v10574_v45 = vadd.f32 %v4033_v17, %v13545_v48  ;;  %v4035_v24 = vpop.f32.mrb[95].mxu1  ;;  %7578 = vmatprep.subr.bf16.mxu1 %v11360_v33  ;;  %v13919_v49 = vpack.c.bf16 %v5925_v44, %v5917_v35  ;;  %v11956_v48 = vld [vmem:[%s15176_s0 + $0x88] ss:$28 sps:$4 sm:$0xff]   ;;  %v524_v28 = vld [vmem:[#allocation3 + $0x9f8] sm:$0xff] }
 0x2a9   :  { %v5549_v53 = vadd.f32 %v10573_v62, %v13700_v60  ;;  %v10575_v3 = vadd.f32 %v4035_v24, %v13548_v42  ;;  %5108 = vmatmul.mubr.bf16.gmra.mrb[200].mxu0 %v11955_v15  ;;  %v10079_v42 = vcombine.high %v13910_v4, %v13912_v54  ;;  %v11361_v38 = vld [vmem:[#allocation8 + $0xa0] ss:$16 sps:$4 sm:$0xff]   ;;  %v11366_v61 = vld [vmem:[#allocation8 + $0xc4] ss:$16 sps:$4 sm:$0xff]   ;;  %v10087_v16 = vcombine.high %v520_v46, %v524_v28 }
 0x2aa   :  { %15458 = vst [vmem:[#allocation97_spill] sm:$0xff] %v13919_v49  ;;  %v5804_v18 = vmul.f32 0.2, %v5548_v5  ;;  %v5556_v20 = vadd.f32 %v10574_v45, %v13696_v27  ;;  %10178 = vmatmul.mubr.msk.bf16.gmra.mrb[136].mxu1 %vm629_vm0, %v11956_v48  ;;  %5177 = vmatpush1.bf16.msra.mxu0 %v10062_v29  ;;  %vm5676_vm14 = vcmp.gt.f32.partialorder %v5548_v5, 0.0  ;;  %v15460_v29 = vld [vmem:[#allocation57_spill] sm:$0xff]  ;;  %v15461_v55 = vld [vmem:[#allocation62_spill] sm:$0xff] }
 0x2ab   :  { %vm5677_vm15 = vcmp.gt.f32.partialorder %v5549_v53, 0.0  ;;  %v5805_v37 = vmul.f32 0.2, %v5549_v53  ;;  %v5557_v27 = vadd.f32 %v10575_v3, %v13700_v60  ;;  %7579 = vmatpush1.bf16.msra.mxu1 %v11358_v63  ;;  %5178 = vmatprep.subr.bf16.mxu0 %v10071_v40  ;;  %v10078_v60 = vcombine.low %v13910_v4, %v13912_v54  ;;  %v11364_v58 = vld [vmem:[#allocation8 + $0xc0] ss:$16 sps:$4 sm:$0xff]  }
 0x2ac   :  { %vm5684_vm1 = vcmp.gt.f32.partialorder %v5556_v20, 0.0  ;;  %v5812_v8 = vmul.f32 0.2, %v5556_v20  ;;  %7580 = vmatprep.subr.bf16.mxu1 %v11363_v6  ;;  %4891 = vmatprep.mubr.bf16.mxu1 %v15257_v50  ;;  %v5932_v47 = vsel %vm5676_vm14, %v5548_v5, %v5804_v18  ;;  %v11369_v63 = vld [vmem:[#allocation8 + $0xe4] ss:$16 sps:$4 sm:$0xff]   ;;  %v15462_v5 = vld [vmem:[#allocation63_spill] sm:$0xff] }
 0x2ad   :  { %vm5685_vm2 = vcmp.gt.f32.partialorder %v5557_v27, 0.0  ;;  %v5813_v43 = vmul.f32 0.2, %v5557_v27  ;;  %v4524_v19 = vpop.f32.mrb[96].mxu1  ;;  %5117 = vmatprep.mubr.bf16.mxu0 %v11957_v2  ;;  %v5933_v31 = vsel %vm5677_vm15, %v5549_v53, %v5805_v37  ;;  %v528_v4 = vld [vmem:[#allocation3 + $0xa18] sm:$0xff]  ;;  %v10086_v53 = vcombine.low %v520_v46, %v524_v28  ;;  %v15463_v37 = vld [vmem:[#allocation67_spill] sm:$0xff] }
 0x2ae   :  { %v13943_v12 = vadd.f32 %v4524_v19, %v15459_v26  ;;  %v4526_v33 = vpop.f32.mrb[97].mxu1  ;;  %5179 = vmatpush1.bf16.msra.mxu0 %v10070_v32  ;;  %v5940_v14 = vsel %vm5684_vm1, %v5556_v20, %v5812_v8  ;;  %v532_v54 = vld [vmem:[#allocation3 + $0xa38] sm:$0xff]  ;;  %v11958_v24 = vld [vmem:[%s15176_s0 + $0xb0] ss:$28 sps:$4 sm:$0xff]  }
 0x2af   :  { %v13949_v40 = vadd.f32 %v4526_v33, %v15460_v29  ;;  %v4528_v52 = vpop.f32.mrb[98].mxu1  ;;  %7581 = vmatpush1.bf16.msra.mxu1 %v11361_v38  ;;  %5180 = vmatprep.subr.bf16.mxu0 %v10079_v42  ;;  %v5941_v35 = vsel %vm5685_vm2, %v5557_v27, %v5813_v43  ;;  %v13952_v10 = vpack.c.bf16 %v5940_v14, %v5932_v47  ;;  %v11959_v6 = vld [vmem:[%s15176_s0 + $0xc0] ss:$28 sps:$4 sm:$0xff]   ;;  %v11367_v3 = vld [vmem:[#allocation8 + $0xe0] ss:$16 sps:$4 sm:$0xff]   ;;  %v15465_v2 = vld [vmem:[#allocation73_spill] sm:$0xff] }
 0x2b0   :  { %v13955_v62 = vadd.f32 %v4528_v52, %v15461_v55  ;;  %v4530_v17 = vpop.f32.mrb[99].mxu1  ;;  %7582 = vmatprep.subr.bf16.mxu1 %v11366_v61  ;;  %v13957_v44 = vpack.c.bf16 %v5941_v35, %v5933_v31  ;;  %v10095_v15 = vcombine.high %v528_v4, %v532_v54  ;;  %v11372_v18 = vld [vmem:[#allocation8 + $0x104] ss:$16 sps:$4 sm:$0xff]   ;;  %v10094_v28 = vcombine.low %v528_v4, %v532_v54  ;;  %v11370_v43 = vld [vmem:[#allocation8 + $0x100] ss:$16 sps:$4 sm:$0xff]  }
 0x2b1   :  { %v13960_v45 = vadd.f32 %v4530_v17, %v15462_v5  ;;  %5118 = vmatmul.mubr.bf16.gmra.mrb[204].mxu0 %v11958_v24  ;;  %v536_v20 = vld [vmem:[#allocation3 + $0xa58] sm:$0xff]  ;;  %v11960_v42 = vld [vmem:[%s15176_s0 + $0xec] ss:$28 sps:$4 sm:$0xff]   ;;  %v11963_v5 = vld [vmem:[%s15176_s0 + $0x124] ss:$28 sps:$4 sm:$0xff]  }
 0x2b2   :  { %10179 = vmatmul.mubr.msk.bf16.gmra.mrb[140].mxu1 %vm629_vm0, %v11959_v6  ;;  %5181 = vmatpush1.bf16.msra.mxu0 %v10078_v60  ;;  %v540_v48 = vld [vmem:[#allocation3 + $0xa78] sm:$0xff]  ;;  %v15464_v38 = vld [vmem:[#allocation68_spill] sm:$0xff] }
 0x2b3   :  { %7583 = vmatpush1.bf16.msra.mxu1 %v11364_v58  ;;  %5182 = vmatprep.subr.bf16.mxu0 %v10087_v16  ;;  %v10103_v19 = vcombine.high %v536_v20, %v540_v48  ;;  %v11375_v26 = vld [vmem:[#allocation8 + $0x124] ss:$16 sps:$4 sm:$0xff]   ;;  %v11961_v29 = vld [vmem:[%s15176_s0 + $0xe8] ss:$28 sps:$4 sm:$0xff]   ;;  %v11962_v52 = vld [vmem:[%s15176_s0 + $0xf8] ss:$28 sps:$4 sm:$0xff]   ;;  %v10102_v58 = vcombine.low %v536_v20, %v540_v48 }
 0x2b4   :  { %7584 = vmatprep.subr.bf16.mxu1 %v11369_v63  ;;  %4901 = vmatprep.mubr.bf16.mxu1 %v15257_v50  ;;  %v544_v33 = vld [vmem:[#allocation3 + $0xa98] sm:$0xff] }
 0x2b5   :  { %v4534_v32 = vpop.f32.mrb[100].mxu1  ;;  %5127 = vmatprep.mubr.bf16.mxu0 %v11960_v42  ;;  %v548_v31 = vld [vmem:[#allocation3 + $0xab8] sm:$0xff]  ;;  %v15469_v42 = vld [vmem:[#allocation84_spill] sm:$0xff] }
 0x2b6   :  { %v13974_v27 = vadd.f32 %v4534_v32, %v15463_v37  ;;  %v4536_v46 = vpop.f32.mrb[101].mxu1  ;;  %5183 = vmatpush1.bf16.msra.mxu0 %v10086_v53  ;;  %v15466_v47 = vld [vmem:[#allocation74_spill] sm:$0xff]  ;;  %v10111_v55 = vcombine.high %v544_v33, %v548_v31 }
 0x2b7   :  { %v13977_v8 = vadd.f32 %v4536_v46, %v15464_v38  ;;  %v4538_v61 = vpop.f32.mrb[102].mxu1  ;;  %7585 = vmatpush1.bf16.msra.mxu1 %v11367_v3  ;;  %5184 = vmatprep.subr.bf16.mxu0 %v10095_v15  ;;  %v11373_v35 = vld [vmem:[#allocation8 + $0x120] ss:$16 sps:$4 sm:$0xff]   ;;  %v11378_v17 = vld [vmem:[#allocation8 + $0x144] ss:$16 sps:$4 sm:$0xff]   ;;  %v10110_v3 = vcombine.low %v544_v33, %v548_v31  ;;  %v15468_v15 = vld [vmem:[#allocation79_spill] sm:$0xff] }
 0x2b8   :  { %v13980_v60 = vadd.f32 %v4538_v61, %v15465_v2  ;;  %v4540_v16 = vpop.f32.mrb[103].mxu1  ;;  %7586 = vmatprep.subr.bf16.mxu1 %v11372_v18  ;;  %v552_v63 = vld [vmem:[#allocation3 + $0xad8] sm:$0xff] }
 0x2b9   :  { %v13983_v14 = vadd.f32 %v4540_v16, %v15466_v47  ;;  %5128 = vmatmul.mubr.bf16.gmra.mrb[208].mxu0 %v11961_v29  ;;  %v556_v4 = vld [vmem:[#allocation3 + $0xaf8] sm:$0xff]  ;;  %v11965_v16 = vld [vmem:[%s15176_s0 + $0x130] ss:$28 sps:$4 sm:$0xff]  }
 0x2ba   :  { %10180 = vmatmul.mubr.msk.bf16.gmra.mrb[144].mxu1 %vm629_vm0, %v11962_v52  ;;  %5185 = vmatpush1.bf16.msra.mxu0 %v10094_v28  ;;  %v15467_v24 = vld [vmem:[#allocation78_spill] sm:$0xff]  ;;  %v10119_v32 = vcombine.high %v552_v63, %v556_v4 }
 0x2bb   :  { %7587 = vmatpush1.bf16.msra.mxu1 %v11370_v43  ;;  %5186 = vmatprep.subr.bf16.mxu0 %v10103_v19  ;;  %v11376_v48 = vld [vmem:[#allocation8 + $0x140] ss:$16 sps:$4 sm:$0xff]   ;;  %v11381_v28 = vld [vmem:[#allocation8 + $0x164] ss:$16 sps:$4 sm:$0xff]   ;;  %v15471_v43 = vld [vmem:[#allocation85_spill] sm:$0xff] }
 0x2bc   :  { %7588 = vmatprep.subr.bf16.mxu1 %v11375_v26  ;;  %4911 = vmatprep.mubr.bf16.mxu1 %v15257_v50  ;;  %v560_v38 = vld [vmem:[#allocation3 + $0xb18] sm:$0xff]  ;;  %v10118_v26 = vcombine.low %v552_v63, %v556_v4 }
 0x2bd   :  { %v4544_v54 = vpop.f32.mrb[104].mxu1  ;;  %5137 = vmatprep.mubr.bf16.mxu0 %v11963_v5  ;;  %v564_v61 = vld [vmem:[#allocation3 + $0xb38] sm:$0xff] }
 0x2be   :  { %v13997_v6 = vadd.f32 %v4544_v54, %v15467_v24  ;;  %v4546_v53 = vpop.f32.mrb[105].mxu1  ;;  %5187 = vmatpush1.bf16.msra.mxu0 %v10102_v58  ;;  %v11964_v2 = vld [vmem:[%s15176_s0 + $0x120] ss:$28 sps:$4 sm:$0xff]   ;;  %v11379_v33 = vld [vmem:[#allocation8 + $0x160] ss:$16 sps:$4 sm:$0xff]   ;;  %v10127_v31 = vcombine.high %v560_v38, %v564_v61  ;;  %v10126_v4 = vcombine.low %v560_v38, %v564_v61 }
 0x2bf   :  { %v14000_v18 = vadd.f32 %v4546_v53, %v15468_v15  ;;  %v4548_v20 = vpop.f32.mrb[106].mxu1  ;;  %7589 = vmatpush1.bf16.msra.mxu1 %v11373_v35  ;;  %5188 = vmatprep.subr.bf16.mxu0 %v10111_v55  ;;  %v11384_v47 = vld [vmem:[#allocation8 + $0x184] ss:$16 sps:$4 sm:$0xff]   ;;  %v15473_v55 = vld [vmem:[#allocation89_spill] sm:$0xff]  ;;  %v11382_v53 = vld [vmem:[#allocation8 + $0x180] ss:$16 sps:$4 sm:$0xff]  }
 0x2c0   :  { %v14003_v37 = vadd.f32 %v4548_v20, %v15469_v42  ;;  %v4550_v46 = vpop.f32.mrb[107].mxu1  ;;  %7590 = vmatprep.subr.bf16.mxu1 %v11378_v17  ;;  %v568_v29 = vld [vmem:[#allocation3 + $0xb58] sm:$0xff]  ;;  %v15477_v15 = vld [vmem:[#allocation95_spill] sm:$0xff] }
 0x2c1   :  { %v14006_v19 = vadd.f32 %v4550_v46, %v15471_v43  ;;  %5138 = vmatmul.mubr.bf16.gmra.mrb[212].mxu0 %v11964_v2  ;;  %v572_v52 = vld [vmem:[#allocation3 + $0xb78] sm:$0xff]  ;;  %v11968_v61 = vld [vmem:[%s15176_s0 + $0x168] ss:$28 sps:$4 sm:$0xff]  }
 0x2c2   :  { %15470 = vst [vmem:[#allocation37_spill] sm:$0xff] %v14003_v37  ;;  %10181 = vmatmul.mubr.msk.bf16.gmra.mrb[148].mxu1 %vm629_vm0, %v11965_v16  ;;  %5189 = vmatpush1.bf16.msra.mxu0 %v10110_v3  ;;  %v11966_v35 = vld [vmem:[%s15176_s0 + $0x15c] ss:$28 sps:$4 sm:$0xff]   ;;  %v10135_v3 = vcombine.high %v568_v29, %v572_v52  ;;  %v10134_v2 = vcombine.low %v568_v29, %v572_v52 }
 0x2c3   :  { %15472 = vst [vmem:[#allocation102_spill] sm:$0xff] %v14006_v19  ;;  %7591 = vmatpush1.bf16.msra.mxu1 %v11376_v48  ;;  %5190 = vmatprep.subr.bf16.mxu0 %v10119_v32  ;;  %v15475_v54 = vld [vmem:[#allocation90_spill] sm:$0xff] }
 0x2c4   :  { %7592 = vmatprep.subr.bf16.mxu1 %v11381_v28  ;;  %4921 = vmatprep.mubr.bf16.mxu1 %v15257_v50  ;;  %v11387_v32 = vld [vmem:[#allocation8 + $0x1a4] ss:$16 sps:$4 sm:$0xff]   ;;  %v11967_v38 = vld [vmem:[%s15176_s0 + $0x158] ss:$28 sps:$4 sm:$0xff]  }
 0x2c5   :  { %v4554_v58 = vpop.f32.mrb[108].mxu1  ;;  %5147 = vmatprep.mubr.bf16.mxu0 %v11966_v35  ;;  %v576_v42 = vld [vmem:[#allocation3 + $0xb98] sm:$0xff]  ;;  %v15479_v28 = vld [vmem:[#allocation96_spill] sm:$0xff] }
 0x2c6   :  { %v14020_v17 = vadd.f32 %v4554_v58, %v15473_v55  ;;  %v4556_v63 = vpop.f32.mrb[109].mxu1  ;;  %5191 = vmatpush1.bf16.msra.mxu0 %v10118_v26  ;;  %v580_v46 = vld [vmem:[#allocation3 + $0xbb8] sm:$0xff]  ;;  %v15481_v55 = vld [vmem:[#allocation100_spill] sm:$0xff] }
 0x2c7   :  { %v14023_v5 = vadd.f32 %v4556_v63, %v15475_v54  ;;  %v4558_v24 = vpop.f32.mrb[110].mxu1  ;;  %7593 = vmatpush1.bf16.msra.mxu1 %v11379_v33  ;;  %5192 = vmatprep.subr.bf16.mxu0 %v10127_v31  ;;  %v11385_v16 = vld [vmem:[#allocation8 + $0x1a0] ss:$16 sps:$4 sm:$0xff]   ;;  %v10143_v26 = vcombine.high %v576_v42, %v580_v46  ;;  %v11390_v33 = vld [vmem:[#allocation8 + $0x1c4] ss:$16 sps:$4 sm:$0xff]   ;;  %v10142_v52 = vcombine.low %v576_v42, %v580_v46 }
 0x2c8   :  { %15474 = vst [vmem:[#allocation38_spill] sm:$0xff] %v14020_v17  ;;  %v14026_v20 = vadd.f32 %v4558_v24, %v15477_v15  ;;  %v4560_v48 = vpop.f32.mrb[111].mxu1  ;;  %7594 = vmatprep.subr.bf16.mxu1 %v11384_v47  ;;  %v11969_v47 = vld [vmem:[%s15176_s0 + $0x194] ss:$28 sps:$4 sm:$0xff]   ;;  %v584_v58 = vld [vmem:[#allocation3 + $0xbd8] sm:$0xff] }
 0x2c9   :  { %15476 = vst [vmem:[#allocation39_spill] sm:$0xff] %v14023_v5  ;;  %v14029_v43 = vadd.f32 %v4560_v48, %v15479_v28  ;;  %5148 = vmatmul.mubr.bf16.gmra.mrb[216].mxu0 %v11967_v38  ;;  %v588_v35 = vld [vmem:[#allocation3 + $0xbf8] sm:$0xff]  ;;  %v11970_v42 = vld [vmem:[%s15176_s0 + $0x190] ss:$28 sps:$4 sm:$0xff]  }
 0x2ca   :  { %15478 = vst [vmem:[#allocation40_spill] sm:$0xff] %v14026_v20  ;;  %10182 = vmatmul.mubr.msk.bf16.gmra.mrb[152].mxu1 %vm629_vm0, %v11968_v61  ;;  %5193 = vmatpush1.bf16.msra.mxu0 %v10126_v4  ;;  %v15483_v4 = vld [vmem:[#allocation101_spill] sm:$0xff]  ;;  %v11393_v28 = vld [vmem:[#allocation8 + $0x1e4] ss:$16 sps:$4 sm:$0xff]   ;;  %v15519_v20 = vld [vmem:[#allocation23_spill] sm:$0xff] }
 0x2cb   :  { %15480 = vst [vmem:[#allocation41_spill] sm:$0xff] %v14029_v43  ;;  %7595 = vmatpush1.bf16.msra.mxu1 %v11382_v53  ;;  %5194 = vmatprep.subr.bf16.mxu0 %v10135_v3  ;;  %v11388_v53 = vld [vmem:[#allocation8 + $0x1c0] ss:$16 sps:$4 sm:$0xff]   ;;  %v15485_v3 = vld [vmem:[#allocation105_spill] sm:$0xff]  ;;  %v11971_v46 = vld [vmem:[%s15176_s0 + $0x1a0] ss:$28 sps:$4 sm:$0xff]  }
 0x2cc   :  { %7596 = vmatprep.subr.bf16.mxu1 %v11387_v32  ;;  %4931 = vmatprep.mubr.bf16.mxu1 %v15257_v50  ;;  %v10151_v32 = vcombine.high %v584_v58, %v588_v35  ;;  %v592_v38 = vld [vmem:[#allocation3 + $0xc18] sm:$0xff] }
 0x2cd   :  { %v4564_v31 = vpop.f32.mrb[112].mxu1  ;;  %5157 = vmatprep.mubr.bf16.mxu0 %v11969_v47  ;;  %v596_v61 = vld [vmem:[#allocation3 + $0xc38] sm:$0xff] }
 0x2ce   :  { %v14043_v63 = vadd.f32 %v4564_v31, %v15481_v55  ;;  %v4566_v29 = vpop.f32.mrb[113].mxu1  ;;  %5195 = vmatpush1.bf16.msra.mxu0 %v10134_v2  ;;  %v15487_v31 = vld [vmem:[#allocation106_spill] sm:$0xff]  ;;  %v10150_v2 = vcombine.low %v584_v58, %v588_v35  ;;  %v10158_v58 = vcombine.low %v592_v38, %v596_v61 }
 0x2cf   :  { %v14046_v54 = vadd.f32 %v4566_v29, %v15483_v4  ;;  %v4568_v24 = vpop.f32.mrb[114].mxu1  ;;  %7597 = vmatpush1.bf16.msra.mxu1 %v11385_v16  ;;  %5196 = vmatprep.subr.bf16.mxu0 %v10143_v26  ;;  %v11391_v16 = vld [vmem:[#allocation8 + $0x1e0] ss:$16 sps:$4 sm:$0xff]   ;;  %v10159_v26 = vcombine.high %v592_v38, %v596_v61  ;;  %v11972_v29 = vld [vmem:[%s15176_s0 + $0x14] ss:$28 sps:$4 sm:$0xff]  }
 0x2d0   :  { %15482 = vst [vmem:[#allocation111_spill] sm:$0xff] %v14043_v63  ;;  %v14049_v15 = vadd.f32 %v4568_v24, %v15485_v3  ;;  %v4570_v48 = vpop.f32.mrb[115].mxu1  ;;  %7598 = vmatprep.subr.bf16.mxu1 %v11390_v33  ;;  %v11396_v33 = vld [vmem:[#allocation8 + $0x204] ss:$16 sps:$4 sm:$0xff]   ;;  %v15489_v4 = vld [vmem:[#allocation109_spill] sm:$0xff] }
 0x2d1   :  { %15484 = vst [vmem:[#allocation42_spill] sm:$0xff] %v14046_v54  ;;  %v14052_v47 = vadd.f32 %v4570_v48, %v15487_v31  ;;  %5158 = vmatmul.mubr.bf16.gmra.mrb[220].mxu0 %v11970_v42  ;;  %v15491_v35 = vld [vmem:[#allocation110_spill] sm:$0xff]  ;;  %v11973_v38 = vld [vmem:[%s15176_s0 + $0x10] ss:$28 sps:$4 sm:$0xff]   ;;  %v11444_v61 = vld [vmem:[#allocation8 + $0xc] ss:$16 sps:$4 sm:$0xff]  }
 0x2d2   :  { %15486 = vst [vmem:[#allocation43_spill] sm:$0xff] %v14049_v15  ;;  %10183 = vmatmul.mubr.msk.bf16.gmra.mrb[156].mxu1 %vm629_vm0, %v11971_v46  ;;  %5197 = vmatpush1.bf16.msra.mxu0 %v10142_v52  ;;  %v11394_v48 = vld [vmem:[#allocation8 + $0x200] ss:$16 sps:$4 sm:$0xff]   ;;  %v11399_v42 = vld [vmem:[#allocation8 + $0x224] ss:$16 sps:$4 sm:$0xff]   ;;  %v15495_v46 = vld [vmem:[#allocation115_spill] sm:$0xff] }
 0x2d3   :  { %15488 = vst [vmem:[#allocation44_spill] sm:$0xff] %v14052_v47  ;;  %7599 = vmatpush1.bf16.msra.mxu1 %v11388_v53  ;;  %7602 = vmatprep.mubr.bf16.mxu1 %v13722_v30  ;;  %v11418_v17 = vld [vmem:[#allocation8 + $0x300] ss:$16 sps:$4 sm:$0xff]  }
 0x2d4   :  { %5198 = vmatprep.subr.bf16.mxu0 %v10151_v32  ;;  %7600 = vmatprep.subr.bf16.mxu1 %v11393_v28  ;;  %v15493_v32 = vld [vmem:[#allocation114_spill] sm:$0xff] }
 0x2d5   :  { %v4574_v55 = vpop.f32.mrb[116].mxu1  ;;  %5200 = vmatprep.mubr.bf16.mxu0 %v11972_v29  ;;  %v11424_v37 = vld [vmem:[#allocation8 + $0x340] ss:$16 sps:$4 sm:$0xff]  }
 0x2d6   :  { %v14066_v24 = vadd.f32 %v4574_v55, %v15489_v4  ;;  %v4576_v3 = vpop.f32.mrb[117].mxu1  ;;  %5199 = vmatpush1.bf16.msra.mxu0 %v10150_v2  ;;  %v11397_v2 = vld [vmem:[#allocation8 + $0x220] ss:$16 sps:$4 sm:$0xff]  }
 0x2d7   :  { %v14069_v52 = vadd.f32 %v4576_v3, %v15491_v35  ;;  %v4578_v53 = vpop.f32.mrb[118].mxu1  ;;  %7601 = vmatpush1.bf16.msra.mxu1 %v11391_v16  ;;  %5281 = vmatprep.subr.bf16.mxu0 %v10159_v26  ;;  %v11974_v16 = vld [vmem:[%s15176_s0 + $0x4c] ss:$28 sps:$4 sm:$0xff]   ;;  %v15499_v35 = vld [vmem:[#allocation122_spill] sm:$0xff] }
 0x2d8   :  { %15490 = vst [vmem:[#allocation116_spill] sm:$0xff] %v14066_v24  ;;  %v14072_v28 = vadd.f32 %v4578_v53, %v15493_v32  ;;  %v4580_v31 = vpop.f32.mrb[119].mxu1  ;;  %7683 = vmatprep.subr.bf16.mxu1 %v11396_v33  ;;  %v11402_v26 = vld [vmem:[#allocation8 + $0x244] ss:$16 sps:$4 sm:$0xff]   ;;  %v15501_v32 = vld [vmem:[#allocation125_spill] sm:$0xff] }
 0x2d9   :  { %15492 = vst [vmem:[#allocation119_spill] sm:$0xff] %v14069_v52  ;;  %v14075_v29 = vadd.f32 %v4580_v31, %v15495_v46  ;;  %5201 = vmatmul.mubr.bf16.vlgmr.msra.gmra.mrb[192].mxu0 %v11973_v38  ;;  %v15497_v55 = vld [vmem:[#allocation120_spill] sm:$0xff]  ;;  %v15503_v38 = vld [vmem:[#allocation126_spill] sm:$0xff]  ;;  %v15516_v24 = vld [vmem:[#allocation21_spill] sm:$0xff] }
 0x2da   :  { %15494 = vst [vmem:[#allocation121_spill] sm:$0xff] %v14072_v28  ;;  %7603 = vmatmul.mubr.bf16.vlgmr.msra.gmra.mrb[160].mxu1 %v13716_v41  ;;  %5282 = vmatpush1.bf16.msra.mxu0 %v10158_v58  ;;  %v11405_v46 = vld [vmem:[#allocation8 + $0x264] ss:$16 sps:$4 sm:$0xff]   ;;  %v11412_v28 = vld [vmem:[#allocation8 + $0x2c0] ss:$16 sps:$4 sm:$0xff]  }
 0x2db   :  { %15496 = vst [vmem:[#allocation45_spill] sm:$0xff] %v14075_v29  ;;  %7612 = vmatprep.mubr.bf16.mxu1 %v13746_v1  ;;  %7684 = vmatpush1.bf16.msra.mxu1 %v11394_v48  ;;  %v11400_v48 = vld [vmem:[#allocation8 + $0x240] ss:$16 sps:$4 sm:$0xff]  }
 0x2dc   :  { %7685 = vmatprep.subr.bf16.mxu1 %v11399_v42  ;;  %5210 = vmatprep.mubr.bf16.mxu0 %v11974_v16 }
 0x2dd   :  { %v4584_v33 = vpop.f32.mrb[120].mxu1  ;;  %8022 = vmatprep.subr.bf16.mxu0 %v11444_v61  ;;  %v11975_v61 = vld [vmem:[%s15176_s0 + $0x48] ss:$28 sps:$4 sm:$0xff]  }
 0x2de   :  { %v14086_v4 = vadd.f32 %v4584_v33, %v15497_v55  ;;  %v4586_v3 = vpop.f32.mrb[121].mxu1  ;;  %v11408_v33 = vld [vmem:[#allocation8 + $0x284] ss:$16 sps:$4 sm:$0xff]  }
 0x2df   :  { %v14089_v53 = vadd.f32 %v4586_v3, %v15499_v35  ;;  %v4588_v58 = vpop.f32.mrb[122].mxu1  ;;  %7686 = vmatpush1.bf16.msra.mxu1 %v11397_v2  ;;  %v11976_v2 = vld [vmem:[%s15176_s0 + $0x84] ss:$28 sps:$4 sm:$0xff]   ;;  %v15505_v3 = vld [vmem:[#allocation133_spill] sm:$0xff] }
 0x2e0   :  { %15498 = vst [vmem:[#allocation46_spill] sm:$0xff] %v14086_v4  ;;  %v14092_v31 = vadd.f32 %v4588_v58, %v15501_v32  ;;  %v4590_v42 = vpop.f32.mrb[123].mxu1  ;;  %7687 = vmatprep.subr.bf16.mxu1 %v11402_v26  ;;  %v11403_v26 = vld [vmem:[#allocation8 + $0x260] ss:$16 sps:$4 sm:$0xff]  }
 0x2e1   :  { %15500 = vst [vmem:[#allocation47_spill] sm:$0xff] %v14089_v53  ;;  %v14095_v16 = vadd.f32 %v4590_v42, %v15503_v38  ;;  %5211 = vmatmul.mubr.bf16.gmra.mrb[196].mxu0 %v11975_v61  ;;  %v15507_v32 = vld [vmem:[#allocation134_spill] sm:$0xff] }
 0x2e2   :  { %15502 = vst [vmem:[#allocation48_spill] sm:$0xff] %v14092_v31  ;;  %7613 = vmatmul.mubr.bf16.gmra.mrb[164].mxu1 %v13742_v0  ;;  %5220 = vmatprep.mubr.bf16.mxu0 %v11976_v2  ;;  %v11406_v61 = vld [vmem:[#allocation8 + $0x280] ss:$16 sps:$4 sm:$0xff]   ;;  %v15509_v2 = vld [vmem:[#allocation137_spill] sm:$0xff]  ;;  %v11411_v53 = vld [vmem:[#allocation8 + $0x2a4] ss:$16 sps:$4 sm:$0xff]  }
 0x2e3   :  { %15504 = vst [vmem:[#allocation129_spill] sm:$0xff] %v14095_v16  ;;  %7622 = vmatprep.mubr.bf16.mxu1 %v13772_v23  ;;  %7688 = vmatpush1.bf16.msra.mxu1 %v11400_v48  ;;  %v15226_v16 = vsub.s32 2, %v13672_v39  ;;  %v15511_v4 = vld [vmem:[#allocation138_spill] sm:$0xff] }
 0x2e4   :  { %7689 = vmatprep.subr.bf16.mxu1 %v11405_v46  ;;  %v15227_v46 = vsub.s32 3, %v13672_v39 }
 0x2e5   :  { %v4594_v55 = vpop.f32.mrb[124].mxu1 }
 0x2e6   :  { %v14106_v35 = vadd.f32 %v4594_v55, %v15505_v3  ;;  %v4596_v58 = vpop.f32.mrb[125].mxu1  ;;  %v11977_v3 = vld [vmem:[%s15176_s0 + $0x80] ss:$28 sps:$4 sm:$0xff]  }
 0x2e7   :  { %v14109_v42 = vadd.f32 %v4596_v58, %v15507_v32  ;;  %v4598_v38 = vpop.f32.mrb[126].mxu1  ;;  %7690 = vmatpush1.bf16.msra.mxu1 %v11403_v26  ;;  %v11978_v26 = vld [vmem:[%s15176_s0 + $0xbc] ss:$28 sps:$4 sm:$0xff]  }
 0x2e8   :  { %15506 = vst [vmem:[#allocation127_spill] sm:$0xff] %v14106_v35  ;;  %v14113_v31 = vadd.f32 %v4598_v38, %v15509_v2  ;;  %v4600_v48 = vpop.f32.mrb[127].mxu1  ;;  %7691 = vmatprep.subr.bf16.mxu1 %v11408_v33  ;;  %v11979_v33 = vld [vmem:[#allocation7] sm:$0xff]  ;;  %v11409_v58 = vld [vmem:[#allocation8 + $0x2a0] ss:$16 sps:$4 sm:$0xff]   ;;  %v15515_v35 = vld [vmem:[#allocation53_spill] sm:$0xff] }
 0x2e9   :  { %15508 = vst [vmem:[#allocation130_spill] sm:$0xff] %v14109_v42  ;;  %v14117_v55 = vadd.f32 %v4600_v48, %v15511_v4  ;;  %5221 = vmatmul.mubr.bf16.gmra.mrb[200].mxu0 %v11977_v3  ;;  %v14129_v4 = vrot.slane %v11979_v33, %v15226_v16  ;;  %v14133_v38 = vrot.slane %v11979_v33, %v15227_v46  ;;  %v11414_v2 = vld [vmem:[#allocation8 + $0x2c4] ss:$16 sps:$4 sm:$0xff]  }
 0x2ea   :  { %15510 = vst [vmem:[#allocation132_spill] sm:$0xff] %v14113_v31  ;;  %7623 = vmatmul.mubr.bf16.gmra.mrb[168].mxu1 %v13768_v7  ;;  %5230 = vmatprep.mubr.bf16.mxu0 %v11978_v26  ;;  %v15513_v48 = vld [vmem:[#allocation52_spill] sm:$0xff]  ;;  %v15514_v26 = vld [vmem:[#allocation50_spill] sm:$0xff] }
 0x2eb   :  { %15512 = vst [vmem:[#allocation49_spill] sm:$0xff] %v14117_v55  ;;  %7632 = vmatprep.mubr.bf16.mxu1 %v13798_v11  ;;  %7692 = vmatpush1.bf16.msra.mxu1 %v11406_v61 }
 0x2ec   :  { %v4411_v32 = vpop.f32.mrb[128].mxu0  ;;  %7693 = vmatprep.subr.bf16.mxu1 %v11411_v53  ;;  %v11417_v53 = vld [vmem:[#allocation8 + $0x2e4] ss:$16 sps:$4 sm:$0xff]  }
 0x2ed   :  { %v10576_v3 = vadd.f32 %v4411_v32, %v15513_v48  ;;  %v4413_v55 = vpop.f32.mrb[129].mxu0 }
 0x2ee   :  { %v10577_v31 = vadd.f32 %v4413_v55, %v15514_v26  ;;  %v4415_v42 = vpop.f32.mrb[130].mxu0  ;;  %v11980_v55 = vld [vmem:[%s15176_s0 + $0xb8] ss:$28 sps:$4 sm:$0xff]  }
 0x2ef   :  { %v5438_v61 = vadd.f32 %v10576_v3, %v14129_v4  ;;  %v10578_v29 = vadd.f32 %v4415_v42, %v15515_v35  ;;  %7694 = vmatpush1.bf16.msra.mxu1 %v11409_v58  ;;  %v4417_v16 = vpop.f32.mrb[131].mxu0  ;;  %v11420_v58 = vld [vmem:[#allocation8 + $0x304] ss:$16 sps:$4 sm:$0xff]  }
 0x2f0   :  { %v5439_v52 = vadd.f32 %v10577_v31, %v14133_v38  ;;  %v10579_v33 = vadd.f32 %v4417_v16, %v15516_v24  ;;  %7695 = vmatprep.subr.bf16.mxu1 %v11414_v2  ;;  %v11981_v24 = vld [vmem:[%s15176_s0 + $0xf4] ss:$28 sps:$4 sm:$0xff]   ;;  %v15517_v26 = vld [vmem:[#allocation58_spill] sm:$0xff] }
 0x2f1   :  { %v5694_v46 = vmul.f32 0.2, %v5438_v61  ;;  %v5446_v32 = vadd.f32 %v10578_v29, %v14129_v4  ;;  %5231 = vmatmul.mubr.bf16.gmra.mrb[204].mxu0 %v11980_v55  ;;  %vm5566_vm3 = vcmp.gt.f32.partialorder %v5438_v61, 0.0  ;;  %v11415_v29 = vld [vmem:[#allocation8 + $0x2e0] ss:$16 sps:$4 sm:$0xff]  }
 0x2f2   :  { %v5695_v48 = vmul.f32 0.2, %v5439_v52  ;;  %v5447_v35 = vadd.f32 %v10579_v33, %v14133_v38  ;;  %7633 = vmatmul.mubr.bf16.gmra.mrb[172].mxu1 %v13794_v22  ;;  %5240 = vmatprep.mubr.bf16.mxu0 %v11981_v24  ;;  %vm5567_vm4 = vcmp.gt.f32.partialorder %v5439_v52, 0.0  ;;  %v15518_v24 = vld [vmem:[#allocation22_spill] sm:$0xff] }
 0x2f3   :  { %vm5574_vm5 = vcmp.gt.f32.partialorder %v5446_v32, 0.0  ;;  %v5702_v31 = vmul.f32 0.2, %v5446_v32  ;;  %7642 = vmatprep.mubr.bf16.mxu1 %v13833_v13  ;;  %7696 = vmatpush1.bf16.msra.mxu1 %v11412_v28  ;;  %v5822_v2 = vsel %vm5566_vm3, %v5438_v61, %v5694_v46 }
 0x2f4   :  { %vm5575_vm6 = vcmp.gt.f32.partialorder %v5447_v35, 0.0  ;;  %v5703_v16 = vmul.f32 0.2, %v5447_v35  ;;  %v4421_v42 = vpop.f32.mrb[132].mxu0  ;;  %7697 = vmatprep.subr.bf16.mxu1 %v11417_v53  ;;  %v5823_v63 = vsel %vm5567_vm4, %v5439_v52, %v5695_v48  ;;  %v11982_v52 = vld [vmem:[%s15176_s0 + $0xf0] ss:$28 sps:$4 sm:$0xff]  }
 0x2f5   :  { %v5830_v3 = vsel %vm5574_vm5, %v5446_v32, %v5702_v31  ;;  %v10580_v33 = vadd.f32 %v4421_v42, %v15517_v26  ;;  %v4423_v55 = vpop.f32.mrb[133].mxu0  ;;  %v15520_v32 = vld [vmem:[#allocation24_spill] sm:$0xff] }
 0x2f6   :  { %v14153_v47 = vpack.c.bf16 %v5830_v3, %v5822_v2  ;;  %v10581_v15 = vadd.f32 %v4423_v55, %v15518_v24  ;;  %v4425_v54 = vpop.f32.mrb[134].mxu0  ;;  %v5831_v28 = vsel %vm5575_vm6, %v5447_v35, %v5703_v16  ;;  %v11423_v42 = vld [vmem:[#allocation8 + $0x324] ss:$16 sps:$4 sm:$0xff]  }
 0x2f7   :  { %v5454_v43 = vadd.f32 %v10580_v33, %v14129_v4  ;;  %v10582_v5 = vadd.f32 %v4425_v54, %v15519_v20  ;;  %7698 = vmatpush1.bf16.msra.mxu1 %v11415_v29  ;;  %v4427_v53 = vpop.f32.mrb[135].mxu0  ;;  %v14159_v46 = vpack.c.bf16 %v5831_v28, %v5823_v63  ;;  %v11983_v63 = vld [vmem:[%s15176_s0 + $0x12c] ss:$28 sps:$4 sm:$0xff]  }
 0x2f8   :  { %v5455_v61 = vadd.f32 %v10581_v15, %v14133_v38  ;;  %v10583_v31 = vadd.f32 %v4427_v53, %v15520_v32  ;;  %7699 = vmatprep.subr.bf16.mxu1 %v11420_v58  ;;  %v11426_v29 = vld [vmem:[#allocation8 + $0x344] ss:$16 sps:$4 sm:$0xff]  }
 0x2f9   :  { %v5710_v2 = vmul.f32 0.2, %v5454_v43  ;;  %v5462_v3 = vadd.f32 %v10582_v5, %v14129_v4  ;;  %5241 = vmatmul.mubr.bf16.gmra.mrb[208].mxu0 %v11982_v52  ;;  %vm5582_vm7 = vcmp.gt.f32.partialorder %v5454_v43, 0.0  ;;  %v11421_v5 = vld [vmem:[#allocation8 + $0x320] ss:$16 sps:$4 sm:$0xff]  }
 0x2fa   :  { %v5711_v20 = vmul.f32 0.2, %v5455_v61  ;;  %v5463_v54 = vadd.f32 %v10583_v31, %v14133_v38  ;;  %7643 = vmatmul.mubr.bf16.gmra.mrb[176].mxu1 %v13829_v56  ;;  %5250 = vmatprep.mubr.bf16.mxu0 %v11983_v63  ;;  %vm5583_vm8 = vcmp.gt.f32.partialorder %v5455_v61, 0.0  ;;  %v15521_v16 = vld [vmem:[#allocation60_spill] sm:$0xff]  ;;  %v15524_v63 = vld [vmem:[#allocation25_spill] sm:$0xff] }
 0x2fb   :  { %vm5590_vm9 = vcmp.gt.f32.partialorder %v5462_v3, 0.0  ;;  %v5718_v15 = vmul.f32 0.2, %v5462_v3  ;;  %7652 = vmatprep.mubr.bf16.mxu1 %v13876_v25  ;;  %7700 = vmatpush1.bf16.msra.mxu1 %v11418_v17  ;;  %v5838_v33 = vsel %vm5582_vm7, %v5454_v43, %v5710_v2  ;;  %v15522_v24 = vld [vmem:[#allocation64_spill] sm:$0xff]  ;;  %v15526_v2 = vld [vmem:[#allocation69_spill] sm:$0xff] }
 0x2fc   :  { %vm5591_vm10 = vcmp.gt.f32.partialorder %v5463_v54, 0.0  ;;  %v5719_v48 = vmul.f32 0.2, %v5463_v54  ;;  %v4431_v35 = vpop.f32.mrb[136].mxu0  ;;  %7701 = vmatprep.subr.bf16.mxu1 %v11423_v42  ;;  %v5839_v32 = vsel %vm5583_vm8, %v5455_v61, %v5711_v20  ;;  %v11984_v20 = vld [vmem:[%s15176_s0 + $0x128] ss:$28 sps:$4 sm:$0xff]  }
 0x2fd   :  { %v10584_v58 = vadd.f32 %v4431_v35, %v15521_v16  ;;  %v4433_v26 = vpop.f32.mrb[137].mxu0  ;;  %v5846_v55 = vsel %vm5590_vm9, %v5462_v3, %v5718_v15  ;;  %v11429_v15 = vld [vmem:[#allocation8 + $0x364] ss:$16 sps:$4 sm:$0xff]  }
 0x2fe   :  { %v10585_v28 = vadd.f32 %v4433_v26, %v15522_v24  ;;  %v4435_v53 = vpop.f32.mrb[138].mxu0  ;;  %v5847_v31 = vsel %vm5591_vm10, %v5463_v54, %v5719_v48  ;;  %v14177_v52 = vpack.c.bf16 %v5846_v55, %v5838_v33  ;;  %v11985_v48 = vld [vmem:[%s15176_s0 + $0x164] ss:$28 sps:$4 sm:$0xff]   ;;  %v11432_v33 = vld [vmem:[#allocation8 + $0x384] ss:$16 sps:$4 sm:$0xff]  }
 0x2ff   :  { %v5470_v17 = vadd.f32 %v10584_v58, %v14129_v4  ;;  %v10586_v19 = vadd.f32 %v4435_v53, %v15524_v63  ;;  %7702 = vmatpush1.bf16.msra.mxu1 %v11421_v5  ;;  %v4437_v42 = vpop.f32.mrb[139].mxu0  ;;  %v14181_v35 = vpack.c.bf16 %v5847_v31, %v5839_v32  ;;  %v15527_v55 = vld [vmem:[#allocation26_spill] sm:$0xff]  ;;  %v15528_v31 = vld [vmem:[#allocation27_spill] sm:$0xff] }
 0x300   :  { %15523 = vst [vmem:[#allocation51_spill] sm:$0xff] %v14177_v52  ;;  %v5471_v43 = vadd.f32 %v10585_v28, %v14133_v38  ;;  %v10587_v3 = vadd.f32 %v4437_v42, %v15526_v2  ;;  %7703 = vmatprep.subr.bf16.mxu1 %v11426_v29 }
 0x301   :  { %15525 = vst [vmem:[#allocation54_spill] sm:$0xff] %v14181_v35  ;;  %v5726_v16 = vmul.f32 0.2, %v5470_v17  ;;  %v5478_v61 = vadd.f32 %v10586_v19, %v14129_v4  ;;  %5251 = vmatmul.mubr.bf16.gmra.mrb[212].mxu0 %v11984_v20  ;;  %vm5598_vm11 = vcmp.gt.f32.partialorder %v5470_v17, 0.0  ;;  %v11427_v19 = vld [vmem:[#allocation8 + $0x360] ss:$16 sps:$4 sm:$0xff]  }
 0x302   :  { %v5727_v54 = vmul.f32 0.2, %v5471_v43  ;;  %v5479_v5 = vadd.f32 %v10587_v3, %v14133_v38  ;;  %7653 = vmatmul.mubr.bf16.gmra.mrb[180].mxu1 %v13872_v9  ;;  %5260 = vmatprep.mubr.bf16.mxu0 %v11985_v48  ;;  %vm5599_vm12 = vcmp.gt.f32.partialorder %v5471_v43, 0.0  ;;  %v15529_v48 = vld [vmem:[#allocation28_spill] sm:$0xff] }
 0x303   :  { %vm5606_vm13 = vcmp.gt.f32.partialorder %v5478_v61, 0.0  ;;  %v5734_v29 = vmul.f32 0.2, %v5478_v61  ;;  %7662 = vmatprep.mubr.bf16.mxu1 %v13919_v49  ;;  %7704 = vmatpush1.bf16.msra.mxu1 %v11424_v37  ;;  %v5854_v53 = vsel %vm5598_vm11, %v5470_v17, %v5726_v16  ;;  %v11430_v9 = vld [vmem:[#allocation8 + $0x380] ss:$16 sps:$4 sm:$0xff]   ;;  %v15531_v16 = vld [vmem:[#allocation71_spill] sm:$0xff] }
 0x304   :  { %vm5607_vm14 = vcmp.gt.f32.partialorder %v5479_v5, 0.0  ;;  %v5735_v58 = vmul.f32 0.2, %v5479_v5  ;;  %v4441_v26 = vpop.f32.mrb[140].mxu0  ;;  %7705 = vmatprep.subr.bf16.mxu1 %v11429_v15  ;;  %v5855_v2 = vsel %vm5599_vm12, %v5471_v43, %v5727_v54  ;;  %v11986_v54 = vld [vmem:[%s15176_s0 + $0x160] ss:$28 sps:$4 sm:$0xff]  }
 0x305   :  { %v10588_v24 = vadd.f32 %v4441_v26, %v15527_v55  ;;  %v4443_v28 = vpop.f32.mrb[141].mxu0  ;;  %v5862_v32 = vsel %vm5606_vm13, %v5478_v61, %v5734_v29  ;;  %v11435_v29 = vld [vmem:[#allocation8 + $0x3a4] ss:$16 sps:$4 sm:$0xff]  }
 0x306   :  { %v10589_v63 = vadd.f32 %v4443_v28, %v15528_v31  ;;  %v4445_v42 = vpop.f32.mrb[142].mxu0  ;;  %v5863_v3 = vsel %vm5607_vm14, %v5479_v5, %v5735_v58  ;;  %v14199_v20 = vpack.c.bf16 %v5862_v32, %v5854_v53  ;;  %v11987_v58 = vld [vmem:[%s15176_s0 + $0x19c] ss:$28 sps:$4 sm:$0xff]   ;;  %v15532_v32 = vld [vmem:[#allocation75_spill] sm:$0xff] }
 0x307   :  { %v5486_v37 = vadd.f32 %v10588_v24, %v14129_v4  ;;  %v10590_v49 = vadd.f32 %v4445_v42, %v15529_v48  ;;  %7706 = vmatpush1.bf16.msra.mxu1 %v11427_v19  ;;  %v4447_v15 = vpop.f32.mrb[143].mxu0  ;;  %v14203_v26 = vpack.c.bf16 %v5863_v3, %v5855_v2  ;;  %v11438_v53 = vld [vmem:[#allocation8 + $0x3c4] ss:$16 sps:$4 sm:$0xff]  }
 0x308   :  { %v5487_v17 = vadd.f32 %v10589_v63, %v14133_v38  ;;  %v10591_v61 = vadd.f32 %v4447_v15, %v15531_v16  ;;  %7707 = vmatprep.subr.bf16.mxu1 %v11432_v33 }
 0x309   :  { %15530 = vst [vmem:[#allocation55_spill] sm:$0xff] %v14203_v26  ;;  %v5742_v55 = vmul.f32 0.2, %v5486_v37  ;;  %v5494_v43 = vadd.f32 %v10590_v49, %v14129_v4  ;;  %5261 = vmatmul.mubr.bf16.gmra.mrb[216].mxu0 %v11986_v54  ;;  %vm5614_vm15 = vcmp.gt.f32.partialorder %v5486_v37, 0.0  ;;  %v11433_v49 = vld [vmem:[#allocation8 + $0x3a0] ss:$16 sps:$4 sm:$0xff]  }
 0x30a   :  { %v5743_v5 = vmul.f32 0.2, %v5487_v17  ;;  %v5495_v19 = vadd.f32 %v10591_v61, %v14133_v38  ;;  %7663 = vmatmul.mubr.bf16.gmra.mrb[184].mxu1 %v13915_v21  ;;  %5270 = vmatprep.mubr.bf16.mxu0 %v11987_v58  ;;  %vm5615_vm1 = vcmp.gt.f32.partialorder %v5487_v17, 0.0  ;;  %v11436_v58 = vld [vmem:[#allocation8 + $0x3c0] ss:$16 sps:$4 sm:$0xff]  }
 0x30b   :  { %vm5622_vm2 = vcmp.gt.f32.partialorder %v5494_v43, 0.0  ;;  %v5750_v33 = vmul.f32 0.2, %v5494_v43  ;;  %7672 = vmatprep.mubr.bf16.mxu1 %v13957_v44  ;;  %7708 = vmatpush1.bf16.msra.mxu1 %v11430_v9  ;;  %v5870_v42 = vsel %vm5614_vm15, %v5486_v37, %v5742_v55 }
 0x30c   :  { %vm5623_vm3 = vcmp.gt.f32.partialorder %v5495_v19, 0.0  ;;  %v5751_v24 = vmul.f32 0.2, %v5495_v19  ;;  %v4451_v28 = vpop.f32.mrb[144].mxu0  ;;  %7709 = vmatprep.subr.bf16.mxu1 %v11435_v29  ;;  %v5871_v15 = vsel %vm5615_vm1, %v5487_v17, %v5743_v5  ;;  %v11988_v5 = vld [vmem:[%s15176_s0 + $0x198] ss:$28 sps:$4 sm:$0xff]  }
 0x30d   :  { %v10592_v31 = vadd.f32 %v4451_v28, %v15532_v32  ;;  %v4453_v63 = vpop.f32.mrb[145].mxu0  ;;  %v5878_v2 = vsel %vm5622_vm2, %v5494_v43, %v5750_v33  ;;  %v11439_v33 = vld [vmem:[#allocation8 + $0x3e0] ss:$16 sps:$4 sm:$0xff]  }
 0x30e   :  { %v10593_v3 = vadd.f32 %v4453_v63, %v13627_v34  ;;  %v4455_v48 = vpop.f32.mrb[146].mxu0  ;;  %v5879_v16 = vsel %vm5623_vm3, %v5495_v19, %v5751_v24  ;;  %v14221_v61 = vpack.c.bf16 %v5878_v2, %v5870_v42  ;;  %v11441_v34 = vld [vmem:[#allocation8 + $0x3e4] ss:$16 sps:$4 sm:$0xff]  }
 0x30f   :  { %v5502_v9 = vadd.f32 %v10592_v31, %v14129_v4  ;;  %v10594_v54 = vadd.f32 %v4455_v48, %v13630_v57  ;;  %7710 = vmatpush1.bf16.msra.mxu1 %v11433_v49  ;;  %v4457_v29 = vpop.f32.mrb[147].mxu0  ;;  %v14225_v28 = vpack.c.bf16 %v5879_v16, %v5871_v15  ;;  %v11442_v48 = vld [vmem:[#allocation8 + $0x8] ss:$16 sps:$4 sm:$0xff]  }
 0x310   :  { %v5503_v37 = vadd.f32 %v10593_v3, %v14133_v38  ;;  %v10595_v55 = vadd.f32 %v4457_v29, %v13633_v51  ;;  %7711 = vmatprep.subr.bf16.mxu1 %v11438_v53  ;;  %v11471_v53 = vld [vmem:[#allocation8 + $0x404] ss:$16 sps:$4 sm:$0xff]  }
 0x311   :  { %v5758_v43 = vmul.f32 0.2, %v5502_v9  ;;  %v5510_v17 = vadd.f32 %v10594_v54, %v14129_v4  ;;  %5271 = vmatmul.mubr.bf16.gmra.mrb[220].mxu0 %v11988_v5  ;;  %vm5630_vm4 = vcmp.gt.f32.partialorder %v5502_v9, 0.0 }
 0x312   :  { %v5759_v57 = vmul.f32 0.2, %v5503_v37  ;;  %v5511_v19 = vadd.f32 %v10595_v55, %v14133_v38  ;;  %7673 = vmatmul.mubr.bf16.gmra.mrb[188].mxu1 %v13952_v10  ;;  %5313 = vmatprep.mubr.bf16.mxu0 %v15257_v50  ;;  %vm5631_vm5 = vcmp.gt.f32.partialorder %v5503_v37, 0.0 }
 0x313   :  { %vm5638_vm6 = vcmp.gt.f32.partialorder %v5510_v17, 0.0  ;;  %v5766_v51 = vmul.f32 0.2, %v5510_v17  ;;  %7712 = vmatpush1.bf16.msra.mxu1 %v11436_v58  ;;  %7715 = vmatprep.mubr.bf16.mxu1 %v14159_v46  ;;  %v5886_v63 = vsel %vm5630_vm4, %v5502_v9, %v5758_v43  ;;  %v15533_v58 = vld [vmem:[#allocation29_spill] sm:$0xff]  ;;  %v15534_v43 = vld [vmem:[#allocation80_spill] sm:$0xff] }
 0x314   :  { %vm5639_vm7 = vcmp.gt.f32.partialorder %v5511_v19, 0.0  ;;  %v5767_v49 = vmul.f32 0.2, %v5511_v19  ;;  %v4461_v24 = vpop.f32.mrb[148].mxu0  ;;  %7713 = vmatprep.subr.bf16.mxu1 %v11441_v34  ;;  %v5887_v15 = vsel %vm5631_vm5, %v5503_v37, %v5759_v57  ;;  %v11989_v57 = vld [vmem:[%s15176_s0 + $0x18] ss:$28 sps:$4 sm:$0xff]  }
 0x315   :  { %v10596_v32 = vadd.f32 %v4461_v24, %v13640_v36  ;;  %v4463_v31 = vpop.f32.mrb[149].mxu0  ;;  %v5894_v42 = vsel %vm5638_vm6, %v5510_v17, %v5766_v51  ;;  %v11447_v36 = vld [vmem:[#allocation8 + $0x2c] ss:$16 sps:$4 sm:$0xff]   ;;  %v11469_v17 = vld [vmem:[#allocation8 + $0x400] ss:$16 sps:$4 sm:$0xff]  }
 0x316   :  { %v10597_v2 = vadd.f32 %v4463_v31, %v13644_v59  ;;  %v4465_v3 = vpop.f32.mrb[150].mxu0  ;;  %v5895_v16 = vsel %vm5639_vm7, %v5511_v19, %v5767_v49  ;;  %v14241_v54 = vpack.c.bf16 %v5894_v42, %v5886_v63  ;;  %v11477_v19 = vld [vmem:[#allocation8 + $0x424] ss:$16 sps:$4 sm:$0xff]   ;;  %v11445_v24 = vld [vmem:[#allocation8 + $0x28] ss:$16 sps:$4 sm:$0xff]  }
 0x317   :  { %v5518_v29 = vadd.f32 %v10596_v32, %v14129_v4  ;;  %v10598_v55 = vadd.f32 %v4465_v3, %v15533_v58  ;;  %7714 = vmatpush1.bf16.msra.mxu1 %v11439_v33  ;;  %v4467_v34 = vpop.f32.mrb[151].mxu0  ;;  %v14245_v5 = vpack.c.bf16 %v5895_v16, %v5887_v15  ;;  %v11450_v32 = vld [vmem:[#allocation8 + $0x4c] ss:$16 sps:$4 sm:$0xff]   ;;  %v11475_v42 = vld [vmem:[#allocation8 + $0x420] ss:$16 sps:$4 sm:$0xff]  }
 0x318   :  { %v5519_v9 = vadd.f32 %v10597_v2, %v14133_v38  ;;  %v10599_v59 = vadd.f32 %v4467_v34, %v15534_v43  ;;  %7796 = vmatprep.subr.bf16.mxu1 %v11471_v53  ;;  %v15535_v2 = vld [vmem:[#allocation30_spill] sm:$0xff] }
 0x319   :  { %v5774_v51 = vmul.f32 0.2, %v5518_v29  ;;  %v5526_v37 = vadd.f32 %v10598_v55, %v14129_v4  ;;  %10184 = vmatmul.mubr.msk.bf16.vlgmr.msra.gmra.mrb[192].mxu0 %vm629_vm0, %v11989_v57  ;;  %vm5646_vm8 = vcmp.gt.f32.partialorder %v5518_v29, 0.0  ;;  %v11483_v58 = vld [vmem:[#allocation8 + $0x444] ss:$16 sps:$4 sm:$0xff]   ;;  %v15536_v55 = vld [vmem:[#allocation31_spill] sm:$0xff] }
 0x31a   :  { %v5775_v33 = vmul.f32 0.2, %v5519_v9  ;;  %v5527_v49 = vadd.f32 %v10599_v59, %v14133_v38  ;;  %7716 = vmatmul.mubr.bf16.vlgmr.msra.gmra.mrb[160].mxu1 %v14153_v47  ;;  %8023 = vmatpush1.bf16.msra.mxu0 %v11442_v48  ;;  %vm5647_vm9 = vcmp.gt.f32.partialorder %v5519_v9, 0.0 }
 0x31b   :  { %vm5654_vm10 = vcmp.gt.f32.partialorder %v5526_v37, 0.0  ;;  %v5782_v53 = vmul.f32 0.2, %v5526_v37  ;;  %7725 = vmatprep.mubr.bf16.mxu1 %v14181_v35  ;;  %8024 = vmatprep.subr.bf16.mxu0 %v11447_v36  ;;  %v5902_v48 = vsel %vm5646_vm8, %v5518_v29, %v5774_v51  ;;  %v11448_v36 = vld [vmem:[#allocation8 + $0x48] ss:$16 sps:$4 sm:$0xff]  }
 0x31c   :  { %vm5655_vm11 = vcmp.gt.f32.partialorder %v5527_v49, 0.0  ;;  %v5783_v31 = vmul.f32 0.2, %v5527_v49  ;;  %v4471_v63 = vpop.f32.mrb[152].mxu0  ;;  %5323 = vmatprep.mubr.bf16.mxu0 %v15257_v50  ;;  %7797 = vmatpush1.bf16.msra.mxu1 %v11469_v17  ;;  %v5903_v59 = vsel %vm5647_vm9, %v5519_v9, %v5775_v33  ;;  %v11453_v29 = vld [vmem:[#allocation8 + $0x6c] ss:$16 sps:$4 sm:$0xff]  }
 0x31d   :  { %v10600_v3 = vadd.f32 %v4471_v63, %v15535_v2  ;;  %v4473_v15 = vpop.f32.mrb[153].mxu0  ;;  %7798 = vmatprep.subr.bf16.mxu1 %v11477_v19  ;;  %v5910_v16 = vsel %vm5654_vm10, %v5526_v37, %v5782_v53  ;;  %v15537_v63 = vld [vmem:[#allocation32_spill] sm:$0xff]  ;;  %v15538_v53 = vld [vmem:[#allocation82_spill] sm:$0xff] }
 0x31e   :  { %v10601_v34 = vadd.f32 %v4473_v15, %v15536_v55  ;;  %v4475_v43 = vpop.f32.mrb[154].mxu0  ;;  %8025 = vmatpush1.bf16.msra.mxu0 %v11445_v24  ;;  %v5911_v57 = vsel %vm5655_vm11, %v5527_v49, %v5783_v31  ;;  %v14263_v35 = vpack.c.bf16 %v5910_v16, %v5902_v48  ;;  %v11481_v15 = vld [vmem:[#allocation8 + $0x440] ss:$16 sps:$4 sm:$0xff]   ;;  %v11990_v49 = vld [vmem:[%s15176_s0 + $0x50] ss:$28 sps:$4 sm:$0xff]  }
 0x31f   :  { %v5534_v17 = vadd.f32 %v10600_v3, %v14129_v4  ;;  %v10602_v2 = vadd.f32 %v4475_v43, %v15537_v63  ;;  %v4477_v19 = vpop.f32.mrb[155].mxu0  ;;  %8026 = vmatprep.subr.bf16.mxu0 %v11450_v32  ;;  %v14267_v51 = vpack.c.bf16 %v5911_v57, %v5903_v59  ;;  %v11489_v32 = vld [vmem:[#allocation8 + $0x464] ss:$16 sps:$4 sm:$0xff]   ;;  %v11456_v16 = vld [vmem:[#allocation8 + $0x8c] ss:$16 sps:$4 sm:$0xff]  }
 0x320   :  { %v5535_v37 = vadd.f32 %v10601_v34, %v14133_v38  ;;  %v10603_v24 = vadd.f32 %v4477_v19, %v15538_v53  ;;  %7799 = vmatpush1.bf16.msra.mxu1 %v11475_v42  ;;  %v11451_v42 = vld [vmem:[#allocation8 + $0x68] ss:$16 sps:$4 sm:$0xff]   ;;  %v15539_v43 = vld [vmem:[#allocation86_spill] sm:$0xff] }
 0x321   :  { %v5790_v9 = vmul.f32 0.2, %v5534_v17  ;;  %v5542_v33 = vadd.f32 %v10602_v2, %v14129_v4  ;;  %10185 = vmatmul.mubr.msk.bf16.gmra.mrb[196].mxu0 %vm629_vm0, %v11990_v49  ;;  %7800 = vmatprep.subr.bf16.mxu1 %v11483_v58  ;;  %vm5662_vm12 = vcmp.gt.f32.partialorder %v5534_v17, 0.0  ;;  %v11487_v58 = vld [vmem:[#allocation8 + $0x460] ss:$16 sps:$4 sm:$0xff]   ;;  %v15540_v19 = vld [vmem:[#allocation33_spill] sm:$0xff] }
 0x322   :  { %v5791_v31 = vmul.f32 0.2, %v5535_v37  ;;  %v5543_v3 = vadd.f32 %v10603_v24, %v14133_v38  ;;  %7726 = vmatmul.mubr.bf16.gmra.mrb[164].mxu1 %v14177_v52  ;;  %8027 = vmatpush1.bf16.msra.mxu0 %v11448_v36  ;;  %vm5663_vm13 = vcmp.gt.f32.partialorder %v5535_v37, 0.0  ;;  %v11495_v2 = vld [vmem:[#allocation8 + $0x484] ss:$16 sps:$4 sm:$0xff]  }
 0x323   :  { %vm5670_vm14 = vcmp.gt.f32.partialorder %v5542_v33, 0.0  ;;  %v5798_v48 = vmul.f32 0.2, %v5542_v33  ;;  %7735 = vmatprep.mubr.bf16.mxu1 %v14203_v26  ;;  %8028 = vmatprep.subr.bf16.mxu0 %v11453_v29  ;;  %v5918_v36 = vsel %vm5662_vm12, %v5534_v17, %v5790_v9  ;;  %v11454_v29 = vld [vmem:[#allocation8 + $0x88] ss:$16 sps:$4 sm:$0xff]  }
 0x324   :  { %vm5671_vm15 = vcmp.gt.f32.partialorder %v5543_v3, 0.0  ;;  %v5799_v55 = vmul.f32 0.2, %v5543_v3  ;;  %v4481_v34 = vpop.f32.mrb[156].mxu0  ;;  %5333 = vmatprep.mubr.bf16.mxu0 %v15257_v50  ;;  %7801 = vmatpush1.bf16.msra.mxu1 %v11481_v15  ;;  %v5919_v49 = vsel %vm5663_vm13, %v5535_v37, %v5791_v31  ;;  %v11459_v17 = vld [vmem:[#allocation8 + $0xac] ss:$16 sps:$4 sm:$0xff]  }
 0x325   :  { %v10604_v59 = vadd.f32 %v4481_v34, %v15539_v43  ;;  %v4483_v57 = vpop.f32.mrb[157].mxu0  ;;  %7802 = vmatprep.subr.bf16.mxu1 %v11489_v32  ;;  %v5926_v63 = vsel %vm5670_vm14, %v5542_v33, %v5798_v48  ;;  %v15541_v34 = vld [vmem:[#allocation91_spill] sm:$0xff]  ;;  %v15542_v48 = vld [vmem:[#allocation34_spill] sm:$0xff] }
 0x326   :  { %v10605_v53 = vadd.f32 %v4483_v57, %v15540_v19  ;;  %v4485_v24 = vpop.f32.mrb[158].mxu0  ;;  %8029 = vmatpush1.bf16.msra.mxu0 %v11451_v42  ;;  %v5927_v26 = vsel %vm5671_vm15, %v5543_v3, %v5799_v55  ;;  %v14285_v52 = vpack.c.bf16 %v5926_v63, %v5918_v36  ;;  %v11493_v57 = vld [vmem:[#allocation8 + $0x480] ss:$16 sps:$4 sm:$0xff]   ;;  %v15543_v19 = vld [vmem:[#allocation59_spill] sm:$0xff] }
 0x327   :  { %v5550_v15 = vadd.f32 %v10604_v59, %v14129_v4  ;;  %v10606_v43 = vadd.f32 %v4485_v24, %v15541_v34  ;;  %v4487_v32 = vpop.f32.mrb[159].mxu0  ;;  %8030 = vmatprep.subr.bf16.mxu0 %v11456_v16  ;;  %v14289_v9 = vpack.c.bf16 %v5927_v26, %v5919_v49  ;;  %v11991_v3 = vld [vmem:[%s15176_s0 + $0x88] ss:$28 sps:$4 sm:$0xff]   ;;  %v11501_v16 = vld [vmem:[#allocation8 + $0x4a4] ss:$16 sps:$4 sm:$0xff]   ;;  %v15544_v34 = vld [vmem:[#allocation61_spill] sm:$0xff] }
 0x328   :  { %v5551_v33 = vadd.f32 %v10605_v53, %v14133_v38  ;;  %v10607_v42 = vadd.f32 %v4487_v32, %v15542_v48  ;;  %7803 = vmatpush1.bf16.msra.mxu1 %v11487_v58  ;;  %v11457_v58 = vld [vmem:[#allocation8 + $0xa8] ss:$16 sps:$4 sm:$0xff]   ;;  %v11507_v49 = vld [vmem:[#allocation8 + $0x4c4] ss:$16 sps:$4 sm:$0xff]  }
 0x329   :  { %v5806_v37 = vmul.f32 0.2, %v5550_v15  ;;  %v5558_v31 = vadd.f32 %v10606_v43, %v14129_v4  ;;  %10186 = vmatmul.mubr.msk.bf16.gmra.mrb[200].mxu0 %vm629_vm0, %v11991_v3  ;;  %7804 = vmatprep.subr.bf16.mxu1 %v11495_v2  ;;  %vm5678_vm1 = vcmp.gt.f32.partialorder %v5550_v15, 0.0  ;;  %v11462_v4 = vld [vmem:[#allocation8 + $0xcc] ss:$16 sps:$4 sm:$0xff]  }
 0x32a   :  { %v5807_v26 = vmul.f32 0.2, %v5551_v33  ;;  %v5559_v55 = vadd.f32 %v10607_v42, %v14133_v38  ;;  %7736 = vmatmul.mubr.bf16.gmra.mrb[168].mxu1 %v14199_v20  ;;  %8031 = vmatpush1.bf16.msra.mxu0 %v11454_v29  ;;  %vm5679_vm2 = vcmp.gt.f32.partialorder %v5551_v33, 0.0  ;;  %v11499_v2 = vld [vmem:[#allocation8 + $0x4a0] ss:$16 sps:$4 sm:$0xff]   ;;  %v15545_v3 = vld [vmem:[#allocation65_spill] sm:$0xff] }
 0x32b   :  { %vm5686_vm3 = vcmp.gt.f32.partialorder %v5558_v31, 0.0  ;;  %v5814_v59 = vmul.f32 0.2, %v5558_v31  ;;  %7745 = vmatprep.mubr.bf16.mxu1 %v14225_v28  ;;  %8032 = vmatprep.subr.bf16.mxu0 %v11459_v17  ;;  %v5934_v24 = vsel %vm5678_vm1, %v5550_v15, %v5806_v37  ;;  %v11460_v17 = vld [vmem:[#allocation8 + $0xc8] ss:$16 sps:$4 sm:$0xff]  }
 0x32c   :  { %vm5687_vm4 = vcmp.gt.f32.partialorder %v5559_v55, 0.0  ;;  %v5815_v36 = vmul.f32 0.2, %v5559_v55  ;;  %v4976_v63 = vpop.f32.mrb[160].mxu0  ;;  %5343 = vmatprep.mubr.bf16.mxu0 %v15257_v50  ;;  %7805 = vmatpush1.bf16.msra.mxu1 %v11493_v57  ;;  %v5935_v48 = vsel %vm5679_vm2, %v5551_v33, %v5807_v26  ;;  %v11465_v15 = vld [vmem:[#allocation8 + $0xec] ss:$16 sps:$4 sm:$0xff]  }
 0x32d   :  { %v14303_v38 = vadd.f32 %v4976_v63, %v15543_v19  ;;  %v4978_v53 = vpop.f32.mrb[161].mxu0  ;;  %7806 = vmatprep.subr.bf16.mxu1 %v11501_v16  ;;  %v5942_v29 = vsel %vm5686_vm3, %v5558_v31, %v5814_v59  ;;  %v15546_v31 = vld [vmem:[#allocation66_spill] sm:$0xff] }
 0x32e   :  { %v14307_v43 = vadd.f32 %v4978_v53, %v15544_v34  ;;  %v4980_v32 = vpop.f32.mrb[162].mxu0  ;;  %8033 = vmatpush1.bf16.msra.mxu0 %v11457_v58  ;;  %v5943_v42 = vsel %vm5687_vm4, %v5559_v55, %v5815_v36  ;;  %v14311_v57 = vpack.c.bf16 %v5942_v29, %v5934_v24  ;;  %v11505_v58 = vld [vmem:[#allocation8 + $0x4c0] ss:$16 sps:$4 sm:$0xff]   ;;  %v11992_v33 = vld [vmem:[%s15176_s0 + $0xc0] ss:$28 sps:$4 sm:$0xff]  }
 0x32f   :  { %v14314_v63 = vadd.f32 %v4980_v32, %v15545_v3  ;;  %v4982_v16 = vpop.f32.mrb[163].mxu0  ;;  %8034 = vmatprep.subr.bf16.mxu0 %v11462_v4  ;;  %v14316_v37 = vpack.c.bf16 %v5943_v42, %v5935_v48  ;;  %v11513_v26 = vld [vmem:[#allocation8 + $0x4e4] ss:$16 sps:$4 sm:$0xff]   ;;  %v11463_v55 = vld [vmem:[#allocation8 + $0xe8] ss:$16 sps:$4 sm:$0xff]  }
 0x330   :  { %v14319_v59 = vadd.f32 %v4982_v16, %v15546_v31  ;;  %7807 = vmatpush1.bf16.msra.mxu1 %v11499_v2  ;;  %v11468_v4 = vld [vmem:[#allocation8 + $0x10c] ss:$16 sps:$4 sm:$0xff]   ;;  %v11511_v2 = vld [vmem:[#allocation8 + $0x4e0] ss:$16 sps:$4 sm:$0xff]   ;;  %v11519_v29 = vld [vmem:[#allocation8 + $0x504] ss:$16 sps:$4 sm:$0xff]  }
 0x331   :  { %10187 = vmatmul.mubr.msk.bf16.gmra.mrb[204].mxu0 %vm629_vm0, %v11992_v33  ;;  %7808 = vmatprep.subr.bf16.mxu1 %v11507_v49  ;;  %v15547_v19 = vld [vmem:[#allocation70_spill] sm:$0xff]  ;;  %v15548_v49 = vld [vmem:[#allocation72_spill] sm:$0xff]  ;;  %v11474_v16 = vld [vmem:[#allocation8 + $0x12c] ss:$16 sps:$4 sm:$0xff]  }
 0x332   :  { %7746 = vmatmul.mubr.bf16.gmra.mrb[172].mxu1 %v14221_v61  ;;  %8035 = vmatpush1.bf16.msra.mxu0 %v11460_v17  ;;  %v11466_v17 = vld [vmem:[#allocation8 + $0x108] ss:$16 sps:$4 sm:$0xff]   ;;  %v15549_v48 = vld [vmem:[#allocation76_spill] sm:$0xff]  ;;  %v11993_v33 = vld [vmem:[%s15176_s0 + $0xf8] ss:$28 sps:$4 sm:$0xff]  }
 0x333   :  { %7755 = vmatprep.mubr.bf16.mxu1 %v14245_v5  ;;  %8036 = vmatprep.subr.bf16.mxu0 %v11465_v15  ;;  %v15551_v15 = vld [vmem:[#allocation77_spill] sm:$0xff] }
 0x334   :  { %v4986_v36 = vpop.f32.mrb[164].mxu0  ;;  %5353 = vmatprep.mubr.bf16.mxu0 %v15257_v50  ;;  %7809 = vmatpush1.bf16.msra.mxu1 %v11505_v58  ;;  %v11517_v58 = vld [vmem:[#allocation8 + $0x500] ss:$16 sps:$4 sm:$0xff]  }
 0x335   :  { %v14329_v53 = vadd.f32 %v4986_v36, %v15547_v19  ;;  %v4988_v24 = vpop.f32.mrb[165].mxu0  ;;  %7810 = vmatprep.subr.bf16.mxu1 %v11513_v26  ;;  %v11525_v26 = vld [vmem:[#allocation8 + $0x524] ss:$16 sps:$4 sm:$0xff]   ;;  %v15553_v19 = vld [vmem:[#allocation81_spill] sm:$0xff] }
 0x336   :  { %v14332_v34 = vadd.f32 %v4988_v24, %v15548_v49  ;;  %v4990_v32 = vpop.f32.mrb[166].mxu0  ;;  %8037 = vmatpush1.bf16.msra.mxu0 %v11463_v55  ;;  %v11472_v55 = vld [vmem:[#allocation8 + $0x128] ss:$16 sps:$4 sm:$0xff]  }
 0x337   :  { %v14335_v42 = vadd.f32 %v4990_v32, %v15549_v48  ;;  %v4992_v3 = vpop.f32.mrb[167].mxu0  ;;  %8038 = vmatprep.subr.bf16.mxu0 %v11468_v4  ;;  %v11480_v4 = vld [vmem:[#allocation8 + $0x14c] ss:$16 sps:$4 sm:$0xff]  }
 0x338   :  { %v14338_v31 = vadd.f32 %v4992_v3, %v15551_v15  ;;  %7811 = vmatpush1.bf16.msra.mxu1 %v11511_v2  ;;  %v11523_v2 = vld [vmem:[#allocation8 + $0x520] ss:$16 sps:$4 sm:$0xff]   ;;  %v15555_v32 = vld [vmem:[#allocation83_spill] sm:$0xff] }
 0x339   :  { %15550 = vst [vmem:[#allocation141_spill] sm:$0xff] %v14335_v42  ;;  %10188 = vmatmul.mubr.msk.bf16.gmra.mrb[208].mxu0 %vm629_vm0, %v11993_v33  ;;  %7812 = vmatprep.subr.bf16.mxu1 %v11519_v29  ;;  %v11531_v29 = vld [vmem:[#allocation8 + $0x544] ss:$16 sps:$4 sm:$0xff]   ;;  %v11478_v3 = vld [vmem:[#allocation8 + $0x148] ss:$16 sps:$4 sm:$0xff]  }
 0x33a   :  { %15552 = vst [vmem:[#allocation139_spill] sm:$0xff] %v14338_v31  ;;  %7756 = vmatmul.mubr.bf16.gmra.mrb[176].mxu1 %v14241_v54  ;;  %8039 = vmatpush1.bf16.msra.mxu0 %v11466_v17  ;;  %v15557_v15 = vld [vmem:[#allocation87_spill] sm:$0xff] }
 0x33b   :  { %7765 = vmatprep.mubr.bf16.mxu1 %v14267_v51  ;;  %8040 = vmatprep.subr.bf16.mxu0 %v11474_v16  ;;  %v11486_v31 = vld [vmem:[#allocation8 + $0x16c] ss:$16 sps:$4 sm:$0xff]  }
 0x33c   :  { %v4996_v36 = vpop.f32.mrb[168].mxu0  ;;  %5363 = vmatprep.mubr.bf16.mxu0 %v15257_v50  ;;  %7813 = vmatpush1.bf16.msra.mxu1 %v11517_v58  ;;  %v15559_v58 = vld [vmem:[#allocation88_spill] sm:$0xff] }
 0x33d   :  { %v14348_v24 = vadd.f32 %v4996_v36, %v15553_v19  ;;  %v4998_v49 = vpop.f32.mrb[169].mxu0  ;;  %7814 = vmatprep.subr.bf16.mxu1 %v11525_v26  ;;  %v11529_v36 = vld [vmem:[#allocation8 + $0x540] ss:$16 sps:$4 sm:$0xff]   ;;  %v11994_v26 = vld [vmem:[%s15176_s0 + $0x130] ss:$28 sps:$4 sm:$0xff]  }
 0x33e   :  { %v14351_v48 = vadd.f32 %v4998_v49, %v15555_v32  ;;  %v5000_v17 = vpop.f32.mrb[170].mxu0  ;;  %8041 = vmatpush1.bf16.msra.mxu0 %v11472_v55  ;;  %v11537_v55 = vld [vmem:[#allocation8 + $0x564] ss:$16 sps:$4 sm:$0xff]   ;;  %v11484_v19 = vld [vmem:[#allocation8 + $0x168] ss:$16 sps:$4 sm:$0xff]  }
 0x33f   :  { %15554 = vst [vmem:[#allocation142_spill] sm:$0xff] %v14348_v24  ;;  %v14354_v16 = vadd.f32 %v5000_v17, %v15557_v15  ;;  %v5002_v33 = vpop.f32.mrb[171].mxu0  ;;  %8042 = vmatprep.subr.bf16.mxu0 %v11480_v4  ;;  %v11492_v4 = vld [vmem:[#allocation8 + $0x18c] ss:$16 sps:$4 sm:$0xff]   ;;  %v15561_v32 = vld [vmem:[#allocation92_spill] sm:$0xff] }
 0x340   :  { %15556 = vst [vmem:[#allocation144_spill] sm:$0xff] %v14351_v48  ;;  %v14357_v42 = vadd.f32 %v5002_v33, %v15559_v58  ;;  %7815 = vmatpush1.bf16.msra.mxu1 %v11523_v2  ;;  %v11535_v2 = vld [vmem:[#allocation8 + $0x560] ss:$16 sps:$4 sm:$0xff]   ;;  %v11498_v48 = vld [vmem:[#allocation8 + $0x1ac] ss:$16 sps:$4 sm:$0xff]  }
 0x341   :  { %15558 = vst [vmem:[#allocation146_spill] sm:$0xff] %v14354_v16  ;;  %10189 = vmatmul.mubr.msk.bf16.gmra.mrb[212].mxu0 %vm629_vm0, %v11994_v26  ;;  %7816 = vmatprep.subr.bf16.mxu1 %v11531_v29  ;;  %v11543_v29 = vld [vmem:[#allocation8 + $0x584] ss:$16 sps:$4 sm:$0xff]   ;;  %v11490_v26 = vld [vmem:[#allocation8 + $0x188] ss:$16 sps:$4 sm:$0xff]  }
 0x342   :  { %15560 = vst [vmem:[#allocation145_spill] sm:$0xff] %v14357_v42  ;;  %7766 = vmatmul.mubr.bf16.gmra.mrb[180].mxu1 %v14263_v35  ;;  %8043 = vmatpush1.bf16.msra.mxu0 %v11478_v3  ;;  %v15562_v33 = vld [vmem:[#allocation94_spill] sm:$0xff] }
 0x343   :  { %7775 = vmatprep.mubr.bf16.mxu1 %v14289_v9  ;;  %8044 = vmatprep.subr.bf16.mxu0 %v11486_v31  ;;  %v15564_v42 = vld [vmem:[#allocation98_spill] sm:$0xff] }
 0x344   :  { %v5006_v49 = vpop.f32.mrb[172].mxu0  ;;  %5373 = vmatprep.mubr.bf16.mxu0 %v15257_v50  ;;  %7817 = vmatpush1.bf16.msra.mxu1 %v11529_v36  ;;  %v15566_v36 = vld [vmem:[#allocation99_spill] sm:$0xff] }
 0x345   :  { %v14367_v17 = vadd.f32 %v5006_v49, %v15561_v32  ;;  %v5008_v15 = vpop.f32.mrb[173].mxu0  ;;  %7818 = vmatprep.subr.bf16.mxu1 %v11537_v55  ;;  %v11541_v49 = vld [vmem:[#allocation8 + $0x580] ss:$16 sps:$4 sm:$0xff]   ;;  %v15568_v32 = vld [vmem:[#allocation103_spill] sm:$0xff] }
 0x346   :  { %v14370_v58 = vadd.f32 %v5008_v15, %v15562_v33  ;;  %v5010_v3 = vpop.f32.mrb[174].mxu0  ;;  %8045 = vmatpush1.bf16.msra.mxu0 %v11484_v19  ;;  %v11995_v55 = vld [vmem:[%s15176_s0 + $0x168] ss:$28 sps:$4 sm:$0xff]   ;;  %v11549_v19 = vld [vmem:[#allocation8 + $0x5a4] ss:$16 sps:$4 sm:$0xff]  }
 0x347   :  { %v14373_v31 = vadd.f32 %v5010_v3, %v15564_v42  ;;  %v5012_v16 = vpop.f32.mrb[175].mxu0  ;;  %8046 = vmatprep.subr.bf16.mxu0 %v11492_v4  ;;  %v11496_v42 = vld [vmem:[#allocation8 + $0x1a8] ss:$16 sps:$4 sm:$0xff]   ;;  %v11504_v4 = vld [vmem:[#allocation8 + $0x1cc] ss:$16 sps:$4 sm:$0xff]   ;;  %v15569_v3 = vld [vmem:[#allocation104_spill] sm:$0xff] }
 0x348   :  { %15563 = vst [vmem:[#allocation147_spill] sm:$0xff] %v14370_v58  ;;  %v14376_v24 = vadd.f32 %v5012_v16, %v15566_v36  ;;  %7819 = vmatpush1.bf16.msra.mxu1 %v11535_v2  ;;  %v11547_v2 = vld [vmem:[#allocation8 + $0x5a0] ss:$16 sps:$4 sm:$0xff]  }
 0x349   :  { %15565 = vst [vmem:[#allocation148_spill] sm:$0xff] %v14373_v31  ;;  %10190 = vmatmul.mubr.msk.bf16.gmra.mrb[216].mxu0 %vm629_vm0, %v11995_v55  ;;  %7820 = vmatprep.subr.bf16.mxu1 %v11543_v29  ;;  %v11555_v29 = vld [vmem:[#allocation8 + $0x5c4] ss:$16 sps:$4 sm:$0xff]   ;;  %v11502_v55 = vld [vmem:[#allocation8 + $0x1c8] ss:$16 sps:$4 sm:$0xff]  }
 0x34a   :  { %15567 = vst [vmem:[#allocation149_spill] sm:$0xff] %v14376_v24  ;;  %7776 = vmatmul.mubr.bf16.gmra.mrb[184].mxu1 %v14285_v52  ;;  %8047 = vmatpush1.bf16.msra.mxu0 %v11490_v26  ;;  %v15571_v24 = vld [vmem:[#allocation107_spill] sm:$0xff] }
 0x34b   :  { %7785 = vmatprep.mubr.bf16.mxu1 %v14316_v37  ;;  %8048 = vmatprep.subr.bf16.mxu0 %v11498_v48 }
 0x34c   :  { %v5016_v16 = vpop.f32.mrb[176].mxu0  ;;  %5383 = vmatprep.mubr.bf16.mxu0 %v15257_v50  ;;  %7821 = vmatpush1.bf16.msra.mxu1 %v11541_v49  ;;  %v11510_v50 = vld [vmem:[#allocation8 + $0x1ec] ss:$16 sps:$4 sm:$0xff]   ;;  %v15573_v49 = vld [vmem:[#allocation108_spill] sm:$0xff] }
 0x34d   :  { %v14386_v15 = vadd.f32 %v5016_v16, %v15568_v32  ;;  %v5018_v33 = vpop.f32.mrb[177].mxu0  ;;  %7822 = vmatprep.subr.bf16.mxu1 %v11549_v19  ;;  %v11553_v16 = vld [vmem:[#allocation8 + $0x5c0] ss:$16 sps:$4 sm:$0xff]   ;;  %v11996_v19 = vld [vmem:[%s15176_s0 + $0x1a0] ss:$28 sps:$4 sm:$0xff]  }
 0x34e   :  { %v14389_v36 = vadd.f32 %v5018_v33, %v15569_v3  ;;  %v5020_v26 = vpop.f32.mrb[178].mxu0  ;;  %8049 = vmatpush1.bf16.msra.mxu0 %v11496_v42  ;;  %v11561_v42 = vld [vmem:[#allocation8 + $0x5e4] ss:$16 sps:$4 sm:$0xff]  }
 0x34f   :  { %v14392_v48 = vadd.f32 %v5020_v26, %v15571_v24  ;;  %v5022_v31 = vpop.f32.mrb[179].mxu0  ;;  %8050 = vmatprep.subr.bf16.mxu0 %v11504_v4  ;;  %v11508_v24 = vld [vmem:[#allocation8 + $0x1e8] ss:$16 sps:$4 sm:$0xff]   ;;  %v11516_v4 = vld [vmem:[#allocation8 + $0x20c] ss:$16 sps:$4 sm:$0xff]   ;;  %v15575_v32 = vld [vmem:[#allocation112_spill] sm:$0xff] }
 0x350   :  { %15570 = vst [vmem:[#allocation56_spill] sm:$0xff] %v14389_v36  ;;  %v14395_v58 = vadd.f32 %v5022_v31, %v15573_v49  ;;  %7823 = vmatpush1.bf16.msra.mxu1 %v11547_v2  ;;  %v11559_v2 = vld [vmem:[#allocation8 + $0x5e0] ss:$16 sps:$4 sm:$0xff]   ;;  %v11615_v26 = vld [vmem:[#allocation8 + $0x604] ss:$16 sps:$4 sm:$0xff]   ;;  %v15577_v49 = vld [vmem:[#allocation113_spill] sm:$0xff] }
 0x351   :  { %15572 = vst [vmem:[#allocation57_spill] sm:$0xff] %v14392_v48  ;;  %10191 = vmatmul.mubr.msk.bf16.gmra.mrb[220].mxu0 %vm629_vm0, %v11996_v19  ;;  %7824 = vmatprep.subr.bf16.mxu1 %v11555_v29 }
 0x352   :  { %15574 = vst [vmem:[#allocation62_spill] sm:$0xff] %v14395_v58  ;;  %7786 = vmatmul.mubr.bf16.gmra.mrb[188].mxu1 %v14311_v57  ;;  %8051 = vmatpush1.bf16.msra.mxu0 %v11502_v55  ;;  %v11514_v55 = vld [vmem:[#allocation8 + $0x208] ss:$16 sps:$4 sm:$0xff]  }
 0x353   :  { %8054 = vmatprep.mubr.bf16.mxu0 %v13722_v30  ;;  %8052 = vmatprep.subr.bf16.mxu0 %v11510_v50  ;;  %v15579_v58 = vld [vmem:[#allocation117_spill] sm:$0xff] }
 0x354   :  { %v5026_v31 = vpop.f32.mrb[180].mxu0  ;;  %7825 = vmatpush1.bf16.msra.mxu1 %v11553_v16  ;;  %v11522_v50 = vld [vmem:[#allocation8 + $0x22c] ss:$16 sps:$4 sm:$0xff]   ;;  %v15581_v16 = vld [vmem:[#allocation118_spill] sm:$0xff] }
 0x355   :  { %v14404_v33 = vadd.f32 %v5026_v31, %v15575_v32  ;;  %v5028_v3 = vpop.f32.mrb[181].mxu0  ;;  %7826 = vmatprep.subr.bf16.mxu1 %v11561_v42  ;;  %v11520_v42 = vld [vmem:[#allocation8 + $0x228] ss:$16 sps:$4 sm:$0xff]  }
 0x356   :  { %v14407_v29 = vadd.f32 %v5028_v3, %v15577_v49  ;;  %v5030_v19 = vpop.f32.mrb[182].mxu0  ;;  %8053 = vmatpush1.bf16.msra.mxu0 %v11508_v24  ;;  %v11528_v24 = vld [vmem:[#allocation8 + $0x24c] ss:$16 sps:$4 sm:$0xff]  }
 0x357   :  { %15576 = vst [vmem:[#allocation63_spill] sm:$0xff] %v14404_v33  ;;  %v14410_v48 = vadd.f32 %v5030_v19, %v15579_v58  ;;  %v5032_v30 = vpop.f32.mrb[183].mxu0  ;;  %8135 = vmatprep.subr.bf16.mxu0 %v11516_v4  ;;  %v15583_v32 = vld [vmem:[#allocation123_spill] sm:$0xff]  ;;  %v15585_v4 = vld [vmem:[#allocation124_spill] sm:$0xff] }
 0x358   :  { %15578 = vst [vmem:[#allocation67_spill] sm:$0xff] %v14407_v29  ;;  %v14413_v36 = vadd.f32 %v5032_v30, %v15581_v16  ;;  %7827 = vmatpush1.bf16.msra.mxu1 %v11559_v2  ;;  %v11526_v2 = vld [vmem:[#allocation8 + $0x248] ss:$16 sps:$4 sm:$0xff]   ;;  %v15587_v30 = vld [vmem:[#allocation128_spill] sm:$0xff] }
 0x359   :  { %15580 = vst [vmem:[#allocation68_spill] sm:$0xff] %v14410_v48  ;;  %8055 = vmatmul.mubr.bf16.vlgmr.msra.gmra.mrb[224].mxu0 %v13716_v41  ;;  %7909 = vmatprep.subr.bf16.mxu1 %v11615_v26  ;;  %v11532_v16 = vld [vmem:[#allocation8 + $0x268] ss:$16 sps:$4 sm:$0xff]   ;;  %v15624_v29 = vld [vmem:[#allocation132_spill] sm:$0xff] }
 0x35a   :  { %15582 = vst [vmem:[#allocation73_spill] sm:$0xff] %v14413_v36  ;;  %8064 = vmatprep.mubr.bf16.mxu0 %v13746_v1  ;;  %8136 = vmatpush1.bf16.msra.mxu0 %v11514_v55  ;;  %v11534_v1 = vld [vmem:[#allocation8 + $0x26c] ss:$16 sps:$4 sm:$0xff]  }
 0x35b   :  { %8137 = vmatprep.subr.bf16.mxu0 %v11522_v50  ;;  %v15589_v55 = vld [vmem:[#allocation131_spill] sm:$0xff] }
 0x35c   :  { %v5036_v31 = vpop.f32.mrb[184].mxu0 }
 0x35d   :  { %v14418_v58 = vadd.f32 %v5036_v31, %v15583_v32  ;;  %v5038_v3 = vpop.f32.mrb[185].mxu0  ;;  %v11540_v31 = vld [vmem:[#allocation8 + $0x28c] ss:$16 sps:$4 sm:$0xff]  }
 0x35e   :  { %v14421_v49 = vadd.f32 %v5038_v3, %v15585_v4  ;;  %v5040_v19 = vpop.f32.mrb[186].mxu0  ;;  %8138 = vmatpush1.bf16.msra.mxu0 %v11520_v42  ;;  %v15591_v42 = vld [vmem:[#allocation135_spill] sm:$0xff] }
 0x35f   :  { %15584 = vst [vmem:[#allocation74_spill] sm:$0xff] %v14418_v58  ;;  %v14424_v41 = vadd.f32 %v5040_v19, %v15587_v30  ;;  %v5042_v26 = vpop.f32.mrb[187].mxu0  ;;  %8139 = vmatprep.subr.bf16.mxu0 %v11528_v24  ;;  %v15593_v19 = vld [vmem:[#allocation136_spill] sm:$0xff] }
 0x360   :  { %15586 = vst [vmem:[#allocation78_spill] sm:$0xff] %v14421_v49  ;;  %v14427_v50 = vadd.f32 %v5042_v26, %v15589_v55  ;;  %v11538_v26 = vld [vmem:[#allocation8 + $0x288] ss:$16 sps:$4 sm:$0xff]   ;;  %v15595_v55 = vld [vmem:[#allocation140_spill] sm:$0xff] }
 0x361   :  { %15588 = vst [vmem:[#allocation79_spill] sm:$0xff] %v14424_v41  ;;  %8065 = vmatmul.mubr.bf16.gmra.mrb[228].mxu0 %v13742_v0  ;;  %v5414_v41 = vsub.s32 4, %v13672_v39 }
 0x362   :  { %15590 = vst [vmem:[#allocation84_spill] sm:$0xff] %v14427_v50  ;;  %8074 = vmatprep.mubr.bf16.mxu0 %v13772_v23  ;;  %8140 = vmatpush1.bf16.msra.mxu0 %v11526_v2  ;;  %v11546_v23 = vld [vmem:[#allocation8 + $0x2ac] ss:$16 sps:$4 sm:$0xff]  }
 0x363   :  { %8141 = vmatprep.subr.bf16.mxu0 %v11534_v1  ;;  %v15597_v2 = vld [vmem:[#allocation143_spill] sm:$0xff] }
 0x364   :  { %v5046_v32 = vpop.f32.mrb[188].mxu0 }
 0x365   :  { %v14432_v3 = vadd.f32 %v5046_v32, %v15591_v42  ;;  %v5048_v4 = vpop.f32.mrb[189].mxu0  ;;  %v5418_v32 = vsub.s32 5, %v13672_v39  ;;  %v11552_v42 = vld [vmem:[#allocation8 + $0x2cc] ss:$16 sps:$4 sm:$0xff]  }
 0x366   :  { %v14435_v30 = vadd.f32 %v5048_v4, %v15593_v19  ;;  %v5050_v24 = vpop.f32.mrb[190].mxu0  ;;  %8142 = vmatpush1.bf16.msra.mxu0 %v11532_v16  ;;  %v11544_v16 = vld [vmem:[#allocation8 + $0x2a8] ss:$16 sps:$4 sm:$0xff]  }
 0x367   :  { %15592 = vst [vmem:[#allocation85_spill] sm:$0xff] %v14432_v3  ;;  %v14438_v50 = vadd.f32 %v5050_v24, %v15595_v55  ;;  %v5052_v0 = vpop.f32.mrb[191].mxu0  ;;  %8143 = vmatprep.subr.bf16.mxu0 %v11540_v31  ;;  %v14447_v4 = vld [vmem:[#allocation7] sm:$0xff] }
 0x368   :  { %15594 = vst [vmem:[#allocation89_spill] sm:$0xff] %v14435_v30  ;;  %v14441_v1 = vadd.f32 %v5052_v0, %v15597_v2  ;;  %v14450_v31 = vrot.slane %v14447_v4, %v5414_v41  ;;  %v14453_v24 = vrot.slane %v14447_v4, %v5418_v32  ;;  %v11550_v0 = vld [vmem:[#allocation8 + $0x2c8] ss:$16 sps:$4 sm:$0xff]  }
 0x369   :  { %15596 = vst [vmem:[#allocation90_spill] sm:$0xff] %v14438_v50  ;;  %8075 = vmatmul.mubr.bf16.gmra.mrb[232].mxu0 %v13768_v7  ;;  %v11562_v30 = vld [vmem:[#allocation8 + $0x308] ss:$16 sps:$4 sm:$0xff]  }
 0x36a   :  { %15598 = vst [vmem:[#allocation95_spill] sm:$0xff] %v14441_v1  ;;  %8084 = vmatprep.mubr.bf16.mxu0 %v13798_v11  ;;  %8144 = vmatpush1.bf16.msra.mxu0 %v11538_v26 }
 0x36b   :  { %8145 = vmatprep.subr.bf16.mxu0 %v11546_v23  ;;  %v11558_v23 = vld [vmem:[#allocation8 + $0x2ec] ss:$16 sps:$4 sm:$0xff]  }
 0x36d   :  { %v4863_v19 = vpop.f32.mrb[128].mxu1 }
 0x36e   :  { %v10608_v55 = vadd.f32 %v4863_v19, %v13943_v12  ;;  %v4865_v7 = vpop.f32.mrb[129].mxu1  ;;  %8146 = vmatpush1.bf16.msra.mxu0 %v11544_v16 }
 0x36f   :  { %v10609_v11 = vadd.f32 %v4865_v7, %v13949_v40  ;;  %v4867_v26 = vpop.f32.mrb[130].mxu1  ;;  %8147 = vmatprep.subr.bf16.mxu0 %v11552_v42  ;;  %v11556_v40 = vld [vmem:[#allocation8 + $0x2e8] ss:$16 sps:$4 sm:$0xff]  }
 0x370   :  { %v5440_v2 = vadd.f32 %v10608_v55, %v14450_v31  ;;  %v10610_v1 = vadd.f32 %v4867_v26, %v13955_v62  ;;  %v4869_v41 = vpop.f32.mrb[131].mxu1  ;;  %v11564_v62 = vld [vmem:[#allocation8 + $0x30c] ss:$16 sps:$4 sm:$0xff]  }
 0x371   :  { %v5441_v50 = vadd.f32 %v10609_v11, %v14453_v24  ;;  %v10611_v32 = vadd.f32 %v4869_v41, %v13960_v45  ;;  %8085 = vmatmul.mubr.bf16.gmra.mrb[236].mxu0 %v13794_v22 }
 0x372   :  { %v5696_v12 = vmul.f32 0.2, %v5440_v2  ;;  %v5448_v16 = vadd.f32 %v10610_v1, %v14450_v31  ;;  %8094 = vmatprep.mubr.bf16.mxu0 %v13833_v13  ;;  %8148 = vmatpush1.bf16.msra.mxu0 %v11550_v0  ;;  %vm5568_vm0 = vcmp.gt.f32.partialorder %v5440_v2, 0.0 }
 0x373   :  { %v5697_v42 = vmul.f32 0.2, %v5441_v50  ;;  %v5449_v19 = vadd.f32 %v10611_v32, %v14453_v24  ;;  %8149 = vmatprep.subr.bf16.mxu0 %v11558_v23  ;;  %vm5569_vm5 = vcmp.gt.f32.partialorder %v5441_v50, 0.0 }
 0x374   :  { %vm5576_vm6 = vcmp.gt.f32.partialorder %v5448_v16, 0.0  ;;  %v5704_v55 = vmul.f32 0.2, %v5448_v16  ;;  %v5824_v22 = vsel %vm5568_vm0, %v5440_v2, %v5696_v12  ;;  %v11567_v12 = vld [vmem:[#allocation8 + $0x32c] ss:$16 sps:$4 sm:$0xff]  }
 0x375   :  { %vm5577_vm7 = vcmp.gt.f32.partialorder %v5449_v19, 0.0  ;;  %v5705_v45 = vmul.f32 0.2, %v5449_v19  ;;  %v4873_v7 = vpop.f32.mrb[132].mxu1  ;;  %v5825_v32 = vsel %vm5569_vm5, %v5441_v50, %v5697_v42 }
 0x376   :  { %v5832_v11 = vsel %vm5576_vm6, %v5448_v16, %v5704_v55  ;;  %v10612_v1 = vadd.f32 %v4873_v7, %v13974_v27  ;;  %v4875_v26 = vpop.f32.mrb[133].mxu1  ;;  %8150 = vmatpush1.bf16.msra.mxu0 %v11556_v40  ;;  %v11613_v27 = vld [vmem:[#allocation8 + $0x600] ss:$16 sps:$4 sm:$0xff]   ;;  %v11570_v55 = vld [vmem:[#allocation8 + $0x34c] ss:$16 sps:$4 sm:$0xff]  }
 0x377   :  { %v14466_v13 = vpack.c.bf16 %v5832_v11, %v5824_v22  ;;  %v10613_v0 = vadd.f32 %v4875_v26, %v13977_v8  ;;  %v4877_v41 = vpop.f32.mrb[134].mxu1  ;;  %v5833_v23 = vsel %vm5577_vm7, %v5449_v19, %v5705_v45  ;;  %8151 = vmatprep.subr.bf16.mxu0 %v11564_v62  ;;  %v11621_v8 = vld [vmem:[#allocation8 + $0x624] ss:$16 sps:$4 sm:$0xff]  }
 0x378   :  { %v5456_v3 = vadd.f32 %v10612_v1, %v14450_v31  ;;  %v10614_v49 = vadd.f32 %v4877_v41, %v13980_v60  ;;  %v4879_v58 = vpop.f32.mrb[135].mxu1  ;;  %v14471_v2 = vpack.c.bf16 %v5833_v23, %v5825_v32  ;;  %v11565_v60 = vld [vmem:[#allocation8 + $0x328] ss:$16 sps:$4 sm:$0xff]  }
 0x379   :  { %v5457_v16 = vadd.f32 %v10613_v0, %v14453_v24  ;;  %v10615_v40 = vadd.f32 %v4879_v58, %v13983_v14  ;;  %8095 = vmatmul.mubr.bf16.gmra.mrb[240].mxu0 %v13829_v56  ;;  %v11619_v14 = vld [vmem:[#allocation8 + $0x620] ss:$16 sps:$4 sm:$0xff]   ;;  %v11568_v41 = vld [vmem:[#allocation8 + $0x348] ss:$16 sps:$4 sm:$0xff]  }
 0x37a   :  { %v5712_v50 = vmul.f32 0.2, %v5456_v3  ;;  %v5464_v42 = vadd.f32 %v10614_v49, %v14450_v31  ;;  %7828 = vmatprep.mubr.bf16.mxu1 %v14471_v2  ;;  %8104 = vmatprep.mubr.bf16.mxu0 %v13876_v25  ;;  %vm5584_vm8 = vcmp.gt.f32.partialorder %v5456_v3, 0.0  ;;  %v11627_v25 = vld [vmem:[#allocation8 + $0x644] ss:$16 sps:$4 sm:$0xff]  }
 0x37b   :  { %v5713_v19 = vmul.f32 0.2, %v5457_v16  ;;  %v5465_v62 = vadd.f32 %v10615_v40, %v14453_v24  ;;  %7829 = vmatmul.mubr.bf16.vlgmr.msra.gmra.mrb[160].mxu1 %v14466_v13  ;;  %8152 = vmatpush1.bf16.msra.mxu0 %v11562_v30  ;;  %vm5585_vm9 = vcmp.gt.f32.partialorder %v5457_v16, 0.0 }
 0x37c   :  { %vm5592_vm10 = vcmp.gt.f32.partialorder %v5464_v42, 0.0  ;;  %v5720_v56 = vmul.f32 0.2, %v5464_v42  ;;  %8153 = vmatprep.subr.bf16.mxu0 %v11567_v12  ;;  %7910 = vmatpush1.bf16.msra.mxu1 %v11613_v27  ;;  %v5840_v22 = vsel %vm5584_vm8, %v5456_v3, %v5712_v50  ;;  %v15599_v12 = vld [vmem:[#allocation37_spill] sm:$0xff]  ;;  %v15600_v50 = vld [vmem:[#allocation102_spill] sm:$0xff] }
 0x37d   :  { %vm5593_vm11 = vcmp.gt.f32.partialorder %v5465_v62, 0.0  ;;  %v5721_v58 = vmul.f32 0.2, %v5465_v62  ;;  %v4883_v49 = vpop.f32.mrb[136].mxu1  ;;  %7911 = vmatprep.subr.bf16.mxu1 %v11621_v8  ;;  %v5841_v26 = vsel %vm5585_vm9, %v5457_v16, %v5713_v19  ;;  %v11573_v3 = vld [vmem:[#allocation8 + $0x36c] ss:$16 sps:$4 sm:$0xff]  }
 0x37e   :  { %v10616_v45 = vadd.f32 %v4883_v49, %v13997_v6  ;;  %v4885_v7 = vpop.f32.mrb[137].mxu1  ;;  %v5848_v11 = vsel %vm5592_vm10, %v5464_v42, %v5720_v56  ;;  %v11625_v8 = vld [vmem:[#allocation8 + $0x640] ss:$16 sps:$4 sm:$0xff]   ;;  %v15601_v16 = vld [vmem:[#allocation93_spill] sm:$0xff] }
 0x37f   :  { %v10617_v30 = vadd.f32 %v4885_v7, %v14000_v18  ;;  %v4887_v1 = vpop.f32.mrb[138].mxu1  ;;  %8154 = vmatpush1.bf16.msra.mxu0 %v11565_v60  ;;  %v5849_v0 = vsel %vm5593_vm11, %v5465_v62, %v5721_v58  ;;  %v14485_v32 = vpack.c.bf16 %v5848_v11, %v5840_v22  ;;  %v11633_v60 = vld [vmem:[#allocation8 + $0x664] ss:$16 sps:$4 sm:$0xff]   ;;  %v15602_v56 = vld [vmem:[#allocation97_spill] sm:$0xff] }
 0x380   :  { %v5472_v23 = vadd.f32 %v10616_v45, %v14450_v31  ;;  %v10618_v27 = vadd.f32 %v4887_v1, %v15599_v12  ;;  %v4889_v40 = vpop.f32.mrb[139].mxu1  ;;  %v14489_v6 = vpack.c.bf16 %v5849_v0, %v5841_v26  ;;  %8155 = vmatprep.subr.bf16.mxu0 %v11570_v55  ;;  %7912 = vmatpush1.bf16.msra.mxu1 %v11619_v14  ;;  %v11571_v58 = vld [vmem:[#allocation8 + $0x368] ss:$16 sps:$4 sm:$0xff]   ;;  %v11576_v49 = vld [vmem:[#allocation8 + $0x38c] ss:$16 sps:$4 sm:$0xff]  }
 0x381   :  { %v5473_v18 = vadd.f32 %v10617_v30, %v14453_v24  ;;  %v10619_v42 = vadd.f32 %v4889_v40, %v15600_v50  ;;  %8105 = vmatmul.mubr.bf16.gmra.mrb[244].mxu0 %v15601_v16  ;;  %7913 = vmatprep.subr.bf16.mxu1 %v11627_v25  ;;  %v11631_v45 = vld [vmem:[#allocation8 + $0x660] ss:$16 sps:$4 sm:$0xff]   ;;  %v11639_v11 = vld [vmem:[#allocation8 + $0x684] ss:$16 sps:$4 sm:$0xff]  }
 0x382   :  { %v5728_v19 = vmul.f32 0.2, %v5472_v23  ;;  %v5480_v62 = vadd.f32 %v10618_v27, %v14450_v31  ;;  %7838 = vmatprep.mubr.bf16.mxu1 %v14489_v6  ;;  %8114 = vmatprep.mubr.bf16.mxu0 %v15602_v56  ;;  %vm5600_vm12 = vcmp.gt.f32.partialorder %v5472_v23, 0.0  ;;  %v15603_v30 = vld [vmem:[#allocation38_spill] sm:$0xff]  ;;  %v15604_v27 = vld [vmem:[#allocation39_spill] sm:$0xff] }
 0x383   :  { %v5729_v55 = vmul.f32 0.2, %v5473_v18  ;;  %v5481_v14 = vadd.f32 %v10619_v42, %v14453_v24  ;;  %7839 = vmatmul.mubr.bf16.gmra.mrb[164].mxu1 %v14485_v32  ;;  %8156 = vmatpush1.bf16.msra.mxu0 %v11568_v41  ;;  %vm5601_vm13 = vcmp.gt.f32.partialorder %v5473_v18, 0.0 }
 0x384   :  { %vm5608_vm14 = vcmp.gt.f32.partialorder %v5480_v62, 0.0  ;;  %v5736_v25 = vmul.f32 0.2, %v5480_v62  ;;  %8157 = vmatprep.subr.bf16.mxu0 %v11573_v3  ;;  %7914 = vmatpush1.bf16.msra.mxu1 %v11625_v8  ;;  %v5856_v0 = vsel %vm5600_vm12, %v5472_v23, %v5728_v19  ;;  %v11574_v8 = vld [vmem:[#allocation8 + $0x388] ss:$16 sps:$4 sm:$0xff]  }
 0x385   :  { %vm5609_vm15 = vcmp.gt.f32.partialorder %v5481_v14, 0.0  ;;  %v5737_v7 = vmul.f32 0.2, %v5481_v14  ;;  %v4893_v22 = vpop.f32.mrb[140].mxu1  ;;  %7915 = vmatprep.subr.bf16.mxu1 %v11633_v60  ;;  %v5857_v50 = vsel %vm5601_vm13, %v5473_v18, %v5729_v55  ;;  %v15605_v60 = vld [vmem:[#allocation40_spill] sm:$0xff] }
 0x386   :  { %v10620_v1 = vadd.f32 %v4893_v22, %v15603_v30  ;;  %v4895_v26 = vpop.f32.mrb[141].mxu1  ;;  %v5864_v12 = vsel %vm5608_vm14, %v5480_v62, %v5736_v25  ;;  %v11579_v23 = vld [vmem:[#allocation8 + $0x3ac] ss:$16 sps:$4 sm:$0xff]   ;;  %v11637_v19 = vld [vmem:[#allocation8 + $0x680] ss:$16 sps:$4 sm:$0xff]  }
 0x387   :  { %v10621_v41 = vadd.f32 %v4895_v26, %v15604_v27  ;;  %v4897_v40 = vpop.f32.mrb[142].mxu1  ;;  %8158 = vmatpush1.bf16.msra.mxu0 %v11571_v58  ;;  %v5865_v3 = vsel %vm5609_vm15, %v5481_v14, %v5737_v7  ;;  %v14503_v42 = vpack.c.bf16 %v5864_v12, %v5856_v0  ;;  %v15606_v58 = vld [vmem:[#allocation41_spill] sm:$0xff]  ;;  %v11645_v18 = vld [vmem:[#allocation8 + $0x6a4] ss:$16 sps:$4 sm:$0xff]   ;;  %v15607_v26 = vld [vmem:[#allocation111_spill] sm:$0xff] }
 0x388   :  { %v5488_v16 = vadd.f32 %v10620_v1, %v14450_v31  ;;  %v10622_v56 = vadd.f32 %v4897_v40, %v15605_v60  ;;  %v4899_v36 = vpop.f32.mrb[143].mxu1  ;;  %v14507_v22 = vpack.c.bf16 %v5865_v3, %v5857_v50  ;;  %8159 = vmatprep.subr.bf16.mxu0 %v11576_v49  ;;  %7916 = vmatpush1.bf16.msra.mxu1 %v11631_v45  ;;  %v11577_v7 = vld [vmem:[#allocation8 + $0x3a8] ss:$16 sps:$4 sm:$0xff]   ;;  %v15608_v40 = vld [vmem:[#allocation42_spill] sm:$0xff] }
 0x389   :  { %v5489_v62 = vadd.f32 %v10621_v41, %v14453_v24  ;;  %v10623_v25 = vadd.f32 %v4899_v36, %v15606_v58  ;;  %8115 = vmatmul.mubr.bf16.gmra.mrb[248].mxu0 %v13915_v21  ;;  %7917 = vmatprep.subr.bf16.mxu1 %v11639_v11  ;;  %v11582_v36 = vld [vmem:[#allocation8 + $0x3cc] ss:$16 sps:$4 sm:$0xff]   ;;  %v11643_v11 = vld [vmem:[#allocation8 + $0x6a0] ss:$16 sps:$4 sm:$0xff]  }
 0x38a   :  { %v5744_v55 = vmul.f32 0.2, %v5488_v16  ;;  %v5496_v14 = vadd.f32 %v10622_v56, %v14450_v31  ;;  %7848 = vmatprep.mubr.bf16.mxu1 %v14507_v22  ;;  %8124 = vmatprep.mubr.bf16.mxu0 %v13957_v44  ;;  %vm5616_vm1 = vcmp.gt.f32.partialorder %v5488_v16, 0.0  ;;  %v11651_v44 = vld [vmem:[#allocation8 + $0x6c4] ss:$16 sps:$4 sm:$0xff]   ;;  %v15609_v58 = vld [vmem:[#allocation43_spill] sm:$0xff] }
 0x38b   :  { %v5745_v49 = vmul.f32 0.2, %v5489_v62  ;;  %v5497_v45 = vadd.f32 %v10623_v25, %v14453_v24  ;;  %7849 = vmatmul.mubr.bf16.gmra.mrb[168].mxu1 %v14503_v42  ;;  %8160 = vmatpush1.bf16.msra.mxu0 %v11574_v8  ;;  %vm5617_vm2 = vcmp.gt.f32.partialorder %v5489_v62, 0.0  ;;  %v11580_v56 = vld [vmem:[#allocation8 + $0x3c8] ss:$16 sps:$4 sm:$0xff]  }
 0x38c   :  { %vm5624_vm3 = vcmp.gt.f32.partialorder %v5496_v14, 0.0  ;;  %v5752_v21 = vmul.f32 0.2, %v5496_v14  ;;  %8161 = vmatprep.subr.bf16.mxu0 %v11579_v23  ;;  %7918 = vmatpush1.bf16.msra.mxu1 %v11637_v19  ;;  %v5872_v27 = vsel %vm5616_vm1, %v5488_v16, %v5744_v55  ;;  %v11585_v16 = vld [vmem:[#allocation8 + $0x3ec] ss:$16 sps:$4 sm:$0xff]  }
 0x38d   :  { %vm5625_vm4 = vcmp.gt.f32.partialorder %v5497_v45, 0.0  ;;  %v5753_v30 = vmul.f32 0.2, %v5497_v45  ;;  %v4903_v1 = vpop.f32.mrb[144].mxu1  ;;  %7919 = vmatprep.subr.bf16.mxu1 %v11645_v18  ;;  %v5873_v8 = vsel %vm5617_vm2, %v5489_v62, %v5745_v49  ;;  %v11649_v55 = vld [vmem:[#allocation8 + $0x6c0] ss:$16 sps:$4 sm:$0xff]  }
 0x38e   :  { %v10624_v0 = vadd.f32 %v4903_v1, %v15607_v26  ;;  %v4905_v12 = vpop.f32.mrb[145].mxu1  ;;  %v5880_v41 = vsel %vm5624_vm3, %v5496_v14, %v5752_v21  ;;  %v11657_v62 = vld [vmem:[#allocation8 + $0x6e4] ss:$16 sps:$4 sm:$0xff]   ;;  %v11588_v26 = vld [vmem:[#allocation8 + $0x40c] ss:$16 sps:$4 sm:$0xff]  }
 0x38f   :  { %v10625_v50 = vadd.f32 %v4905_v12, %v15608_v40  ;;  %v4907_v3 = vpop.f32.mrb[146].mxu1  ;;  %8162 = vmatpush1.bf16.msra.mxu0 %v11577_v7  ;;  %v5881_v60 = vsel %vm5625_vm4, %v5497_v45, %v5753_v30  ;;  %v14521_v23 = vpack.c.bf16 %v5880_v41, %v5872_v27  ;;  %v15610_v7 = vld [vmem:[#allocation44_spill] sm:$0xff]  ;;  %v11583_v30 = vld [vmem:[#allocation8 + $0x3e8] ss:$16 sps:$4 sm:$0xff]  }
 0x390   :  { %v5504_v19 = vadd.f32 %v10624_v0, %v14450_v31  ;;  %v10626_v25 = vadd.f32 %v4907_v3, %v15609_v58  ;;  %v4909_v18 = vpop.f32.mrb[147].mxu1  ;;  %v14525_v1 = vpack.c.bf16 %v5881_v60, %v5873_v8  ;;  %8163 = vmatprep.subr.bf16.mxu0 %v11582_v36  ;;  %7920 = vmatpush1.bf16.msra.mxu1 %v11643_v11  ;;  %v15611_v27 = vld [vmem:[#allocation116_spill] sm:$0xff]  ;;  %v15612_v8 = vld [vmem:[#allocation119_spill] sm:$0xff] }
 0x391   :  { %v5505_v14 = vadd.f32 %v10625_v50, %v14453_v24  ;;  %v10627_v21 = vadd.f32 %v4909_v18, %v15610_v7  ;;  %8125 = vmatmul.mubr.bf16.gmra.mrb[252].mxu0 %v13952_v10  ;;  %7921 = vmatprep.subr.bf16.mxu1 %v11651_v44  ;;  %v11655_v44 = vld [vmem:[#allocation8 + $0x6e0] ss:$16 sps:$4 sm:$0xff]  }
 0x392   :  { %v5760_v49 = vmul.f32 0.2, %v5504_v19  ;;  %v5512_v45 = vadd.f32 %v10626_v25, %v14450_v31  ;;  %7858 = vmatprep.mubr.bf16.mxu1 %v14525_v1  ;;  %8167 = vmatprep.mubr.bf16.mxu0 %v14159_v46  ;;  %vm5632_vm0 = vcmp.gt.f32.partialorder %v5504_v19, 0.0  ;;  %v11663_v46 = vld [vmem:[#allocation8 + $0x704] ss:$16 sps:$4 sm:$0xff]  }
 0x393   :  { %v5761_v36 = vmul.f32 0.2, %v5505_v14  ;;  %v5513_v11 = vadd.f32 %v10627_v21, %v14453_v24  ;;  %7859 = vmatmul.mubr.bf16.gmra.mrb[172].mxu1 %v14521_v23  ;;  %8164 = vmatpush1.bf16.msra.mxu0 %v11580_v56  ;;  %vm5633_vm5 = vcmp.gt.f32.partialorder %v5505_v14, 0.0 }
 0x394   :  { %vm5640_vm6 = vcmp.gt.f32.partialorder %v5512_v45, 0.0  ;;  %v5768_v10 = vmul.f32 0.2, %v5512_v45  ;;  %8165 = vmatprep.subr.bf16.mxu0 %v11585_v16  ;;  %7922 = vmatpush1.bf16.msra.mxu1 %v11649_v55  ;;  %v5888_v50 = vsel %vm5632_vm0, %v5504_v19, %v5760_v49  ;;  %v15613_v55 = vld [vmem:[#allocation121_spill] sm:$0xff]  ;;  %v11661_v19 = vld [vmem:[#allocation8 + $0x700] ss:$16 sps:$4 sm:$0xff]  }
 0x395   :  { %vm5641_vm7 = vcmp.gt.f32.partialorder %v5513_v11, 0.0  ;;  %v5769_v0 = vmul.f32 0.2, %v5513_v11  ;;  %v4913_v12 = vpop.f32.mrb[148].mxu1  ;;  %7923 = vmatprep.subr.bf16.mxu1 %v11657_v62  ;;  %v5889_v58 = vsel %vm5633_vm5, %v5505_v14, %v5761_v36  ;;  %v11669_v14 = vld [vmem:[#allocation8 + $0x724] ss:$16 sps:$4 sm:$0xff]  }
 0x396   :  { %v10628_v41 = vadd.f32 %v4913_v12, %v15611_v27  ;;  %v4915_v40 = vpop.f32.mrb[149].mxu1  ;;  %v5896_v3 = vsel %vm5640_vm6, %v5512_v45, %v5768_v10  ;;  %v11586_v12 = vld [vmem:[#allocation8 + $0x408] ss:$16 sps:$4 sm:$0xff]   ;;  %v11591_v10 = vld [vmem:[#allocation8 + $0x42c] ss:$16 sps:$4 sm:$0xff]  }
 0x397   :  { %v10629_v60 = vadd.f32 %v4915_v40, %v15612_v8  ;;  %v4917_v56 = vpop.f32.mrb[150].mxu1  ;;  %8166 = vmatpush1.bf16.msra.mxu0 %v11583_v30  ;;  %v5897_v25 = vsel %vm5641_vm7, %v5513_v11, %v5769_v0  ;;  %v14539_v18 = vpack.c.bf16 %v5896_v3, %v5888_v50  ;;  %v15614_v45 = vld [vmem:[#allocation45_spill] sm:$0xff]  ;;  %v11667_v40 = vld [vmem:[#allocation8 + $0x720] ss:$16 sps:$4 sm:$0xff]  }
 0x398   :  { %v5520_v16 = vadd.f32 %v10628_v41, %v14450_v31  ;;  %v10630_v7 = vadd.f32 %v4917_v56, %v15613_v55  ;;  %v4919_v21 = vpop.f32.mrb[151].mxu1  ;;  %v14543_v62 = vpack.c.bf16 %v5897_v25, %v5889_v58  ;;  %8248 = vmatprep.subr.bf16.mxu0 %v11588_v26  ;;  %7924 = vmatpush1.bf16.msra.mxu1 %v11655_v44  ;;  %v11589_v0 = vld [vmem:[#allocation8 + $0x428] ss:$16 sps:$4 sm:$0xff]   ;;  %v15615_v44 = vld [vmem:[#allocation54_spill] sm:$0xff]  ;;  %v11594_v41 = vld [vmem:[#allocation8 + $0x44c] ss:$16 sps:$4 sm:$0xff]  }
 0x399   :  { %v5521_v49 = vadd.f32 %v10629_v60, %v14453_v24  ;;  %v10631_v30 = vadd.f32 %v4919_v21, %v15614_v45  ;;  %7925 = vmatprep.subr.bf16.mxu1 %v11663_v46  ;;  %v15616_v8 = vld [vmem:[#allocation46_spill] sm:$0xff]  ;;  %v15617_v55 = vld [vmem:[#allocation47_spill] sm:$0xff] }
 0x39a   :  { %v5776_v36 = vmul.f32 0.2, %v5520_v16  ;;  %v5528_v11 = vadd.f32 %v10630_v7, %v14450_v31  ;;  %7868 = vmatprep.mubr.bf16.mxu1 %v14543_v62  ;;  %8168 = vmatmul.mubr.bf16.vlgmr.msra.gmra.mrb[224].mxu0 %v14153_v47  ;;  %vm5648_vm8 = vcmp.gt.f32.partialorder %v5520_v16, 0.0  ;;  %v11675_v47 = vld [vmem:[#allocation8 + $0x744] ss:$16 sps:$4 sm:$0xff]  }
 0x39b   :  { %v5777_v27 = vmul.f32 0.2, %v5521_v49  ;;  %v5529_v26 = vadd.f32 %v10631_v30, %v14453_v24  ;;  %7869 = vmatmul.mubr.bf16.gmra.mrb[176].mxu1 %v14539_v18  ;;  %8177 = vmatprep.mubr.bf16.mxu0 %v15615_v44  ;;  %vm5649_vm9 = vcmp.gt.f32.partialorder %v5521_v49, 0.0  ;;  %v15618_v44 = vld [vmem:[#allocation48_spill] sm:$0xff] }
 0x39c   :  { %vm5656_vm10 = vcmp.gt.f32.partialorder %v5528_v11, 0.0  ;;  %v5784_v46 = vmul.f32 0.2, %v5528_v11  ;;  %8249 = vmatpush1.bf16.msra.mxu0 %v11586_v12  ;;  %7926 = vmatpush1.bf16.msra.mxu1 %v11661_v19  ;;  %v5904_v58 = vsel %vm5648_vm8, %v5520_v16, %v5776_v36  ;;  %v11673_v16 = vld [vmem:[#allocation8 + $0x740] ss:$16 sps:$4 sm:$0xff]  }
 0x39d   :  { %vm5657_vm11 = vcmp.gt.f32.partialorder %v5529_v26, 0.0  ;;  %v5785_v50 = vmul.f32 0.2, %v5529_v26  ;;  %v4923_v3 = vpop.f32.mrb[152].mxu1  ;;  %8250 = vmatprep.subr.bf16.mxu0 %v11591_v10  ;;  %7927 = vmatprep.subr.bf16.mxu1 %v11669_v14  ;;  %v5905_v45 = vsel %vm5649_vm9, %v5521_v49, %v5777_v27  ;;  %v11597_v49 = vld [vmem:[#allocation8 + $0x46c] ss:$16 sps:$4 sm:$0xff]  }
 0x39e   :  { %v10632_v60 = vadd.f32 %v4923_v3, %v15616_v8  ;;  %v4925_v56 = vpop.f32.mrb[153].mxu1  ;;  %v5912_v25 = vsel %vm5656_vm10, %v5528_v11, %v5784_v46  ;;  %v11592_v3 = vld [vmem:[#allocation8 + $0x448] ss:$16 sps:$4 sm:$0xff]   ;;  %v11681_v27 = vld [vmem:[#allocation8 + $0x764] ss:$16 sps:$4 sm:$0xff]  }
 0x39f   :  { %v10633_v7 = vadd.f32 %v4925_v56, %v15617_v55  ;;  %v4927_v21 = vpop.f32.mrb[154].mxu1  ;;  %v5913_v12 = vsel %vm5657_vm11, %v5529_v26, %v5785_v50  ;;  %v14557_v19 = vpack.c.bf16 %v5912_v25, %v5904_v58  ;;  %v15619_v11 = vld [vmem:[#allocation129_spill] sm:$0xff]  ;;  %v15621_v56 = vld [vmem:[#allocation55_spill] sm:$0xff]  ;;  %v11679_v58 = vld [vmem:[#allocation8 + $0x760] ss:$16 sps:$4 sm:$0xff]  }
 0x3a0   :  { %v5536_v30 = vadd.f32 %v10632_v60, %v14450_v31  ;;  %v10634_v10 = vadd.f32 %v4927_v21, %v15618_v44  ;;  %8251 = vmatpush1.bf16.msra.mxu0 %v11589_v0  ;;  %v4929_v14 = vpop.f32.mrb[155].mxu1  ;;  %v14561_v48 = vpack.c.bf16 %v5913_v12, %v5905_v45  ;;  %7928 = vmatpush1.bf16.msra.mxu1 %v11667_v40  ;;  %v15620_v0 = vld [vmem:[#allocation51_spill] sm:$0xff] }
 0x3a1   :  { %v5537_v36 = vadd.f32 %v10633_v7, %v14453_v24  ;;  %v10635_v46 = vadd.f32 %v4929_v14, %v15619_v11  ;;  %8252 = vmatprep.subr.bf16.mxu0 %v11594_v41  ;;  %7929 = vmatprep.subr.bf16.mxu1 %v11675_v47  ;;  %v11595_v8 = vld [vmem:[#allocation8 + $0x468] ss:$16 sps:$4 sm:$0xff]   ;;  %v11600_v41 = vld [vmem:[#allocation8 + $0x48c] ss:$16 sps:$4 sm:$0xff]   ;;  %v11687_v7 = vld [vmem:[#allocation8 + $0x784] ss:$16 sps:$4 sm:$0xff]  }
 0x3a2   :  { %v5792_v26 = vmul.f32 0.2, %v5536_v30  ;;  %v5544_v50 = vadd.f32 %v10634_v10, %v14450_v31  ;;  %7878 = vmatprep.mubr.bf16.mxu1 %v14561_v48  ;;  %8178 = vmatmul.mubr.bf16.gmra.mrb[228].mxu0 %v15620_v0  ;;  %vm5664_vm12 = vcmp.gt.f32.partialorder %v5536_v30, 0.0  ;;  %v15622_v21 = vld [vmem:[#allocation127_spill] sm:$0xff]  ;;  %v15623_v14 = vld [vmem:[#allocation130_spill] sm:$0xff] }
 0x3a3   :  { %v5793_v60 = vmul.f32 0.2, %v5537_v36  ;;  %v5545_v40 = vadd.f32 %v10635_v46, %v14453_v24  ;;  %7879 = vmatmul.mubr.bf16.gmra.mrb[180].mxu1 %v14557_v19  ;;  %8187 = vmatprep.mubr.bf16.mxu0 %v15621_v56  ;;  %vm5665_vm13 = vcmp.gt.f32.partialorder %v5537_v36, 0.0 }
 0x3a4   :  { %vm5672_vm14 = vcmp.gt.f32.partialorder %v5544_v50, 0.0  ;;  %v5800_v47 = vmul.f32 0.2, %v5544_v50  ;;  %8253 = vmatpush1.bf16.msra.mxu0 %v11592_v3  ;;  %7930 = vmatpush1.bf16.msra.mxu1 %v11673_v16  ;;  %v5920_v44 = vsel %vm5664_vm12, %v5536_v30, %v5792_v26  ;;  %v11685_v30 = vld [vmem:[#allocation8 + $0x780] ss:$16 sps:$4 sm:$0xff]  }
 0x3a5   :  { %vm5673_vm15 = vcmp.gt.f32.partialorder %v5545_v40, 0.0  ;;  %v5801_v25 = vmul.f32 0.2, %v5545_v40  ;;  %v4933_v55 = vpop.f32.mrb[156].mxu1  ;;  %8254 = vmatprep.subr.bf16.mxu0 %v11597_v49  ;;  %7931 = vmatprep.subr.bf16.mxu1 %v11681_v27  ;;  %v5921_v0 = vsel %vm5665_vm13, %v5537_v36, %v5793_v60  ;;  %v11603_v36 = vld [vmem:[#allocation8 + $0x4ac] ss:$16 sps:$4 sm:$0xff]  }
 0x3a6   :  { %v10636_v45 = vadd.f32 %v4933_v55, %v15622_v21  ;;  %v4935_v12 = vpop.f32.mrb[157].mxu1  ;;  %v5928_v10 = vsel %vm5672_vm14, %v5544_v50, %v5800_v47  ;;  %v11598_v55 = vld [vmem:[#allocation8 + $0x488] ss:$16 sps:$4 sm:$0xff]   ;;  %v11693_v60 = vld [vmem:[#allocation8 + $0x7a4] ss:$16 sps:$4 sm:$0xff]  }
 0x3a7   :  { %v10637_v11 = vadd.f32 %v4935_v12, %v15623_v14  ;;  %v4937_v46 = vpop.f32.mrb[158].mxu1  ;;  %v5929_v3 = vsel %vm5673_vm15, %v5545_v40, %v5801_v25  ;;  %v14575_v16 = vpack.c.bf16 %v5928_v10, %v5920_v44  ;;  %v15625_v50 = vld [vmem:[#allocation49_spill] sm:$0xff] }
 0x3a8   :  { %v5552_v56 = vadd.f32 %v10636_v45, %v14450_v31  ;;  %v10638_v49 = vadd.f32 %v4937_v46, %v15624_v29  ;;  %8255 = vmatpush1.bf16.msra.mxu0 %v11595_v8  ;;  %v4939_v27 = vpop.f32.mrb[159].mxu1  ;;  %v14579_v33 = vpack.c.bf16 %v5929_v3, %v5921_v0  ;;  %7932 = vmatpush1.bf16.msra.mxu1 %v11679_v58  ;;  %v11601_v29 = vld [vmem:[#allocation8 + $0x4a8] ss:$16 sps:$4 sm:$0xff]   ;;  %v11609_v46 = vld [vmem:[#allocation8 + $0x4ec] ss:$16 sps:$4 sm:$0xff]  }
 0x3a9   :  { %v5553_v26 = vadd.f32 %v10637_v11, %v14453_v24  ;;  %v10639_v47 = vadd.f32 %v4939_v27, %v15625_v50  ;;  %8256 = vmatprep.subr.bf16.mxu0 %v11600_v41  ;;  %7933 = vmatprep.subr.bf16.mxu1 %v11687_v7  ;;  %v11606_v41 = vld [vmem:[#allocation8 + $0x4cc] ss:$16 sps:$4 sm:$0xff]   ;;  %v11604_v14 = vld [vmem:[#allocation8 + $0x4c8] ss:$16 sps:$4 sm:$0xff]   ;;  %v11697_v11 = vld [vmem:[#allocation8 + $0x7c0] ss:$16 sps:$4 sm:$0xff]  }
 0x3aa   :  { %v5808_v40 = vmul.f32 0.2, %v5552_v56  ;;  %v5560_v25 = vadd.f32 %v10638_v49, %v14450_v31  ;;  %7888 = vmatprep.mubr.bf16.mxu1 %v14579_v33  ;;  %8188 = vmatmul.mubr.bf16.gmra.mrb[232].mxu0 %v14199_v20  ;;  %vm5680_vm1 = vcmp.gt.f32.partialorder %v5552_v56, 0.0  ;;  %v11691_v31 = vld [vmem:[#allocation8 + $0x7a0] ss:$16 sps:$4 sm:$0xff]  }
 0x3ab   :  { %v5809_v8 = vmul.f32 0.2, %v5553_v26  ;;  %v5561_v58 = vadd.f32 %v10639_v47, %v14453_v24  ;;  %7889 = vmatmul.mubr.bf16.gmra.mrb[184].mxu1 %v14575_v16  ;;  %8197 = vmatprep.mubr.bf16.mxu0 %v14225_v28  ;;  %vm5681_vm2 = vcmp.gt.f32.partialorder %v5553_v26, 0.0  ;;  %v11699_v20 = vld [vmem:[#allocation8 + $0x7c4] ss:$16 sps:$4 sm:$0xff]  }
 0x3ac   :  { %vm5688_vm3 = vcmp.gt.f32.partialorder %v5560_v25, 0.0  ;;  %v5816_v7 = vmul.f32 0.2, %v5560_v25  ;;  %8257 = vmatpush1.bf16.msra.mxu0 %v11598_v55  ;;  %7934 = vmatpush1.bf16.msra.mxu1 %v11685_v30  ;;  %v5936_v45 = vsel %vm5680_vm1, %v5552_v56, %v5808_v40  ;;  %v11705_v0 = vld [vmem:[#allocation8 + $0x7e4] ss:$16 sps:$4 sm:$0xff]  }
 0x3ad   :  { %vm5689_vm4 = vcmp.gt.f32.partialorder %v5561_v58, 0.0  ;;  %v5817_v21 = vmul.f32 0.2, %v5561_v58  ;;  %8258 = vmatprep.subr.bf16.mxu0 %v11603_v36  ;;  %7935 = vmatprep.subr.bf16.mxu1 %v11693_v60  ;;  %v5937_v24 = vsel %vm5681_vm2, %v5553_v26, %v5809_v8  ;;  %v11607_v3 = vld [vmem:[#allocation8 + $0x4e8] ss:$16 sps:$4 sm:$0xff]  }
 0x3ae   :  { %v5944_v12 = vsel %vm5688_vm3, %v5560_v25, %v5816_v7  ;;  %v11703_v56 = vld [vmem:[#allocation8 + $0x7e0] ss:$16 sps:$4 sm:$0xff]   ;;  %v11612_v49 = vld [vmem:[#allocation8 + $0x50c] ss:$16 sps:$4 sm:$0xff]   ;;  %v11610_v27 = vld [vmem:[#allocation8 + $0x508] ss:$16 sps:$4 sm:$0xff]  }
 0x3af   :  { %v5945_v44 = vsel %vm5689_vm4, %v5561_v58, %v5817_v21  ;;  %v14590_v10 = vpack.c.bf16 %v5944_v12, %v5936_v45  ;;  %v11618_v55 = vld [vmem:[#allocation8 + $0x52c] ss:$16 sps:$4 sm:$0xff]   ;;  %v11622_v30 = vld [vmem:[#allocation8 + $0x548] ss:$16 sps:$4 sm:$0xff]  }
 0x3b0   :  { %8259 = vmatpush1.bf16.msra.mxu0 %v11601_v29  ;;  %v14592_v28 = vpack.c.bf16 %v5945_v44, %v5937_v24  ;;  %7936 = vmatpush1.bf16.msra.mxu1 %v11691_v31  ;;  %v11630_v26 = vld [vmem:[#allocation8 + $0x56c] ss:$16 sps:$4 sm:$0xff]   ;;  %v11628_v50 = vld [vmem:[#allocation8 + $0x568] ss:$16 sps:$4 sm:$0xff]   ;;  %v5426_v31 = vsub.s32 7, %v13672_v39 }
 0x3b1   :  { %8260 = vmatprep.subr.bf16.mxu0 %v11606_v41  ;;  %7937 = vmatprep.subr.bf16.mxu1 %v11699_v20  ;;  %v11636_v47 = vld [vmem:[#allocation8 + $0x58c] ss:$16 sps:$4 sm:$0xff]   ;;  %v11640_v36 = vld [vmem:[#allocation8 + $0x5a8] ss:$16 sps:$4 sm:$0xff]  }
 0x3b2   :  { %7898 = vmatprep.mubr.bf16.mxu1 %v14592_v28  ;;  %8198 = vmatmul.mubr.bf16.gmra.mrb[236].mxu0 %v14221_v61  ;;  %v11616_v61 = vld [vmem:[#allocation8 + $0x528] ss:$16 sps:$4 sm:$0xff]   ;;  %v11648_v60 = vld [vmem:[#allocation8 + $0x5cc] ss:$16 sps:$4 sm:$0xff]  }
 0x3b3   :  { %7899 = vmatmul.mubr.bf16.gmra.mrb[188].mxu1 %v14590_v10  ;;  %8207 = vmatprep.mubr.bf16.mxu0 %v14245_v5  ;;  %v11624_v5 = vld [vmem:[#allocation8 + $0x54c] ss:$16 sps:$4 sm:$0xff]   ;;  %v11732_v40 = vld [vmem:[#allocation11 + $0x4] ss:$8 sps:$4 sm:$0xff]  }
 0x3b4   :  { %8261 = vmatpush1.bf16.msra.mxu0 %v11604_v14  ;;  %7938 = vmatpush1.bf16.msra.mxu1 %v11697_v11  ;;  %v11652_v25 = vld [vmem:[#allocation8 + $0x5e8] ss:$16 sps:$4 sm:$0xff]   ;;  %v11660_v29 = vld [vmem:[#allocation8 + $0x60c] ss:$16 sps:$4 sm:$0xff]  }
 0x3b5   :  { %8262 = vmatprep.subr.bf16.mxu0 %v11609_v46  ;;  %7939 = vmatprep.subr.bf16.mxu1 %v11705_v0  ;;  %v11664_v8 = vld [vmem:[#allocation8 + $0x628] ss:$16 sps:$4 sm:$0xff]   ;;  %v11678_v58 = vld [vmem:[#allocation8 + $0x66c] ss:$16 sps:$4 sm:$0xff]  }
 0x3b6   :  { %v11676_v41 = vld [vmem:[#allocation8 + $0x668] ss:$16 sps:$4 sm:$0xff]   ;;  %v11684_v7 = vld [vmem:[#allocation8 + $0x68c] ss:$16 sps:$4 sm:$0xff]  }
 0x3b7   :  { %v11690_v21 = vld [vmem:[#allocation8 + $0x6ac] ss:$16 sps:$4 sm:$0xff]   ;;  %v11688_v45 = vld [vmem:[#allocation8 + $0x6a8] ss:$16 sps:$4 sm:$0xff]  }
 0x3b8   :  { %8263 = vmatpush1.bf16.msra.mxu0 %v11607_v3  ;;  %7940 = vmatpush1.bf16.msra.mxu1 %v11703_v56  ;;  %v11696_v44 = vld [vmem:[#allocation8 + $0x6cc] ss:$16 sps:$4 sm:$0xff]   ;;  %v11694_v3 = vld [vmem:[#allocation8 + $0x6c8] ss:$16 sps:$4 sm:$0xff]  }
 0x3b9   :  { %8264 = vmatprep.subr.bf16.mxu0 %v11612_v49  ;;  %9094 = vmatprep.subr.bf16.mxu1 %v11732_v40  ;;  %v11702_v49 = vld [vmem:[#allocation8 + $0x6ec] ss:$16 sps:$4 sm:$0xff]  }
 0x3ba   :  { %8208 = vmatmul.mubr.bf16.gmra.mrb[240].mxu0 %v14241_v54  ;;  %v11634_v54 = vld [vmem:[#allocation8 + $0x588] ss:$16 sps:$4 sm:$0xff]  }
 0x3bb   :  { %8217 = vmatprep.mubr.bf16.mxu0 %v14267_v51  ;;  %v11642_v51 = vld [vmem:[#allocation8 + $0x5ac] ss:$16 sps:$4 sm:$0xff]  }
 0x3bc   :  { %8265 = vmatpush1.bf16.msra.mxu0 %v11610_v27 }
 0x3bd   :  { %8266 = vmatprep.subr.bf16.mxu0 %v11618_v55 }
 0x3c0   :  { %8267 = vmatpush1.bf16.msra.mxu0 %v11616_v61  ;;  %v11700_v61 = vld [vmem:[#allocation8 + $0x6e8] ss:$16 sps:$4 sm:$0xff]  }
 0x3c1   :  { %8268 = vmatprep.subr.bf16.mxu0 %v11624_v5 }
 0x3c2   :  { %8218 = vmatmul.mubr.bf16.gmra.mrb[244].mxu0 %v14263_v35  ;;  %v11646_v35 = vld [vmem:[#allocation8 + $0x5c8] ss:$16 sps:$4 sm:$0xff]  }
 0x3c3   :  { %8227 = vmatprep.mubr.bf16.mxu0 %v14289_v9  ;;  %v11654_v9 = vld [vmem:[#allocation8 + $0x5ec] ss:$16 sps:$4 sm:$0xff]  }
 0x3c4   :  { %8269 = vmatpush1.bf16.msra.mxu0 %v11622_v30 }
 0x3c5   :  { %8270 = vmatprep.subr.bf16.mxu0 %v11630_v26 }
 0x3c8   :  { %8271 = vmatpush1.bf16.msra.mxu0 %v11628_v50 }
 0x3c9   :  { %8272 = vmatprep.subr.bf16.mxu0 %v11636_v47  ;;  %v11708_v47 = vld [vmem:[#allocation8 + $0x70c] ss:$16 sps:$4 sm:$0xff]  }
 0x3ca   :  { %8228 = vmatmul.mubr.bf16.gmra.mrb[248].mxu0 %v14285_v52  ;;  %v11658_v52 = vld [vmem:[#allocation8 + $0x608] ss:$16 sps:$4 sm:$0xff]  }
 0x3cb   :  { %8237 = vmatprep.mubr.bf16.mxu0 %v14316_v37  ;;  %v11666_v37 = vld [vmem:[#allocation8 + $0x62c] ss:$16 sps:$4 sm:$0xff]  }
 0x3cc   :  { %8273 = vmatpush1.bf16.msra.mxu0 %v11634_v54 }
 0x3cd   :  { %8274 = vmatprep.subr.bf16.mxu0 %v11642_v51 }
 0x3d0   :  { %8275 = vmatpush1.bf16.msra.mxu0 %v11640_v36 }
 0x3d1   :  { %8276 = vmatprep.subr.bf16.mxu0 %v11648_v60 }
 0x3d2   :  { %8238 = vmatmul.mubr.bf16.gmra.mrb[252].mxu0 %v14311_v57  ;;  %v11672_v57 = vld [vmem:[#allocation8 + $0x64c] ss:$16 sps:$4 sm:$0xff]  }
 0x3d3   :  { %8280 = vmatprep.mubr.bf16.mxu0 %v14471_v2  ;;  %v11670_v2 = vld [vmem:[#allocation8 + $0x648] ss:$16 sps:$4 sm:$0xff]  }
 0x3d4   :  { %8277 = vmatpush1.bf16.msra.mxu0 %v11646_v35  ;;  %v15626_v35 = vld [vmem:[#allocation141_spill] sm:$0xff] }
 0x3d5   :  { %8278 = vmatprep.subr.bf16.mxu0 %v11654_v9 }
 0x3d8   :  { %8279 = vmatpush1.bf16.msra.mxu0 %v11652_v25 }
 0x3d9   :  { %8361 = vmatprep.subr.bf16.mxu0 %v11660_v29 }
 0x3db   :  { %8281 = vmatmul.mubr.bf16.vlgmr.msra.gmra.mrb[224].mxu0 %v14466_v13  ;;  %v5422_v13 = vsub.s32 6, %v13672_v39 }
 0x3dc   :  { %8290 = vmatprep.mubr.bf16.mxu0 %v14489_v6  ;;  %8362 = vmatpush1.bf16.msra.mxu0 %v11658_v52  ;;  %v11682_v6 = vld [vmem:[#allocation8 + $0x688] ss:$16 sps:$4 sm:$0xff]  }
 0x3dd   :  { %8363 = vmatprep.subr.bf16.mxu0 %v11666_v37  ;;  %v14614_v20 = vrot.slane %v14447_v4, %v5422_v13  ;;  %v15627_v52 = vld [vmem:[#allocation139_spill] sm:$0xff] }
 0x3de   :  { %v11709_v13 = vld [vmem:[#allocation8 + $0x728] ss:$16 sps:$4 sm:$0xff]  }
 0x3e0   :  { %8364 = vmatpush1.bf16.msra.mxu0 %v11664_v8  ;;  %v11706_v8 = vld [vmem:[#allocation8 + $0x708] ss:$16 sps:$4 sm:$0xff]  }
 0x3e1   :  { %8365 = vmatprep.subr.bf16.mxu0 %v11672_v57 }
 0x3e3   :  { %8291 = vmatmul.mubr.bf16.gmra.mrb[228].mxu0 %v14485_v32 }
 0x3e4   :  { %8300 = vmatprep.mubr.bf16.mxu0 %v14507_v22  ;;  %8366 = vmatpush1.bf16.msra.mxu0 %v11670_v2  ;;  %v14618_v22 = vrot.slane %v14447_v4, %v5426_v31  ;;  %v11711_v2 = vld [vmem:[#allocation8 + $0x72c] ss:$16 sps:$4 sm:$0xff]  }
 0x3e5   :  { %8367 = vmatprep.subr.bf16.mxu0 %v11678_v58  ;;  %v11735_v58 = vld [vmem:[#allocation11 + $0x14] ss:$8 sps:$4 sm:$0xff]   ;;  %v11733_v31 = vld [vmem:[#allocation11 + $0x10] ss:$8 sps:$4 sm:$0xff]  }
 0x3e8   :  { %8368 = vmatpush1.bf16.msra.mxu0 %v11676_v41 }
 0x3e9   :  { %8369 = vmatprep.subr.bf16.mxu0 %v11684_v7 }
 0x3eb   :  { %8301 = vmatmul.mubr.bf16.gmra.mrb[232].mxu0 %v14503_v42 }
 0x3ec   :  { %8310 = vmatprep.mubr.bf16.mxu0 %v14525_v1  ;;  %8370 = vmatpush1.bf16.msra.mxu0 %v11682_v6  ;;  %v5315_v32 = vpop.f32.mrb[192].mxu0 }
 0x3ed   :  { %v10640_v12 = vadd.f32 %v5315_v32, %v14303_v38  ;;  %v5317_v24 = vpop.f32.mrb[193].mxu0  ;;  %8371 = vmatprep.subr.bf16.mxu0 %v11690_v21 }
 0x3ee   :  { %v10641_v14 = vadd.f32 %v5317_v24, %v14307_v43  ;;  %v5319_v11 = vpop.f32.mrb[194].mxu0 }
 0x3ef   :  { %v5442_v42 = vadd.f32 %v10640_v12, %v14614_v20  ;;  %v10642_v46 = vadd.f32 %v5319_v11, %v14314_v63  ;;  %v5321_v0 = vpop.f32.mrb[195].mxu0  ;;  %v15628_v12 = vld [vmem:[#allocation142_spill] sm:$0xff] }
 0x3f0   :  { %v5443_v1 = vadd.f32 %v10641_v14, %v14618_v22  ;;  %8372 = vmatpush1.bf16.msra.mxu0 %v11688_v45  ;;  %v10643_v4 = vadd.f32 %v5321_v0, %v14319_v59  ;;  %v11738_v45 = vld [vmem:[#allocation11 + $0x24] ss:$8 sps:$4 sm:$0xff]   ;;  %v11714_v14 = vld [vmem:[#allocation8 + $0x74c] ss:$16 sps:$4 sm:$0xff]  }
 0x3f1   :  { %v5698_v56 = vmul.f32 0.2, %v5442_v42  ;;  %v5450_v38 = vadd.f32 %v10642_v46, %v14614_v20  ;;  %8373 = vmatprep.subr.bf16.mxu0 %v11696_v44  ;;  %vm5570_vm0 = vcmp.gt.f32.partialorder %v5442_v42, 0.0 }
 0x3f2   :  { %v5699_v27 = vmul.f32 0.2, %v5443_v1  ;;  %v5451_v43 = vadd.f32 %v10643_v4, %v14618_v22  ;;  %vm5571_vm5 = vcmp.gt.f32.partialorder %v5443_v1, 0.0 }
 0x3f3   :  { %vm5578_vm6 = vcmp.gt.f32.partialorder %v5450_v38, 0.0  ;;  %v5706_v55 = vmul.f32 0.2, %v5450_v38  ;;  %8311 = vmatmul.mubr.bf16.gmra.mrb[236].mxu0 %v14521_v23  ;;  %v5826_v5 = vsel %vm5570_vm0, %v5442_v42, %v5698_v56  ;;  %v15630_v56 = vld [vmem:[#allocation146_spill] sm:$0xff] }
 0x3f4   :  { %vm5579_vm7 = vcmp.gt.f32.partialorder %v5451_v43, 0.0  ;;  %v5707_v63 = vmul.f32 0.2, %v5451_v43  ;;  %8320 = vmatprep.mubr.bf16.mxu0 %v14543_v62  ;;  %8374 = vmatpush1.bf16.msra.mxu0 %v11694_v3  ;;  %v5325_v59 = vpop.f32.mrb[196].mxu0  ;;  %v5827_v23 = vsel %vm5571_vm5, %v5443_v1, %v5699_v27 }
 0x3f5   :  { %v5834_v30 = vsel %vm5578_vm6, %v5450_v38, %v5706_v55  ;;  %v10644_v26 = vadd.f32 %v5325_v59, %v14329_v53  ;;  %v5327_v50 = vpop.f32.mrb[197].mxu0  ;;  %8375 = vmatprep.subr.bf16.mxu0 %v11702_v49  ;;  %v11730_v53 = vld [vmem:[#allocation11] ss:$8 sps:$4 sm:$0xff]  }
 0x3f6   :  { %v14631_v54 = vpack.c.bf16 %v5834_v30, %v5826_v5  ;;  %v10645_v51 = vadd.f32 %v5327_v50, %v14332_v34  ;;  %v5329_v36 = vpop.f32.mrb[198].mxu0  ;;  %v5835_v60 = vsel %vm5579_vm7, %v5451_v43, %v5707_v63  ;;  %v11736_v43 = vld [vmem:[#allocation11 + $0x20] ss:$8 sps:$4 sm:$0xff]   ;;  %v11741_v50 = vld [vmem:[#allocation11 + $0x34] ss:$8 sps:$4 sm:$0xff]  }
 0x3f7   :  { %v5458_v62 = vadd.f32 %v10644_v26, %v14614_v20  ;;  %v10646_v9 = vadd.f32 %v5329_v36, %v15626_v35  ;;  %v5331_v40 = vpop.f32.mrb[199].mxu0  ;;  %v14638_v25 = vpack.c.bf16 %v5835_v60, %v5827_v23  ;;  %v15631_v63 = vld [vmem:[#allocation145_spill] sm:$0xff]  ;;  %v11739_v60 = vld [vmem:[#allocation11 + $0x30] ss:$8 sps:$4 sm:$0xff]  }
 0x3f8   :  { %v5459_v29 = vadd.f32 %v10645_v51, %v14618_v22  ;;  %8376 = vmatpush1.bf16.msra.mxu0 %v11700_v61  ;;  %v10647_v37 = vadd.f32 %v5331_v40, %v15627_v52  ;;  %v11712_v61 = vld [vmem:[#allocation8 + $0x748] ss:$16 sps:$4 sm:$0xff]   ;;  %v11717_v26 = vld [vmem:[#allocation8 + $0x76c] ss:$16 sps:$4 sm:$0xff]  }
 0x3f9   :  { %v5714_v34 = vmul.f32 0.2, %v5458_v62  ;;  %v5466_v57 = vadd.f32 %v10646_v9, %v14614_v20  ;;  %7941 = vmatprep.mubr.bf16.mxu1 %v14638_v25  ;;  %8377 = vmatprep.subr.bf16.mxu0 %v11708_v47  ;;  %vm5586_vm8 = vcmp.gt.f32.partialorder %v5458_v62, 0.0  ;;  %v11715_v36 = vld [vmem:[#allocation8 + $0x768] ss:$16 sps:$4 sm:$0xff]  }
 0x3fa   :  { %v5715_v41 = vmul.f32 0.2, %v5459_v29  ;;  %v5467_v7 = vadd.f32 %v10647_v37, %v14618_v22  ;;  %7942 = vmatmul.mubr.bf16.vlgmr.msra.gmra.mrb[160].mxu1 %v14631_v54  ;;  %vm5587_vm9 = vcmp.gt.f32.partialorder %v5459_v29, 0.0  ;;  %v11744_v9 = vld [vmem:[#allocation11 + $0x44] ss:$8 sps:$4 sm:$0xff]  }
 0x3fb   :  { %vm5594_vm10 = vcmp.gt.f32.partialorder %v5466_v57, 0.0  ;;  %v5722_v6 = vmul.f32 0.2, %v5466_v57  ;;  %8321 = vmatmul.mubr.bf16.gmra.mrb[240].mxu0 %v14539_v18  ;;  %9095 = vmatpush1.bf16.msra.mxu1 %v11730_v53  ;;  %v5842_v11 = vsel %vm5586_vm8, %v5458_v62, %v5714_v34  ;;  %v15629_v18 = vld [vmem:[#allocation144_spill] sm:$0xff] }
 0x3fc   :  { %vm5595_vm11 = vcmp.gt.f32.partialorder %v5467_v7, 0.0  ;;  %v5723_v21 = vmul.f32 0.2, %v5467_v7  ;;  %8330 = vmatprep.mubr.bf16.mxu0 %v14561_v48  ;;  %8378 = vmatpush1.bf16.msra.mxu0 %v11706_v8  ;;  %v5335_v32 = vpop.f32.mrb[200].mxu0  ;;  %v5843_v1 = vsel %vm5587_vm9, %v5459_v29, %v5715_v41  ;;  %v11720_v29 = vld [vmem:[#allocation8 + $0x78c] ss:$16 sps:$4 sm:$0xff]  }
 0x3fd   :  { %v10648_v24 = vadd.f32 %v5335_v32, %v15628_v12  ;;  %v5337_v44 = vpop.f32.mrb[201].mxu0  ;;  %8379 = vmatprep.subr.bf16.mxu0 %v11711_v2  ;;  %v5850_v42 = vsel %vm5594_vm10, %v5466_v57, %v5722_v6  ;;  %9096 = vmatprep.subr.bf16.mxu1 %v11735_v58  ;;  %v11742_v6 = vld [vmem:[#allocation11 + $0x40] ss:$8 sps:$4 sm:$0xff]  }
 0x3fe   :  { %v10649_v46 = vadd.f32 %v5337_v44, %v15629_v18  ;;  %v5339_v0 = vpop.f32.mrb[202].mxu0  ;;  %v5851_v48 = vsel %vm5595_vm11, %v5467_v7, %v5723_v21  ;;  %v14654_v4 = vpack.c.bf16 %v5850_v42, %v5842_v11  ;;  %v15634_v21 = vld [vmem:[#allocation149_spill] sm:$0xff] }
 0x3ff   :  { %v5474_v3 = vadd.f32 %v10648_v24, %v14614_v20  ;;  %v10650_v38 = vadd.f32 %v5339_v0, %v15630_v56  ;;  %v5341_v49 = vpop.f32.mrb[203].mxu0  ;;  %v14658_v27 = vpack.c.bf16 %v5851_v48, %v5843_v1  ;;  %9097 = vmatpush1.bf16.msra.mxu1 %v11733_v31  ;;  %v11723_v44 = vld [vmem:[#allocation8 + $0x7ac] ss:$16 sps:$4 sm:$0xff]   ;;  %v11721_v18 = vld [vmem:[#allocation8 + $0x7a8] ss:$16 sps:$4 sm:$0xff]  }
 0x400   :  { %v5475_v55 = vadd.f32 %v10649_v46, %v14618_v22  ;;  %8380 = vmatpush1.bf16.msra.mxu0 %v11709_v13  ;;  %v10651_v59 = vadd.f32 %v5341_v49, %v15631_v63  ;;  %9098 = vmatprep.subr.bf16.mxu1 %v11738_v45  ;;  %v11718_v45 = vld [vmem:[#allocation8 + $0x788] ss:$16 sps:$4 sm:$0xff]   ;;  %v11745_v0 = vld [vmem:[#allocation11 + $0x50] ss:$8 sps:$4 sm:$0xff]  }
 0x401   :  { %v5730_v5 = vmul.f32 0.2, %v5474_v3  ;;  %v5482_v30 = vadd.f32 %v10650_v38, %v14614_v20  ;;  %7951 = vmatprep.mubr.bf16.mxu1 %v14658_v27  ;;  %8381 = vmatprep.subr.bf16.mxu0 %v11714_v14  ;;  %vm5602_vm12 = vcmp.gt.f32.partialorder %v5474_v3, 0.0  ;;  %v11747_v14 = vld [vmem:[#allocation11 + $0x54] ss:$8 sps:$4 sm:$0xff]  }
 0x402   :  { %v5731_v47 = vmul.f32 0.2, %v5475_v55  ;;  %v5483_v51 = vadd.f32 %v10651_v59, %v14618_v22  ;;  %7952 = vmatmul.mubr.bf16.gmra.mrb[164].mxu1 %v14654_v4  ;;  %vm5603_vm13 = vcmp.gt.f32.partialorder %v5475_v55, 0.0  ;;  %v11726_v49 = vld [vmem:[#allocation8 + $0x7cc] ss:$16 sps:$4 sm:$0xff]  }
 0x403   :  { %vm5610_vm14 = vcmp.gt.f32.partialorder %v5482_v30, 0.0  ;;  %v5738_v23 = vmul.f32 0.2, %v5482_v30  ;;  %8331 = vmatmul.mubr.bf16.gmra.mrb[244].mxu0 %v14557_v19  ;;  %9099 = vmatpush1.bf16.msra.mxu1 %v11736_v43  ;;  %v5858_v52 = vsel %vm5602_vm12, %v5474_v3, %v5730_v5  ;;  %v15632_v19 = vld [vmem:[#allocation147_spill] sm:$0xff]  ;;  %v11750_v3 = vld [vmem:[#allocation11 + $0x64] ss:$8 sps:$4 sm:$0xff]  }
 0x404   :  { %vm5611_vm15 = vcmp.gt.f32.partialorder %v5483_v51, 0.0  ;;  %v5739_v62 = vmul.f32 0.2, %v5483_v51  ;;  %8340 = vmatprep.mubr.bf16.mxu0 %v14579_v33  ;;  %8382 = vmatpush1.bf16.msra.mxu0 %v11712_v61  ;;  %v5345_v35 = vpop.f32.mrb[204].mxu0  ;;  %v5859_v57 = vsel %vm5603_vm13, %v5475_v55, %v5731_v47 }
 0x405   :  { %v10652_v40 = vadd.f32 %v5345_v35, %v14367_v17  ;;  %v5347_v53 = vpop.f32.mrb[205].mxu0  ;;  %8383 = vmatprep.subr.bf16.mxu0 %v11717_v26  ;;  %v5866_v37 = vsel %vm5610_vm14, %v5482_v30, %v5738_v23  ;;  %9100 = vmatprep.subr.bf16.mxu1 %v11741_v50  ;;  %v15633_v17 = vld [vmem:[#allocation148_spill] sm:$0xff]  ;;  %v15637_v23 = vld [vmem:[#allocation62_spill] sm:$0xff] }
 0x406   :  { %v10653_v8 = vadd.f32 %v5347_v53, %v15632_v19  ;;  %v5349_v34 = vpop.f32.mrb[206].mxu0  ;;  %v5867_v33 = vsel %vm5611_vm15, %v5483_v51, %v5739_v62  ;;  %v14674_v2 = vpack.c.bf16 %v5866_v37, %v5858_v52  ;;  %v11748_v51 = vld [vmem:[#allocation11 + $0x60] ss:$8 sps:$4 sm:$0xff]   ;;  %v11724_v62 = vld [vmem:[#allocation8 + $0x7c8] ss:$16 sps:$4 sm:$0xff]  }
 0x407   :  { %v5490_v58 = vadd.f32 %v10652_v40, %v14614_v20  ;;  %v10654_v41 = vadd.f32 %v5349_v34, %v15633_v17  ;;  %v5351_v7 = vpop.f32.mrb[207].mxu0  ;;  %v14678_v13 = vpack.c.bf16 %v5867_v33, %v5859_v57  ;;  %9101 = vmatpush1.bf16.msra.mxu1 %v11739_v60  ;;  %v11729_v40 = vld [vmem:[#allocation8 + $0x7ec] ss:$16 sps:$4 sm:$0xff]   ;;  %v11753_v53 = vld [vmem:[#allocation11 + $0x74] ss:$8 sps:$4 sm:$0xff]  }
 0x408   :  { %v5491_v31 = vadd.f32 %v10653_v8, %v14618_v22  ;;  %8384 = vmatpush1.bf16.msra.mxu0 %v11715_v36  ;;  %v10655_v32 = vadd.f32 %v5351_v7, %v15634_v21  ;;  %9102 = vmatprep.subr.bf16.mxu1 %v11744_v9  ;;  %v11727_v37 = vld [vmem:[#allocation8 + $0x7e8] ss:$16 sps:$4 sm:$0xff]   ;;  %v11751_v8 = vld [vmem:[#allocation11 + $0x70] ss:$8 sps:$4 sm:$0xff]  }
 0x409   :  { %v5746_v12 = vmul.f32 0.2, %v5490_v58  ;;  %v5498_v24 = vadd.f32 %v10654_v41, %v14614_v20  ;;  %7961 = vmatprep.mubr.bf16.mxu1 %v14678_v13  ;;  %8385 = vmatprep.subr.bf16.mxu0 %v11720_v29  ;;  %vm5618_vm1 = vcmp.gt.f32.partialorder %v5490_v58, 0.0  ;;  %v11756_v33 = vld [vmem:[#allocation11 + $0x84] ss:$8 sps:$4 sm:$0xff]  }
 0x40a   :  { %v5747_v11 = vmul.f32 0.2, %v5491_v31  ;;  %v5499_v42 = vadd.f32 %v10655_v32, %v14618_v22  ;;  %7962 = vmatmul.mubr.bf16.gmra.mrb[168].mxu1 %v14674_v2  ;;  %vm5619_vm2 = vcmp.gt.f32.partialorder %v5491_v31, 0.0 }
 0x40b   :  { %vm5626_vm3 = vcmp.gt.f32.partialorder %v5498_v24, 0.0  ;;  %v5754_v46 = vmul.f32 0.2, %v5498_v24  ;;  %8341 = vmatmul.mubr.bf16.gmra.mrb[248].mxu0 %v14575_v16  ;;  %9103 = vmatpush1.bf16.msra.mxu1 %v11742_v6  ;;  %v5874_v43 = vsel %vm5618_vm1, %v5490_v58, %v5746_v12  ;;  %v15635_v16 = vld [vmem:[#allocation56_spill] sm:$0xff]  ;;  %v15638_v58 = vld [vmem:[#allocation63_spill] sm:$0xff] }
 0x40c   :  { %vm5627_vm4 = vcmp.gt.f32.partialorder %v5499_v42, 0.0  ;;  %v5755_v1 = vmul.f32 0.2, %v5499_v42  ;;  %8350 = vmatprep.mubr.bf16.mxu0 %v14592_v28  ;;  %8386 = vmatpush1.bf16.msra.mxu0 %v11718_v45  ;;  %v5355_v48 = vpop.f32.mrb[208].mxu0  ;;  %v5875_v61 = vsel %vm5619_vm2, %v5491_v31, %v5747_v11  ;;  %v15639_v31 = vld [vmem:[#allocation67_spill] sm:$0xff] }
 0x40d   :  { %v10656_v56 = vadd.f32 %v5355_v48, %v14386_v15  ;;  %v5357_v38 = vpop.f32.mrb[209].mxu0  ;;  %8387 = vmatprep.subr.bf16.mxu0 %v11723_v44  ;;  %v5882_v55 = vsel %vm5626_vm3, %v5498_v24, %v5754_v46  ;;  %9104 = vmatprep.subr.bf16.mxu1 %v11747_v14  ;;  %v15636_v15 = vld [vmem:[#allocation57_spill] sm:$0xff]  ;;  %v15640_v24 = vld [vmem:[#allocation68_spill] sm:$0xff] }
 0x40e   :  { %v10657_v63 = vadd.f32 %v5357_v38, %v15635_v16  ;;  %v5359_v59 = vpop.f32.mrb[210].mxu0  ;;  %v5883_v28 = vsel %vm5627_vm4, %v5499_v42, %v5755_v1  ;;  %v14694_v5 = vpack.c.bf16 %v5882_v55, %v5874_v43  ;;  %v11754_v42 = vld [vmem:[#allocation11 + $0x80] ss:$8 sps:$4 sm:$0xff]   ;;  %v11759_v1 = vld [vmem:[#allocation11 + $0x94] ss:$8 sps:$4 sm:$0xff]  }
 0x40f   :  { %v5506_v30 = vadd.f32 %v10656_v56, %v14614_v20  ;;  %v10658_v26 = vadd.f32 %v5359_v59, %v15636_v15  ;;  %v5361_v50 = vpop.f32.mrb[211].mxu0  ;;  %v14698_v47 = vpack.c.bf16 %v5883_v28, %v5875_v61  ;;  %9105 = vmatpush1.bf16.msra.mxu1 %v11745_v0  ;;  %v15641_v46 = vld [vmem:[#allocation73_spill] sm:$0xff]  ;;  %v11757_v43 = vld [vmem:[#allocation11 + $0x90] ss:$8 sps:$4 sm:$0xff]  }
 0x410   :  { %v5507_v36 = vadd.f32 %v10657_v63, %v14618_v22  ;;  %8388 = vmatpush1.bf16.msra.mxu0 %v11721_v18  ;;  %v10659_v60 = vadd.f32 %v5361_v50, %v15637_v23  ;;  %9106 = vmatprep.subr.bf16.mxu1 %v11750_v3  ;;  %v11762_v63 = vld [vmem:[#allocation11 + $0xa4] ss:$8 sps:$4 sm:$0xff]  }
 0x411   :  { %v5762_v35 = vmul.f32 0.2, %v5506_v30  ;;  %v5514_v9 = vadd.f32 %v10658_v26, %v14614_v20  ;;  %7971 = vmatprep.mubr.bf16.mxu1 %v14698_v47  ;;  %8389 = vmatprep.subr.bf16.mxu0 %v11726_v49  ;;  %vm5634_vm0 = vcmp.gt.f32.partialorder %v5506_v30, 0.0  ;;  %v15642_v59 = vld [vmem:[#allocation74_spill] sm:$0xff] }
 0x412   :  { %v5763_v29 = vmul.f32 0.2, %v5507_v36  ;;  %v5515_v52 = vadd.f32 %v10659_v60, %v14618_v22  ;;  %7972 = vmatmul.mubr.bf16.gmra.mrb[172].mxu1 %v14694_v5  ;;  %vm5635_vm5 = vcmp.gt.f32.partialorder %v5507_v36, 0.0  ;;  %v15643_v26 = vld [vmem:[#allocation78_spill] sm:$0xff] }
 0x413   :  { %vm5642_vm6 = vcmp.gt.f32.partialorder %v5514_v9, 0.0  ;;  %v5770_v19 = vmul.f32 0.2, %v5514_v9  ;;  %8351 = vmatmul.mubr.bf16.gmra.mrb[252].mxu0 %v14590_v10  ;;  %9107 = vmatpush1.bf16.msra.mxu1 %v11748_v51  ;;  %v5890_v7 = vsel %vm5634_vm0, %v5506_v30, %v5762_v35 }
 0x414   :  { %vm5643_vm7 = vcmp.gt.f32.partialorder %v5515_v52, 0.0  ;;  %v5771_v34 = vmul.f32 0.2, %v5515_v52  ;;  %8390 = vmatpush1.bf16.msra.mxu0 %v11724_v62  ;;  %8393 = vmatprep.mubr.bf16.mxu0 %v14638_v25  ;;  %v5365_v57 = vpop.f32.mrb[212].mxu0  ;;  %v5891_v32 = vsel %vm5635_vm5, %v5507_v36, %v5763_v29  ;;  %v15645_v29 = vld [vmem:[#allocation84_spill] sm:$0xff] }
 0x415   :  { %v10660_v17 = vadd.f32 %v5365_v57, %v15638_v58  ;;  %v5367_v41 = vpop.f32.mrb[213].mxu0  ;;  %8391 = vmatprep.subr.bf16.mxu0 %v11729_v40  ;;  %v5898_v6 = vsel %vm5642_vm6, %v5514_v9, %v5770_v19  ;;  %9108 = vmatprep.subr.bf16.mxu1 %v11753_v53  ;;  %v11760_v40 = vld [vmem:[#allocation11 + $0xa0] ss:$8 sps:$4 sm:$0xff]   ;;  %v11763_v58 = vld [vmem:[#allocation11 + $0xb0] ss:$8 sps:$4 sm:$0xff]  }
 0x416   :  { %v10661_v21 = vadd.f32 %v5367_v41, %v15639_v31  ;;  %v5369_v10 = vpop.f32.mrb[214].mxu0  ;;  %v5899_v45 = vsel %vm5643_vm7, %v5515_v52, %v5771_v34  ;;  %v14712_v12 = vpack.c.bf16 %v5898_v6, %v5890_v7  ;;  %v11768_v7 = vld [vmem:[#allocation11 + $0xc4] ss:$8 sps:$4 sm:$0xff]  }
 0x417   :  { %v5522_v25 = vadd.f32 %v10660_v17, %v14614_v20  ;;  %v10662_v44 = vadd.f32 %v5369_v10, %v15640_v24  ;;  %v5371_v14 = vpop.f32.mrb[215].mxu0  ;;  %v14716_v11 = vpack.c.bf16 %v5899_v45, %v5891_v32  ;;  %9109 = vmatpush1.bf16.msra.mxu1 %v11751_v8  ;;  %v15646_v6 = vld [vmem:[#allocation85_spill] sm:$0xff] }
 0x418   :  { %v5523_v18 = vadd.f32 %v10661_v21, %v14618_v22  ;;  %8392 = vmatpush1.bf16.msra.mxu0 %v11727_v37  ;;  %v10663_v0 = vadd.f32 %v5371_v14, %v15641_v46  ;;  %9110 = vmatprep.subr.bf16.mxu1 %v11756_v33  ;;  %v11765_v37 = vld [vmem:[#allocation11 + $0xb4] ss:$8 sps:$4 sm:$0xff]   ;;  %v15647_v45 = vld [vmem:[#allocation89_spill] sm:$0xff] }
 0x419   :  { %v5778_v48 = vmul.f32 0.2, %v5522_v25  ;;  %v5530_v3 = vadd.f32 %v10662_v44, %v14614_v20  ;;  %7981 = vmatprep.mubr.bf16.mxu1 %v14716_v11  ;;  %vm5650_vm8 = vcmp.gt.f32.partialorder %v5522_v25, 0.0 }
 0x41a   :  { %v5779_v56 = vmul.f32 0.2, %v5523_v18  ;;  %v5531_v38 = vadd.f32 %v10663_v0, %v14618_v22  ;;  %7982 = vmatmul.mubr.bf16.gmra.mrb[176].mxu1 %v14712_v12  ;;  %vm5651_vm9 = vcmp.gt.f32.partialorder %v5523_v18, 0.0 }
 0x41b   :  { %vm5658_vm10 = vcmp.gt.f32.partialorder %v5530_v3, 0.0  ;;  %v5786_v49 = vmul.f32 0.2, %v5530_v3  ;;  %8394 = vmatmul.mubr.bf16.vlgmr.msra.gmra.mrb[224].mxu0 %v14631_v54  ;;  %9111 = vmatpush1.bf16.msra.mxu1 %v11754_v42  ;;  %v5906_v30 = vsel %vm5650_vm8, %v5522_v25, %v5778_v48 }
 0x41c   :  { %vm5659_vm11 = vcmp.gt.f32.partialorder %v5531_v38, 0.0  ;;  %v5787_v55 = vmul.f32 0.2, %v5531_v38  ;;  %8403 = vmatprep.mubr.bf16.mxu0 %v14658_v27  ;;  %v5375_v16 = vpop.f32.mrb[216].mxu0  ;;  %9112 = vmatprep.subr.bf16.mxu1 %v11759_v1  ;;  %v5907_v54 = vsel %vm5651_vm9, %v5523_v18, %v5779_v56  ;;  %v15644_v27 = vld [vmem:[#allocation79_spill] sm:$0xff]  ;;  %v15648_v18 = vld [vmem:[#allocation90_spill] sm:$0xff] }
 0x41d   :  { %v10664_v61 = vadd.f32 %v5375_v16, %v15642_v59  ;;  %v5377_v28 = vpop.f32.mrb[217].mxu0  ;;  %v5914_v15 = vsel %vm5658_vm10, %v5530_v3, %v5786_v49  ;;  %v11766_v1 = vld [vmem:[#allocation11 + $0xc0] ss:$8 sps:$4 sm:$0xff]   ;;  %v15649_v3 = vld [vmem:[#allocation95_spill] sm:$0xff] }
 0x41e   :  { %v10665_v50 = vadd.f32 %v5377_v28, %v15643_v26  ;;  %v5379_v51 = vpop.f32.mrb[218].mxu0  ;;  %v5915_v36 = vsel %vm5659_vm11, %v5531_v38, %v5787_v55  ;;  %v14730_v23 = vpack.c.bf16 %v5914_v15, %v5906_v30  ;;  %v11772_v26 = vld [vmem:[#allocation11 + $0xe0] ss:$8 sps:$4 sm:$0xff]  }
 0x41f   :  { %v5538_v60 = vadd.f32 %v10664_v61, %v14614_v20  ;;  %v10666_v62 = vadd.f32 %v5379_v51, %v15644_v27  ;;  %v5381_v35 = vpop.f32.mrb[219].mxu0  ;;  %v14734_v9 = vpack.c.bf16 %v5915_v36, %v5907_v54  ;;  %9113 = vmatpush1.bf16.msra.mxu1 %v11757_v43  ;;  %v15650_v51 = vld [vmem:[#allocation35_spill] sm:$0xff]  ;;  %v15651_v36 = vld [vmem:[#allocation36_spill] sm:$0xff] }
 0x420   :  { %v5539_v53 = vadd.f32 %v10665_v50, %v14618_v22  ;;  %v10667_v52 = vadd.f32 %v5381_v35, %v15645_v29  ;;  %9114 = vmatprep.subr.bf16.mxu1 %v11762_v63  ;;  %v14761_v50 = vld [vmem:[#allocation10] sm:$0xf] }
 0x421   :  { %v5794_v19 = vmul.f32 0.2, %v5538_v60  ;;  %v5546_v8 = vadd.f32 %v10666_v62, %v14614_v20  ;;  %7991 = vmatprep.mubr.bf16.mxu1 %v14734_v9  ;;  %vm5666_vm12 = vcmp.gt.f32.partialorder %v5538_v60, 0.0  ;;  %v14765_v54 = vrot.slane %v14761_v50, %v15650_v51 }
 0x422   :  { %v5795_v34 = vmul.f32 0.2, %v5539_v53  ;;  %v5547_v57 = vadd.f32 %v10667_v52, %v14618_v22  ;;  %7992 = vmatmul.mubr.bf16.gmra.mrb[180].mxu1 %v14730_v23  ;;  %vm5667_vm13 = vcmp.gt.f32.partialorder %v5539_v53, 0.0 }
 0x423   :  { %vm5674_vm14 = vcmp.gt.f32.partialorder %v5546_v8, 0.0  ;;  %v5802_v33 = vmul.f32 0.2, %v5546_v8  ;;  %8404 = vmatmul.mubr.bf16.gmra.mrb[228].mxu0 %v14654_v4  ;;  %9115 = vmatpush1.bf16.msra.mxu1 %v11760_v40  ;;  %v5922_v10 = vsel %vm5666_vm12, %v5538_v60, %v5794_v19 }
 0x424   :  { %vm5675_vm15 = vcmp.gt.f32.partialorder %v5547_v57, 0.0  ;;  %v5803_v17 = vmul.f32 0.2, %v5547_v57  ;;  %8413 = vmatprep.mubr.bf16.mxu0 %v14678_v13  ;;  %v5385_v41 = vpop.f32.mrb[220].mxu0  ;;  %9116 = vmatprep.subr.bf16.mxu1 %v11765_v37  ;;  %v5923_v4 = vsel %vm5667_vm13, %v5539_v53, %v5795_v34 }
 0x425   :  { %v10668_v31 = vadd.f32 %v5385_v41, %v15646_v6  ;;  %v5387_v21 = vpop.f32.mrb[221].mxu0  ;;  %v5930_v32 = vsel %vm5674_vm14, %v5546_v8, %v5802_v33 }
 0x426   :  { %v10669_v25 = vadd.f32 %v5387_v21, %v15647_v45  ;;  %v5389_v24 = vpop.f32.mrb[222].mxu0  ;;  %v5931_v44 = vsel %vm5675_vm15, %v5547_v57, %v5803_v17  ;;  %v6002_v14 = vpack.c.bf16 %v5930_v32, %v5922_v10  ;;  %v11778_v21 = vld [vmem:[#allocation11 + $0x100] ss:$8 sps:$4 sm:$0xff]   ;;  %v11783_v45 = vld [vmem:[#allocation11 + $0x114] ss:$8 sps:$4 sm:$0xff]  }
 0x427   :  { %v5554_v42 = vadd.f32 %v10668_v31, %v14614_v20  ;;  %v10670_v13 = vadd.f32 %v5389_v24, %v15648_v18  ;;  %v5391_v46 = vpop.f32.mrb[223].mxu0  ;;  %v6003_v0 = vpack.c.bf16 %v5931_v44, %v5923_v4  ;;  %9117 = vmatpush1.bf16.msra.mxu1 %v11763_v58  ;;  %v11781_v18 = vld [vmem:[#allocation11 + $0x110] ss:$8 sps:$4 sm:$0xff]  }
 0x428   :  { %v5555_v48 = vadd.f32 %v10669_v25, %v14618_v22  ;;  %v10671_v56 = vadd.f32 %v5391_v46, %v15649_v3  ;;  %9118 = vmatprep.subr.bf16.mxu1 %v11768_v7  ;;  %v11786_v46 = vld [vmem:[#allocation11 + $0x124] ss:$8 sps:$4 sm:$0xff]  }
 0x429   :  { %v5810_v38 = vmul.f32 0.2, %v5554_v42  ;;  %v5562_v49 = vadd.f32 %v10670_v13, %v14614_v20  ;;  %8001 = vmatprep.mubr.bf16.mxu1 %v6003_v0  ;;  %vm5682_vm1 = vcmp.gt.f32.partialorder %v5554_v42, 0.0 }
 0x42a   :  { %v5811_v43 = vmul.f32 0.2, %v5555_v48  ;;  %v5563_v55 = vadd.f32 %v10671_v56, %v14618_v22  ;;  %8002 = vmatmul.mubr.bf16.gmra.mrb[184].mxu1 %v6002_v14  ;;  %vm5683_vm2 = vcmp.gt.f32.partialorder %v5555_v48, 0.0  ;;  %v11771_v22 = vld [vmem:[#allocation11 + $0xd4] ss:$8 sps:$4 sm:$0xff]  }
 0x42b   :  { %vm5690_vm3 = vcmp.gt.f32.partialorder %v5562_v49, 0.0  ;;  %v5818_v16 = vmul.f32 0.2, %v5562_v49  ;;  %8414 = vmatmul.mubr.bf16.gmra.mrb[232].mxu0 %v14674_v2  ;;  %9119 = vmatpush1.bf16.msra.mxu1 %v11766_v1  ;;  %v5938_v59 = vsel %vm5682_vm1, %v5554_v42, %v5810_v38  ;;  %v11769_v2 = vld [vmem:[#allocation11 + $0xd0] ss:$8 sps:$4 sm:$0xff]  }
 0x42c   :  { %vm5691_vm4 = vcmp.gt.f32.partialorder %v5563_v55, 0.0  ;;  %v5819_v63 = vmul.f32 0.2, %v5563_v55  ;;  %8423 = vmatprep.mubr.bf16.mxu0 %v14698_v47  ;;  %v5939_v28 = vsel %vm5683_vm2, %v5555_v48, %v5811_v43  ;;  %9120 = vmatprep.subr.bf16.mxu1 %v11771_v22  ;;  %v11774_v47 = vld [vmem:[#allocation11 + $0xe4] ss:$8 sps:$4 sm:$0xff]  }
 0x42d   :  { %v5946_v61 = vsel %vm5690_vm3, %v5562_v49, %v5818_v16  ;;  %v11784_v16 = vld [vmem:[#allocation11 + $0x120] ss:$8 sps:$4 sm:$0xff]  }
 0x42e   :  { %v5947_v20 = vsel %vm5691_vm4, %v5563_v55, %v5819_v63  ;;  %v6010_v30 = vpack.c.bf16 %v5946_v61, %v5938_v59  ;;  %v11789_v61 = vld [vmem:[#allocation11 + $0x134] ss:$8 sps:$4 sm:$0xff]  }
 0x42f   :  { %v6011_v15 = vpack.c.bf16 %v5947_v20, %v5939_v28  ;;  %9121 = vmatpush1.bf16.msra.mxu1 %v11769_v2 }
 0x430   :  { %9122 = vmatprep.subr.bf16.mxu1 %v11774_v47  ;;  %v11787_v47 = vld [vmem:[#allocation11 + $0x130] ss:$8 sps:$4 sm:$0xff]  }
 0x431   :  { %8011 = vmatprep.mubr.bf16.mxu1 %v6011_v15 }
 0x432   :  { %8012 = vmatmul.mubr.bf16.gmra.mrb[188].mxu1 %v6010_v30 }
 0x433   :  { %8424 = vmatmul.mubr.bf16.gmra.mrb[236].mxu0 %v14694_v5  ;;  %9123 = vmatpush1.bf16.msra.mxu1 %v11772_v26  ;;  %v11777_v5 = vld [vmem:[#allocation11 + $0xf4] ss:$8 sps:$4 sm:$0xff]  }
 0x434   :  { %8433 = vmatprep.mubr.bf16.mxu0 %v14716_v11  ;;  %v11775_v11 = vld [vmem:[#allocation11 + $0xf0] ss:$8 sps:$4 sm:$0xff]   ;;  %9124 = vmatprep.subr.bf16.mxu1 %v11777_v5  ;;  %v11792_v5 = vld [vmem:[#allocation11 + $0x144] ss:$8 sps:$4 sm:$0xff]  }
 0x437   :  { %9125 = vmatpush1.bf16.msra.mxu1 %v11775_v11 }
 0x43b   :  { %8434 = vmatmul.mubr.bf16.gmra.mrb[240].mxu0 %v14712_v12  ;;  %v11780_v12 = vld [vmem:[#allocation11 + $0x104] ss:$8 sps:$4 sm:$0xff]  }
 0x43c   :  { %8443 = vmatprep.mubr.bf16.mxu0 %v14734_v9  ;;  %9207 = vmatprep.subr.bf16.mxu1 %v11780_v12 }
 0x443   :  { %8444 = vmatmul.mubr.bf16.gmra.mrb[244].mxu0 %v14730_v23  ;;  %v14769_v23 = vrot.slane %v14761_v50, %v15651_v36 }
 0x444   :  { %8453 = vmatprep.mubr.bf16.mxu0 %v6003_v0 }
 0x44b   :  { %8454 = vmatmul.mubr.bf16.gmra.mrb[248].mxu0 %v6002_v14 }
 0x44c   :  { %8463 = vmatprep.mubr.bf16.mxu0 %v6011_v15 }
 0x453   :  { %8464 = vmatmul.mubr.bf16.gmra.mrb[252].mxu0 %v6010_v30 }
 0x4cd   :  { %v7943_v60 = vpop.f32.mrb[160].mxu1 }
 0x4ce   :  { %v10672_v27 = vadd.f32 %v7943_v60, %v14765_v54  ;;  %v7945_v62 = vpop.f32.mrb[161].mxu1 }
 0x4cf   :  { %v10673_v35 = vadd.f32 %v7945_v62, %v14769_v23  ;;  %v7947_v9 = vpop.f32.mrb[162].mxu1 }
 0x4d0   :  { %v8538_v40 = vmul.f32 0.2, %v10672_v27  ;;  %v10674_v53 = vadd.f32 %v7947_v9, %v14765_v54  ;;  %v7949_v29 = vpop.f32.mrb[163].mxu1  ;;  %vm8474_vm0 = vcmp.gt.f32.partialorder %v10672_v27, 0.0 }
 0x4d1   :  { %v8539_v52 = vmul.f32 0.2, %v10673_v35  ;;  %v10675_v37 = vadd.f32 %v7949_v29, %v14769_v23  ;;  %vm8475_vm5 = vcmp.gt.f32.partialorder %v10673_v35, 0.0  ;;  %v11790_v29 = vld [vmem:[#allocation11 + $0x140] ss:$8 sps:$4 sm:$0xff]  }
 0x4d2   :  { %vm8478_vm6 = vcmp.gt.f32.partialorder %v10674_v53, 0.0  ;;  %v8542_v19 = vmul.f32 0.2, %v10674_v53  ;;  %v8602_v34 = vsel %vm8474_vm0, %v10672_v27, %v8538_v40 }
 0x4d3   :  { %vm8479_vm7 = vcmp.gt.f32.partialorder %v10675_v37, 0.0  ;;  %v8543_v8 = vmul.f32 0.2, %v10675_v37  ;;  %v8603_v17 = vsel %vm8475_vm5, %v10673_v35, %v8539_v52 }
 0x4d4   :  { %v8606_v57 = vsel %vm8478_vm6, %v10674_v53, %v8542_v19  ;;  %v11795_v19 = vld [vmem:[#allocation11 + $0x154] ss:$8 sps:$4 sm:$0xff]  }
 0x4d5   :  { %v8666_v33 = vpack.c.bf16 %v8606_v57, %v8602_v34  ;;  %v7953_v58 = vpop.f32.mrb[164].mxu1  ;;  %v8607_v41 = vsel %vm8479_vm7, %v10675_v37, %v8543_v8 }
 0x4d6   :  { %v10676_v7 = vadd.f32 %v7953_v58, %v14765_v54  ;;  %v7955_v6 = vpop.f32.mrb[165].mxu1  ;;  %v8667_v31 = vpack.c.bf16 %v8607_v41, %v8603_v17  ;;  %v11793_v41 = vld [vmem:[#allocation11 + $0x150] ss:$8 sps:$4 sm:$0xff]  }
 0x4d7   :  { %v10677_v10 = vadd.f32 %v7955_v6, %v14769_v23  ;;  %v7957_v32 = vpop.f32.mrb[166].mxu1  ;;  %v15652_v6 = vsub.s32 2, %v13672_v39 }
 0x4d8   :  { %v8546_v25 = vmul.f32 0.2, %v10676_v7  ;;  %v10678_v24 = vadd.f32 %v7957_v32, %v14765_v54  ;;  %v7959_v4 = vpop.f32.mrb[167].mxu1  ;;  %9126 = vmatprep.mubr.bf16.mxu1 %v8667_v31  ;;  %vm8482_vm8 = vcmp.gt.f32.partialorder %v10676_v7, 0.0 }
 0x4d9   :  { %v8547_v44 = vmul.f32 0.2, %v10677_v10  ;;  %v10679_v14 = vadd.f32 %v7959_v4, %v14769_v23  ;;  %9127 = vmatmul.mubr.bf16.vlgmr.msra.gmra.mrb[192].mxu1 %v8666_v33  ;;  %vm8483_vm9 = vcmp.gt.f32.partialorder %v10677_v10, 0.0  ;;  %v14790_v31 = vrot.slane %v14761_v50, %v15652_v6  ;;  %v11805_v6 = vld [vmem:[#allocation11 + $0x190] ss:$8 sps:$4 sm:$0xff]  }
 0x4da   :  { %vm8486_vm10 = vcmp.gt.f32.partialorder %v10678_v24, 0.0  ;;  %v8550_v42 = vmul.f32 0.2, %v10678_v24  ;;  %9208 = vmatpush1.bf16.msra.mxu1 %v11778_v21  ;;  %v8610_v0 = vsel %vm8482_vm8, %v10676_v7, %v8546_v25  ;;  %v11798_v21 = vld [vmem:[#allocation11 + $0x164] ss:$8 sps:$4 sm:$0xff]  }
 0x4db   :  { %vm8487_vm11 = vcmp.gt.f32.partialorder %v10679_v14, 0.0  ;;  %v8551_v13 = vmul.f32 0.2, %v10679_v14  ;;  %9209 = vmatprep.subr.bf16.mxu1 %v11783_v45  ;;  %v8611_v3 = vsel %vm8483_vm9, %v10677_v10, %v8547_v44  ;;  %v15653_v10 = vsub.s32 3, %v13672_v39 }
 0x4dc   :  { %v8614_v1 = vsel %vm8486_vm10, %v10678_v24, %v8550_v42 }
 0x4dd   :  { %v7963_v48 = vpop.f32.mrb[168].mxu1  ;;  %v8615_v56 = vsel %vm8487_vm11, %v10679_v14, %v8551_v13  ;;  %v8670_v38 = vpack.c.bf16 %v8614_v1, %v8610_v0  ;;  %v14795_v32 = vrot.slane %v14761_v50, %v15653_v10  ;;  %v11796_v0 = vld [vmem:[#allocation11 + $0x160] ss:$8 sps:$4 sm:$0xff]   ;;  %v11810_v10 = vld [vmem:[#allocation11 + $0x1a4] ss:$8 sps:$4 sm:$0xff]  }
 0x4de   :  { %v10680_v49 = vadd.f32 %v7963_v48, %v14765_v54  ;;  %v7965_v43 = vpop.f32.mrb[169].mxu1  ;;  %9210 = vmatpush1.bf16.msra.mxu1 %v11781_v18  ;;  %v8671_v55 = vpack.c.bf16 %v8615_v56, %v8611_v3  ;;  %v11801_v3 = vld [vmem:[#allocation11 + $0x174] ss:$8 sps:$4 sm:$0xff]  }
 0x4df   :  { %v10681_v63 = vadd.f32 %v7965_v43, %v14769_v23  ;;  %v7967_v59 = vpop.f32.mrb[170].mxu1  ;;  %9211 = vmatprep.subr.bf16.mxu1 %v11786_v46 }
 0x4e0   :  { %v8554_v28 = vmul.f32 0.2, %v10680_v49  ;;  %v10682_v20 = vadd.f32 %v7967_v59, %v14765_v54  ;;  %v7969_v30 = vpop.f32.mrb[171].mxu1  ;;  %9136 = vmatprep.mubr.bf16.mxu1 %v8671_v55  ;;  %vm8490_vm12 = vcmp.gt.f32.partialorder %v10680_v49, 0.0  ;;  %v11799_v55 = vld [vmem:[#allocation11 + $0x170] ss:$8 sps:$4 sm:$0xff]  }
 0x4e1   :  { %v8555_v15 = vmul.f32 0.2, %v10681_v63  ;;  %v10683_v22 = vadd.f32 %v7969_v30, %v14769_v23  ;;  %9137 = vmatmul.mubr.bf16.gmra.mrb[196].mxu1 %v8670_v38  ;;  %vm8491_vm13 = vcmp.gt.f32.partialorder %v10681_v63, 0.0 }
 0x4e2   :  { %vm8494_vm14 = vcmp.gt.f32.partialorder %v10682_v20, 0.0  ;;  %v8558_v2 = vmul.f32 0.2, %v10682_v20  ;;  %9212 = vmatpush1.bf16.msra.mxu1 %v11784_v16  ;;  %v8618_v11 = vsel %vm8490_vm12, %v10680_v49, %v8554_v28 }
 0x4e3   :  { %vm8495_vm15 = vcmp.gt.f32.partialorder %v10683_v22, 0.0  ;;  %v8559_v26 = vmul.f32 0.2, %v10683_v22  ;;  %9213 = vmatprep.subr.bf16.mxu1 %v11789_v61  ;;  %v8619_v27 = vsel %vm8491_vm13, %v10681_v63, %v8555_v15 }
 0x4e4   :  { %v8622_v12 = vsel %vm8494_vm14, %v10682_v20, %v8558_v2 }
 0x4e5   :  { %v7973_v60 = vpop.f32.mrb[172].mxu1  ;;  %v8623_v62 = vsel %vm8495_vm15, %v10683_v22, %v8559_v26  ;;  %v8674_v35 = vpack.c.bf16 %v8622_v12, %v8618_v11  ;;  %v11804_v22 = vld [vmem:[#allocation11 + $0x184] ss:$8 sps:$4 sm:$0xff]  }
 0x4e6   :  { %v10684_v9 = vadd.f32 %v7973_v60, %v14765_v54  ;;  %v7975_v40 = vpop.f32.mrb[173].mxu1  ;;  %9214 = vmatpush1.bf16.msra.mxu1 %v11787_v47  ;;  %v8675_v53 = vpack.c.bf16 %v8623_v62, %v8619_v27 }
 0x4e7   :  { %v10685_v52 = vadd.f32 %v7975_v40, %v14769_v23  ;;  %v7977_v37 = vpop.f32.mrb[174].mxu1  ;;  %9215 = vmatprep.subr.bf16.mxu1 %v11792_v5  ;;  %v11802_v40 = vld [vmem:[#allocation11 + $0x180] ss:$8 sps:$4 sm:$0xff]  }
 0x4e8   :  { %v8562_v8 = vmul.f32 0.2, %v10684_v9  ;;  %v10686_v34 = vadd.f32 %v7977_v37, %v14765_v54  ;;  %v7979_v57 = vpop.f32.mrb[175].mxu1  ;;  %9146 = vmatprep.mubr.bf16.mxu1 %v8675_v53  ;;  %vm8498_vm1 = vcmp.gt.f32.partialorder %v10684_v9, 0.0 }
 0x4e9   :  { %v8563_v33 = vmul.f32 0.2, %v10685_v52  ;;  %v10687_v58 = vadd.f32 %v7979_v57, %v14769_v23  ;;  %9147 = vmatmul.mubr.bf16.gmra.mrb[200].mxu1 %v8674_v35  ;;  %vm8499_vm2 = vcmp.gt.f32.partialorder %v10685_v52, 0.0 }
 0x4ea   :  { %vm8502_vm3 = vcmp.gt.f32.partialorder %v10686_v34, 0.0  ;;  %v8566_v17 = vmul.f32 0.2, %v10686_v34  ;;  %9216 = vmatpush1.bf16.msra.mxu1 %v11790_v29  ;;  %v8626_v45 = vsel %vm8498_vm1, %v10684_v9, %v8562_v8 }
 0x4eb   :  { %vm8503_vm4 = vcmp.gt.f32.partialorder %v10687_v58, 0.0  ;;  %v8567_v7 = vmul.f32 0.2, %v10687_v58  ;;  %9217 = vmatprep.subr.bf16.mxu1 %v11795_v19  ;;  %v8627_v4 = vsel %vm8499_vm2, %v10685_v52, %v8563_v33 }
 0x4ec   :  { %v8630_v25 = vsel %vm8502_vm3, %v10686_v34, %v8566_v17  ;;  %v11807_v34 = vld [vmem:[#allocation11 + $0x194] ss:$8 sps:$4 sm:$0xff]  }
 0x4ed   :  { %v7983_v24 = vpop.f32.mrb[176].mxu1  ;;  %v8631_v44 = vsel %vm8503_vm4, %v10687_v58, %v8567_v7  ;;  %v8678_v14 = vpack.c.bf16 %v8630_v25, %v8626_v45 }
 0x4ee   :  { %v8395_v42 = vpop.f32.mrb[224].mxu0  ;;  %v10688_v18 = vadd.f32 %v7983_v24, %v14765_v54  ;;  %v7985_v13 = vpop.f32.mrb[177].mxu1  ;;  %9218 = vmatpush1.bf16.msra.mxu1 %v11793_v41  ;;  %v8679_v46 = vpack.c.bf16 %v8631_v44, %v8627_v4 }
 0x4ef   :  { %v10704_v1 = vadd.f32 %v8395_v42, %v14790_v31  ;;  %v8397_v48 = vpop.f32.mrb[225].mxu0  ;;  %v10689_v39 = vadd.f32 %v7985_v13, %v14769_v23  ;;  %v7987_v50 = vpop.f32.mrb[178].mxu1  ;;  %9219 = vmatprep.subr.bf16.mxu1 %v11798_v21 }
 0x4f0   :  { %v10705_v56 = vadd.f32 %v8397_v48, %v14795_v32  ;;  %v8399_v38 = vpop.f32.mrb[226].mxu0  ;;  %v10690_v49 = vadd.f32 %v7987_v50, %v14765_v54  ;;  %v7989_v43 = vpop.f32.mrb[179].mxu1  ;;  %9156 = vmatprep.mubr.bf16.mxu1 %v8679_v46  ;;  %vm8506_vm0 = vcmp.gt.f32.partialorder %v10688_v18, 0.0  ;;  %v8570_v59 = vmul.f32 0.2, %v10688_v18 }
 0x4f1   :  { %v8540_v16 = vmul.f32 0.2, %v10704_v1  ;;  %v8571_v63 = vmul.f32 0.2, %v10689_v39  ;;  %9157 = vmatmul.mubr.bf16.gmra.mrb[204].mxu1 %v8678_v14  ;;  %vm8476_vm5 = vcmp.gt.f32.partialorder %v10704_v1, 0.0  ;;  %vm8507_vm6 = vcmp.gt.f32.partialorder %v10689_v39, 0.0 }
 0x4f2   :  { %v10706_v61 = vadd.f32 %v8399_v38, %v14790_v31  ;;  %v8401_v28 = vpop.f32.mrb[227].mxu0  ;;  %9220 = vmatpush1.bf16.msra.mxu1 %v11796_v0  ;;  %vm8510_vm7 = vcmp.gt.f32.partialorder %v10690_v49, 0.0  ;;  %v8574_v20 = vmul.f32 0.2, %v10690_v49  ;;  %v10691_v15 = vadd.f32 %v7989_v43, %v14769_v23  ;;  %v11808_v0 = vld [vmem:[#allocation11 + $0x1a0] ss:$8 sps:$4 sm:$0xff]  }
 0x4f3   :  { %v10707_v30 = vadd.f32 %v8401_v28, %v14795_v32  ;;  %9221 = vmatprep.subr.bf16.mxu1 %v11801_v3  ;;  %vm8477_vm8 = vcmp.gt.f32.partialorder %v10705_v56, 0.0  ;;  %v8541_v2 = vmul.f32 0.2, %v10705_v56  ;;  %v14806_v26 = vsel %vm8476_vm5, %v10704_v1, %v8540_v16  ;;  %v11813_v3 = vld [vmem:[#allocation11 + $0x1b4] ss:$8 sps:$4 sm:$0xff]  }
 0x4f4   :  { %vm8480_vm9 = vcmp.gt.f32.partialorder %v10706_v61, 0.0  ;;  %v8544_v47 = vmul.f32 0.2, %v10706_v61  ;;  %vm8511_vm10 = vcmp.gt.f32.partialorder %v10691_v15, 0.0  ;;  %v8575_v5 = vmul.f32 0.2, %v10691_v15 }
 0x4f5   :  { %v8635_v11 = vsel %vm8507_vm6, %v10689_v39, %v8571_v63  ;;  %v8545_v60 = vmul.f32 0.2, %v10707_v30  ;;  %v7993_v62 = vpop.f32.mrb[180].mxu1  ;;  %v8634_v35 = vsel %vm8506_vm0, %v10688_v18, %v8570_v59  ;;  %v8638_v9 = vsel %vm8510_vm7, %v10690_v49, %v8574_v20 }
 0x4f6   :  { %v14809_v12 = vsel %vm8480_vm9, %v10706_v61, %v8544_v47  ;;  %v8405_v27 = vpop.f32.mrb[228].mxu0  ;;  %9222 = vmatpush1.bf16.msra.mxu1 %v11799_v55  ;;  %v10692_v52 = vadd.f32 %v7993_v62, %v14765_v54  ;;  %v7995_v19 = vpop.f32.mrb[181].mxu1  ;;  %v8639_v8 = vsel %vm8511_vm10, %v10691_v15, %v8575_v5  ;;  %v8682_v7 = vpack.c.bf16 %v8638_v9, %v8634_v35  ;;  %v11816_v35 = vld [vmem:[#allocation11 + $0x1c4] ss:$8 sps:$4 sm:$0xff]  }
 0x4f7   :  { %v8668_v53 = vpack.c.bf16 %v14809_v12, %v14806_v26  ;;  %v14816_v29 = vadd.f32 %v8405_v27, %v14790_v31  ;;  %v8407_v37 = vpop.f32.mrb[229].mxu0  ;;  %9223 = vmatprep.subr.bf16.mxu1 %v11804_v22  ;;  %v10693_v33 = vadd.f32 %v7995_v19, %v14769_v23  ;;  %v7997_v17 = vpop.f32.mrb[182].mxu1  ;;  %v8683_v41 = vpack.c.bf16 %v8639_v8, %v8635_v11 }
 0x4f8   :  { %v14821_v57 = vadd.f32 %v8407_v37, %v14795_v32  ;;  %v8409_v58 = vpop.f32.mrb[230].mxu0  ;;  %vm8481_vm11 = vcmp.gt.f32.partialorder %v10707_v30, 0.0  ;;  %v8578_v21 = vmul.f32 0.2, %v10692_v52  ;;  %v14825_v45 = vsel %vm8477_vm8, %v10705_v56, %v8541_v2  ;;  %v7999_v42 = vpop.f32.mrb[183].mxu1 }
 0x4f9   :  { %vm8484_vm12 = vcmp.gt.f32.partialorder %v14816_v29, 0.0  ;;  %vm8514_vm13 = vcmp.gt.f32.partialorder %v10692_v52, 0.0  ;;  %vm8515_vm14 = vcmp.gt.f32.partialorder %v10693_v33, 0.0  ;;  %v8579_v25 = vmul.f32 0.2, %v10693_v33  ;;  %9166 = vmatprep.mubr.bf16.mxu1 %v8683_v41  ;;  %v8411_v14 = vpop.f32.mrb[231].mxu0 }
 0x4fa   :  { %9224 = vmatpush1.bf16.msra.mxu1 %v11802_v40  ;;  %v8548_v24 = vmul.f32 0.2, %v14816_v29  ;;  %vm8485_vm15 = vcmp.gt.f32.partialorder %v14821_v57, 0.0  ;;  %v14831_v4 = vadd.f32 %v8409_v58, %v14790_v31  ;;  %v10694_v44 = vadd.f32 %v7997_v17, %v14765_v54 }
 0x4fb   :  { %9167 = vmatmul.mubr.bf16.gmra.mrb[208].mxu1 %v8682_v7  ;;  %9225 = vmatprep.subr.bf16.mxu1 %v11807_v34  ;;  %v8549_v18 = vmul.f32 0.2, %v14821_v57  ;;  %v10711_v13 = vadd.f32 %v8411_v14, %v14795_v32  ;;  %v10695_v46 = vadd.f32 %v7999_v42, %v14769_v23  ;;  %v14838_v1 = vsel %vm8481_vm11, %v10707_v30, %v8545_v60  ;;  %v11811_v60 = vld [vmem:[#allocation11 + $0x1b0] ss:$8 sps:$4 sm:$0xff]  }
 0x4fc   :  { %vm8518_vm1 = vcmp.gt.f32.partialorder %v10694_v44, 0.0  ;;  %v8582_v48 = vmul.f32 0.2, %v10694_v44  ;;  %v8643_v39 = vsel %vm8515_vm14, %v10693_v33, %v8579_v25  ;;  %v8642_v50 = vsel %vm8514_vm13, %v10692_v52, %v8578_v21  ;;  %v11819_v21 = vld [vmem:[#allocation11 + $0x1d4] ss:$8 sps:$4 sm:$0xff]  }
 0x4fd   :  { %vm8489_vm2 = vcmp.gt.f32.partialorder %v10711_v13, 0.0  ;;  %v8553_v56 = vmul.f32 0.2, %v10711_v13  ;;  %vm8519_vm3 = vcmp.gt.f32.partialorder %v10695_v46, 0.0  ;;  %v8583_v38 = vmul.f32 0.2, %v10695_v46 }
 0x4fe   :  { %9226 = vmatpush1.bf16.msra.mxu1 %v11805_v6  ;;  %vm8488_vm4 = vcmp.gt.f32.partialorder %v14831_v4, 0.0  ;;  %v8552_v49 = vmul.f32 0.2, %v14831_v4  ;;  %v8415_v43 = vpop.f32.mrb[232].mxu0  ;;  %v8003_v55 = vpop.f32.mrb[184].mxu1  ;;  %v8646_v16 = vsel %vm8518_vm1, %v10694_v44, %v8582_v48  ;;  %v8669_v63 = vpack.c.bf16 %v14838_v1, %v14825_v45 }
 0x4ff   :  { %9227 = vmatprep.subr.bf16.mxu1 %v11810_v10  ;;  %v14847_v59 = vadd.f32 %v8415_v43, %v14790_v31  ;;  %v10696_v61 = vadd.f32 %v8003_v55, %v14765_v54  ;;  %v8417_v28 = vpop.f32.mrb[233].mxu0  ;;  %v8005_v20 = vpop.f32.mrb[185].mxu1  ;;  %v8647_v30 = vsel %vm8519_vm3, %v10695_v46, %v8583_v38  ;;  %v8686_v15 = vpack.c.bf16 %v8646_v16, %v8642_v50  ;;  %v11814_v6 = vld [vmem:[#allocation11 + $0x1c0] ss:$8 sps:$4 sm:$0xff]   ;;  %v11817_v43 = vld [vmem:[#allocation11 + $0x1d0] ss:$8 sps:$4 sm:$0xff]  }
 0x500   :  { %v10713_v22 = vadd.f32 %v8417_v28, %v14795_v32  ;;  %v10697_v2 = vadd.f32 %v8005_v20, %v14769_v23  ;;  %v8419_v47 = vpop.f32.mrb[234].mxu0  ;;  %v8007_v5 = vpop.f32.mrb[186].mxu1  ;;  %v8687_v11 = vpack.c.bf16 %v8647_v30, %v8643_v39  ;;  %v14853_v27 = vsel %vm8489_vm2, %v10711_v13, %v8553_v56  ;;  %v11822_v55 = vld [vmem:[#allocation11 + $0x1e4] ss:$8 sps:$4 sm:$0xff]  }
 0x501   :  { %vm8522_vm0 = vcmp.gt.f32.partialorder %v10696_v61, 0.0  ;;  %v8586_v62 = vmul.f32 0.2, %v10696_v61  ;;  %v14858_v9 = vsel %vm8485_vm15, %v14821_v57, %v8549_v18  ;;  %v14863_v40 = vsel %vm8484_vm12, %v14816_v29, %v8548_v24  ;;  %v8421_v57 = vpop.f32.mrb[235].mxu0  ;;  %v8009_v33 = vpop.f32.mrb[187].mxu1 }
 0x502   :  { %9228 = vmatpush1.bf16.msra.mxu1 %v11808_v0  ;;  %v14866_v52 = vmul.f32 0.2, %v14847_v59  ;;  %vm8493_vm5 = vcmp.gt.f32.partialorder %v10713_v22, 0.0  ;;  %vm8523_vm6 = vcmp.gt.f32.partialorder %v10697_v2, 0.0  ;;  %v8587_v37 = vmul.f32 0.2, %v10697_v2  ;;  %9176 = vmatprep.mubr.bf16.mxu1 %v8687_v11 }
 0x503   :  { %9229 = vmatprep.subr.bf16.mxu1 %v11813_v3  ;;  %v8557_v19 = vmul.f32 0.2, %v10713_v22  ;;  %v14869_v8 = vadd.f32 %v8419_v47, %v14790_v31  ;;  %v10698_v34 = vadd.f32 %v8007_v5, %v14765_v54  ;;  %9177 = vmatmul.mubr.bf16.gmra.mrb[212].mxu1 %v8686_v15  ;;  %v8673_v29 = vpack.c.bf16 %v14853_v27, %v14858_v9 }
 0x504   :  { %vm8492_vm7 = vcmp.gt.f32.partialorder %v14847_v59, 0.0  ;;  %v14876_v58 = vadd.f32 %v8421_v57, %v14795_v32  ;;  %v10699_v17 = vadd.f32 %v8009_v33, %v14769_v23  ;;  %v14880_v7 = vsel %vm8522_vm0, %v10696_v61, %v8586_v62  ;;  %v11825_v33 = vld [vmem:[#allocation11 + $0x1f4] ss:$8 sps:$4 sm:$0xff]  }
 0x505   :  { %v8013_v41 = vpop.f32.mrb[188].mxu1  ;;  %v14885_v10 = vsel %vm8488_vm4, %v14831_v4, %v8552_v49  ;;  %v14888_v25 = vmul.f32 0.2, %v14869_v8  ;;  %vm8526_vm8 = vcmp.gt.f32.partialorder %v10698_v34, 0.0  ;;  %v8590_v24 = vmul.f32 0.2, %v10698_v34 }
 0x506   :  { %9230 = vmatpush1.bf16.msra.mxu1 %v11811_v60  ;;  %v8651_v44 = vsel %vm8523_vm6, %v10697_v2, %v8587_v37  ;;  %vm8497_vm9 = vcmp.gt.f32.partialorder %v14876_v58, 0.0  ;;  %v8561_v14 = vmul.f32 0.2, %v14876_v58  ;;  %vm8527_vm10 = vcmp.gt.f32.partialorder %v10699_v17, 0.0  ;;  %v8425_v18 = vpop.f32.mrb[236].mxu0  ;;  %v8015_v13 = vpop.f32.mrb[189].mxu1 }
 0x507   :  { %v8591_v42 = vmul.f32 0.2, %v10699_v17  ;;  %9231 = vmatprep.subr.bf16.mxu1 %v11816_v35  ;;  %vm8496_vm11 = vcmp.gt.f32.partialorder %v14869_v8, 0.0  ;;  %v10700_v4 = vadd.f32 %v8013_v41, %v14765_v54  ;;  %v8654_v46 = vsel %vm8526_vm8, %v10698_v34, %v8590_v24  ;;  %v8427_v50 = vpop.f32.mrb[237].mxu0  ;;  %v8017_v56 = vpop.f32.mrb[190].mxu1 }
 0x508   :  { %v8672_v0 = vpack.c.bf16 %v14885_v10, %v14863_v40  ;;  %v14898_v48 = vsel %vm8493_vm5, %v10713_v22, %v8557_v19  ;;  %v14901_v39 = vadd.f32 %v8425_v18, %v14790_v31  ;;  %v10701_v3 = vadd.f32 %v8015_v13, %v14769_v23  ;;  %v8429_v28 = vpop.f32.mrb[238].mxu0  ;;  %v8019_v30 = vpop.f32.mrb[191].mxu1  ;;  %v11820_v35 = vld [vmem:[#allocation11 + $0x1e0] ss:$8 sps:$4 sm:$0xff]  }
 0x509   :  { %v8655_v38 = vsel %vm8527_vm10, %v10699_v17, %v8591_v42  ;;  %v8690_v49 = vpack.c.bf16 %v8654_v46, %v14880_v7  ;;  %vm8530_vm12 = vcmp.gt.f32.partialorder %v10700_v4, 0.0  ;;  %v8594_v16 = vmul.f32 0.2, %v10700_v4  ;;  %v8431_v5 = vpop.f32.mrb[239].mxu0 }
 0x50a   :  { %v10717_v61 = vadd.f32 %v8427_v50, %v14795_v32  ;;  %v10702_v20 = vadd.f32 %v8017_v56, %v14765_v54  ;;  %9232 = vmatpush1.bf16.msra.mxu1 %v11814_v6  ;;  %vm8500_vm13 = vcmp.gt.f32.partialorder %v14901_v39, 0.0  ;;  %v8564_v15 = vmul.f32 0.2, %v14901_v39 }
 0x50b   :  { %vm8531_vm14 = vcmp.gt.f32.partialorder %v10701_v3, 0.0  ;;  %v8595_v22 = vmul.f32 0.2, %v10701_v3  ;;  %9233 = vmatprep.subr.bf16.mxu1 %v11819_v21  ;;  %v10718_v47 = vadd.f32 %v8429_v28, %v14790_v31  ;;  %v10719_v60 = vadd.f32 %v8431_v5, %v14795_v32 }
 0x50c   :  { %vm8501_vm15 = vcmp.gt.f32.partialorder %v10717_v61, 0.0  ;;  %v8565_v2 = vmul.f32 0.2, %v10717_v61  ;;  %vm8534_vm1 = vcmp.gt.f32.partialorder %v10702_v20, 0.0  ;;  %v8598_v11 = vmul.f32 0.2, %v10702_v20 }
 0x50d   :  { %v10703_v54 = vadd.f32 %v8019_v30, %v14769_v23  ;;  %v8691_v62 = vpack.c.bf16 %v8655_v38, %v8651_v44  ;;  %vm8504_vm2 = vcmp.gt.f32.partialorder %v10718_v47, 0.0  ;;  %v8568_v37 = vmul.f32 0.2, %v10718_v47 }
 0x50e   :  { %v8435_v19 = vpop.f32.mrb[240].mxu0  ;;  %9234 = vmatpush1.bf16.msra.mxu1 %v11817_v43  ;;  %v8659_v34 = vsel %vm8531_vm14, %v10701_v3, %v8595_v22  ;;  %v8658_v57 = vsel %vm8530_vm12, %v10700_v4, %v8594_v16  ;;  %vm8505_vm3 = vcmp.gt.f32.partialorder %v10719_v60, 0.0  ;;  %v8569_v17 = vmul.f32 0.2, %v10719_v60  ;;  %v11823_v3 = vld [vmem:[#allocation11 + $0x1f0] ss:$8 sps:$4 sm:$0xff]  }
 0x50f   :  { %vm8535_vm4 = vcmp.gt.f32.partialorder %v10703_v54, 0.0  ;;  %v8599_v41 = vmul.f32 0.2, %v10703_v54  ;;  %9186 = vmatprep.mubr.bf16.mxu1 %v8691_v62  ;;  %9235 = vmatprep.subr.bf16.mxu1 %v11822_v55  ;;  %v10720_v23 = vadd.f32 %v8435_v19, %v14790_v31  ;;  %v8437_v7 = vpop.f32.mrb[241].mxu0  ;;  %v8662_v6 = vsel %vm8534_vm1, %v10702_v20, %v8598_v11 }
 0x510   :  { %9187 = vmatmul.mubr.bf16.gmra.mrb[216].mxu1 %v8690_v49  ;;  %v14919_v21 = vsel %vm8497_vm9, %v14876_v58, %v8561_v14  ;;  %v14925_v24 = vsel %vm8492_vm7, %v14847_v59, %v14866_v52  ;;  %v10721_v44 = vadd.f32 %v8437_v7, %v14795_v32  ;;  %v8439_v42 = vpop.f32.mrb[242].mxu0  ;;  %v8694_v4 = vpack.c.bf16 %v8662_v6, %v8658_v57 }
 0x511   :  { %v8663_v18 = vsel %vm8535_vm4, %v10703_v54, %v8599_v41  ;;  %v8677_v13 = vpack.c.bf16 %v14919_v21, %v14898_v48  ;;  %vm8508_vm0 = vcmp.gt.f32.partialorder %v10720_v23, 0.0  ;;  %v8572_v46 = vmul.f32 0.2, %v10720_v23  ;;  %v8441_v58 = vpop.f32.mrb[243].mxu0 }
 0x512   :  { %v10722_v50 = vadd.f32 %v8439_v42, %v14790_v31  ;;  %v8695_v14 = vpack.c.bf16 %v8663_v18, %v8659_v34  ;;  %9236 = vmatpush1.bf16.msra.mxu1 %v11820_v35  ;;  %vm8509_vm5 = vcmp.gt.f32.partialorder %v10721_v44, 0.0  ;;  %v8573_v56 = vmul.f32 0.2, %v10721_v44 }
 0x513   :  { %v10723_v59 = vadd.f32 %v8441_v58, %v14795_v32  ;;  %9237 = vmatprep.subr.bf16.mxu1 %v11825_v33  ;;  %v14936_v52 = vsel %vm8496_vm11, %v14869_v8, %v14888_v25  ;;  %v14941_v43 = vsel %vm8501_vm15, %v10717_v61, %v8565_v2  ;;  %v14944_v16 = vsel %vm8505_vm3, %v10719_v60, %v8569_v17 }
 0x514   :  { %vm8512_vm6 = vcmp.gt.f32.partialorder %v10722_v50, 0.0  ;;  %v8576_v38 = vmul.f32 0.2, %v10722_v50  ;;  %9196 = vmatprep.mubr.bf16.mxu1 %v8695_v14  ;;  %v8676_v49 = vpack.c.bf16 %v14936_v52, %v14925_v24  ;;  %v14949_v28 = vsel %vm8500_vm13, %v14901_v39, %v8564_v15  ;;  %v9416_v24 = vld [vmem:[#allocation14] sm:$0x3] }
 0x515   :  { %vm8513_vm7 = vcmp.gt.f32.partialorder %v10723_v59, 0.0  ;;  %v8577_v55 = vmul.f32 0.2, %v10723_v59  ;;  %v8681_v25 = vpack.c.bf16 %v14944_v16, %v14941_v43  ;;  %v14954_v20 = vsel %vm8504_vm2, %v10718_v47, %v8568_v37 }
 0x516   :  { %v8445_v8 = vpop.f32.mrb[244].mxu0  ;;  %9238 = vmatpush1.bf16.msra.mxu1 %v11823_v3  ;;  %v14957_v61 = vsel %vm8509_vm5, %v10721_v44, %v8573_v56  ;;  %v14960_v30 = vsel %vm8508_vm0, %v10720_v23, %v8572_v46  ;;  %v8680_v39 = vpack.c.bf16 %v14954_v20, %v14949_v28  ;;  %v14968_v5 = vsel %vm8512_vm6, %v10722_v50, %v8576_v38 }
 0x517   :  { %v10724_v22 = vadd.f32 %v8445_v8, %v14790_v31  ;;  %v8447_v2 = vpop.f32.mrb[245].mxu0  ;;  %v14965_v15 = vsel %vm8513_vm7, %v10723_v59, %v8577_v55  ;;  %v8684_v54 = vpack.c.bf16 %v14968_v5, %v14960_v30  ;;  %v15024_v28 = vrot.slane %v9416_v24, %v15650_v51 }
 0x518   :  { %9197 = vmatmul.mubr.bf16.gmra.mrb[220].mxu1 %v8694_v4  ;;  %v10725_v47 = vadd.f32 %v8447_v2, %v14795_v32  ;;  %v8449_v11 = vpop.f32.mrb[246].mxu0  ;;  %v8685_v60 = vpack.c.bf16 %v14965_v15, %v14957_v61  ;;  %v15028_v30 = vrot.slane %v9416_v24, %v15651_v36 }
 0x519   :  { %9239 = vmatprep.mubr.bf16.mxu1 %v8669_v63  ;;  %v8580_v62 = vmul.f32 0.2, %v10724_v22  ;;  %v10726_v35 = vadd.f32 %v8449_v11, %v14790_v31  ;;  %v8451_v37 = vpop.f32.mrb[247].mxu0  ;;  %vm8516_vm8 = vcmp.gt.f32.partialorder %v10724_v22, 0.0 }
 0x51a   :  { %v8581_v19 = vmul.f32 0.2, %v10725_v47  ;;  %v10727_v34 = vadd.f32 %v8451_v37, %v14795_v32  ;;  %vm8517_vm9 = vcmp.gt.f32.partialorder %v10725_v47, 0.0 }
 0x51b   :  { %vm8520_vm10 = vcmp.gt.f32.partialorder %v10726_v35, 0.0  ;;  %v8584_v57 = vmul.f32 0.2, %v10726_v35  ;;  %v8644_v17 = vsel %vm8516_vm8, %v10724_v22, %v8580_v62 }
 0x51c   :  { %vm8521_vm11 = vcmp.gt.f32.partialorder %v10727_v34, 0.0  ;;  %v8585_v33 = vmul.f32 0.2, %v10727_v34  ;;  %v8645_v7 = vsel %vm8517_vm9, %v10725_v47, %v8581_v19 }
 0x51d   :  { %v8648_v41 = vsel %vm8520_vm10, %v10726_v35, %v8584_v57 }
 0x51e   :  { %v8455_v23 = vpop.f32.mrb[248].mxu0  ;;  %v8649_v6 = vsel %vm8521_vm11, %v10727_v34, %v8585_v33  ;;  %v8688_v45 = vpack.c.bf16 %v8648_v41, %v8644_v17 }
 0x51f   :  { %v10728_v1 = vadd.f32 %v8455_v23, %v14790_v31  ;;  %v8457_v63 = vpop.f32.mrb[249].mxu0  ;;  %v8689_v44 = vpack.c.bf16 %v8649_v6, %v8645_v7 }
 0x520   :  { %9240 = vmatmul.mubr.bf16.vlgmr.msra.gmra.mrb[192].mxu1 %v8668_v53  ;;  %v10729_v42 = vadd.f32 %v8457_v63, %v14795_v32  ;;  %v8459_v18 = vpop.f32.mrb[250].mxu0 }
 0x521   :  { %9249 = vmatprep.mubr.bf16.mxu1 %v8673_v29  ;;  %v8588_v4 = vmul.f32 0.2, %v10728_v1  ;;  %v10730_v46 = vadd.f32 %v8459_v18, %v14790_v31  ;;  %v8461_v50 = vpop.f32.mrb[251].mxu0  ;;  %vm8524_vm12 = vcmp.gt.f32.partialorder %v10728_v1, 0.0 }
 0x522   :  { %v8589_v58 = vmul.f32 0.2, %v10729_v42  ;;  %v10731_v14 = vadd.f32 %v8461_v50, %v14795_v32  ;;  %vm8525_vm13 = vcmp.gt.f32.partialorder %v10729_v42, 0.0 }
 0x523   :  { %vm8528_vm14 = vcmp.gt.f32.partialorder %v10730_v46, 0.0  ;;  %v8592_v3 = vmul.f32 0.2, %v10730_v46  ;;  %v8652_v12 = vsel %vm8524_vm12, %v10728_v1, %v8588_v4 }
 0x524   :  { %vm8529_vm15 = vcmp.gt.f32.partialorder %v10731_v14, 0.0  ;;  %v8593_v26 = vmul.f32 0.2, %v10731_v14  ;;  %v8653_v59 = vsel %vm8525_vm13, %v10729_v42, %v8589_v58 }
 0x525   :  { %v8656_v53 = vsel %vm8528_vm14, %v10730_v46, %v8592_v3 }
 0x526   :  { %v8465_v56 = vpop.f32.mrb[252].mxu0  ;;  %v8657_v38 = vsel %vm8529_vm15, %v10731_v14, %v8593_v26  ;;  %v8692_v27 = vpack.c.bf16 %v8656_v53, %v8652_v12 }
 0x527   :  { %v10732_v9 = vadd.f32 %v8465_v56, %v14790_v31  ;;  %v8467_v29 = vpop.f32.mrb[253].mxu0  ;;  %v8693_v55 = vpack.c.bf16 %v8657_v38, %v8653_v59 }
 0x528   :  { %9250 = vmatmul.mubr.bf16.gmra.mrb[196].mxu1 %v8672_v0  ;;  %v10733_v8 = vadd.f32 %v8467_v29, %v14795_v32  ;;  %v8469_v22 = vpop.f32.mrb[254].mxu0 }
 0x529   :  { %9259 = vmatprep.mubr.bf16.mxu1 %v8677_v13  ;;  %v8596_v2 = vmul.f32 0.2, %v10732_v9  ;;  %v10734_v47 = vadd.f32 %v8469_v22, %v14790_v31  ;;  %v8471_v11 = vpop.f32.mrb[255].mxu0  ;;  %vm8532_vm1 = vcmp.gt.f32.partialorder %v10732_v9, 0.0  ;;  %v8762_v31 = vld [vmem:[#allocation13] sm:$0x3] }
 0x52a   :  { %v8597_v62 = vmul.f32 0.2, %v10733_v8  ;;  %v10735_v35 = vadd.f32 %v8471_v11, %v14795_v32  ;;  %vm8533_vm2 = vcmp.gt.f32.partialorder %v10733_v8, 0.0  ;;  %v15016_v32 = vrot.slane %v8762_v31, %v15650_v51 }
 0x52b   :  { %vm8536_vm3 = vcmp.gt.f32.partialorder %v10734_v47, 0.0  ;;  %v8600_v37 = vmul.f32 0.2, %v10734_v47  ;;  %v8660_v10 = vsel %vm8532_vm1, %v10732_v9, %v8596_v2  ;;  %v15019_v21 = vrot.slane %v8762_v31, %v15651_v36 }
 0x52c   :  { %vm8537_vm4 = vcmp.gt.f32.partialorder %v10735_v35, 0.0  ;;  %v8601_v40 = vmul.f32 0.2, %v10735_v35  ;;  %v8661_v19 = vsel %vm8533_vm2, %v10733_v8, %v8597_v62 }
 0x52d   :  { %v8664_v0 = vsel %vm8536_vm3, %v10734_v47, %v8600_v37 }
 0x52e   :  { %v8665_v34 = vsel %vm8537_vm4, %v10735_v35, %v8601_v40  ;;  %v8696_v57 = vpack.c.bf16 %v8664_v0, %v8660_v10 }
 0x52f   :  { %v8697_v48 = vpack.c.bf16 %v8665_v34, %v8661_v19 }
 0x530   :  { %9260 = vmatmul.mubr.bf16.gmra.mrb[200].mxu1 %v8676_v49 }
 0x531   :  { %9269 = vmatprep.mubr.bf16.mxu1 %v8681_v25 }
 0x538   :  { %9270 = vmatmul.mubr.bf16.gmra.mrb[204].mxu1 %v8680_v39 }
 0x539   :  { %9279 = vmatprep.mubr.bf16.mxu1 %v8685_v60 }
 0x540   :  { %9280 = vmatmul.mubr.bf16.gmra.mrb[208].mxu1 %v8684_v54 }
 0x541   :  { %9289 = vmatprep.mubr.bf16.mxu1 %v8689_v44 }
 0x548   :  { %9290 = vmatmul.mubr.bf16.gmra.mrb[212].mxu1 %v8688_v45 }
 0x549   :  { %9299 = vmatprep.mubr.bf16.mxu1 %v8693_v55 }
 0x550   :  { %9300 = vmatmul.mubr.bf16.gmra.mrb[216].mxu1 %v8692_v27 }
 0x551   :  { %9309 = vmatprep.mubr.bf16.mxu1 %v8697_v48 }
 0x558   :  { %9310 = vmatmul.mubr.bf16.gmra.mrb[220].mxu1 %v8696_v57 }
 0x5f3   :  { %v9241_v13 = vpop.f32.mrb[192].mxu1 }
 0x5f4   :  { %v10736_v52 = vadd.f32 %v9241_v13, %v15016_v32  ;;  %v9243_v49 = vpop.f32.mrb[193].mxu1 }
 0x5f5   :  { %v10737_v43 = vadd.f32 %v9243_v49, %v15019_v21  ;;  %v9245_v16 = vpop.f32.mrb[194].mxu1 }
 0x5f6   :  { %vm9320_vm0 = vcmp.gt.f32.partialorder %v10736_v52, 0.0  ;;  %v9352_v25 = vmul.f32 0.2, %v10736_v52  ;;  %v10738_v20 = vadd.f32 %v9245_v16, %v15016_v32  ;;  %v9247_v61 = vpop.f32.mrb[195].mxu1 }
 0x5f7   :  { %vm9321_vm5 = vcmp.gt.f32.partialorder %v10737_v43, 0.0  ;;  %v9353_v39 = vmul.f32 0.2, %v10737_v43  ;;  %v10739_v15 = vadd.f32 %v9247_v61, %v15019_v21 }
 0x5f8   :  { %vm9322_vm6 = vcmp.gt.f32.partialorder %v10738_v20, 0.0  ;;  %v9354_v5 = vmul.f32 0.2, %v10738_v20  ;;  %v9384_v60 = vsel %vm9320_vm0, %v10736_v52, %v9352_v25 }
 0x5f9   :  { %vm9323_vm7 = vcmp.gt.f32.partialorder %v10739_v15, 0.0  ;;  %v9355_v54 = vmul.f32 0.2, %v10739_v15  ;;  %v9385_v33 = vsel %vm9321_vm5, %v10737_v43, %v9353_v39  ;;  %v9428_v51 = vmul.f32 %v15024_v28, %v9384_v60 }
 0x5fa   :  { %v9429_v17 = vmul.f32 %v15028_v30, %v9385_v33  ;;  %v9386_v41 = vsel %vm9322_vm6, %v10738_v20, %v9354_v5 }
 0x5fb   :  { %v9251_v23 = vpop.f32.mrb[196].mxu1  ;;  %v9387_v7 = vsel %vm9323_vm7, %v10739_v15, %v9355_v54  ;;  %v9430_v36 = vmul.f32 %v15024_v28, %v9386_v41 }
 0x5fc   :  { %v10740_v6 = vadd.f32 %v9251_v23, %v15016_v32  ;;  %v9253_v45 = vpop.f32.mrb[197].mxu1  ;;  %v9460_v1 = vadd.f32 %v9429_v17, %v9428_v51  ;;  %v9431_v63 = vmul.f32 %v15028_v30, %v9387_v7 }
 0x5fd   :  { %v10741_v44 = vadd.f32 %v9253_v45, %v15019_v21  ;;  %v9255_v42 = vpop.f32.mrb[198].mxu1 }
 0x5fe   :  { %vm9324_vm8 = vcmp.gt.f32.partialorder %v10740_v6, 0.0  ;;  %v9356_v18 = vmul.f32 0.2, %v10740_v6  ;;  %v10742_v4 = vadd.f32 %v9255_v42, %v15016_v32  ;;  %v9257_v46 = vpop.f32.mrb[199].mxu1  ;;  %9461 = vadd.xlane.f32.xlu0 %v9460_v1  ;;  %v9463_v50 = vadd.f32 %v9431_v63, %v9430_v36 }
 0x5ff   :  { %vm9325_vm9 = vcmp.gt.f32.partialorder %v10741_v44, 0.0  ;;  %v9357_v58 = vmul.f32 0.2, %v10741_v44  ;;  %v10743_v14 = vadd.f32 %v9257_v46, %v15019_v21 }
 0x600   :  { %vm9326_vm10 = vcmp.gt.f32.partialorder %v10742_v4, 0.0  ;;  %v9358_v3 = vmul.f32 0.2, %v10742_v4  ;;  %v9388_v26 = vsel %vm9324_vm8, %v10740_v6, %v9356_v18 }
 0x601   :  { %vm9327_vm11 = vcmp.gt.f32.partialorder %v10743_v14, 0.0  ;;  %v9359_v12 = vmul.f32 0.2, %v10743_v14  ;;  %v9389_v53 = vsel %vm9325_vm9, %v10741_v44, %v9357_v58  ;;  %v9432_v56 = vmul.f32 %v15024_v28, %v9388_v26 }
 0x602   :  { %9464 = vadd.xlane.f32.xlu0 %v9463_v50  ;;  %v9433_v59 = vmul.f32 %v15028_v30, %v9389_v53  ;;  %v9390_v38 = vsel %vm9326_vm10, %v10742_v4, %v9358_v3 }
 0x603   :  { %v9261_v27 = vpop.f32.mrb[200].mxu1  ;;  %v9391_v9 = vsel %vm9327_vm11, %v10743_v14, %v9359_v12  ;;  %v9434_v29 = vmul.f32 %v15024_v28, %v9390_v38 }
 0x604   :  { %v10744_v55 = vadd.f32 %v9261_v27, %v15016_v32  ;;  %v9263_v8 = vpop.f32.mrb[201].mxu1  ;;  %v9466_v22 = vadd.f32 %v9433_v59, %v9432_v56  ;;  %v9435_v2 = vmul.f32 %v15028_v30, %v9391_v9 }
 0x605   :  { %v10745_v47 = vadd.f32 %v9263_v8, %v15019_v21  ;;  %v9265_v11 = vpop.f32.mrb[202].mxu1 }
 0x606   :  { %vm9328_vm12 = vcmp.gt.f32.partialorder %v10744_v55, 0.0  ;;  %v9360_v62 = vmul.f32 0.2, %v10744_v55  ;;  %v10746_v35 = vadd.f32 %v9265_v11, %v15016_v32  ;;  %v9267_v37 = vpop.f32.mrb[203].mxu1  ;;  %9467 = vadd.xlane.f32.xlu1 %v9466_v22  ;;  %v9469_v40 = vadd.f32 %v9435_v2, %v9434_v29 }
 0x607   :  { %vm9329_vm13 = vcmp.gt.f32.partialorder %v10745_v47, 0.0  ;;  %v9361_v10 = vmul.f32 0.2, %v10745_v47  ;;  %v10747_v0 = vadd.f32 %v9267_v37, %v15019_v21 }
 0x608   :  { %vm9330_vm14 = vcmp.gt.f32.partialorder %v10746_v35, 0.0  ;;  %v9362_v19 = vmul.f32 0.2, %v10746_v35  ;;  %v9392_v34 = vsel %vm9328_vm12, %v10744_v55, %v9360_v62 }
 0x609   :  { %vm9331_vm15 = vcmp.gt.f32.partialorder %v10747_v0, 0.0  ;;  %v9363_v57 = vmul.f32 0.2, %v10747_v0  ;;  %v9393_v48 = vsel %vm9329_vm13, %v10745_v47, %v9361_v10  ;;  %v9436_v31 = vmul.f32 %v15024_v28, %v9392_v34 }
 0x60a   :  { %9470 = vadd.xlane.f32.xlu1 %v9469_v40  ;;  %v9437_v24 = vmul.f32 %v15028_v30, %v9393_v48  ;;  %v9394_v13 = vsel %vm9330_vm14, %v10746_v35, %v9362_v19 }
 0x60b   :  { %v9271_v52 = vpop.f32.mrb[204].mxu1  ;;  %v9395_v49 = vsel %vm9331_vm15, %v10747_v0, %v9363_v57  ;;  %v9438_v43 = vmul.f32 %v15024_v28, %v9394_v13 }
 0x60c   :  { %v10748_v16 = vadd.f32 %v9271_v52, %v15016_v32  ;;  %v9273_v25 = vpop.f32.mrb[205].mxu1  ;;  %v9472_v20 = vadd.f32 %v9437_v24, %v9436_v31  ;;  %v9439_v61 = vmul.f32 %v15028_v30, %v9395_v49 }
 0x60d   :  { %v10749_v39 = vadd.f32 %v9273_v25, %v15019_v21  ;;  %v9275_v15 = vpop.f32.mrb[206].mxu1 }
 0x60e   :  { %vm9332_vm1 = vcmp.gt.f32.partialorder %v10748_v16, 0.0  ;;  %v9364_v5 = vmul.f32 0.2, %v10748_v16  ;;  %v10750_v60 = vadd.f32 %v9275_v15, %v15016_v32  ;;  %v9277_v54 = vpop.f32.mrb[207].mxu1  ;;  %9473 = vadd.xlane.f32.xlu0 %v9472_v20  ;;  %v9475_v33 = vadd.f32 %v9439_v61, %v9438_v43 }
 0x60f   :  { %vm9333_vm2 = vcmp.gt.f32.partialorder %v10749_v39, 0.0  ;;  %v9365_v51 = vmul.f32 0.2, %v10749_v39  ;;  %v10751_v17 = vadd.f32 %v9277_v54, %v15019_v21 }
 0x610   :  { %vm9334_vm3 = vcmp.gt.f32.partialorder %v10750_v60, 0.0  ;;  %v9366_v41 = vmul.f32 0.2, %v10750_v60  ;;  %9476 = vadd.xlane.f32.xlu1 %v9475_v33  ;;  %v9396_v23 = vsel %vm9332_vm1, %v10748_v16, %v9364_v5 }
 0x611   :  { %vm9335_vm4 = vcmp.gt.f32.partialorder %v10751_v17, 0.0  ;;  %v9367_v7 = vmul.f32 0.2, %v10751_v17  ;;  %v9397_v36 = vsel %vm9333_vm2, %v10749_v39, %v9365_v51  ;;  %v9440_v6 = vmul.f32 %v15024_v28, %v9396_v23 }
 0x612   :  { %v9441_v45 = vmul.f32 %v15028_v30, %v9397_v36  ;;  %v9398_v1 = vsel %vm9334_vm3, %v10750_v60, %v9366_v41 }
 0x613   :  { %v9281_v63 = vpop.f32.mrb[208].mxu1  ;;  %v9399_v44 = vsel %vm9335_vm4, %v10751_v17, %v9367_v7  ;;  %v9442_v42 = vmul.f32 %v15024_v28, %v9398_v1 }
 0x614   :  { %v10752_v18 = vadd.f32 %v9281_v63, %v15016_v32  ;;  %v9283_v4 = vpop.f32.mrb[209].mxu1  ;;  %v9478_v46 = vadd.f32 %v9441_v45, %v9440_v6  ;;  %v9443_v50 = vmul.f32 %v15028_v30, %v9399_v44 }
 0x615   :  { %v10753_v58 = vadd.f32 %v9283_v4, %v15019_v21  ;;  %v9285_v14 = vpop.f32.mrb[210].mxu1 }
 0x616   :  { %vm9336_vm0 = vcmp.gt.f32.partialorder %v10752_v18, 0.0  ;;  %v9368_v3 = vmul.f32 0.2, %v10752_v18  ;;  %v10754_v26 = vadd.f32 %v9285_v14, %v15016_v32  ;;  %v9287_v12 = vpop.f32.mrb[211].mxu1  ;;  %9479 = vadd.xlane.f32.xlu0 %v9478_v46  ;;  %v9481_v53 = vadd.f32 %v9443_v50, %v9442_v42 }
 0x617   :  { %vm9337_vm5 = vcmp.gt.f32.partialorder %v10753_v58, 0.0  ;;  %v9369_v56 = vmul.f32 0.2, %v10753_v58  ;;  %v10755_v59 = vadd.f32 %v9287_v12, %v15019_v21 }
 0x618   :  { %vm9338_vm6 = vcmp.gt.f32.partialorder %v10754_v26, 0.0  ;;  %v9370_v38 = vmul.f32 0.2, %v10754_v26  ;;  %9482 = vadd.xlane.f32.xlu1 %v9481_v53  ;;  %v9400_v27 = vsel %vm9336_vm0, %v10752_v18, %v9368_v3  ;;  %vm9622_vm0 = vcmask 7168  }
 0x619   :  { %vm9339_vm7 = vcmp.gt.f32.partialorder %v10755_v59, 0.0  ;;  %v9371_v9 = vmul.f32 0.2, %v10755_v59  ;;  %v9401_v29 = vsel %vm9337_vm5, %v10753_v58, %v9369_v56  ;;  %v9444_v55 = vmul.f32 %v15024_v28, %v9400_v27 }
 0x61a   :  { %v9445_v8 = vmul.f32 %v15028_v30, %v9401_v29  ;;  %v9402_v22 = vsel %vm9338_vm6, %v10754_v26, %v9370_v38 }
 0x61b   :  { %v9291_v2 = vpop.f32.mrb[212].mxu1  ;;  %v9403_v47 = vsel %vm9339_vm7, %v10755_v59, %v9371_v9  ;;  %v9446_v11 = vmul.f32 %v15024_v28, %v9402_v22 }
 0x61c   :  { %v10756_v62 = vadd.f32 %v9291_v2, %v15016_v32  ;;  %v9293_v35 = vpop.f32.mrb[213].mxu1  ;;  %v9484_v37 = vadd.f32 %v9445_v8, %v9444_v55  ;;  %v9447_v40 = vmul.f32 %v15028_v30, %v9403_v47 }
 0x61d   :  { %v10757_v10 = vadd.f32 %v9293_v35, %v15019_v21  ;;  %v9295_v0 = vpop.f32.mrb[214].mxu1 }
 0x61e   :  { %vm9340_vm8 = vcmp.gt.f32.partialorder %v10756_v62, 0.0  ;;  %v9372_v19 = vmul.f32 0.2, %v10756_v62  ;;  %v10758_v34 = vadd.f32 %v9295_v0, %v15016_v32  ;;  %v9297_v57 = vpop.f32.mrb[215].mxu1  ;;  %9485 = vadd.xlane.f32.xlu0 %v9484_v37  ;;  %v9487_v48 = vadd.f32 %v9447_v40, %v9446_v11 }
 0x61f   :  { %vm9341_vm9 = vcmp.gt.f32.partialorder %v10757_v10, 0.0  ;;  %v9373_v31 = vmul.f32 0.2, %v10757_v10  ;;  %v10759_v24 = vadd.f32 %v9297_v57, %v15019_v21 }
 0x620   :  { %vm9342_vm10 = vcmp.gt.f32.partialorder %v10758_v34, 0.0  ;;  %v9374_v13 = vmul.f32 0.2, %v10758_v34  ;;  %9488 = vadd.xlane.f32.xlu1 %v9487_v48  ;;  %v9404_v52 = vsel %vm9340_vm8, %v10756_v62, %v9372_v19  ;;  %v15094_v19 = vstv %s15186_s10 }
 0x621   :  { %vm9343_vm11 = vcmp.gt.f32.partialorder %v10759_v24, 0.0  ;;  %v9375_v49 = vmul.f32 0.2, %v10759_v24  ;;  %v9405_v43 = vsel %vm9341_vm9, %v10757_v10, %v9373_v31  ;;  %v9448_v16 = vmul.f32 %v15024_v28, %v9404_v52 }
 0x622   :  { %v9449_v25 = vmul.f32 %v15028_v30, %v9405_v43  ;;  %v9406_v20 = vsel %vm9342_vm10, %v10758_v34, %v9374_v13 }
 0x623   :  { %v9301_v61 = vpop.f32.mrb[216].mxu1  ;;  %v9407_v39 = vsel %vm9343_vm11, %v10759_v24, %v9375_v49  ;;  %v9450_v15 = vmul.f32 %v15024_v28, %v9406_v20 }
 0x624   :  { %v10760_v5 = vadd.f32 %v9301_v61, %v15016_v32  ;;  %v9303_v60 = vpop.f32.mrb[217].mxu1  ;;  %v9490_v54 = vadd.f32 %v9449_v25, %v9448_v16  ;;  %v9451_v33 = vmul.f32 %v15028_v30, %v9407_v39 }
 0x625   :  { %v10761_v51 = vadd.f32 %v9303_v60, %v15019_v21  ;;  %v9305_v17 = vpop.f32.mrb[218].mxu1 }
 0x626   :  { %vm9344_vm12 = vcmp.gt.f32.partialorder %v10760_v5, 0.0  ;;  %v9376_v41 = vmul.f32 0.2, %v10760_v5  ;;  %v10762_v23 = vadd.f32 %v9305_v17, %v15016_v32  ;;  %v9307_v7 = vpop.f32.mrb[219].mxu1  ;;  %9491 = vadd.xlane.f32.xlu0 %v9490_v54  ;;  %v9493_v36 = vadd.f32 %v9451_v33, %v9450_v15 }
 0x627   :  { %vm9345_vm13 = vcmp.gt.f32.partialorder %v10761_v51, 0.0  ;;  %v9377_v6 = vmul.f32 0.2, %v10761_v51  ;;  %v10763_v45 = vadd.f32 %v9307_v7, %v15019_v21 }
 0x628   :  { %vm9346_vm14 = vcmp.gt.f32.partialorder %v10762_v23, 0.0  ;;  %v9378_v1 = vmul.f32 0.2, %v10762_v23  ;;  %9494 = vadd.xlane.f32.xlu1 %v9493_v36  ;;  %v9408_v63 = vsel %vm9344_vm12, %v10760_v5, %v9376_v41 }
 0x629   :  { %vm9347_vm15 = vcmp.gt.f32.partialorder %v10763_v45, 0.0  ;;  %v9379_v44 = vmul.f32 0.2, %v10763_v45  ;;  %v9409_v42 = vsel %vm9345_vm13, %v10761_v51, %v9377_v6  ;;  %v9452_v18 = vmul.f32 %v15024_v28, %v9408_v63 }
 0x62a   :  { %v9453_v4 = vmul.f32 %v15028_v30, %v9409_v42  ;;  %v9410_v46 = vsel %vm9346_vm14, %v10762_v23, %v9378_v1 }
 0x62b   :  { %v9311_v50 = vpop.f32.mrb[220].mxu1  ;;  %v9411_v58 = vsel %vm9347_vm15, %v10763_v45, %v9379_v44  ;;  %v9454_v14 = vmul.f32 %v15024_v28, %v9410_v46 }
 0x62c   :  { %v10764_v3 = vadd.f32 %v9311_v50, %v15016_v32  ;;  %v9313_v26 = vpop.f32.mrb[221].mxu1  ;;  %v9496_v12 = vadd.f32 %v9453_v4, %v9452_v18  ;;  %v9455_v53 = vmul.f32 %v15028_v30, %v9411_v58 }
 0x62d   :  { %v10765_v56 = vadd.f32 %v9313_v26, %v15019_v21  ;;  %v9315_v59 = vpop.f32.mrb[222].mxu1 }
 0x62e   :  { %vm9348_vm1 = vcmp.gt.f32.partialorder %v10764_v3, 0.0  ;;  %v9380_v38 = vmul.f32 0.2, %v10764_v3  ;;  %v10766_v27 = vadd.f32 %v9315_v59, %v15016_v32  ;;  %v9317_v9 = vpop.f32.mrb[223].mxu1  ;;  %9497 = vadd.xlane.f32.xlu0 %v9496_v12  ;;  %v9499_v29 = vadd.f32 %v9455_v53, %v9454_v14 }
 0x62f   :  { %vm9349_vm2 = vcmp.gt.f32.partialorder %v10765_v56, 0.0  ;;  %v9381_v55 = vmul.f32 0.2, %v10765_v56  ;;  %v10767_v8 = vadd.f32 %v9317_v9, %v15019_v21 }
 0x630   :  { %vm9350_vm3 = vcmp.gt.f32.partialorder %v10766_v27, 0.0  ;;  %v9382_v22 = vmul.f32 0.2, %v10766_v27  ;;  %9500 = vadd.xlane.f32.xlu1 %v9499_v29  ;;  %v9412_v2 = vsel %vm9348_vm1, %v10764_v3, %v9380_v38 }
 0x631   :  { %vm9351_vm4 = vcmp.gt.f32.partialorder %v10767_v8, 0.0  ;;  %v9383_v47 = vmul.f32 0.2, %v10767_v8  ;;  %v9413_v11 = vsel %vm9349_vm2, %v10765_v56, %v9381_v55  ;;  %v9456_v62 = vmul.f32 %v15024_v28, %v9412_v2 }
 0x632   :  { %v9457_v35 = vmul.f32 %v15028_v30, %v9413_v11  ;;  %v9414_v37 = vsel %vm9350_vm3, %v10766_v27, %v9382_v22 }
 0x633   :  { %v9415_v32 = vsel %vm9351_vm4, %v10767_v8, %v9383_v47  ;;  %v9458_v40 = vmul.f32 %v15024_v28, %v9414_v37 }
 0x634   :  { %v9502_v10 = vadd.f32 %v9457_v35, %v9456_v62  ;;  %v9459_v0 = vmul.f32 %v15028_v30, %v9415_v32 }
 0x636   :  { %9503 = vadd.xlane.f32.xlu0 %v9502_v10  ;;  %v9505_v21 = vadd.f32 %v9459_v0, %v9458_v40 }
 0x638   :  { %9506 = vadd.xlane.f32.xlu1 %v9505_v21 }
 0x68b   :  { %v9462_v34 = vpop.xlane.xlu0 %9461 }
 0x68c   :  { %v9510_v57 = vadd.f32 %v15094_v19, %v9462_v34 }
 0x68e   :  { %v10512_v48 = vmul.f32 -1.442695, %v9510_v57 }
 0x68f   :  { %v9465_v31 = vpop.xlane.xlu0 %9464 }
 0x690   :  { %11826 = vpow2.f32 %v10512_v48  ;;  %v9511_v24 = vadd.f32 %v15094_v19, %v9465_v31 }
 0x692   :  { %v10513_v28 = vmul.f32 -1.442695, %v9511_v24 }
 0x693   :  { %v9468_v13 = vpop.xlane.xlu1 %9467 }
 0x694   :  { %11828 = vpow2.f32 %v10513_v28  ;;  %v9512_v30 = vadd.f32 %v15094_v19, %v9468_v13 }
 0x696   :  { %v10514_v52 = vmul.f32 -1.442695, %v9512_v30 }
 0x697   :  { %v9471_v49 = vpop.xlane.xlu1 %9470 }
 0x698   :  { %11830 = vpow2.f32 %v10514_v52  ;;  %v9513_v43 = vadd.f32 %v15094_v19, %v9471_v49 }
 0x69a   :  { %v11827_v16 = vpop.eup %11826  ;;  %v10515_v25 = vmul.f32 -1.442695, %v9513_v43 }
 0x69b   :  { %v9574_v20 = vadd.f32 1.0, %v11827_v16  ;;  %v9474_v61 = vpop.xlane.xlu0 %9473 }
 0x69c   :  { %11832 = vpow2.f32 %v10515_v25  ;;  %v9514_v39 = vadd.f32 %v15094_v19, %v9474_v61 }
 0x69d   :  { %11834 = vrcp.f32 %v9574_v20  ;;  %v9477_v15 = vpop.xlane.xlu1 %9476 }
 0x69e   :  { %v11829_v5 = vpop.eup %11828  ;;  %v10516_v60 = vmul.f32 -1.442695, %v9514_v39  ;;  %v9515_v54 = vadd.f32 %v15094_v19, %v9477_v15 }
 0x69f   :  { %v9575_v33 = vadd.f32 1.0, %v11829_v5 }
 0x6a0   :  { %11836 = vpow2.f32 %v10516_v60  ;;  %v10517_v51 = vmul.f32 -1.442695, %v9515_v54 }
 0x6a1   :  { %11838 = vrcp.f32 %v9575_v33 }
 0x6a2   :  { %v11831_v17 = vpop.eup %11830  ;;  %11840 = vpow2.f32 %v10517_v51 }
 0x6a3   :  { %v9576_v41 = vadd.f32 1.0, %v11831_v17  ;;  %v9480_v23 = vpop.xlane.xlu0 %9479 }
 0x6a4   :  { %v9516_v7 = vadd.f32 %v15094_v19, %v9480_v23 }
 0x6a5   :  { %11842 = vrcp.f32 %v9576_v41  ;;  %v9483_v36 = vpop.xlane.xlu1 %9482 }
 0x6a6   :  { %v11833_v6 = vpop.eup %11832  ;;  %v10518_v45 = vmul.f32 -1.442695, %v9516_v7  ;;  %v9517_v1 = vadd.f32 %v15094_v19, %v9483_v36 }
 0x6a7   :  { %v11835_v63 = vpop.eup %11834  ;;  %v9577_v44 = vadd.f32 1.0, %v11833_v6 }
 0x6a8   :  { %9623 = vst.msk [vmem:[%s15187_s11] sm:$0xff] %vm9622_vm0, %v11835_v63  ;;  %11844 = vpow2.f32 %v10518_v45  ;;  %v10519_v42 = vmul.f32 -1.442695, %v9517_v1 }
 0x6a9   :  { %11846 = vrcp.f32 %v9577_v44 }
 0x6aa   :  { %v11837_v18 = vpop.eup %11836  ;;  %11848 = vpow2.f32 %v10519_v42 }
 0x6ab   :  { %v11839_v4 = vpop.eup %11838  ;;  %v9578_v46 = vadd.f32 1.0, %v11837_v18  ;;  %v9486_v50 = vpop.xlane.xlu0 %9485 }
 0x6ac   :  { %v11841_v58 = vpop.eup %11840  ;;  %9624 = vst.msk [vmem:[%s15187_s11 + $0x8] sm:$0xff] %vm9622_vm0, %v11839_v4  ;;  %v9518_v14 = vadd.f32 %v15094_v19, %v9486_v50 }
 0x6ad   :  { %11850 = vrcp.f32 %v9578_v46  ;;  %v9579_v3 = vadd.f32 1.0, %v11841_v58  ;;  %v9489_v26 = vpop.xlane.xlu1 %9488 }
 0x6ae   :  { %v10520_v12 = vmul.f32 -1.442695, %v9518_v14  ;;  %v9519_v53 = vadd.f32 %v15094_v19, %v9489_v26 }
 0x6af   :  { %v11843_v56 = vpop.eup %11842  ;;  %11852 = vrcp.f32 %v9579_v3 }
 0x6b0   :  { %9625 = vst.msk [vmem:[%s15187_s11 + $0x10] sm:$0xff] %vm9622_vm0, %v11843_v56  ;;  %11854 = vpow2.f32 %v10520_v12  ;;  %v10521_v59 = vmul.f32 -1.442695, %v9519_v53 }
 0x6b2   :  { %v11845_v38 = vpop.eup %11844  ;;  %11856 = vpow2.f32 %v10521_v59 }
 0x6b3   :  { %v11847_v27 = vpop.eup %11846  ;;  %v9580_v9 = vadd.f32 1.0, %v11845_v38  ;;  %v9492_v29 = vpop.xlane.xlu0 %9491 }
 0x6b4   :  { %v11849_v55 = vpop.eup %11848  ;;  %9626 = vst.msk [vmem:[%s15187_s11 + $0x18] sm:$0xff] %vm9622_vm0, %v11847_v27  ;;  %v9520_v8 = vadd.f32 %v15094_v19, %v9492_v29 }
 0x6b5   :  { %11858 = vrcp.f32 %v9580_v9  ;;  %v9581_v22 = vadd.f32 1.0, %v11849_v55  ;;  %v9495_v2 = vpop.xlane.xlu1 %9494 }
 0x6b6   :  { %v10522_v47 = vmul.f32 -1.442695, %v9520_v8  ;;  %v9521_v11 = vadd.f32 %v15094_v19, %v9495_v2 }
 0x6b7   :  { %v11851_v62 = vpop.eup %11850  ;;  %11860 = vrcp.f32 %v9581_v22 }
 0x6b8   :  { %9627 = vst.msk [vmem:[%s15187_s11 + $0x20] sm:$0xff] %vm9622_vm0, %v11851_v62  ;;  %11862 = vpow2.f32 %v10522_v47  ;;  %v10523_v35 = vmul.f32 -1.442695, %v9521_v11 }
 0x6b9   :  { %v11853_v37 = vpop.eup %11852 }
 0x6ba   :  { %v11855_v32 = vpop.eup %11854  ;;  %9628 = vst.msk [vmem:[%s15187_s11 + $0x28] sm:$0xff] %vm9622_vm0, %v11853_v37  ;;  %11864 = vpow2.f32 %v10523_v35 }
 0x6bb   :  { %v9582_v40 = vadd.f32 1.0, %v11855_v32  ;;  %v9498_v10 = vpop.xlane.xlu0 %9497 }
 0x6bc   :  { %v11857_v0 = vpop.eup %11856  ;;  %v9522_v21 = vadd.f32 %v15094_v19, %v9498_v10 }
 0x6bd   :  { %11866 = vrcp.f32 %v9582_v40  ;;  %v9583_v34 = vadd.f32 1.0, %v11857_v0  ;;  %v9501_v57 = vpop.xlane.xlu1 %9500 }
 0x6be   :  { %v10524_v48 = vmul.f32 -1.442695, %v9522_v21  ;;  %v9523_v31 = vadd.f32 %v15094_v19, %v9501_v57 }
 0x6bf   :  { %v11859_v24 = vpop.eup %11858  ;;  %11868 = vrcp.f32 %v9583_v34 }
 0x6c0   :  { %9629 = vst.msk [vmem:[%s15187_s11 + $0x30] sm:$0xff] %vm9622_vm0, %v11859_v24  ;;  %11870 = vpow2.f32 %v10524_v48  ;;  %v10525_v28 = vmul.f32 -1.442695, %v9523_v31 }
 0x6c1   :  { %v11861_v13 = vpop.eup %11860 }
 0x6c2   :  { %v11863_v30 = vpop.eup %11862  ;;  %9630 = vst.msk [vmem:[%s15187_s11 + $0x38] sm:$0xff] %vm9622_vm0, %v11861_v13  ;;  %11872 = vpow2.f32 %v10525_v28 }
 0x6c3   :  { %v9584_v52 = vadd.f32 1.0, %v11863_v30  ;;  %v9504_v49 = vpop.xlane.xlu0 %9503 }
 0x6c4   :  { %v11865_v43 = vpop.eup %11864  ;;  %v9524_v16 = vadd.f32 %v15094_v19, %v9504_v49 }
 0x6c5   :  { %11874 = vrcp.f32 %v9584_v52  ;;  %v9585_v25 = vadd.f32 1.0, %v11865_v43  ;;  %v9507_v20 = vpop.xlane.xlu1 %9506 }
 0x6c6   :  { %v10526_v61 = vmul.f32 -1.442695, %v9524_v16  ;;  %v9525_v39 = vadd.f32 %v15094_v19, %v9507_v20 }
 0x6c7   :  { %v11867_v15 = vpop.eup %11866  ;;  %11876 = vrcp.f32 %v9585_v25 }
 0x6c8   :  { %9631 = vst.msk [vmem:[%s15187_s11 + $0x40] sm:$0xff] %vm9622_vm0, %v11867_v15  ;;  %11878 = vpow2.f32 %v10526_v61  ;;  %v10527_v5 = vmul.f32 -1.442695, %v9525_v39 }
 0x6c9   :  { %v11869_v60 = vpop.eup %11868 }
 0x6ca   :  { %v11871_v54 = vpop.eup %11870  ;;  %9632 = vst.msk [vmem:[%s15187_s11 + $0x48] sm:$0xff] %vm9622_vm0, %v11869_v60  ;;  %11880 = vpow2.f32 %v10527_v5 }
 0x6cb   :  { %v9586_v33 = vadd.f32 1.0, %v11871_v54 }
 0x6cc   :  { %v11873_v51 = vpop.eup %11872 }
 0x6cd   :  { %11882 = vrcp.f32 %v9586_v33  ;;  %v9587_v19 = vadd.f32 1.0, %v11873_v51 }
 0x6cf   :  { %v11875_v17 = vpop.eup %11874  ;;  %11884 = vrcp.f32 %v9587_v19 }
 0x6d0   :  { %9633 = vst.msk [vmem:[%s15187_s11 + $0x50] sm:$0xff] %vm9622_vm0, %v11875_v17 }
 0x6d1   :  { %v11877_v41 = vpop.eup %11876 }
 0x6d2   :  { %v11879_v23 = vpop.eup %11878  ;;  %9634 = vst.msk [vmem:[%s15187_s11 + $0x58] sm:$0xff] %vm9622_vm0, %v11877_v41 }
 0x6d3   :  { %v9588_v7 = vadd.f32 1.0, %v11879_v23 }
 0x6d4   :  { %v11881_v36 = vpop.eup %11880 }
 0x6d5   :  { %11886 = vrcp.f32 %v9588_v7  ;;  %v9589_v6 = vadd.f32 1.0, %v11881_v36 }
 0x6d7   :  { %v11883_v45 = vpop.eup %11882  ;;  %11888 = vrcp.f32 %v9589_v6 }
 0x6d8   :  { %9635 = vst.msk [vmem:[%s15187_s11 + $0x60] sm:$0xff] %vm9622_vm0, %v11883_v45 }
 0x6d9   :  { %v11885_v1 = vpop.eup %11884 }
 0x6da   :  { %9636 = vst.msk [vmem:[%s15187_s11 + $0x68] sm:$0xff] %vm9622_vm0, %v11885_v1 }
 0x6df   :  { %v11887_v63 = vpop.eup %11886 }
 0x6e0   :  { %9637 = vst.msk [vmem:[%s15187_s11 + $0x70] sm:$0xff] %vm9622_vm0, %v11887_v63 }
 0x6e1   :  { %v11889_v44 = vpop.eup %11888 }
 0x6e2   :  { %9638 = vst.msk [vmem:[%s15187_s11 + $0x78] sm:$0xff] %vm9622_vm0, %v11889_v44 }
 0x6e3   :  { %9643 = vsyncpa [#allocation4], 1 }
 0x6e4   :  { %9644 = vsyncpa [#allocation6], 1 }
 0x6e5   :  { %9645 = vsyncpa [#allocation9], 1 }
 0x6e6   :  { %9646 = vsyncpa [#allocation12], 1 }
 0x6e7   :  { %9647 = vsyncpa [#allocation15], 1 }

</bundles_post_ra>
